<compile_context>
chip_gen: v7x
topology: tpu7x:2x2x1
jax: 0.10.0
libtpu: 0.0.40
codegen_flags: <defaults>
</compile_context>

<pallas_src>
import functools

import numpy as np
import jax
import jax.numpy as jnp
from jax.experimental import pallas as pl
from jax.experimental.pallas import tpu as pltpu


def _round_up(a, b):
    return (a + b - 1) // b * b


# ----------------------------------------------------------------------------
# interpolation grid + bilinear matrices (verbatim semantics, numpy glue)
# ----------------------------------------------------------------------------
def make_interpolation_grid(K=5, N=224, gamma=0.1):
    a = np.zeros((K * K, N, N), dtype="f")
    sz = N / float(K)
    for row in range(N):
        for col in range(N):
            for ki in range(K):
                for kj in range(K):
                    k = ki * K + kj
                    i, j = (int(row / sz), int(col / sz))
                    a[k, row, col] = np.exp(-gamma * ((ki - i) ** 2 + (kj - j) ** 2))
    a = a / a.sum(axis=0)
    return a[np.newaxis, ...]


def bilinear_matrix_1d(out_size, in_size):
    # align_corners=True (matches the pixelnet-era F.upsample default).
    m = np.zeros((out_size, in_size), dtype=np.float32)
    if in_size == 1:
        m[:, 0] = 1.0
        return m
    if out_size == 1:
        m[0, 0] = 1.0
        return m
    scale = (in_size - 1) / (out_size - 1)
    for i in range(out_size):
        s = min(max(i * scale, 0.0), in_size - 1)
        i0 = int(np.floor(s))
        i1 = min(i0 + 1, in_size - 1)
        f = s - i0
        m[i, i0] += 1.0 - f
        m[i, i1] += f
    return m


# ----------------------------------------------------------------------------
# Pallas kernel: tiled matmul + bias (+ ReLU), bf16 MXU, f32 VMEM accumulator
# ----------------------------------------------------------------------------
def _matmul_bias_kernel(x_ref, w_ref, b_ref, o_ref, acc_ref, *, relu):
    @pl.when(pl.program_id(2) == 0)
    def _init():
        acc_ref[...] = jnp.zeros_like(acc_ref)

    acc_ref[...] += jnp.dot(x_ref[...], w_ref[...],
                            preferred_element_type=jnp.float32)

    @pl.when(pl.program_id(2) == pl.num_programs(2) - 1)
    def _finalize():
        r = acc_ref[...] + b_ref[...]
        if relu:
            r = jnp.maximum(r, 0.0)
        o_ref[...] = r.astype(o_ref.dtype)


def pallas_matmul_bias(x, w, b, relu=False, out_dtype=jnp.float32,
                       operand_dtype=jnp.bfloat16):
    """(M, K) @ (K, N) + b[N], optional ReLU.  M/N/K tiled, N lane-dense."""
    M, K = x.shape
    Kw, N = w.shape
    assert Kw == K

    x = x.astype(operand_dtype)
    w = w.astype(operand_dtype)
    b = b.reshape(1, N).astype(jnp.float32)

    if M <= 256:
        Mp = _round_up(M, 8)
        tm = Mp
    else:
        tm = 256
        Mp = _round_up(M, tm)
    if K <= 512:
        Kp, tk = K, K
    else:
        tk = 512
        Kp = _round_up(K, tk)
    tn = 128
    Np = _round_up(N, tn)                 # lane-dense output, no masked stores

    if (Mp, Kp) != (M, K):
        x = jnp.pad(x, ((0, Mp - M), (0, Kp - K)))
    if (Kp, Np) != (K, N):
        w = jnp.pad(w, ((0, Kp - K), (0, Np - N)))
    if Np != N:
        b = jnp.pad(b, ((0, 0), (0, Np - N)))

    out = pl.pallas_call(
        functools.partial(_matmul_bias_kernel, relu=relu),
        out_shape=jax.ShapeDtypeStruct((Mp, Np), out_dtype),
        grid=(Mp // tm, Np // tn, Kp // tk),
        in_specs=[
            pl.BlockSpec((tm, tk), lambda i, j, k: (i, k)),
            pl.BlockSpec((tk, tn), lambda i, j, k: (k, j)),
            pl.BlockSpec((1, tn), lambda i, j, k: (0, j)),
        ],
        out_specs=pl.BlockSpec((tm, tn), lambda i, j, k: (i, j)),
        scratch_shapes=[pltpu.VMEM((tm, tn), jnp.float32)],
        compiler_params=pltpu.CompilerParams(
            dimension_semantics=("parallel", "parallel", "arbitrary")),
    )(x, w, b)
    if (Mp, Np) != (M, N):
        out = out[:M, :N]
    return out


# ----------------------------------------------------------------------------
# Pallas kernel: direct 3x3 conv + ReLU (im2col fused in-kernel), NHWC
# ----------------------------------------------------------------------------
def _conv3x3_kernel(x_ref, w_ref, b_ref, o_ref, *, wp):
    # x_ref: (rows_in, Cin) bf16 flattened padded image of one batch element
    # w_ref: (3, 3, Cin, tn) bf16 ; b_ref: (1, tn) f32 ; o_ref: (rows_out, tn)
    rout = o_ref.shape[0]
    x = x_ref[...]
    w = w_ref[...]
    acc = jnp.zeros(o_ref.shape, jnp.float32)
    for di in range(3):
        for dj in range(3):
            off = di * wp + dj
            acc = acc + jnp.dot(x[off:off + rout, :], w[di, dj],
                                preferred_element_type=jnp.float32)
    acc = acc + b_ref[...]
    acc = jnp.maximum(acc, 0.0)
    o_ref[...] = acc.astype(o_ref.dtype)


def conv3x3_relu(x, w, b):
    """NHWC 3x3 same-padding conv + ReLU.

    The padded image is flattened to (rows, Cin); each of the 9 taps is a
    constant row offset, so the conv is 9 row-shifted bf16 matmuls accumulated
    in f32 inside the kernel -- no patch matrix ever touches HBM.
    """
    B, H, W, Cin = x.shape
    Cout = w.shape[0]
    Wp = W + 2
    rin = (H + 3) * Wp            # 1 top + 2 bottom pad rows keep taps in-bounds
    rout = H * Wp
    xp = jnp.pad(x.astype(jnp.bfloat16), ((0, 0), (1, 2), (1, 1), (0, 0)))
    xf = xp.reshape(B, rin, Cin)
    wt = jnp.transpose(w, (2, 3, 1, 0)).astype(jnp.bfloat16)   # (3,3,Cin,Cout)
    b2 = b.reshape(1, Cout).astype(jnp.float32)

    tn = Cout if Cout <= 128 else 128
    if Cout % tn:
        tn = Cout
    out = pl.pallas_call(
        functools.partial(_conv3x3_kernel, wp=Wp),
        out_shape=jax.ShapeDtypeStruct((B, rout, Cout), jnp.bfloat16),
        grid=(B, Cout // tn),
        in_specs=[
            pl.BlockSpec((None, rin, Cin), lambda bi, ni: (bi, 0, 0)),
            pl.BlockSpec((3, 3, Cin, tn), lambda bi, ni: (0, 0, 0, ni)),
            pl.BlockSpec((1, tn), lambda bi, ni: (0, ni)),
        ],
        out_specs=pl.BlockSpec((None, rout, tn), lambda bi, ni: (bi, 0, ni)),
        compiler_params=pltpu.CompilerParams(
            dimension_semantics=("parallel", "parallel")),
    )(xf, wt, b2)
    # drop the 2 garbage columns per image row introduced by the flat layout
    # TODO(synk): at full 224x224 scale this whole-image-per-step kernel needs
    # row-halo tiling of the H axis to bound VMEM; fine at demo scale.
    return out.reshape(B, H, Wp, Cout)[:, :, :W, :]


# ----------------------------------------------------------------------------
# Pallas kernel: 2x2 max-pool, NHWC, lane-dense slices only
# ----------------------------------------------------------------------------
def _maxpool_kernel(x_ref, o_ref):
    v = x_ref[...]                                     # (tm, 2, Wo, 2*C)
    v = jnp.maximum(v[:, 0], v[:, 1])                  # vertical max
    c = o_ref.shape[-1]
    o_ref[...] = jnp.maximum(v[..., :c], v[..., c:])   # horizontal max


def pallas_maxpool2x2(x):
    B, H, W, C = x.shape
    Ho, Wo = H // 2, W // 2
    M = B * Ho
    xr = x.reshape(M, 2, Wo, 2 * C)
    if M <= 256:
        tm, Mp = M, M
    else:
        tm = 256
        Mp = _round_up(M, tm)
        xr = jnp.pad(xr, ((0, Mp - M), (0, 0), (0, 0), (0, 0)))
    out = pl.pallas_call(
        _maxpool_kernel,
        out_shape=jax.ShapeDtypeStruct((Mp, Wo, C), x.dtype),
        grid=(Mp // tm,),
        in_specs=[pl.BlockSpec((tm, 2, Wo, 2 * C), lambda i: (i, 0, 0, 0))],
        out_specs=pl.BlockSpec((tm, Wo, C), lambda i: (i, 0, 0)),
        compiler_params=pltpu.CompilerParams(dimension_semantics=("parallel",)),
    )(xr)
    return out[:M].reshape(B, Ho, Wo, C)


# ----------------------------------------------------------------------------
# Pallas kernel: sum 5 heads + sigmoid + interpolation-grid weighted sum
# ----------------------------------------------------------------------------
def _fuse_kernel(u0_ref, u1_ref, u2_ref, u3_ref, u4_ref, g_ref, o_ref):
    logits = (u0_ref[...] + u1_ref[...] + u2_ref[...]
              + u3_ref[...] + u4_ref[...])             # (KK, tr, N)
    s = jax.nn.sigmoid(logits)                         # exp runs on the EUP
    o_ref[...] = jnp.sum(s * g_ref[...], axis=0)       # weighted channel sum


def pallas_fuse(ups, grid_w):
    B, KK, N, _ = ups[0].shape
    tr = 8 if N % 8 == 0 else N
    u_spec = pl.BlockSpec((None, KK, tr, N), lambda b, r: (b, 0, r, 0))
    return pl.pallas_call(
        _fuse_kernel,
        out_shape=jax.ShapeDtypeStruct((B, N, N), jnp.float32),
        grid=(B, N // tr),
        in_specs=[u_spec] * 5
                 + [pl.BlockSpec((KK, tr, N), lambda b, r: (0, r, 0))],
        out_specs=pl.BlockSpec((None, tr, N), lambda b, r: (b, r, 0)),
        compiler_params=pltpu.CompilerParams(
            dimension_semantics=("parallel", "parallel")),
    )(*[u.astype(jnp.float32) for u in ups], grid_w.astype(jnp.float32))


# ----------------------------------------------------------------------------
# Glue (parameter folding, separable upsample, stage loop) in plain JAX
# ----------------------------------------------------------------------------
def bn_conv1x1_head(x, bn, wh, bh, eps=1e-5):
    # eval-mode BatchNorm2d folded into the 1x1 conv, applied via Pallas matmul.
    gamma, beta, mean, var = bn
    B, H, W, C = x.shape
    KK = wh.shape[0]
    w2 = wh.reshape(KK, C)
    scale = gamma / jnp.sqrt(var + eps)
    w_fold = (w2 * scale[None, :]).T                 # (C, KK)
    b_fold = bh + w2 @ (beta - mean * scale)         # (KK,)
    y = pallas_matmul_bias(x.reshape(B * H * W, C).astype(jnp.float32),
                           w_fold, b_fold, relu=False,
                           operand_dtype=jnp.float32)   # tiny FLOPs; keep f32
    return y.reshape(B, H, W, KK)


def upsample_bilinear(t, wy, wx):
    """Separable bilinear upsample: rows matmul then cols matmul (bf16 MXU)."""
    B, h, w, KK = t.shape
    Nout = wy.shape[0]
    zero = jnp.zeros((Nout,), jnp.float32)
    s = t.transpose(0, 2, 3, 1).reshape(B * w * KK, h)
    s = pallas_matmul_bias(s, wy.T, zero)                           # (B*w*KK, N)
    s = s.reshape(B, w, KK, Nout).transpose(0, 2, 3, 1).reshape(B * KK * Nout, w)
    s = pallas_matmul_bias(s, wx.T, zero)                           # (B*KK*N, N)
    return s.reshape(B, KK, Nout, Nout)


def base_forward(x_nchw, params, grid_w, up_mats, N):
    # mirrors Base.forward: 5 VGG stages, hypercolumn heads, bilinear upsample
    # to NxN, sum, sigmoid, interpolation-grid weighted sum over K*K channels.
    x = jnp.transpose(x_nchw, (0, 2, 3, 1))          # NCHW -> NHWC, once
    ups = []
    for si in range(5):
        if si > 0:
            x = pallas_maxpool2x2(x)
        for (w, b) in params["stages"][si]:
            x = conv3x3_relu(x, w, b)
        bn, wh, bh = params["heads"][si]
        h = bn_conv1x1_head(x, bn, wh, bh)           # (B, H, W, KK) f32
        wy = up_mats[h.shape[1]]
        ups.append(upsample_bilinear(h, wy, wy))     # (B, KK, N, N)
    return pallas_fuse(ups, grid_w)


# ----------------------------------------------------------------------------
# deterministic synthetic parameters (VGG16-like structure, scaled down)
# ----------------------------------------------------------------------------
def init_params(key, in_ch, stage_channels, convs_per_stage, KK):
    params = {"stages": [], "heads": []}
    c_in = in_ch
    for (c_out, n_conv) in zip(stage_channels, convs_per_stage):
        convs = []
        for _ in range(n_conv):
            key, k1 = jax.random.split(key)
            fan_in = c_in * 9
            w = jax.random.normal(k1, (c_out, c_in, 3, 3), jnp.float32) * np.sqrt(2.0 / fan_in)
            b = jnp.zeros((c_out,), jnp.float32)
            convs.append((w, b))
            c_in = c_out
        params["stages"].append(convs)
        key, k1, k2, k3, k4, k5 = jax.random.split(key, 6)
        gamma = 1.0 + 0.1 * jax.random.normal(k1, (c_out,), jnp.float32)
        beta = 0.1 * jax.random.normal(k2, (c_out,), jnp.float32)
        mean = 0.1 * jax.random.normal(k3, (c_out,), jnp.float32)
        var = 0.9 + 0.1 * jnp.abs(jax.random.normal(k4, (c_out,), jnp.float32))
        wh = jax.random.normal(k5, (KK, c_out, 1, 1), jnp.float32) * np.sqrt(2.0 / c_out)
        bh = jnp.zeros((KK,), jnp.float32)
        params["heads"].append(((gamma, beta, mean, var), wh, bh))
    return params


# ----------------------------------------------------------------------------
# pure-JAX reference (numerical sanity check of the Pallas path)
# ----------------------------------------------------------------------------
def ref_forward(x_nchw, params, grid_w, up_mats, N):
    bf16 = jnp.bfloat16
    hp = jax.lax.Precision.HIGHEST
    KK = grid_w.shape[0]
    x = jnp.transpose(x_nchw, (0, 2, 3, 1))
    ups = []
    for si in range(5):
        if si > 0:
            B_, H_, W_, C_ = x.shape
            x = x.reshape(B_, H_ // 2, 2, W_ // 2, 2, C_).max(axis=(2, 4))
        for (w, b) in params["stages"][si]:
            y = jax.lax.conv_general_dilated(
                x.astype(bf16), jnp.transpose(w, (2, 3, 1, 0)).astype(bf16),
                window_strides=(1, 1), padding="SAME",
                dimension_numbers=("NHWC", "HWIO", "NHWC"),
                preferred_element_type=jnp.float32)
            x = jnp.maximum(y + b, 0.0).astype(bf16)
        (gamma, beta, mean, var), wh, bh = params["heads"][si]
        B_, H_, W_, C_ = x.shape
        xb = (x.astype(jnp.float32) - mean) / jnp.sqrt(var + 1e-5) * gamma + beta
        w2 = wh.reshape(KK, C_)
        logits = (jnp.dot(xb.reshape(-1, C_), w2.T, precision=hp,
                          preferred_element_type=jnp.float32)
                  + bh).reshape(B_, H_, W_, KK)
        wy = up_mats[H_]
        s1 = jnp.einsum("bhwk,Ih->bwkI", logits.astype(bf16), wy.astype(bf16),
                        preferred_element_type=jnp.float32)
        u = jnp.einsum("bwkI,Jw->bkIJ", s1.astype(bf16), wy.astype(bf16),
                       preferred_element_type=jnp.float32)
        ups.append(u)
    s = jax.nn.sigmoid(ups[0] + ups[1] + ups[2] + ups[3] + ups[4])
    return jnp.sum(s * grid_w[None], axis=1)


# ----------------------------------------------------------------------------
if __name__ == "__main__":
    key = jax.random.PRNGKey(0)
    B, Cin, N, K = 2, 3, 32, 5          # small shapes; real module uses N=224
    KK = K * K
    stage_channels = [8, 16, 32, 32, 32]      # scaled-down VGG16 widths
    convs_per_stage = [2, 2, 3, 3, 3]         # VGG16 conv counts per stage

    kx, kp = jax.random.split(key)
    x = jax.random.normal(kx, (B, Cin, N, N), jnp.float32)   # NCHW, like PyTorch
    params = init_params(kp, Cin, stage_channels, convs_per_stage, KK)

    grid_w = jnp.asarray(make_interpolation_grid(K=K, N=N, gamma=0.1)[0])  # (KK,N,N)

    # 1-D bilinear interpolation matrices for every stage resolution (separable)
    up_mats = {}
    h = N
    for si in range(5):
        if si > 0:
            h //= 2
        if h not in up_mats:
            up_mats[h] = jnp.asarray(bilinear_matrix_1d(N, h))   # (N, h)

    out = base_forward(x, params, grid_w, up_mats, N)
    out = jax.block_until_ready(out)
    assert out.shape == (B, N, N)

    ref = ref_forward(x, params, grid_w, up_mats, N)
    ref = jax.block_until_ready(ref)
    max_diff = float(jnp.max(jnp.abs(out - ref)))
    assert np.isfinite(max_diff) and max_diff < 5e-2, f"mismatch vs reference: {max_diff}"

    print("KERNEL_OK")
</pallas_src>

<mosaic_0001>
module attributes {stable_mosaic.version = 11 : i64} {
  func.func @_conv3x3_kernel(%arg0: i32, %arg1: i32, %arg2: memref<1x1190x3xbf16, #tpu.memory_space<vmem>>, %arg3: memref<3x3x3x8xbf16, #tpu.memory_space<vmem>>, %arg4: memref<1x8xf32, #tpu.memory_space<vmem>>, %arg5: memref<1x1088x8xbf16, #tpu.memory_space<vmem>>) attributes {dimension_semantics = [#tpu.dimension_semantics<parallel>, #tpu.dimension_semantics<parallel>], iteration_bounds = array<i64: 2, 1>, scalar_prefetch = 0 : i64, scratch_operands = 0 : i64, tpu.core_type = #tpu.core_type<tc>, window_params = [{transform_indices = @transform_0, window_bounds = array<i64: 1, 1190, 3>}, {transform_indices = @transform_1, window_bounds = array<i64: 3, 3, 3, 8>}, {transform_indices = @transform_2, window_bounds = array<i64: 1, 8>}, {transform_indices = @transform_3, window_bounds = array<i64: 1, 1088, 8>}]} {
    %c0 = arith.constant 0 : index
    %c0_0 = arith.constant 0 : index
    %c0_1 = arith.constant 0 : index
    %0 = vector.load %arg2[%c0, %c0_0, %c0_1] : memref<1x1190x3xbf16, #tpu.memory_space<vmem>>, vector<1x1190x3xbf16>
    %1 = vector.shape_cast %0 : vector<1x1190x3xbf16> to vector<1190x3xbf16>
    %c0_2 = arith.constant 0 : index
    %c0_3 = arith.constant 0 : index
    %c0_4 = arith.constant 0 : index
    %c0_5 = arith.constant 0 : index
    %2 = vector.load %arg3[%c0_2, %c0_3, %c0_4, %c0_5] : memref<3x3x3x8xbf16, #tpu.memory_space<vmem>>, vector<3x3x3x8xbf16>
    %cst = arith.constant 0.000000e+00 : f32
    %3 = vector.broadcast %cst : f32 to vector<1088x8xf32>
    %4 = vector.extract_strided_slice %1 {offsets = [0, 0], sizes = [1088, 3], strides = [1, 1]} : vector<1190x3xbf16> to vector<1088x3xbf16>
    %5 = vector.extract_strided_slice %2 {offsets = [0, 0, 0, 0], sizes = [1, 1, 3, 8], strides = [1, 1, 1, 1]} : vector<3x3x3x8xbf16> to vector<1x1x3x8xbf16>
    %6 = vector.shape_cast %5 : vector<1x1x3x8xbf16> to vector<3x8xbf16>
    %cst_6 = arith.constant dense<0.000000e+00> : vector<1088x8xf32>
    %7 = tpu.matmul %4, %6, %cst_6 {dimension_numbers = #tpu.dot_dimension_numbers<[1], [0], [0], [1], [0, 0, 1, 1], [], []>} : vector<1088x3xbf16>, vector<3x8xbf16>, vector<1088x8xf32> -> vector<1088x8xf32>
    %8 = arith.addf %3, %7 : vector<1088x8xf32>
    %9 = vector.extract_strided_slice %1 {offsets = [1, 0], sizes = [1088, 3], strides = [1, 1]} : vector<1190x3xbf16> to vector<1088x3xbf16>
    %10 = vector.extract_strided_slice %2 {offsets = [0, 1, 0, 0], sizes = [1, 1, 3, 8], strides = [1, 1, 1, 1]} : vector<3x3x3x8xbf16> to vector<1x1x3x8xbf16>
    %11 = vector.shape_cast %10 : vector<1x1x3x8xbf16> to vector<3x8xbf16>
    %cst_7 = arith.constant dense<0.000000e+00> : vector<1088x8xf32>
    %12 = tpu.matmul %9, %11, %cst_7 {dimension_numbers = #tpu.dot_dimension_numbers<[1], [0], [0], [1], [0, 0, 1, 1], [], []>} : vector<1088x3xbf16>, vector<3x8xbf16>, vector<1088x8xf32> -> vector<1088x8xf32>
    %13 = arith.addf %8, %12 : vector<1088x8xf32>
    %14 = vector.extract_strided_slice %1 {offsets = [2, 0], sizes = [1088, 3], strides = [1, 1]} : vector<1190x3xbf16> to vector<1088x3xbf16>
    %15 = vector.extract_strided_slice %2 {offsets = [0, 2, 0, 0], sizes = [1, 1, 3, 8], strides = [1, 1, 1, 1]} : vector<3x3x3x8xbf16> to vector<1x1x3x8xbf16>
    %16 = vector.shape_cast %15 : vector<1x1x3x8xbf16> to vector<3x8xbf16>
    %cst_8 = arith.constant dense<0.000000e+00> : vector<1088x8xf32>
    %17 = tpu.matmul %14, %16, %cst_8 {dimension_numbers = #tpu.dot_dimension_numbers<[1], [0], [0], [1], [0, 0, 1, 1], [], []>} : vector<1088x3xbf16>, vector<3x8xbf16>, vector<1088x8xf32> -> vector<1088x8xf32>
    %18 = arith.addf %13, %17 : vector<1088x8xf32>
    %19 = vector.extract_strided_slice %1 {offsets = [34, 0], sizes = [1088, 3], strides = [1, 1]} : vector<1190x3xbf16> to vector<1088x3xbf16>
    %20 = vector.extract_strided_slice %2 {offsets = [1, 0, 0, 0], sizes = [1, 1, 3, 8], strides = [1, 1, 1, 1]} : vector<3x3x3x8xbf16> to vector<1x1x3x8xbf16>
    %21 = vector.shape_cast %20 : vector<1x1x3x8xbf16> to vector<3x8xbf16>
    %cst_9 = arith.constant dense<0.000000e+00> : vector<1088x8xf32>
    %22 = tpu.matmul %19, %21, %cst_9 {dimension_numbers = #tpu.dot_dimension_numbers<[1], [0], [0], [1], [0, 0, 1, 1], [], []>} : vector<1088x3xbf16>, vector<3x8xbf16>, vector<1088x8xf32> -> vector<1088x8xf32>
    %23 = arith.addf %18, %22 : vector<1088x8xf32>
    %24 = vector.extract_strided_slice %1 {offsets = [35, 0], sizes = [1088, 3], strides = [1, 1]} : vector<1190x3xbf16> to vector<1088x3xbf16>
    %25 = vector.extract_strided_slice %2 {offsets = [1, 1, 0, 0], sizes = [1, 1, 3, 8], strides = [1, 1, 1, 1]} : vector<3x3x3x8xbf16> to vector<1x1x3x8xbf16>
    %26 = vector.shape_cast %25 : vector<1x1x3x8xbf16> to vector<3x8xbf16>
    %cst_10 = arith.constant dense<0.000000e+00> : vector<1088x8xf32>
    %27 = tpu.matmul %24, %26, %cst_10 {dimension_numbers = #tpu.dot_dimension_numbers<[1], [0], [0], [1], [0, 0, 1, 1], [], []>} : vector<1088x3xbf16>, vector<3x8xbf16>, vector<1088x8xf32> -> vector<1088x8xf32>
    %28 = arith.addf %23, %27 : vector<1088x8xf32>
    %29 = vector.extract_strided_slice %1 {offsets = [36, 0], sizes = [1088, 3], strides = [1, 1]} : vector<1190x3xbf16> to vector<1088x3xbf16>
    %30 = vector.extract_strided_slice %2 {offsets = [1, 2, 0, 0], sizes = [1, 1, 3, 8], strides = [1, 1, 1, 1]} : vector<3x3x3x8xbf16> to vector<1x1x3x8xbf16>
    %31 = vector.shape_cast %30 : vector<1x1x3x8xbf16> to vector<3x8xbf16>
    %cst_11 = arith.constant dense<0.000000e+00> : vector<1088x8xf32>
    %32 = tpu.matmul %29, %31, %cst_11 {dimension_numbers = #tpu.dot_dimension_numbers<[1], [0], [0], [1], [0, 0, 1, 1], [], []>} : vector<1088x3xbf16>, vector<3x8xbf16>, vector<1088x8xf32> -> vector<1088x8xf32>
    %33 = arith.addf %28, %32 : vector<1088x8xf32>
    %34 = vector.extract_strided_slice %1 {offsets = [68, 0], sizes = [1088, 3], strides = [1, 1]} : vector<1190x3xbf16> to vector<1088x3xbf16>
    %35 = vector.extract_strided_slice %2 {offsets = [2, 0, 0, 0], sizes = [1, 1, 3, 8], strides = [1, 1, 1, 1]} : vector<3x3x3x8xbf16> to vector<1x1x3x8xbf16>
    %36 = vector.shape_cast %35 : vector<1x1x3x8xbf16> to vector<3x8xbf16>
    %cst_12 = arith.constant dense<0.000000e+00> : vector<1088x8xf32>
    %37 = tpu.matmul %34, %36, %cst_12 {dimension_numbers = #tpu.dot_dimension_numbers<[1], [0], [0], [1], [0, 0, 1, 1], [], []>} : vector<1088x3xbf16>, vector<3x8xbf16>, vector<1088x8xf32> -> vector<1088x8xf32>
    %38 = arith.addf %33, %37 : vector<1088x8xf32>
    %39 = vector.extract_strided_slice %1 {offsets = [69, 0], sizes = [1088, 3], strides = [1, 1]} : vector<1190x3xbf16> to vector<1088x3xbf16>
    %40 = vector.extract_strided_slice %2 {offsets = [2, 1, 0, 0], sizes = [1, 1, 3, 8], strides = [1, 1, 1, 1]} : vector<3x3x3x8xbf16> to vector<1x1x3x8xbf16>
    %41 = vector.shape_cast %40 : vector<1x1x3x8xbf16> to vector<3x8xbf16>
    %cst_13 = arith.constant dense<0.000000e+00> : vector<1088x8xf32>
    %42 = tpu.matmul %39, %41, %cst_13 {dimension_numbers = #tpu.dot_dimension_numbers<[1], [0], [0], [1], [0, 0, 1, 1], [], []>} : vector<1088x3xbf16>, vector<3x8xbf16>, vector<1088x8xf32> -> vector<1088x8xf32>
    %43 = arith.addf %38, %42 : vector<1088x8xf32>
    %44 = vector.extract_strided_slice %1 {offsets = [70, 0], sizes = [1088, 3], strides = [1, 1]} : vector<1190x3xbf16> to vector<1088x3xbf16>
    %45 = vector.extract_strided_slice %2 {offsets = [2, 2, 0, 0], sizes = [1, 1, 3, 8], strides = [1, 1, 1, 1]} : vector<3x3x3x8xbf16> to vector<1x1x3x8xbf16>
    %46 = vector.shape_cast %45 : vector<1x1x3x8xbf16> to vector<3x8xbf16>
    %cst_14 = arith.constant dense<0.000000e+00> : vector<1088x8xf32>
    %47 = tpu.matmul %44, %46, %cst_14 {dimension_numbers = #tpu.dot_dimension_numbers<[1], [0], [0], [1], [0, 0, 1, 1], [], []>} : vector<1088x3xbf16>, vector<3x8xbf16>, vector<1088x8xf32> -> vector<1088x8xf32>
    %48 = arith.addf %43, %47 : vector<1088x8xf32>
    %c0_15 = arith.constant 0 : index
    %c0_16 = arith.constant 0 : index
    %49 = vector.load %arg4[%c0_15, %c0_16] : memref<1x8xf32, #tpu.memory_space<vmem>>, vector<1x8xf32>
    %50 = vector.broadcast %49 : vector<1x8xf32> to vector<1088x8xf32>
    %51 = arith.addf %48, %50 : vector<1088x8xf32>
    %cst_17 = arith.constant 0.000000e+00 : f32
    %52 = vector.broadcast %cst_17 : f32 to vector<1088x8xf32>
    %53 = arith.maximumf %51, %52 : vector<1088x8xf32>
    %54 = arith.truncf %53 : vector<1088x8xf32> to vector<1088x8xbf16>
    %c0_18 = arith.constant 0 : index
    %c0_19 = arith.constant 0 : index
    %c0_20 = arith.constant 0 : index
    %55 = vector.load %arg5[%c0_18, %c0_19, %c0_20] : memref<1x1088x8xbf16, #tpu.memory_space<vmem>>, vector<1x1088x8xbf16>
    %56 = vector.shape_cast %55 : vector<1x1088x8xbf16> to vector<1088x8xbf16>
    %57 = vector.shape_cast %54 : vector<1088x8xbf16> to vector<1x1088x8xbf16>
    tpu.vector_store %arg5[%c0_18, %c0_19, %c0_20], %57 {strides = array<i32>} : memref<1x1088x8xbf16, #tpu.memory_space<vmem>>, vector<1x1088x8xbf16>,
    return
  }
  func.func @transform_0(%arg0: i32, %arg1: i32) -> (i32, i32, i32) {
    %c0_i32 = arith.constant 0 : i32
    %c0_i32_0 = arith.constant 0 : i32
    %c0_i32_1 = arith.constant 0 : i32
    return %arg0, %c0_i32, %c0_i32_0 : i32, i32, i32
  }
  func.func @transform_1(%arg0: i32, %arg1: i32) -> (i32, i32, i32, i32) {
    %c0_i32 = arith.constant 0 : i32
    %c0_i32_0 = arith.constant 0 : i32
    %c0_i32_1 = arith.constant 0 : i32
    %c0_i32_2 = arith.constant 0 : i32
    return %c0_i32, %c0_i32_0, %c0_i32_1, %arg1 : i32, i32, i32, i32
  }
  func.func @transform_2(%arg0: i32, %arg1: i32) -> (i32, i32) {
    %c0_i32 = arith.constant 0 : i32
    %c0_i32_0 = arith.constant 0 : i32
    return %c0_i32, %arg1 : i32, i32
  }
  func.func @transform_3(%arg0: i32, %arg1: i32) -> (i32, i32, i32) {
    %c0_i32 = arith.constant 0 : i32
    %c0_i32_0 = arith.constant 0 : i32
    return %arg0, %c0_i32, %arg1 : i32, i32, i32
  }
}

</mosaic_0001>

<bundles_post_ra>
// kernel: tpu_custom_call.1
= control target key start
LH: loop header
LB: loop body
LE: loop exit
PB: predicated region body
PF: predicated region fallthrough
CT: control target
= control target key end

     0   :  { %s15137_s12 = smov 0   ;;  %s15139_s13 = smov 0   ;;  %s18800_s0 = inlined_call_operand.vmem [shape: bf16[2,1190,3], index: 0, kind: input, shape index: {}]   ;;  %s18801_s1 = inlined_call_operand.vmem [shape: bf16[3,3,3,8], index: 1, kind: input, shape index: {}]   ;;  %s18802_s2 = inlined_call_operand.vmem [shape: f32[1,8], index: 2, kind: input, shape index: {}]   ;;  %s18803_s3 = inlined_call_operand.vmem [shape: bf16[2,1088,8], index: 3, kind: output, shape index: {}]  }
   0x1   :  { %s15141_s14 = smov 0  }
   0x2 LB: > { %s25_s15 = sadd.s32 1, %s15110_s13  ;;  %p10925_p0 = scmp.ge.s32.totalorder %s15114_s14, 1  ;;  %s15114_s14 = sphi %s15141_s14, %s13_s14   ;;  %s15110_s13 = sphi %s15139_s13, %s19672_s13   ;;  %s15106_s12 = sphi %s15137_s12, %s19671_s12  }
   0x3   : > { %p27_p1 = scmp.ge.s32.totalorder %s25_s15, 2  ;;  %p168_p2 = scmp.lt.s32.totalorder %s15114_s14, 3 }
   0x5   : > { %s19674_s15 = smov (%p27_p1, %s25_s15), 0  ;;  %p169_p3 = pnand %p10925_p0, %p168_p2 }
   0x7   : > { %172 = sbr.rel (%p169_p3) target bundleno = 1471 (0x5bf), region = 32 }
   0xe   : > { %v369_v0 = vld [vmem:[%s18801_s1 + $0x2] sm:$0x3]  ;;  %vm1474_vm0 = vcmask 1040384   ;;  %vm1475_vm1 = vcmask 1041408   ;;  %p202_p4 = scmp.lt.s32.totalorder %s15106_s12, 1  ;;  %v15116_v1 = vmov 65535  }
   0xf   : > { %v1476_v2 = vsel %vm1474_vm0, 4294967295, %v15116_v1  ;;  %v372_v3 = vld [vmem:[%s18801_s1 + $0x8] sm:$0x3]  ;;  %v368_v5 = vld [vmem:[%s18801_s1] sm:$0x3]  ;;  %vm1269_vm3 = vcmask 23552  }
  0x10   : > { %v15161_v4 = vsel %vm1475_vm1, %v1476_v2, 0  ;;  %s19676_s12 = smov (!%p202_p4, %s15106_s12), 1  ;;  %v373_v9 = vld [vmem:[%s18801_s1 + $0xa] sm:$0x3]  ;;  %vm720_vm2 = vsmask.f32 7424 }
  0x11   : > { %v1479_v6 = vand.u32 %v15161_v4, %v369_v0  ;;  %v15170_v7 = vand.u32 %v15161_v4, %v372_v3  ;;  %v2195_v8 = vand.u32 %v15161_v4, %v368_v5  ;;  %s14843_s24 = smul.u32 596, %s19676_s12  ;;  %v15178_v10 = vand.u32 %v15161_v4, %v373_v9 }
  0x12   : > { %vm4574_vm4 = vsmask.f32 6400  ;;  %vm5785_vm5 = vcmask 1045504   ;;  %vm2774_vm6 = vcmask 1046528   ;;  %vm7585_vm7 = vsmask.f32 5376 }
  0x13   : > { %19105 = vst [vmem:[#allocation2_spill] sm:$0xff] %v15170_v7  ;;  %12511 = vmatprep.subr.bf16.mxu1 %v1479_v6  ;;  %13063 = vmatprep.subr.bf16.mxu0 %v15170_v7  ;;  %s15185_s27 = scalar_lea.vmem %s18800_s0, %s14843_s24  ;;  %vm8796_vm8 = vcmask 1044480   ;;  %s14844_s17 = smul.u32 544, %s19676_s12  ;;  %vm10677_vm9 = vcmask 60416  }
  0x14   : > { %12512 = vmatpush3.bf16.msra.mxu1 %v1479_v6  ;;  %13064 = vmatpush3.bf16.msra.mxu0 %v15170_v7  ;;  %v14870_v11 = vld [vmem:[%s15185_s27] sm:$0xff]   ;;  %v14871_v12 = vld [vmem:[%s15185_s27 + $0x8] sm:$0xff]   ;;  %v14872_v17 = vld [vmem:[%s15185_s27 + $0x10] sm:$0xff]  }
  0x15   : > { %12649 = vmatprep.subr.bf16.mxu1 %v2195_v8  ;;  %13201 = vmatprep.subr.bf16.mxu0 %v15178_v10  ;;  %v722_v13 = vshrl.u32 %v14870_v11, 16  ;;  %v724_v14 = vshll.u32 %v14870_v11, 16  ;;  %v729_v15 = vshll.u32 %v14871_v12, 16  ;;  %v733_v16 = vshrl.u32 %v14871_v12, 16  ;;  %v14873_v18 = vld [vmem:[%s15185_s27 + $0x18] sm:$0xff]   ;;  %v14874_v21 = vld [vmem:[%s15185_s27 + $0x20] sm:$0xff]   ;;  %s18238_s19 = scalar_lea.vmem %s18803_s3, %s14844_s17 }
  0x16   : > { %v14875_v22 = vld [vmem:[%s15185_s27 + $0x28] sm:$0xff]   ;;  %v737_v23 = vshll.u32 %v14872_v17, 16  ;;  %v741_v24 = vshrl.u32 %v14872_v17, 16  ;;  %v745_v25 = vshll.u32 %v14873_v18, 16  ;;  %v749_v26 = vshrl.u32 %v14873_v18, 16  ;;  %v14876_v39 = vld [vmem:[%s15185_s27 + $0x30] sm:$0xff]  }
  0x17   : > { %v726_v19 = vrot.slane %v724_v14, 1  ;;  %v731_v20 = vrot.slane %v729_v15, 1  ;;  %v15194_v29 = vshll.u32 %v14874_v21, 16  ;;  %v15196_v30 = vshrl.u32 %v14874_v21, 16  ;;  %v14877_v44 = vld [vmem:[%s15185_s27 + $0x38] sm:$0xff]   ;;  %v14878_v49 = vld [vmem:[%s15185_s27 + $0x40] sm:$0xff]  }
  0x18   : > { %v4575_v31 = vrot.slane %v741_v24, 1  ;;  %v4576_v32 = vrot.slane %v737_v23, 2  ;;  %v4578_v33 = vrot.slane %v749_v26, 1  ;;  %v4579_v34 = vrot.slane %v745_v25, 2  ;;  %v14879_v1 = vld [vmem:[%s15185_s27 + $0x48] sm:$0xff]   ;;  %v14881_v21 = vld [vmem:[%s15185_s27 + $0x58] sm:$0xff]  }
  0x19   : > { %v727_v27 = vor.u32 %v726_v19, %v722_v13  ;;  %v735_v28 = vor.u32 %v733_v16, %v731_v20  ;;  %19106 = vst [vmem:[#allocation3_spill] sm:$0xff] %v15194_v29  ;;  %19107 = vst [vmem:[#allocation4_spill] sm:$0xff] %v15196_v30  ;;  %v739_v36 = vrot.slane %v737_v23, 1  ;;  %v4582_v37 = vrot.slane %v15196_v30, 1  ;;  %v14880_v16 = vld [vmem:[%s15185_s27 + $0x50] sm:$0xff]  }
  0x1a   : > { %v4583_v38 = vrot.slane %v15194_v29, 2  ;;  %v4577_v40 = vor.u32 %v4576_v32, %v4575_v31  ;;  %v4580_v41 = vor.u32 %v4579_v34, %v4578_v33  ;;  %v747_v42 = vrot.slane %v745_v25, 1 }
  0x1b   : > { %v732_v35 = vsel %vm720_vm2, %v727_v27, %v731_v20  ;;  %v15203_v43 = vshll.u32 %v14875_v22, 16  ;;  %v740_v45 = vsel %vm720_vm2, %v735_v28, %v739_v36  ;;  %v743_v47 = vor.u32 %v741_v24, %v739_v36 }
  0x1c   : > { %12513 = vmatprep.mubr.msk.bf16.mxu1 %vm1269_vm3, %v732_v35  ;;  %v4584_v46 = vor.u32 %v4583_v38, %v4582_v37  ;;  %v15207_v48 = vshrl.u32 %v14875_v22, 16  ;;  %v4581_v50 = vsel %vm4574_vm4, %v4577_v40, %v4580_v41  ;;  %v751_v52 = vor.u32 %v749_v26, %v747_v42  ;;  %v14882_v38 = vld [vmem:[%s15185_s27 + $0x60] sm:$0xff]  }
  0x1d   : > { %19108 = vst [vmem:[#allocation5_spill] sm:$0xff] %v15203_v43  ;;  %12514 = vmatmul.mubr.msk.bf16.vlgmr.msra.gmra.mrb[0].mxu1 %vm1269_vm3, %v740_v45  ;;  %v4587_v51 = vrot.slane %v15203_v43, 2  ;;  %v755_v53 = vrot.slane %v15194_v29, 1  ;;  %13065 = vmatprep.mubr.msk.bf16.mxu0 %vm1269_vm3, %v4581_v50  ;;  %v748_v55 = vsel %vm720_vm2, %v743_v47, %v747_v42  ;;  %v15218_v57 = vshll.u32 %v14876_v39, 16 }
  0x1e   : > { %19109 = vst [vmem:[#allocation6_spill] sm:$0xff] %v15207_v48  ;;  %12650 = vmatpush3.bf16.msra.mxu1 %v2195_v8  ;;  %v4585_v54 = vsel %vm4574_vm4, %v4580_v41, %v4584_v46  ;;  %v4586_v56 = vrot.slane %v15207_v48, 1  ;;  %12517 = vmatprep.mubr.msk.bf16.mxu1 %vm1269_vm3, %v748_v55  ;;  %v15222_v58 = vshrl.u32 %v14876_v39, 16  ;;  %v763_v60 = vrot.slane %v15203_v43, 1 }
  0x1f   : > { %19110 = vst [vmem:[#allocation7_spill] sm:$0xff] %v15218_v57  ;;  %13066 = vmatmul.mubr.msk.bf16.vlgmr.msra.gmra.mrb[0].mxu0 %vm1269_vm3, %v4585_v54  ;;  %v759_v59 = vor.u32 %v15196_v30, %v755_v53  ;;  %v4591_v62 = vrot.slane %v15218_v57, 2  ;;  %v15228_v63 = vshll.u32 %v14877_v44, 16  ;;  %v15230_v0 = vshrl.u32 %v14877_v44, 16  ;;  %v14883_v44 = vld [vmem:[%s15185_s27 + $0x68] sm:$0xff]   ;;  %v15917_v30 = vld [vmem:[%s15185_s27 + $0x170] sm:$0xff]  }
  0x20   : > { %19111 = vst [vmem:[#allocation8_spill] sm:$0xff] %v15222_v58  ;;  %13202 = vmatpush3.bf16.msra.mxu0 %v15178_v10  ;;  %v4588_v61 = vor.u32 %v4587_v51, %v4586_v56  ;;  %v756_v2 = vsel %vm720_vm2, %v751_v52, %v755_v53  ;;  %v4590_v3 = vrot.slane %v15222_v58, 1  ;;  %v15238_v9 = vshll.u32 %v14878_v49, 16 }
  0x21   : > { %19112 = vst [vmem:[#allocation9_spill] sm:$0xff] %v15228_v63  ;;  %19113 = vst [vmem:[#allocation10_spill] sm:$0xff] %v15230_v0  ;;  %v4594_v6 = vrot.slane %v15230_v0, 1  ;;  %v4595_v8 = vrot.slane %v15228_v63, 2  ;;  %v764_v11 = vsel %vm720_vm2, %v759_v59, %v763_v60  ;;  %v15242_v12 = vshrl.u32 %v14878_v49, 16 }
  0x22   : > { %v4589_v5 = vsel %vm4574_vm4, %v4584_v46, %v4588_v61  ;;  %19114 = vst [vmem:[#allocation11_spill] sm:$0xff] %v15238_v9  ;;  %v4592_v10 = vor.u32 %v4591_v62, %v4590_v3  ;;  %v4599_v14 = vrot.slane %v15238_v9, 2  ;;  %v15245_v15 = vshll.u32 %v14879_v1, 16  ;;  %v14884_v62 = vld [vmem:[%s15185_s27 + $0x70] sm:$0xff]  }
  0x23   : > { %13069 = vmatprep.mubr.msk.bf16.mxu0 %vm1269_vm3, %v4589_v5  ;;  %19115 = vst [vmem:[#allocation12_spill] sm:$0xff] %v15242_v12  ;;  %v4596_v13 = vor.u32 %v4595_v8, %v4594_v6  ;;  %v771_v18 = vrot.slane %v15218_v57, 1  ;;  %v4598_v19 = vrot.slane %v15242_v12, 1  ;;  %v15252_v20 = vshrl.u32 %v14879_v1, 16 }
  0x24   : > { %19116 = vst [vmem:[#allocation13_spill] sm:$0xff] %v15245_v15  ;;  %v4593_v17 = vsel %vm4574_vm4, %v4588_v61, %v4592_v10  ;;  %v767_v23 = vor.u32 %v15207_v48, %v763_v60  ;;  %v4603_v24 = vrot.slane %v15245_v15, 2  ;;  %v779_v26 = vrot.slane %v15228_v63, 1 }
  0x25   : > { %12518 = vmatmul.mubr.msk.bf16.gmra.mrb[4].mxu1 %vm1269_vm3, %v756_v2  ;;  %19117 = vst [vmem:[#allocation14_spill] sm:$0xff] %v15252_v20  ;;  %v4597_v22 = vsel %vm4574_vm4, %v4592_v10, %v4596_v13  ;;  %v775_v25 = vor.u32 %v15222_v58, %v771_v18  ;;  %v4602_v27 = vrot.slane %v15252_v20, 1  ;;  %v4600_v28 = vor.u32 %v4599_v14, %v4598_v19  ;;  %v15882_v58 = vld [vmem:[%s15185_s27 + $0x168] sm:$0xff]  }
  0x26   : > { %12521 = vmatprep.mubr.msk.bf16.mxu1 %vm1269_vm3, %v764_v11  ;;  %v15264_v31 = vshll.u32 %v14880_v16, 16  ;;  %v15266_v32 = vshrl.u32 %v14880_v16, 16  ;;  %v15268_v34 = vshll.u32 %v14881_v21, 16  ;;  %v772_v35 = vsel %vm720_vm2, %v767_v23, %v771_v18  ;;  %v15310_v11 = vld [vmem:[%s15185_s27 + $0x78] sm:$0xff]  }
  0x27   : > { %13070 = vmatmul.mubr.msk.bf16.gmra.mrb[4].mxu0 %vm1269_vm3, %v4593_v17  ;;  %v4604_v33 = vor.u32 %v4603_v24, %v4602_v27  ;;  %v15271_v36 = vshrl.u32 %v14881_v21, 16  ;;  %v780_v37 = vsel %vm720_vm2, %v775_v25, %v779_v26  ;;  %v4601_v39 = vsel %vm4574_vm4, %v4596_v13, %v4600_v28 }
  0x28   : > { %13073 = vmatprep.mubr.msk.bf16.mxu0 %vm1269_vm3, %v4597_v22  ;;  %19118 = vst [vmem:[#allocation15_spill] sm:$0xff] %v15264_v31  ;;  %19119 = vst [vmem:[#allocation16_spill] sm:$0xff] %v15266_v32  ;;  %v787_v40 = vrot.slane %v15238_v9, 1  ;;  %v4606_v41 = vrot.slane %v15266_v32, 1  ;;  %v4607_v42 = vrot.slane %v15264_v31, 2  ;;  %v4611_v47 = vrot.slane %v15268_v34, 2 }
  0x29   : > { %19120 = vst [vmem:[#allocation17_spill] sm:$0xff] %v15268_v34  ;;  %19121 = vst [vmem:[#allocation18_spill] sm:$0xff] %v15271_v36  ;;  %v4605_v45 = vsel %vm4574_vm4, %v4600_v28, %v4604_v33  ;;  %v4610_v46 = vrot.slane %v15271_v36, 1  ;;  %v783_v49 = vor.u32 %v15230_v0, %v779_v26  ;;  %v795_v51 = vrot.slane %v15245_v15, 1  ;;  %v15331_v26 = vld [vmem:[%s15185_s27 + $0x80] sm:$0xff]  }
  0x2a   : > { %v791_v50 = vor.u32 %v15242_v12, %v787_v40  ;;  %v4608_v52 = vor.u32 %v4607_v42, %v4606_v41  ;;  %v15290_v53 = vshll.u32 %v14882_v38, 16  ;;  %v15292_v54 = vshrl.u32 %v14882_v38, 16  ;;  %v15873_v0 = vld [vmem:[%s15185_s27 + $0x160] sm:$0xff]  }
  0x2b   : > { %v4612_v55 = vor.u32 %v4611_v47, %v4610_v46  ;;  %v15294_v56 = vshll.u32 %v14883_v44, 16  ;;  %v15296_v59 = vshrl.u32 %v14883_v44, 16  ;;  %v788_v60 = vsel %vm720_vm2, %v783_v49, %v787_v40  ;;  %v15342_v40 = vld [vmem:[%s15185_s27 + $0x88] sm:$0xff]  }
  0x2c   : > { %19122 = vst [vmem:[#allocation19_spill] sm:$0xff] %v15290_v53  ;;  %19123 = vst [vmem:[#allocation20_spill] sm:$0xff] %v15292_v54  ;;  %v796_v61 = vsel %vm720_vm2, %v791_v50, %v795_v51  ;;  %v4609_v1 = vsel %vm4574_vm4, %v4604_v33, %v4608_v52  ;;  %v4614_v2 = vrot.slane %v15292_v54, 1  ;;  %v4615_v3 = vrot.slane %v15290_v53, 2 }
  0x2d   : > { %12522 = vmatmul.mubr.msk.bf16.gmra.mrb[8].mxu1 %vm1269_vm3, %v772_v35  ;;  %19124 = vst [vmem:[#allocation21_spill] sm:$0xff] %v15294_v56  ;;  %19125 = vst [vmem:[#allocation22_spill] sm:$0xff] %v15296_v59  ;;  %v4613_v5 = vsel %vm4574_vm4, %v4608_v52, %v4612_v55  ;;  %v803_v6 = vrot.slane %v15264_v31, 1  ;;  %v4618_v8 = vrot.slane %v15296_v59, 1  ;;  %v4619_v10 = vrot.slane %v15294_v56, 2 }
  0x2e   : > { %12525 = vmatprep.mubr.msk.bf16.mxu1 %vm1269_vm3, %v780_v37  ;;  %v799_v13 = vor.u32 %v15252_v20, %v795_v51  ;;  %v811_v16 = vrot.slane %v15268_v34, 1  ;;  %v4616_v17 = vor.u32 %v4615_v3, %v4614_v2  ;;  %v15318_v18 = vshll.u32 %v14884_v62, 16  ;;  %v15838_v20 = vld [vmem:[%s15185_s27 + $0x158] sm:$0xff]  }
  0x2f   : > { %13074 = vmatmul.mubr.msk.bf16.gmra.mrb[8].mxu0 %vm1269_vm3, %v4601_v39  ;;  %v807_v14 = vor.u32 %v15266_v32, %v803_v6  ;;  %v15320_v19 = vshrl.u32 %v14884_v62, 16  ;;  %v4620_v21 = vor.u32 %v4619_v10, %v4618_v8  ;;  %v15323_v22 = vshll.u32 %v15310_v11, 16  ;;  %v15369_v62 = vld [vmem:[%s15185_s27 + $0x98] sm:$0xff]   ;;  %v15829_v32 = vld [vmem:[%s15185_s27 + $0x150] sm:$0xff]  }
  0x30   : > { %13077 = vmatprep.mubr.msk.bf16.mxu0 %vm1269_vm3, %v4605_v45  ;;  %19126 = vst [vmem:[#allocation23_spill] sm:$0xff] %v15318_v18  ;;  %v15326_v23 = vshrl.u32 %v15310_v11, 16  ;;  %v804_v24 = vsel %vm720_vm2, %v799_v13, %v803_v6  ;;  %v4617_v27 = vsel %vm4574_vm4, %v4612_v55, %v4616_v17  ;;  %v4623_v33 = vrot.slane %v15318_v18, 2 }
  0x31   : > { %19127 = vst [vmem:[#allocation24_spill] sm:$0xff] %v15320_v19  ;;  %19128 = vst [vmem:[#allocation25_spill] sm:$0xff] %v15323_v22  ;;  %v812_v25 = vsel %vm720_vm2, %v807_v14, %v811_v16  ;;  %v4622_v28 = vrot.slane %v15320_v19, 1  ;;  %v4621_v35 = vsel %vm4574_vm4, %v4616_v17, %v4620_v21  ;;  %v819_v37 = vrot.slane %v15290_v53, 1 }
  0x32   : > { %19129 = vst [vmem:[#allocation26_spill] sm:$0xff] %v15326_v23  ;;  %v4626_v38 = vrot.slane %v15326_v23, 1  ;;  %v4627_v39 = vrot.slane %v15323_v22, 2  ;;  %v815_v41 = vor.u32 %v15271_v36, %v811_v16  ;;  %v827_v44 = vrot.slane %v15294_v56, 1 }
  0x33   : > { %v823_v42 = vor.u32 %v15292_v54, %v819_v37  ;;  %v4624_v45 = vor.u32 %v4623_v33, %v4622_v28  ;;  %v15351_v46 = vshll.u32 %v15331_v26, 16  ;;  %v15354_v47 = vshrl.u32 %v15331_v26, 16 }
  0x34   : > { %v4628_v49 = vor.u32 %v4627_v39, %v4626_v38  ;;  %v15357_v50 = vshll.u32 %v15342_v40, 16  ;;  %v15360_v51 = vshrl.u32 %v15342_v40, 16  ;;  %v820_v52 = vsel %vm720_vm2, %v815_v41, %v819_v37  ;;  %v15400_v37 = vld [vmem:[%s15185_s27 + $0xa0] sm:$0xff]   ;;  %v15403_v38 = vld [vmem:[%s15185_s27 + $0xa8] sm:$0xff]  }
  0x35   : > { %12526 = vmatmul.mubr.msk.bf16.gmra.mrb[12].mxu1 %vm1269_vm3, %v788_v60  ;;  %19130 = vst [vmem:[#allocation27_spill] sm:$0xff] %v15351_v46  ;;  %19131 = vst [vmem:[#allocation28_spill] sm:$0xff] %v15354_v47  ;;  %v828_v55 = vsel %vm720_vm2, %v823_v42, %v827_v44  ;;  %v835_v60 = vrot.slane %v15318_v18, 1  ;;  %v4630_v2 = vrot.slane %v15354_v47, 1  ;;  %v4631_v3 = vrot.slane %v15351_v46, 2 }
  0x36   : > { %12529 = vmatprep.mubr.msk.bf16.mxu1 %vm1269_vm3, %v796_v61  ;;  %19132 = vst [vmem:[#allocation29_spill] sm:$0xff] %v15357_v50  ;;  %19133 = vst [vmem:[#allocation30_spill] sm:$0xff] %v15360_v51  ;;  %v15366_v61 = vld [vmem:[%s15185_s27 + $0x90] sm:$0xff]   ;;  %v4634_v6 = vrot.slane %v15360_v51, 1  ;;  %v4635_v8 = vrot.slane %v15357_v50, 2  ;;  %v831_v10 = vor.u32 %v15296_v59, %v827_v44  ;;  %v843_v14 = vrot.slane %v15323_v22, 1 }
  0x37   : > { %13078 = vmatmul.mubr.msk.bf16.gmra.mrb[12].mxu0 %vm1269_vm3, %v4609_v1  ;;  %v4625_v1 = vsel %vm4574_vm4, %v4620_v21, %v4624_v45  ;;  %v839_v13 = vor.u32 %v15320_v19, %v835_v60  ;;  %v4632_v16 = vor.u32 %v4631_v3, %v4630_v2  ;;  %v15385_v17 = vshll.u32 %v15366_v61, 16 }
  0x38   : > { %13081 = vmatprep.mubr.msk.bf16.mxu0 %vm1269_vm3, %v4613_v5  ;;  %v4629_v5 = vsel %vm4574_vm4, %v4624_v45, %v4628_v49  ;;  %v15388_v21 = vshrl.u32 %v15366_v61, 16  ;;  %v836_v28 = vsel %vm720_vm2, %v831_v10, %v835_v60  ;;  %v859_v60 = vrot.slane %v15357_v50, 1 }
  0x39   : > { %19134 = vst [vmem:[#allocation31_spill] sm:$0xff] %v15385_v17  ;;  %v844_v33 = vsel %vm720_vm2, %v839_v13, %v843_v14  ;;  %v4633_v39 = vsel %vm4574_vm4, %v4628_v49, %v4632_v16  ;;  %v4639_v42 = vrot.slane %v15385_v17, 2  ;;  %v15419_v2 = vshll.u32 %v15400_v37, 16  ;;  %v15432_v13 = vld [vmem:[%s15185_s27 + $0xb0] sm:$0xff]  }
  0x3a   : > { %19135 = vst [vmem:[#allocation32_spill] sm:$0xff] %v15388_v21  ;;  %v4638_v41 = vrot.slane %v15388_v21, 1  ;;  %v15422_v3 = vshrl.u32 %v15400_v37, 16  ;;  %v15859_v9 = vshrl.u32 %v15829_v32, 16  ;;  %v15862_v12 = vshll.u32 %v15838_v20, 16 }
  0x3b   : > { %19138 = vst [vmem:[#allocation35_spill] sm:$0xff] %v15419_v2  ;;  %v15903_v43 = vshrl.u32 %v15873_v0, 16  ;;  %v15906_v48 = vshll.u32 %v15882_v58, 16 }
  0x3c   : > { %19139 = vst [vmem:[#allocation36_spill] sm:$0xff] %v15422_v3  ;;  %19187 = vst [vmem:[#allocation84_spill] sm:$0xff] %v15859_v9 }
  0x3d   : > { %12530 = vmatmul.mubr.msk.bf16.gmra.mrb[16].mxu1 %vm1269_vm3, %v804_v24  ;;  %v4636_v24 = vor.u32 %v4635_v8, %v4634_v6  ;;  %v15425_v6 = vshll.u32 %v15403_v38, 16  ;;  %v15428_v8 = vshrl.u32 %v15403_v38, 16  ;;  %19188 = vst [vmem:[#allocation85_spill] sm:$0xff] %v15862_v12  ;;  %19193 = vst [vmem:[#allocation90_spill] sm:$0xff] %v15903_v43 }
  0x3e   : > { %12533 = vmatprep.mubr.msk.bf16.mxu1 %vm1269_vm3, %v812_v25  ;;  %v15391_v25 = vshll.u32 %v15369_v62, 16  ;;  %19194 = vst [vmem:[#allocation91_spill] sm:$0xff] %v15906_v48 }
  0x3f   : > { %13082 = vmatmul.mubr.msk.bf16.gmra.mrb[16].mxu0 %vm1269_vm3, %v4617_v27  ;;  %v15394_v27 = vshrl.u32 %v15369_v62, 16  ;;  %v4637_v44 = vsel %vm4574_vm4, %v4632_v16, %v4636_v24  ;;  %19140 = vst [vmem:[#allocation37_spill] sm:$0xff] %v15425_v6  ;;  %19141 = vst [vmem:[#allocation38_spill] sm:$0xff] %v15428_v8  ;;  %v867_v16 = vrot.slane %v15385_v17, 1 }
  0x40   : > { %13085 = vmatprep.mubr.msk.bf16.mxu0 %vm1269_vm3, %v4621_v35  ;;  %19136 = vst [vmem:[#allocation33_spill] sm:$0xff] %v15391_v25  ;;  %v851_v35 = vrot.slane %v15351_v46, 1 }
  0x41   : > { %19137 = vst [vmem:[#allocation34_spill] sm:$0xff] %v15394_v27  ;;  %v4642_v45 = vrot.slane %v15394_v27, 1 }
  0x42   : > { %v855_v49 = vor.u32 %v15354_v47, %v851_v35 }
  0x45   : > { %12534 = vmatmul.mubr.msk.bf16.gmra.mrb[20].mxu1 %vm1269_vm3, %v820_v52  ;;  %v4643_v52 = vrot.slane %v15391_v25, 2 }
  0x46   : > { %12537 = vmatprep.mubr.msk.bf16.mxu1 %vm1269_vm3, %v828_v55  ;;  %v847_v55 = vor.u32 %v15326_v23, %v843_v14  ;;  %v860_v14 = vsel %vm720_vm2, %v855_v49, %v859_v60  ;;  %v15453_v49 = vshll.u32 %v15432_v13, 16 }
  0x47   : > { %13086 = vmatmul.mubr.msk.bf16.gmra.mrb[20].mxu0 %vm1269_vm3, %v4625_v1  ;;  %v4640_v1 = vor.u32 %v4639_v42, %v4638_v41  ;;  %v4647_v41 = vrot.slane %v15419_v2, 2 }
  0x48   : > { %13089 = vmatprep.mubr.msk.bf16.mxu0 %vm1269_vm3, %v4629_v5  ;;  %v4644_v5 = vor.u32 %v4643_v52, %v4642_v45  ;;  %v852_v10 = vsel %vm720_vm2, %v847_v55, %v851_v35  ;;  %v4650_v35 = vrot.slane %v15428_v8, 1  ;;  %v863_v45 = vor.u32 %v15360_v51, %v859_v60  ;;  %19142 = vst [vmem:[#allocation39_spill] sm:$0xff] %v15453_v49 }
  0x49   : > { %v875_v52 = vrot.slane %v15391_v25, 1 }
  0x4a   : > { %v4645_v42 = vsel %vm4574_vm4, %v4640_v1, %v4644_v5 }
  0x4d   : > { %12538 = vmatmul.mubr.msk.bf16.gmra.mrb[24].mxu1 %vm1269_vm3, %v836_v28  ;;  %v15437_v28 = vld [vmem:[%s15185_s27 + $0xb8] sm:$0xff]  }
  0x4e   : > { %12541 = vmatprep.mubr.msk.bf16.mxu1 %vm1269_vm3, %v844_v33  ;;  %v4641_v33 = vsel %vm4574_vm4, %v4636_v24, %v4640_v1  ;;  %v871_v24 = vor.u32 %v15388_v21, %v867_v16  ;;  %v15456_v1 = vshrl.u32 %v15432_v13, 16  ;;  %v15462_v60 = vshrl.u32 %v15437_v28, 16 }
  0x4f   : > { %13090 = vmatmul.mubr.msk.bf16.gmra.mrb[24].mxu0 %vm1269_vm3, %v4633_v39  ;;  %v4646_v39 = vrot.slane %v15422_v3, 1 }
  0x50   : > { %13093 = vmatprep.mubr.msk.bf16.mxu0 %vm1269_vm3, %v4637_v44  ;;  %v4651_v44 = vrot.slane %v15425_v6, 2  ;;  %19143 = vst [vmem:[#allocation40_spill] sm:$0xff] %v15456_v1  ;;  %19145 = vst [vmem:[#allocation42_spill] sm:$0xff] %v15462_v60  ;;  %v876_v25 = vsel %vm720_vm2, %v871_v24, %v875_v52  ;;  %v879_v24 = vor.u32 %v15394_v27, %v875_v52  ;;  %v15511_v27 = vld [vmem:[%s15185_s27 + $0xd8] sm:$0xff]  }
  0x51   : > { %v4648_v55 = vor.u32 %v4647_v41, %v4646_v39  ;;  %v15468_v39 = vld [vmem:[%s15185_s27 + $0xc0] sm:$0xff]   ;;  %v15471_v41 = vld [vmem:[%s15185_s27 + $0xc8] sm:$0xff]  }
  0x52   : > { %v15490_v50 = vshrl.u32 %v15468_v39, 16 }
  0x53   : > { %v4649_v17 = vsel %vm4574_vm4, %v4644_v5, %v4648_v55 }
  0x54   : > { %19147 = vst [vmem:[#allocation44_spill] sm:$0xff] %v15490_v50 }
  0x55   : > { %12542 = vmatmul.mubr.msk.bf16.gmra.mrb[28].mxu1 %vm1269_vm3, %v852_v10  ;;  %v4652_v10 = vor.u32 %v4651_v44, %v4650_v35  ;;  %v4654_v35 = vrot.slane %v15456_v1, 1  ;;  %v4655_v44 = vrot.slane %v15453_v49, 2 }
  0x56   : > { %12545 = vmatprep.mubr.msk.bf16.mxu1 %vm1269_vm3, %v860_v14  ;;  %v15459_v14 = vshll.u32 %v15437_v28, 16 }
  0x57   : > { %13094 = vmatmul.mubr.msk.bf16.gmra.mrb[28].mxu0 %vm1269_vm3, %v4641_v33  ;;  %v868_v33 = vsel %vm720_vm2, %v863_v45, %v867_v16  ;;  %v4653_v21 = vsel %vm4574_vm4, %v4648_v55, %v4652_v10  ;;  %v4658_v16 = vrot.slane %v15462_v60, 1  ;;  %v15487_v55 = vshll.u32 %v15468_v39, 16 }
  0x58   : > { %13097 = vmatprep.mubr.msk.bf16.mxu0 %vm1269_vm3, %v4645_v42  ;;  %19144 = vst [vmem:[#allocation41_spill] sm:$0xff] %v15459_v14  ;;  %v883_v42 = vrot.slane %v15419_v2, 1  ;;  %v4659_v45 = vrot.slane %v15459_v14, 2  ;;  %v891_v2 = vrot.slane %v15425_v6, 1 }
  0x59   : > { %19146 = vst [vmem:[#allocation43_spill] sm:$0xff] %v15487_v55 }
  0x5a   : > { %v887_v5 = vor.u32 %v15422_v3, %v883_v42  ;;  %v4660_v51 = vor.u32 %v4659_v45, %v4658_v16  ;;  %v884_v52 = vsel %vm720_vm2, %v879_v24, %v883_v42  ;;  %v899_v16 = vrot.slane %v15453_v49, 1 }
  0x5b   : > { %v4662_v45 = vrot.slane %v15490_v50, 1  ;;  %v4663_v3 = vrot.slane %v15487_v55, 2 }
  0x5c   : > { %v903_v49 = vor.u32 %v15456_v1, %v899_v16 }
  0x5d   : > { %12546 = vmatmul.mubr.msk.bf16.gmra.mrb[32].mxu1 %vm1269_vm3, %v868_v33  ;;  %v4656_v33 = vor.u32 %v4655_v44, %v4654_v35  ;;  %v892_v35 = vsel %vm720_vm2, %v887_v5, %v891_v2  ;;  %v15504_v44 = vld [vmem:[%s15185_s27 + $0xd0] sm:$0xff]  }
  0x5e   : > { %12549 = vmatprep.mubr.msk.bf16.mxu1 %vm1269_vm3, %v876_v25  ;;  %v15493_v25 = vshll.u32 %v15471_v41, 16  ;;  %v15528_v47 = vshll.u32 %v15504_v44, 16 }
  0x5f   : > { %13098 = vmatmul.mubr.msk.bf16.gmra.mrb[32].mxu0 %vm1269_vm3, %v4649_v17  ;;  %v15496_v17 = vshrl.u32 %v15471_v41, 16  ;;  %v4657_v6 = vsel %vm4574_vm4, %v4652_v10, %v4656_v33  ;;  %v4661_v42 = vsel %vm4574_vm4, %v4656_v33, %v4660_v51  ;;  %v895_v10 = vor.u32 %v15428_v8, %v891_v2 }
  0x60   : > { %13101 = vmatprep.mubr.msk.bf16.mxu0 %vm1269_vm3, %v4653_v21  ;;  %19148 = vst [vmem:[#allocation45_spill] sm:$0xff] %v15493_v25  ;;  %v374_v21 = vld [vmem:[%s18801_s1 + $0xc] sm:$0x3]  ;;  %v4667_v5 = vrot.slane %v15493_v25, 2  ;;  %v4664_v33 = vor.u32 %v4663_v3, %v4662_v45  ;;  %19150 = vst [vmem:[#allocation47_spill] sm:$0xff] %v15528_v47  ;;  %v15534_v2 = vshll.u32 %v15511_v27, 16 }
  0x61   : > { %19149 = vst [vmem:[#allocation46_spill] sm:$0xff] %v15496_v17  ;;  %v4666_v24 = vrot.slane %v15496_v17, 1  ;;  %v15518_v46 = vand.u32 %v15161_v4, %v374_v21  ;;  %v15531_v21 = vshrl.u32 %v15504_v44, 16  ;;  %v4671_v8 = vrot.slane %v15528_v47, 2 }
  0x62   : > { %19152 = vst [vmem:[#allocation49_spill] sm:$0xff] %v15534_v2  ;;  %v4665_v3 = vsel %vm4574_vm4, %v4660_v51, %v4664_v33 }
  0x63   : > { %13339 = vmatprep.subr.bf16.mxu0 %v15518_v46  ;;  %19151 = vst [vmem:[#allocation48_spill] sm:$0xff] %v15531_v21  ;;  %v4670_v45 = vrot.slane %v15531_v21, 1 }
  0x65   : > { %12550 = vmatmul.mubr.msk.bf16.gmra.mrb[36].mxu1 %vm1269_vm3, %v884_v52  ;;  %v907_v52 = vrot.slane %v15459_v14, 1  ;;  %v900_v14 = vsel %vm720_vm2, %v895_v10, %v899_v16  ;;  %v4675_v16 = vrot.slane %v15534_v2, 2  ;;  %v15553_v10 = vld [vmem:[%s15185_s27 + $0xe8] sm:$0xff]  }
  0x66   : > { %12553 = vmatprep.mubr.msk.bf16.mxu1 %vm1269_vm3, %v892_v35  ;;  %v4668_v35 = vor.u32 %v4667_v5, %v4666_v24  ;;  %v915_v5 = vrot.slane %v15487_v55, 1 }
  0x67   : > { %13102 = vmatmul.mubr.msk.bf16.gmra.mrb[36].mxu0 %vm1269_vm3, %v4657_v6  ;;  %v15537_v6 = vshrl.u32 %v15511_v27, 16  ;;  %v908_v1 = vsel %vm720_vm2, %v903_v49, %v907_v52  ;;  %v911_v51 = vor.u32 %v15462_v60, %v907_v52  ;;  %v15568_v52 = vshll.u32 %v15553_v10, 16  ;;  %v15579_v60 = vld [vmem:[%s15185_s27 + $0xf0] sm:$0xff]  }
  0x68   : > { %13105 = vmatprep.mubr.msk.bf16.mxu0 %vm1269_vm3, %v4661_v42  ;;  %v15542_v42 = vld [vmem:[%s15185_s27 + $0xe0] sm:$0xff]   ;;  %v4669_v24 = vsel %vm4574_vm4, %v4664_v33, %v4668_v35  ;;  %v919_v49 = vor.u32 %v15490_v50, %v915_v5  ;;  %v4672_v33 = vor.u32 %v4671_v8, %v4670_v45  ;;  %v15599_v19 = vshrl.u32 %v15579_v60, 16 }
  0x69   : > { %19153 = vst [vmem:[#allocation50_spill] sm:$0xff] %v15537_v6  ;;  %v4674_v22 = vrot.slane %v15537_v6, 1  ;;  %v15562_v55 = vshll.u32 %v15542_v42, 16  ;;  %v15565_v23 = vshrl.u32 %v15542_v42, 16  ;;  %19156 = vst [vmem:[#allocation53_spill] sm:$0xff] %v15568_v52  ;;  %v916_v50 = vsel %vm720_vm2, %v911_v51, %v915_v5  ;;  %v15587_v51 = vld [vmem:[%s15185_s27 + $0xf8] sm:$0xff]  }
  0x6a   : > { %v4673_v8 = vsel %vm4574_vm4, %v4668_v35, %v4672_v33  ;;  %v4683_v5 = vrot.slane %v15568_v52, 2  ;;  %19159 = vst [vmem:[#allocation56_spill] sm:$0xff] %v15599_v19 }
  0x6b   : > { %19154 = vst [vmem:[#allocation51_spill] sm:$0xff] %v15562_v55  ;;  %19155 = vst [vmem:[#allocation52_spill] sm:$0xff] %v15565_v23  ;;  %v4678_v45 = vrot.slane %v15565_v23, 1 }
  0x6d   : > { %12554 = vmatmul.mubr.msk.bf16.gmra.mrb[40].mxu1 %vm1269_vm3, %v900_v14  ;;  %v923_v14 = vrot.slane %v15493_v25, 1 }
  0x6e   : > { %12557 = vmatprep.mubr.msk.bf16.mxu1 %vm1269_vm3, %v908_v1  ;;  %v4676_v1 = vor.u32 %v4675_v16, %v4674_v22  ;;  %v931_v16 = vrot.slane %v15528_v47, 1  ;;  %v15596_v47 = vshll.u32 %v15579_v60, 16 }
  0x6f   : > { %13106 = vmatmul.mubr.msk.bf16.gmra.mrb[40].mxu0 %vm1269_vm3, %v4665_v3  ;;  %v15571_v3 = vshrl.u32 %v15553_v10, 16  ;;  %v924_v25 = vsel %vm720_vm2, %v919_v49, %v923_v14  ;;  %v927_v35 = vor.u32 %v15496_v17, %v923_v14  ;;  %v15602_v14 = vshll.u32 %v15587_v51, 16  ;;  %v15613_v17 = vld [vmem:[%s15185_s27 + $0x100] sm:$0xff]  }
  0x70   : > { %13109 = vmatprep.mubr.msk.bf16.mxu0 %vm1269_vm3, %v4669_v24  ;;  %v4679_v24 = vrot.slane %v15562_v55, 2  ;;  %v4677_v22 = vsel %vm4574_vm4, %v4672_v33, %v4676_v1  ;;  %v935_v49 = vor.u32 %v15531_v21, %v931_v16  ;;  %19158 = vst [vmem:[#allocation55_spill] sm:$0xff] %v15596_v47  ;;  %v15633_v59 = vshrl.u32 %v15613_v17, 16 }
  0x71   : > { %19157 = vst [vmem:[#allocation54_spill] sm:$0xff] %v15571_v3  ;;  %v4682_v18 = vrot.slane %v15571_v3, 1  ;;  %19160 = vst [vmem:[#allocation57_spill] sm:$0xff] %v15602_v14  ;;  %v932_v21 = vsel %vm720_vm2, %v927_v35, %v931_v16  ;;  %v4691_v16 = vrot.slane %v15602_v14, 2  ;;  %v15621_v35 = vld [vmem:[%s15185_s27 + $0x108] sm:$0xff]  }
  0x72   : > { %v4680_v33 = vor.u32 %v4679_v24, %v4678_v45  ;;  %v4686_v24 = vrot.slane %v15599_v19, 1  ;;  %19163 = vst [vmem:[#allocation60_spill] sm:$0xff] %v15633_v59 }
  0x74   : > { %v4681_v45 = vsel %vm4574_vm4, %v4676_v1, %v4680_v33 }
  0x75   : > { %12558 = vmatmul.mubr.msk.bf16.gmra.mrb[44].mxu1 %vm1269_vm3, %v916_v50  ;;  %v939_v50 = vrot.slane %v15534_v2, 1 }
  0x76   : > { %12561 = vmatprep.mubr.msk.bf16.mxu1 %vm1269_vm3, %v924_v25  ;;  %v4684_v25 = vor.u32 %v4683_v5, %v4682_v18  ;;  %v947_v5 = vrot.slane %v15562_v55, 1  ;;  %v15630_v55 = vshll.u32 %v15613_v17, 16 }
  0x77   : > { %13110 = vmatmul.mubr.msk.bf16.gmra.mrb[44].mxu0 %vm1269_vm3, %v4673_v8  ;;  %v15605_v8 = vshrl.u32 %v15587_v51, 16  ;;  %v940_v2 = vsel %vm720_vm2, %v935_v49, %v939_v50  ;;  %v943_v1 = vor.u32 %v15537_v6, %v939_v50  ;;  %v15636_v50 = vshll.u32 %v15621_v35, 16  ;;  %v15647_v6 = vld [vmem:[%s15185_s27 + $0x110] sm:$0xff]  }
  0x78   : > { %13113 = vmatprep.mubr.msk.bf16.mxu0 %vm1269_vm3, %v4677_v22  ;;  %v4687_v22 = vrot.slane %v15596_v47, 2  ;;  %v4685_v18 = vsel %vm4574_vm4, %v4680_v33, %v4684_v25  ;;  %v951_v49 = vor.u32 %v15565_v23, %v947_v5  ;;  %19162 = vst [vmem:[#allocation59_spill] sm:$0xff] %v15630_v55  ;;  %v15667_v54 = vshrl.u32 %v15647_v6, 16 }
  0x79   : > { %19161 = vst [vmem:[#allocation58_spill] sm:$0xff] %v15605_v8  ;;  %v4690_v56 = vrot.slane %v15605_v8, 1  ;;  %19164 = vst [vmem:[#allocation61_spill] sm:$0xff] %v15636_v50  ;;  %v948_v23 = vsel %vm720_vm2, %v943_v1, %v947_v5  ;;  %v4699_v5 = vrot.slane %v15636_v50, 2  ;;  %v15655_v1 = vld [vmem:[%s15185_s27 + $0x118] sm:$0xff]  }
  0x7a   : > { %v4688_v33 = vor.u32 %v4687_v22, %v4686_v24  ;;  %v4694_v22 = vrot.slane %v15633_v59, 1  ;;  %19167 = vst [vmem:[#allocation64_spill] sm:$0xff] %v15667_v54 }
  0x7c   : > { %v4689_v24 = vsel %vm4574_vm4, %v4684_v25, %v4688_v33 }
  0x7d   : > { %12562 = vmatmul.mubr.msk.bf16.gmra.mrb[48].mxu1 %vm1269_vm3, %v932_v21  ;;  %v955_v21 = vrot.slane %v15568_v52, 1 }
  0x7e   : > { %12565 = vmatprep.mubr.msk.bf16.mxu1 %vm1269_vm3, %v940_v2  ;;  %v4692_v2 = vor.u32 %v4691_v16, %v4690_v56  ;;  %v963_v16 = vrot.slane %v15596_v47, 1  ;;  %v15664_v47 = vshll.u32 %v15647_v6, 16 }
  0x7f   : > { %13114 = vmatmul.mubr.msk.bf16.gmra.mrb[48].mxu0 %vm1269_vm3, %v4681_v45  ;;  %v15639_v45 = vshrl.u32 %v15621_v35, 16  ;;  %v956_v52 = vsel %vm720_vm2, %v951_v49, %v955_v21  ;;  %v959_v25 = vor.u32 %v15571_v3, %v955_v21  ;;  %v15673_v21 = vshrl.u32 %v15655_v1, 16 }
  0x80   : > { %13117 = vmatprep.mubr.msk.bf16.mxu0 %vm1269_vm3, %v4685_v18  ;;  %v4695_v18 = vrot.slane %v15630_v55, 2  ;;  %v4693_v56 = vsel %vm4574_vm4, %v4688_v33, %v4692_v2  ;;  %v967_v49 = vor.u32 %v15599_v19, %v963_v16  ;;  %19166 = vst [vmem:[#allocation63_spill] sm:$0xff] %v15664_v47  ;;  %v15681_v19 = vld [vmem:[%s15185_s27 + $0x120] sm:$0xff]  }
  0x81   : > { %19165 = vst [vmem:[#allocation62_spill] sm:$0xff] %v15639_v45  ;;  %v4698_v53 = vrot.slane %v15639_v45, 1  ;;  %19169 = vst [vmem:[#allocation66_spill] sm:$0xff] %v15673_v21  ;;  %v4706_v3 = vrot.slane %v15673_v21, 1 }
  0x82   : > { %v4696_v33 = vor.u32 %v4695_v18, %v4694_v22  ;;  %v4702_v22 = vrot.slane %v15667_v54, 1  ;;  %v4703_v18 = vrot.slane %v15664_v47, 2 }
  0x83   : > { %v4700_v34 = vor.u32 %v4699_v5, %v4698_v53  ;;  %v979_v5 = vrot.slane %v15630_v55, 1  ;;  %v15698_v55 = vshrl.u32 %v15681_v19, 16 }
  0x85   : > { %12566 = vmatmul.mubr.msk.bf16.gmra.mrb[52].mxu1 %vm1269_vm3, %v948_v23  ;;  %v971_v23 = vrot.slane %v15602_v14, 1  ;;  %v4701_v53 = vsel %vm4574_vm4, %v4696_v33, %v4700_v34  ;;  %19171 = vst [vmem:[#allocation68_spill] sm:$0xff] %v15698_v55 }
  0x86   : > { %12569 = vmatprep.mubr.msk.bf16.mxu1 %vm1269_vm3, %v956_v52  ;;  %v15670_v52 = vshll.u32 %v15655_v1, 16 }
  0x87   : > { %13118 = vmatmul.mubr.msk.bf16.gmra.mrb[52].mxu0 %vm1269_vm3, %v4689_v24  ;;  %v964_v24 = vsel %vm720_vm2, %v959_v25, %v963_v16  ;;  %v972_v14 = vsel %vm720_vm2, %v967_v49, %v971_v23  ;;  %v983_v25 = vor.u32 %v15633_v59, %v979_v5  ;;  %v987_v49 = vrot.slane %v15636_v50, 1  ;;  %v15786_v59 = vld [vmem:[%s15185_s27 + $0x148] sm:$0xff]  }
  0x88   : > { %13121 = vmatprep.mubr.msk.bf16.mxu0 %vm1269_vm3, %v4693_v56  ;;  %19168 = vst [vmem:[#allocation65_spill] sm:$0xff] %v15670_v52  ;;  %v4697_v56 = vsel %vm4574_vm4, %v4692_v2, %v4696_v33  ;;  %v4707_v16 = vrot.slane %v15670_v52, 2  ;;  %v975_v2 = vor.u32 %v15605_v8, %v971_v23  ;;  %v15695_v33 = vshll.u32 %v15681_v19, 16 }
  0x89   : > { %v988_v23 = vsel %vm720_vm2, %v983_v25, %v987_v49  ;;  %v4710_v50 = vrot.slane %v15698_v55, 1  ;;  %v15720_v25 = vld [vmem:[%s15185_s27 + $0x10] sm:$0xff]   ;;  %v15818_v8 = vshll.u32 %v15786_v59, 16 }
  0x8a   : > { %19170 = vst [vmem:[#allocation67_spill] sm:$0xff] %v15695_v33  ;;  %v4708_v36 = vor.u32 %v4707_v16, %v4706_v3  ;;  %v991_v3 = vor.u32 %v15639_v45, %v987_v49  ;;  %v15714_v16 = vld [vmem:[%s15185_s27 + $0x128] sm:$0xff]  }
  0x8b   : > { %19182 = vst [vmem:[#allocation79_spill] sm:$0xff] %v15818_v8 }
  0x8d   : > { %12570 = vmatmul.mubr.msk.bf16.gmra.mrb[56].mxu1 %vm1269_vm3, %v964_v24  ;;  %v4704_v24 = vor.u32 %v4703_v18, %v4702_v22  ;;  %v4711_v22 = vrot.slane %v15695_v33, 2 }
  0x8e   : > { %12573 = vmatprep.mubr.msk.bf16.mxu1 %vm1269_vm3, %v972_v14  ;;  %v980_v14 = vsel %vm720_vm2, %v975_v2, %v979_v5 }
  0x8f   : > { %13122 = vmatmul.mubr.msk.bf16.gmra.mrb[56].mxu0 %vm1269_vm3, %v4697_v56  ;;  %v4705_v56 = vsel %vm4574_vm4, %v4700_v34, %v4704_v24  ;;  %v4709_v18 = vsel %vm4574_vm4, %v4704_v24, %v4708_v36  ;;  %v1003_v34 = vrot.slane %v15670_v52, 1  ;;  %v15717_v2 = vor.u32 %v4711_v22, %v4710_v50 }
  0x90   : > { %13125 = vmatprep.mubr.msk.bf16.mxu0 %vm1269_vm3, %v4701_v53  ;;  %v995_v53 = vrot.slane %v15664_v47, 1  ;;  %v5786_v24 = vrot.slane %v15720_v25, 2  ;;  %v1011_v52 = vrot.slane %v15695_v33, 1  ;;  %v15738_v47 = vld [vmem:[%s15185_s27 + $0x130] sm:$0xff]  }
  0x91   : > { %19172 = vst [vmem:[#allocation69_spill] sm:$0xff] %v15717_v2  ;;  %v4713_v50 = vsel %vm4574_vm4, %v4708_v36, %v15717_v2  ;;  %v15750_v36 = vld [vmem:[%s15185_s27 + $0x20] sm:$0xff]   ;;  %v15762_v2 = vshrl.u32 %v15714_v16, 16 }
  0x92   : > { %v999_v5 = vor.u32 %v15667_v54, %v995_v53  ;;  %v15746_v54 = vld [vmem:[%s15185_s27 + $0x138] sm:$0xff]  }
  0x93   : > { %19175 = vst [vmem:[#allocation72_spill] sm:$0xff] %v15762_v2  ;;  %v15769_v33 = vshll.u32 %v15746_v54, 16 }
  0x95   : > { %12574 = vmatmul.mubr.msk.bf16.gmra.mrb[60].mxu1 %vm1269_vm3, %v980_v14  ;;  %v15724_v14 = vld [vmem:[%s15185_s27 + $0x18] sm:$0xff]   ;;  %19177 = vst [vmem:[#allocation74_spill] sm:$0xff] %v15769_v33 }
  0x96   : > { %12577 = vmatprep.mubr.msk.bf16.mxu1 %vm1269_vm3, %v988_v23  ;;  %v5787_v49 = vrot.slane %v15724_v14, 2  ;;  %v996_v23 = vsel %vm720_vm2, %v991_v3, %v995_v53  ;;  %v1007_v53 = vor.u32 %v15673_v21, %v1003_v34  ;;  %v1015_v3 = vor.u32 %v15698_v55, %v1011_v52 }
  0x97   : > { %13126 = vmatmul.mubr.msk.bf16.gmra.mrb[60].mxu0 %vm1269_vm3, %v4705_v56  ;;  %v1004_v56 = vsel %vm720_vm2, %v999_v5, %v1003_v34  ;;  %v15758_v34 = vshll.u32 %v15738_v47, 16 }
  0x98   : > { %13129 = vmatprep.mubr.msk.bf16.mxu0 %vm1269_vm3, %v4709_v18  ;;  %v15730_v18 = vshll.u32 %v15714_v16, 16  ;;  %v5788_v22 = vsel %vm5785_vm5, %v5786_v24, %v5787_v49  ;;  %v5789_v24 = vrot.slane %v15750_v36, 2 }
  0x99   : > { %19174 = vst [vmem:[#allocation71_spill] sm:$0xff] %v15758_v34 }
  0x9a   : > { %19173 = vst [vmem:[#allocation70_spill] sm:$0xff] %v15730_v18  ;;  %v1019_v5 = vrot.slane %v15730_v18, 1  ;;  %v5790_v55 = vsel %vm5785_vm5, %v5787_v49, %v5789_v24  ;;  %v1035_v49 = vrot.slane %v15769_v33, 1 }
  0x9c   : > { %v1020_v18 = vsel %vm720_vm2, %v1015_v3, %v1019_v5  ;;  %v1023_v3 = vor.u32 %v15762_v2, %v1019_v5 }
  0x9d   : > { %12578 = vmatmul.mubr.msk.bf16.gmra.mrb[64].mxu1 %vm1269_vm3, %v996_v23  ;;  %v15754_v23 = vld [vmem:[%s15185_s27 + $0x28] sm:$0xff]  }
  0x9e   : > { %12581 = vmatprep.mubr.msk.bf16.mxu1 %vm1269_vm3, %v1004_v56  ;;  %v5791_v56 = vrot.slane %v15754_v23, 2 }
  0x9f   : > { %13130 = vmatmul.mubr.msk.bf16.gmra.mrb[64].mxu0 %vm1269_vm3, %v4713_v50  ;;  %v1012_v50 = vsel %vm720_vm2, %v1007_v53, %v1011_v52  ;;  %v1027_v52 = vrot.slane %v15758_v34, 1  ;;  %v15778_v53 = vld [vmem:[%s15185_s27 + $0x140] sm:$0xff]  }
  0xa0   : > { %13203 = vmatprep.mubr.msk.bf16.mxu0 %vm1269_vm3, %v5788_v22  ;;  %v15766_v22 = vshrl.u32 %v15738_v47, 16  ;;  %v15774_v21 = vsel %vm5785_vm5, %v5789_v24, %v5791_v56  ;;  %v370_v24 = vld [vmem:[%s18801_s1 + $0x4] sm:$0x3]  ;;  %v15806_v34 = vshll.u32 %v15778_v53, 16 }
  0xa1   : > { %19178 = vst [vmem:[#allocation75_spill] sm:$0xff] %v15774_v21  ;;  %v15799_v5 = vand.u32 %v15161_v4, %v370_v24  ;;  %v15815_v24 = vshrl.u32 %v15778_v53, 16 }
  0xa2   : > { %19176 = vst [vmem:[#allocation73_spill] sm:$0xff] %v15766_v22  ;;  %v1031_v45 = vor.u32 %v15766_v22, %v1027_v52  ;;  %19179 = vst [vmem:[#allocation76_spill] sm:$0xff] %v15806_v34  ;;  %v15810_v22 = vshrl.u32 %v15746_v54, 16 }
  0xa3   : > { %12787 = vmatprep.subr.bf16.mxu1 %v15799_v5  ;;  %19181 = vst [vmem:[#allocation78_spill] sm:$0xff] %v15815_v24 }
  0xa4   : > { %19180 = vst [vmem:[#allocation77_spill] sm:$0xff] %v15810_v22  ;;  %v1036_v2 = vsel %vm720_vm2, %v1031_v45, %v1035_v49  ;;  %v1039_v45 = vor.u32 %v15810_v22, %v1035_v49 }
  0xa5   : > { %12582 = vmatmul.mubr.msk.bf16.gmra.mrb[68].mxu1 %vm1269_vm3, %v1012_v50  ;;  %v15802_v50 = vld [vmem:[%s15185_s27 + $0x38] sm:$0xff]  }
  0xa6   : > { %12585 = vmatprep.mubr.msk.bf16.mxu1 %vm1269_vm3, %v1020_v18  ;;  %v15795_v18 = vld [vmem:[%s15185_s27 + $0x30] sm:$0xff]   ;;  %v5795_v33 = vrot.slane %v15802_v50, 2 }
  0xa7   : > { %13204 = vmatmul.mubr.msk.bf16.vlgmr.msra.gmra.mrb[0].mxu0 %vm1269_vm3, %v5790_v55  ;;  %v5793_v55 = vrot.slane %v15795_v18, 2 }
  0xa8   : > { %13340 = vmatpush3.bf16.msra.mxu0 %v15518_v46  ;;  %13207 = vmatprep.mubr.msk.bf16.mxu0 %vm1269_vm3, %v15774_v21  ;;  %v1028_v46 = vsel %vm720_vm2, %v1023_v3, %v1027_v52  ;;  %v1043_v3 = vrot.slane %v15806_v34, 1  ;;  %v15851_v34 = vshll.u32 %v15829_v32, 16 }
  0xa9   : > { %v15821_v31 = vsel %vm5785_vm5, %v5791_v56, %v5793_v55  ;;  %v15825_v52 = vsel %vm5785_vm5, %v5793_v55, %v5795_v33  ;;  %v1051_v56 = vrot.slane %v15818_v8, 1  ;;  %v15843_v55 = vld [vmem:[%s15185_s27 + $0x40] sm:$0xff]  }
  0xaa   : > { %19183 = vst [vmem:[#allocation80_spill] sm:$0xff] %v15821_v31  ;;  %19184 = vst [vmem:[#allocation81_spill] sm:$0xff] %v15825_v52  ;;  %v1047_v15 = vor.u32 %v15815_v24, %v1043_v3  ;;  %v1044_v8 = vsel %vm720_vm2, %v1039_v45, %v1043_v3  ;;  %v15855_v24 = vshrl.u32 %v15786_v59, 16  ;;  %v1059_v45 = vrot.slane %v15851_v34, 1 }
  0xab   : > { %19185 = vst [vmem:[#allocation82_spill] sm:$0xff] %v15851_v34  ;;  %v15895_v34 = vshll.u32 %v15873_v0, 16 }
  0xac   : > { %19186 = vst [vmem:[#allocation83_spill] sm:$0xff] %v15855_v24  ;;  %v1052_v22 = vsel %vm720_vm2, %v1047_v15, %v1051_v56  ;;  %v1055_v15 = vor.u32 %v15855_v24, %v1051_v56  ;;  %v1063_v57 = vor.u32 %v15859_v9, %v1059_v45  ;;  %v15899_v9 = vshrl.u32 %v15838_v20, 16 }
  0xad   : > { %12586 = vmatmul.mubr.msk.bf16.gmra.mrb[72].mxu1 %vm1269_vm3, %v1028_v46  ;;  %v5797_v46 = vrot.slane %v15843_v55, 2  ;;  %19191 = vst [vmem:[#allocation88_spill] sm:$0xff] %v15895_v34 }
  0xae   : > { %12589 = vmatprep.mubr.msk.bf16.mxu1 %vm1269_vm3, %v1036_v2  ;;  %v15847_v2 = vld [vmem:[%s15185_s27 + $0x48] sm:$0xff]   ;;  %19192 = vst [vmem:[#allocation89_spill] sm:$0xff] %v15899_v9 }
  0xaf   : > { %13208 = vmatmul.mubr.msk.bf16.gmra.mrb[4].mxu0 %vm1269_vm3, %v15821_v31  ;;  %v5799_v49 = vrot.slane %v15847_v2, 2  ;;  %v15865_v63 = vsel %vm5785_vm5, %v5795_v33, %v5797_v46  ;;  %v1067_v33 = vrot.slane %v15862_v12, 1  ;;  %v1060_v12 = vsel %vm720_vm2, %v1055_v15, %v1059_v45 }
  0xb0   : > { %13211 = vmatprep.mubr.msk.bf16.mxu0 %vm1269_vm3, %v15825_v52  ;;  %19189 = vst [vmem:[#allocation86_spill] sm:$0xff] %v15865_v63  ;;  %v1075_v15 = vrot.slane %v15895_v34, 1  ;;  %v15939_v34 = vshll.u32 %v15917_v30, 16 }
  0xb1   : > { %v15869_v3 = vsel %vm5785_vm5, %v5797_v46, %v5799_v49  ;;  %v1068_v24 = vsel %vm720_vm2, %v1063_v57, %v1067_v33  ;;  %v1071_v57 = vor.u32 %v15899_v9, %v1067_v33 }
  0xb2   : > { %19190 = vst [vmem:[#allocation87_spill] sm:$0xff] %v15869_v3  ;;  %v1079_v7 = vor.u32 %v15903_v43, %v1075_v15  ;;  %19197 = vst [vmem:[#allocation94_spill] sm:$0xff] %v15939_v34  ;;  %v15943_v43 = vshrl.u32 %v15882_v58, 16 }
  0xb4   : > { %19198 = vst [vmem:[#allocation95_spill] sm:$0xff] %v15943_v43 }
  0xb5   : > { %12590 = vmatmul.mubr.msk.bf16.gmra.mrb[76].mxu1 %vm1269_vm3, %v1044_v8  ;;  %v15887_v8 = vld [vmem:[%s15185_s27 + $0x50] sm:$0xff]  }
  0xb6   : > { %12593 = vmatprep.mubr.msk.bf16.mxu1 %vm1269_vm3, %v1052_v22  ;;  %v5801_v46 = vrot.slane %v15887_v8, 2  ;;  %v15891_v22 = vld [vmem:[%s15185_s27 + $0x58] sm:$0xff]  }
  0xb7   : > { %13212 = vmatmul.mubr.msk.bf16.gmra.mrb[8].mxu0 %vm1269_vm3, %v15865_v63  ;;  %v5803_v56 = vrot.slane %v15891_v22, 2 }
  0xb8   : > { %13215 = vmatprep.mubr.msk.bf16.mxu0 %vm1269_vm3, %v15869_v3  ;;  %v15909_v29 = vsel %vm5785_vm5, %v5799_v49, %v5801_v46  ;;  %v1083_v49 = vrot.slane %v15906_v48, 1  ;;  %v15926_v3 = vld [vmem:[%s15185_s27 + $0x178] sm:$0xff]   ;;  %v1076_v48 = vsel %vm720_vm2, %v1071_v57, %v1075_v15  ;;  %v1091_v15 = vrot.slane %v15939_v34, 1  ;;  %v15961_v57 = vld [vmem:[%s15185_s27 + $0x180] sm:$0xff]  }
  0xb9   : > { %19195 = vst [vmem:[#allocation92_spill] sm:$0xff] %v15909_v29  ;;  %v15913_v45 = vsel %vm5785_vm5, %v5801_v46, %v5803_v56 }
  0xba   : > { %19196 = vst [vmem:[#allocation93_spill] sm:$0xff] %v15913_v45  ;;  %v1084_v9 = vsel %vm720_vm2, %v1079_v7, %v1083_v49  ;;  %v1087_v7 = vor.u32 %v15943_v43, %v1083_v49  ;;  %v15980_v49 = vshll.u32 %v15961_v57, 16 }
  0xbc   : > { %19204 = vst [vmem:[#allocation101_spill] sm:$0xff] %v15980_v49 }
  0xbd   : > { %12594 = vmatmul.mubr.msk.bf16.gmra.mrb[80].mxu1 %vm1269_vm3, %v1060_v12  ;;  %v15931_v12 = vld [vmem:[%s15185_s27 + $0x60] sm:$0xff]  }
  0xbe   : > { %12597 = vmatprep.mubr.msk.bf16.mxu1 %vm1269_vm3, %v1068_v24  ;;  %v5805_v46 = vrot.slane %v15931_v12, 2  ;;  %v15935_v24 = vld [vmem:[%s15185_s27 + $0x68] sm:$0xff]  }
  0xbf   : > { %13216 = vmatmul.mubr.msk.bf16.gmra.mrb[12].mxu0 %vm1269_vm3, %v15909_v29  ;;  %v5807_v33 = vrot.slane %v15935_v24, 2  ;;  %v15950_v29 = vshll.u32 %v15926_v3, 16 }
  0xc0   : > { %13219 = vmatprep.mubr.msk.bf16.mxu0 %vm1269_vm3, %v15913_v45  ;;  %v15947_v45 = vshrl.u32 %v15917_v30, 16  ;;  %v15953_v63 = vsel %vm5785_vm5, %v5803_v56, %v5805_v46 }
  0xc1   : > { %19200 = vst [vmem:[#allocation97_spill] sm:$0xff] %v15950_v29  ;;  %19201 = vst [vmem:[#allocation98_spill] sm:$0xff] %v15953_v63  ;;  %v15957_v52 = vsel %vm5785_vm5, %v5805_v46, %v5807_v33  ;;  %v1099_v56 = vrot.slane %v15950_v29, 1  ;;  %v15975_v46 = vld [vmem:[%s15185_s27 + $0x70] sm:$0xff]   ;;  %v15984_v29 = vshrl.u32 %v15926_v3, 16 }
  0xc2   : > { %19199 = vst [vmem:[#allocation96_spill] sm:$0xff] %v15947_v45  ;;  %19202 = vst [vmem:[#allocation99_spill] sm:$0xff] %v15957_v52  ;;  %v1095_v31 = vor.u32 %v15947_v45, %v1091_v15  ;;  %v5809_v34 = vrot.slane %v15975_v46, 2  ;;  %v1092_v45 = vsel %vm720_vm2, %v1087_v7, %v1091_v15  ;;  %v1107_v15 = vrot.slane %v15980_v49, 1  ;;  %v16002_v7 = vld [vmem:[%s15185_s27 + $0x190] sm:$0xff]  }
  0xc3   : > { %19203 = vst [vmem:[#allocation100_spill] sm:$0xff] %v15975_v46  ;;  %19205 = vst [vmem:[#allocation102_spill] sm:$0xff] %v15984_v29  ;;  %v5815_v49 = vrot.slane %v15342_v40, 2 }
  0xc4   : > { %v1100_v43 = vsel %vm720_vm2, %v1095_v31, %v1099_v56  ;;  %v15994_v21 = vsel %vm5785_vm5, %v5807_v33, %v5809_v34  ;;  %v1103_v31 = vor.u32 %v15984_v29, %v1099_v56  ;;  %v16026_v29 = vshrl.u32 %v16002_v7, 16 }
  0xc5   : > { %12598 = vmatmul.mubr.msk.bf16.gmra.mrb[84].mxu1 %vm1269_vm3, %v1076_v48  ;;  %v15970_v48 = vld [vmem:[%s15185_s27 + $0x188] sm:$0xff]   ;;  %19208 = vst [vmem:[#allocation105_spill] sm:$0xff] %v15994_v21 }
  0xc6   : > { %12601 = vmatprep.mubr.msk.bf16.mxu1 %vm1269_vm3, %v1084_v9  ;;  %v5811_v9 = vrot.slane %v15310_v11, 2  ;;  %v1108_v56 = vsel %vm720_vm2, %v1103_v31, %v1107_v15  ;;  %19212 = vst [vmem:[#allocation109_spill] sm:$0xff] %v16026_v29  ;;  %v16040_v31 = vld [vmem:[%s15185_s27 + $0x1a0] sm:$0xff]  }
  0xc7   : > { %13220 = vmatmul.mubr.msk.bf16.gmra.mrb[16].mxu0 %vm1269_vm3, %v15953_v63  ;;  %v15988_v63 = vshrl.u32 %v15961_v57, 16 }
  0xc8   : > { %13223 = vmatprep.mubr.msk.bf16.mxu0 %vm1269_vm3, %v15957_v52  ;;  %v15991_v52 = vshll.u32 %v15970_v48, 16  ;;  %v15998_v11 = vsel %vm5785_vm5, %v5809_v34, %v5811_v9  ;;  %v5813_v34 = vrot.slane %v15331_v26, 2 }
  0xc9   : > { %19206 = vst [vmem:[#allocation103_spill] sm:$0xff] %v15988_v63  ;;  %19209 = vst [vmem:[#allocation106_spill] sm:$0xff] %v15998_v11  ;;  %v1111_v46 = vor.u32 %v15988_v63, %v1107_v15  ;;  %v16022_v63 = vshrl.u32 %v15970_v48, 16 }
  0xca   : > { %19207 = vst [vmem:[#allocation104_spill] sm:$0xff] %v15991_v52  ;;  %v1115_v33 = vrot.slane %v15991_v52, 1  ;;  %v16032_v26 = vsel %vm5785_vm5, %v5811_v9, %v5813_v34  ;;  %v16036_v40 = vsel %vm5785_vm5, %v5813_v34, %v5815_v49  ;;  %v5817_v34 = vrot.slane %v15366_v61, 2 }
  0xcb   : > { %19211 = vst [vmem:[#allocation108_spill] sm:$0xff] %v16022_v63  ;;  %19214 = vst [vmem:[#allocation111_spill] sm:$0xff] %v16032_v26 }
  0xcc   : > { %v1116_v52 = vsel %vm720_vm2, %v1111_v46, %v1115_v33  ;;  %19215 = vst [vmem:[#allocation112_spill] sm:$0xff] %v16036_v40  ;;  %v1119_v46 = vor.u32 %v16022_v63, %v1115_v33  ;;  %v16064_v63 = vshrl.u32 %v16040_v31, 16  ;;  %v16070_v61 = vsel %vm5785_vm5, %v5815_v49, %v5817_v34 }
  0xcd   : > { %12602 = vmatmul.mubr.msk.bf16.gmra.mrb[88].mxu1 %vm1269_vm3, %v1092_v45  ;;  %v16011_v45 = vld [vmem:[%s15185_s27 + $0x198] sm:$0xff]   ;;  %19220 = vst [vmem:[#allocation117_spill] sm:$0xff] %v16070_v61 }
  0xce   : > { %12605 = vmatprep.mubr.msk.bf16.mxu1 %vm1269_vm3, %v1100_v43  ;;  %v16018_v43 = vshll.u32 %v16002_v7, 16  ;;  %19218 = vst [vmem:[#allocation115_spill] sm:$0xff] %v16064_v63 }
  0xcf   : > { %13224 = vmatmul.mubr.msk.bf16.gmra.mrb[20].mxu0 %vm1269_vm3, %v15994_v21 }
  0xd0   : > { %13227 = vmatprep.mubr.msk.bf16.mxu0 %vm1269_vm3, %v15998_v11  ;;  %19210 = vst [vmem:[#allocation107_spill] sm:$0xff] %v16018_v43  ;;  %v16029_v11 = vshll.u32 %v16011_v45, 16  ;;  %v1123_v15 = vrot.slane %v16018_v43, 1  ;;  %v5819_v43 = vrot.slane %v15369_v62, 2 }
  0xd2   : > { %19213 = vst [vmem:[#allocation110_spill] sm:$0xff] %v16029_v11  ;;  %v1127_v21 = vor.u32 %v16026_v29, %v1123_v15  ;;  %v1131_v9 = vrot.slane %v16029_v11, 1  ;;  %v1124_v33 = vsel %vm720_vm2, %v1119_v46, %v1123_v15  ;;  %v16060_v29 = vshrl.u32 %v16011_v45, 16  ;;  %v16078_v46 = vld [vmem:[%s15185_s27 + $0x1b0] sm:$0xff]  }
  0xd3   : > { %v16074_v62 = vsel %vm5785_vm5, %v5817_v34, %v5819_v43  ;;  %v5821_v34 = vrot.slane %v15400_v37, 2 }
  0xd4   : > { %19217 = vst [vmem:[#allocation114_spill] sm:$0xff] %v16060_v29  ;;  %v1132_v11 = vsel %vm720_vm2, %v1127_v21, %v1131_v9  ;;  %19221 = vst [vmem:[#allocation118_spill] sm:$0xff] %v16074_v62  ;;  %v1135_v21 = vor.u32 %v16060_v29, %v1131_v9  ;;  %v16102_v29 = vshrl.u32 %v16078_v46, 16 }
  0xd5   : > { %12606 = vmatmul.mubr.msk.bf16.gmra.mrb[92].mxu1 %vm1269_vm3, %v1108_v56  ;;  %v16049_v56 = vld [vmem:[%s15185_s27 + $0x1a8] sm:$0xff]   ;;  %v16108_v37 = vsel %vm5785_vm5, %v5819_v43, %v5821_v34 }
  0xd6   : > { %12609 = vmatprep.mubr.msk.bf16.mxu1 %vm1269_vm3, %v1116_v52  ;;  %v16056_v52 = vshll.u32 %v16040_v31, 16  ;;  %19224 = vst [vmem:[#allocation121_spill] sm:$0xff] %v16102_v29  ;;  %19226 = vst [vmem:[#allocation123_spill] sm:$0xff] %v16108_v37 }
  0xd7   : > { %13228 = vmatmul.mubr.msk.bf16.gmra.mrb[24].mxu0 %vm1269_vm3, %v16032_v26 }
  0xd8   : > { %13231 = vmatprep.mubr.msk.bf16.mxu0 %vm1269_vm3, %v16036_v40  ;;  %19216 = vst [vmem:[#allocation113_spill] sm:$0xff] %v16056_v52  ;;  %v16067_v40 = vshll.u32 %v16049_v56, 16  ;;  %v1139_v15 = vrot.slane %v16056_v52, 1  ;;  %v5823_v52 = vrot.slane %v15403_v38, 2 }
  0xda   : > { %19219 = vst [vmem:[#allocation116_spill] sm:$0xff] %v16067_v40  ;;  %v1143_v26 = vor.u32 %v16064_v63, %v1139_v15  ;;  %v1147_v49 = vrot.slane %v16067_v40, 1  ;;  %v1140_v9 = vsel %vm720_vm2, %v1135_v21, %v1139_v15  ;;  %v16098_v63 = vshrl.u32 %v16049_v56, 16  ;;  %v16116_v21 = vld [vmem:[%s15185_s27 + $0x1c0] sm:$0xff]  }
  0xdb   : > { %v16112_v38 = vsel %vm5785_vm5, %v5821_v34, %v5823_v52  ;;  %v5825_v34 = vrot.slane %v15432_v13, 2 }
  0xdc   : > { %19223 = vst [vmem:[#allocation120_spill] sm:$0xff] %v16098_v63  ;;  %v1148_v40 = vsel %vm720_vm2, %v1143_v26, %v1147_v49  ;;  %19227 = vst [vmem:[#allocation124_spill] sm:$0xff] %v16112_v38  ;;  %v1151_v26 = vor.u32 %v16098_v63, %v1147_v49  ;;  %v16140_v63 = vshrl.u32 %v16116_v21, 16 }
  0xdd   : > { %12610 = vmatmul.mubr.msk.bf16.gmra.mrb[96].mxu1 %vm1269_vm3, %v1124_v33  ;;  %v16087_v33 = vld [vmem:[%s15185_s27 + $0x1b8] sm:$0xff]   ;;  %v16146_v13 = vsel %vm5785_vm5, %v5823_v52, %v5825_v34 }
  0xde   : > { %12613 = vmatprep.mubr.msk.bf16.mxu1 %vm1269_vm3, %v1132_v11  ;;  %v16094_v11 = vshll.u32 %v16078_v46, 16  ;;  %19230 = vst [vmem:[#allocation127_spill] sm:$0xff] %v16140_v63  ;;  %19232 = vst [vmem:[#allocation129_spill] sm:$0xff] %v16146_v13 }
  0xdf   : > { %13232 = vmatmul.mubr.msk.bf16.gmra.mrb[28].mxu0 %vm1269_vm3, %v16070_v61 }
  0xe0   : > { %13235 = vmatprep.mubr.msk.bf16.mxu0 %vm1269_vm3, %v16074_v62  ;;  %19222 = vst [vmem:[#allocation119_spill] sm:$0xff] %v16094_v11  ;;  %v16105_v62 = vshll.u32 %v16087_v33, 16  ;;  %v1155_v15 = vrot.slane %v16094_v11, 1  ;;  %v5827_v11 = vrot.slane %v15437_v28, 2 }
  0xe2   : > { %19225 = vst [vmem:[#allocation122_spill] sm:$0xff] %v16105_v62  ;;  %v1159_v61 = vor.u32 %v16102_v29, %v1155_v15  ;;  %v1163_v43 = vrot.slane %v16105_v62, 1  ;;  %v1156_v49 = vsel %vm720_vm2, %v1151_v26, %v1155_v15  ;;  %v16136_v29 = vshrl.u32 %v16087_v33, 16  ;;  %v16154_v26 = vld [vmem:[%s15185_s27 + $0x1d0] sm:$0xff]  }
  0xe3   : > { %v16150_v28 = vsel %vm5785_vm5, %v5825_v34, %v5827_v11  ;;  %v5829_v34 = vrot.slane %v15468_v39, 2 }
  0xe4   : > { %19229 = vst [vmem:[#allocation126_spill] sm:$0xff] %v16136_v29  ;;  %v1164_v62 = vsel %vm720_vm2, %v1159_v61, %v1163_v43  ;;  %19233 = vst [vmem:[#allocation130_spill] sm:$0xff] %v16150_v28  ;;  %v1167_v61 = vor.u32 %v16136_v29, %v1163_v43  ;;  %v16178_v29 = vshrl.u32 %v16154_v26, 16 }
  0xe5   : > { %12614 = vmatmul.mubr.msk.bf16.gmra.mrb[100].mxu1 %vm1269_vm3, %v1140_v9  ;;  %v16125_v9 = vld [vmem:[%s15185_s27 + $0x1c8] sm:$0xff]   ;;  %v16184_v39 = vsel %vm5785_vm5, %v5827_v11, %v5829_v34 }
  0xe6   : > { %12617 = vmatprep.mubr.msk.bf16.mxu1 %vm1269_vm3, %v1148_v40  ;;  %v16132_v40 = vshll.u32 %v16116_v21, 16  ;;  %19236 = vst [vmem:[#allocation133_spill] sm:$0xff] %v16178_v29  ;;  %19238 = vst [vmem:[#allocation135_spill] sm:$0xff] %v16184_v39 }
  0xe7   : > { %13236 = vmatmul.mubr.msk.bf16.gmra.mrb[32].mxu0 %vm1269_vm3, %v16108_v37 }
  0xe8   : > { %13239 = vmatprep.mubr.msk.bf16.mxu0 %vm1269_vm3, %v16112_v38  ;;  %19228 = vst [vmem:[#allocation125_spill] sm:$0xff] %v16132_v40  ;;  %v16143_v38 = vshll.u32 %v16125_v9, 16  ;;  %v1171_v15 = vrot.slane %v16132_v40, 1  ;;  %v5831_v40 = vrot.slane %v15471_v41, 2 }
  0xea   : > { %19231 = vst [vmem:[#allocation128_spill] sm:$0xff] %v16143_v38  ;;  %v1175_v37 = vor.u32 %v16140_v63, %v1171_v15  ;;  %v1179_v52 = vrot.slane %v16143_v38, 1  ;;  %v1172_v43 = vsel %vm720_vm2, %v1167_v61, %v1171_v15  ;;  %v16174_v63 = vshrl.u32 %v16125_v9, 16  ;;  %v16192_v61 = vld [vmem:[%s15185_s27 + $0x1e0] sm:$0xff]  }
  0xeb   : > { %v16188_v41 = vsel %vm5785_vm5, %v5829_v34, %v5831_v40  ;;  %v5833_v34 = vrot.slane %v15504_v44, 2 }
  0xec   : > { %19235 = vst [vmem:[#allocation132_spill] sm:$0xff] %v16174_v63  ;;  %v1180_v38 = vsel %vm720_vm2, %v1175_v37, %v1179_v52  ;;  %19239 = vst [vmem:[#allocation136_spill] sm:$0xff] %v16188_v41  ;;  %v1183_v37 = vor.u32 %v16174_v63, %v1179_v52  ;;  %v16216_v63 = vshrl.u32 %v16192_v61, 16 }
  0xed   : > { %12618 = vmatmul.mubr.msk.bf16.gmra.mrb[104].mxu1 %vm1269_vm3, %v1156_v49  ;;  %v16163_v49 = vld [vmem:[%s15185_s27 + $0x1d8] sm:$0xff]   ;;  %v16222_v44 = vsel %vm5785_vm5, %v5831_v40, %v5833_v34 }
  0xee   : > { %12621 = vmatprep.mubr.msk.bf16.mxu1 %vm1269_vm3, %v1164_v62  ;;  %v16170_v62 = vshll.u32 %v16154_v26, 16  ;;  %19242 = vst [vmem:[#allocation139_spill] sm:$0xff] %v16216_v63  ;;  %19244 = vst [vmem:[#allocation141_spill] sm:$0xff] %v16222_v44 }
  0xef   : > { %13240 = vmatmul.mubr.msk.bf16.gmra.mrb[36].mxu0 %vm1269_vm3, %v16146_v13 }
  0xf0   : > { %13243 = vmatprep.mubr.msk.bf16.mxu0 %vm1269_vm3, %v16150_v28  ;;  %19234 = vst [vmem:[#allocation131_spill] sm:$0xff] %v16170_v62  ;;  %v16181_v28 = vshll.u32 %v16163_v49, 16  ;;  %v1187_v15 = vrot.slane %v16170_v62, 1  ;;  %v5835_v62 = vrot.slane %v15511_v27, 2 }
  0xf2   : > { %19237 = vst [vmem:[#allocation134_spill] sm:$0xff] %v16181_v28  ;;  %v1191_v13 = vor.u32 %v16178_v29, %v1187_v15  ;;  %v1195_v11 = vrot.slane %v16181_v28, 1  ;;  %v1188_v52 = vsel %vm720_vm2, %v1183_v37, %v1187_v15  ;;  %v16212_v29 = vshrl.u32 %v16163_v49, 16  ;;  %v16230_v37 = vld [vmem:[%s15185_s27 + $0x1f0] sm:$0xff]  }
  0xf3   : > { %v16226_v27 = vsel %vm5785_vm5, %v5833_v34, %v5835_v62  ;;  %v5837_v34 = vrot.slane %v15542_v42, 2 }
  0xf4   : > { %19241 = vst [vmem:[#allocation138_spill] sm:$0xff] %v16212_v29  ;;  %v1196_v28 = vsel %vm720_vm2, %v1191_v13, %v1195_v11  ;;  %19245 = vst [vmem:[#allocation142_spill] sm:$0xff] %v16226_v27  ;;  %v1199_v13 = vor.u32 %v16212_v29, %v1195_v11  ;;  %v16254_v29 = vshrl.u32 %v16230_v37, 16 }
  0xf5   : > { %12622 = vmatmul.mubr.msk.bf16.gmra.mrb[108].mxu1 %vm1269_vm3, %v1172_v43  ;;  %v16201_v43 = vld [vmem:[%s15185_s27 + $0x1e8] sm:$0xff]   ;;  %v16260_v42 = vsel %vm5785_vm5, %v5835_v62, %v5837_v34 }
  0xf6   : > { %12625 = vmatprep.mubr.msk.bf16.mxu1 %vm1269_vm3, %v1180_v38  ;;  %v16208_v38 = vshll.u32 %v16192_v61, 16  ;;  %19248 = vst [vmem:[#allocation145_spill] sm:$0xff] %v16254_v29  ;;  %19250 = vst [vmem:[#allocation147_spill] sm:$0xff] %v16260_v42 }
  0xf7   : > { %13244 = vmatmul.mubr.msk.bf16.gmra.mrb[40].mxu0 %vm1269_vm3, %v16184_v39 }
  0xf8   : > { %13247 = vmatprep.mubr.msk.bf16.mxu0 %vm1269_vm3, %v16188_v41  ;;  %19240 = vst [vmem:[#allocation137_spill] sm:$0xff] %v16208_v38  ;;  %v16219_v41 = vshll.u32 %v16201_v43, 16  ;;  %v1203_v15 = vrot.slane %v16208_v38, 1  ;;  %v5839_v38 = vrot.slane %v15553_v10, 2 }
  0xfa   : > { %19243 = vst [vmem:[#allocation140_spill] sm:$0xff] %v16219_v41  ;;  %v1207_v39 = vor.u32 %v16216_v63, %v1203_v15  ;;  %v1211_v40 = vrot.slane %v16219_v41, 1  ;;  %v1204_v11 = vsel %vm720_vm2, %v1199_v13, %v1203_v15  ;;  %v16250_v63 = vshrl.u32 %v16201_v43, 16  ;;  %v16268_v13 = vld [vmem:[%s15185_s27 + $0x200] sm:$0xff]  }
  0xfb   : > { %v16264_v10 = vsel %vm5785_vm5, %v5837_v34, %v5839_v38  ;;  %v5841_v34 = vrot.slane %v15579_v60, 2 }
  0xfc   : > { %19247 = vst [vmem:[#allocation144_spill] sm:$0xff] %v16250_v63  ;;  %v1212_v41 = vsel %vm720_vm2, %v1207_v39, %v1211_v40  ;;  %19251 = vst [vmem:[#allocation148_spill] sm:$0xff] %v16264_v10  ;;  %v1215_v39 = vor.u32 %v16250_v63, %v1211_v40  ;;  %v16292_v63 = vshrl.u32 %v16268_v13, 16 }
  0xfd   : > { %12626 = vmatmul.mubr.msk.bf16.gmra.mrb[112].mxu1 %vm1269_vm3, %v1188_v52  ;;  %v16239_v52 = vld [vmem:[%s15185_s27 + $0x1f8] sm:$0xff]   ;;  %v16298_v60 = vsel %vm5785_vm5, %v5839_v38, %v5841_v34 }
  0xfe   : > { %12629 = vmatprep.mubr.msk.bf16.mxu1 %vm1269_vm3, %v1196_v28  ;;  %v16246_v28 = vshll.u32 %v16230_v37, 16  ;;  %19254 = vst [vmem:[#allocation151_spill] sm:$0xff] %v16292_v63  ;;  %19256 = vst [vmem:[#allocation153_spill] sm:$0xff] %v16298_v60 }
  0xff   : > { %13248 = vmatmul.mubr.msk.bf16.gmra.mrb[44].mxu0 %vm1269_vm3, %v16222_v44 }
 0x100   : > { %13251 = vmatprep.mubr.msk.bf16.mxu0 %vm1269_vm3, %v16226_v27  ;;  %19246 = vst [vmem:[#allocation143_spill] sm:$0xff] %v16246_v28  ;;  %v16257_v27 = vshll.u32 %v16239_v52, 16  ;;  %v1219_v15 = vrot.slane %v16246_v28, 1  ;;  %v5843_v28 = vrot.slane %v15587_v51, 2 }
 0x102   : > { %19249 = vst [vmem:[#allocation146_spill] sm:$0xff] %v16257_v27  ;;  %v1223_v44 = vor.u32 %v16254_v29, %v1219_v15  ;;  %v1227_v62 = vrot.slane %v16257_v27, 1  ;;  %v1220_v40 = vsel %vm720_vm2, %v1215_v39, %v1219_v15  ;;  %v16288_v29 = vshrl.u32 %v16239_v52, 16  ;;  %v16306_v39 = vld [vmem:[%s15185_s27 + $0x210] sm:$0xff]  }
 0x103   : > { %v16302_v51 = vsel %vm5785_vm5, %v5841_v34, %v5843_v28  ;;  %v5845_v34 = vrot.slane %v15613_v17, 2 }
 0x104   : > { %19253 = vst [vmem:[#allocation150_spill] sm:$0xff] %v16288_v29  ;;  %v1228_v27 = vsel %vm720_vm2, %v1223_v44, %v1227_v62  ;;  %19257 = vst [vmem:[#allocation154_spill] sm:$0xff] %v16302_v51  ;;  %v1231_v44 = vor.u32 %v16288_v29, %v1227_v62 }
 0x105   : > { %12630 = vmatmul.mubr.msk.bf16.gmra.mrb[116].mxu1 %vm1269_vm3, %v1204_v11  ;;  %v16277_v11 = vld [vmem:[%s15185_s27 + $0x208] sm:$0xff]   ;;  %v16339_v17 = vsel %vm5785_vm5, %v5843_v28, %v5845_v34 }
 0x106   : > { %12633 = vmatprep.mubr.msk.bf16.mxu1 %vm1269_vm3, %v1212_v41  ;;  %v16284_v41 = vshll.u32 %v16268_v13, 16  ;;  %v16326_v29 = vshrl.u32 %v16277_v11, 16  ;;  %19262 = vst [vmem:[#allocation159_spill] sm:$0xff] %v16339_v17 }
 0x107   : > { %13252 = vmatmul.mubr.msk.bf16.gmra.mrb[48].mxu0 %vm1269_vm3, %v16260_v42 }
 0x108   : > { %13255 = vmatprep.mubr.msk.bf16.mxu0 %vm1269_vm3, %v16264_v10  ;;  %19252 = vst [vmem:[#allocation149_spill] sm:$0xff] %v16284_v41  ;;  %v16295_v10 = vshll.u32 %v16277_v11, 16  ;;  %v1235_v15 = vrot.slane %v16284_v41, 1  ;;  %v5847_v41 = vrot.slane %v15621_v35, 2  ;;  %19259 = vst [vmem:[#allocation156_spill] sm:$0xff] %v16326_v29 }
 0x10a   : > { %19255 = vst [vmem:[#allocation152_spill] sm:$0xff] %v16295_v10  ;;  %v1239_v38 = vor.u32 %v16292_v63, %v1235_v15  ;;  %v1243_v42 = vrot.slane %v16295_v10, 1  ;;  %v1236_v62 = vsel %vm720_vm2, %v1231_v44, %v1235_v15  ;;  %v16330_v10 = vshrl.u32 %v16306_v39, 16 }
 0x10b   : > { %v16343_v35 = vsel %vm5785_vm5, %v5845_v34, %v5847_v41  ;;  %v5849_v34 = vrot.slane %v15647_v6, 2 }
 0x10c   : > { %v1244_v63 = vsel %vm720_vm2, %v1239_v38, %v1243_v42  ;;  %19260 = vst [vmem:[#allocation157_spill] sm:$0xff] %v16330_v10  ;;  %v1247_v44 = vor.u32 %v16326_v29, %v1243_v42 }
 0x10d   : > { %12634 = vmatmul.mubr.msk.bf16.gmra.mrb[120].mxu1 %vm1269_vm3, %v1220_v40  ;;  %v16315_v40 = vld [vmem:[%s15185_s27 + $0x218] sm:$0xff]  }
 0x10e   : > { %12637 = vmatprep.mubr.msk.bf16.mxu1 %vm1269_vm3, %v1228_v27  ;;  %v16322_v27 = vshll.u32 %v16306_v39, 16 }
 0x10f   : > { %13256 = vmatmul.mubr.msk.bf16.gmra.mrb[52].mxu0 %vm1269_vm3, %v16298_v60  ;;  %v16333_v60 = vshll.u32 %v16315_v40, 16 }
 0x110   : > { %13259 = vmatprep.mubr.msk.bf16.mxu0 %vm1269_vm3, %v16302_v51  ;;  %19258 = vst [vmem:[#allocation155_spill] sm:$0xff] %v16322_v27  ;;  %v16336_v51 = vld [vmem:[%s15185_s27 + $0x220] sm:$0xf]  ;;  %v1251_v15 = vrot.slane %v16322_v27, 1  ;;  %v16362_v27 = vshrl.u32 %v16315_v40, 16 }
 0x111   : > { %19261 = vst [vmem:[#allocation158_spill] sm:$0xff] %v16333_v60  ;;  %v16350_v38 = vcombine.low %v16336_v51, %v16336_v51 }
 0x112   : > { %v1255_v28 = vor.u32 %v16330_v10, %v1251_v15  ;;  %v1252_v42 = vsel %vm720_vm2, %v1247_v44, %v1251_v15  ;;  %19264 = vst [vmem:[#allocation161_spill] sm:$0xff] %v16362_v27  ;;  %v16367_v10 = vsel %vm5785_vm5, %v5847_v41, %v5849_v34  ;;  %v5853_v41 = vrot.slane %v15681_v19, 2 }
 0x113   : > { %19263 = vst [vmem:[#allocation160_spill] sm:$0xff] %v16350_v38  ;;  %v1265_v29 = vshll.u32 %v16350_v38, 16  ;;  %v5855_v15 = vrot.slane %v15714_v16, 2  ;;  %v5857_v19 = vrot.slane %v15738_v47, 2 }
 0x115   : > { %12638 = vmatmul.mubr.msk.bf16.gmra.mrb[124].mxu1 %vm1269_vm3, %v1236_v62  ;;  %v1259_v62 = vrot.slane %v16333_v60, 1 }
 0x116   : > { %12641 = vmatprep.mubr.msk.bf16.mxu1 %vm1269_vm3, %v1244_v63  ;;  %v5851_v63 = vrot.slane %v15655_v1, 2  ;;  %v1267_v1 = vrot.slane %v1265_v29, 1  ;;  %v16387_v29 = vsel %vm5785_vm5, %v5853_v41, %v5855_v15 }
 0x117   : > { %13260 = vmatmul.mubr.msk.bf16.gmra.mrb[56].mxu0 %vm1269_vm3, %v16339_v17  ;;  %v1260_v17 = vsel %vm720_vm2, %v1255_v28, %v1259_v62  ;;  %v1263_v6 = vor.u32 %v16362_v27, %v1259_v62  ;;  %v5859_v62 = vrot.slane %v15746_v54, 2 }
 0x118   : > { %13263 = vmatprep.mubr.msk.bf16.mxu0 %vm1269_vm3, %v16343_v35  ;;  %v16371_v60 = vsel %vm5785_vm5, %v5849_v34, %v5851_v63  ;;  %v16383_v28 = vsel %vm5785_vm5, %v5851_v63, %v5853_v41  ;;  %v16401_v34 = vsel %vm5785_vm5, %v5855_v15, %v5857_v19  ;;  %v16404_v63 = vld [vmem:[%s15185_s27 + $0x8] sm:$0xff]   ;;  %v5863_v41 = vrot.slane %v15786_v59, 2 }
 0x119   : > { %v1268_v44 = vsel %vm720_vm2, %v1263_v6, %v1267_v1  ;;  %v5861_v6 = vrot.slane %v15778_v53, 2  ;;  %v375_v1 = vld [vmem:[%s18801_s1 + $0xe] sm:$0x3] }
 0x11a   : > { %v16424_v15 = vand.u32 %v15161_v4, %v375_v1 }
 0x11c   : > { %13477 = vmatprep.subr.bf16.mxu0 %v16424_v15 }
 0x11d   : > { %12642 = vmatmul.mubr.msk.bf16.gmra.mrb[128].mxu1 %vm1269_vm3, %v1252_v42  ;;  %v16409_v42 = vsel %vm5785_vm5, %v5857_v19, %v5859_v62  ;;  %v5867_v19 = vrot.slane %v15838_v20, 2 }
 0x11e   : > { %12645 = vmatprep.mubr.msk.bf16.mxu1 %vm1269_vm3, %v1260_v17  ;;  %v16390_v17 = vld [vmem:[%s15185_s27] sm:$0xff]  }
 0x11f   : > { %13264 = vmatmul.mubr.msk.bf16.gmra.mrb[60].mxu0 %vm1269_vm3, %v16367_v10 }
 0x120   : > { %13267 = vmatprep.mubr.msk.bf16.mxu0 %vm1269_vm3, %v16371_v60 }
 0x125   : > { %12646 = vmatmul.mubr.msk.bf16.gmra.mrb[132].mxu1 %vm1269_vm3, %v1268_v44  ;;  %v5865_v44 = vrot.slane %v15829_v32, 2 }
 0x126   : > { %12651 = vmatprep.mubr.msk.bf16.mxu1 %vm1269_vm3, %v16390_v17 }
 0x127   : > { %13268 = vmatmul.mubr.msk.bf16.gmra.mrb[64].mxu0 %vm1269_vm3, %v16383_v28 }
 0x128   : > { %13271 = vmatprep.mubr.msk.bf16.mxu0 %vm1269_vm3, %v16387_v29 }
 0x12d   : > { %12652 = vmatmul.mubr.msk.bf16.vlgmr.msra.gmra.mrb[0].mxu1 %vm1269_vm3, %v16404_v63 }
 0x12e   : > { %12788 = vmatpush3.bf16.msra.mxu1 %v15799_v5  ;;  %12655 = vmatprep.mubr.msk.bf16.mxu1 %vm1269_vm3, %v15720_v25  ;;  %v16428_v25 = vsel %vm5785_vm5, %v5859_v62, %v5861_v6  ;;  %v16433_v5 = vsel %vm5785_vm5, %v5861_v6, %v5863_v41  ;;  %v16444_v62 = vsel %vm5785_vm5, %v5863_v41, %v5865_v44  ;;  %v5871_v6 = vrot.slane %v15882_v58, 2 }
 0x12f   : > { %13272 = vmatmul.mubr.msk.bf16.gmra.mrb[68].mxu0 %vm1269_vm3, %v16401_v34  ;;  %v5875_v41 = vrot.slane %v15926_v3, 2 }
 0x130   : > { %13275 = vmatprep.mubr.msk.bf16.mxu0 %vm1269_vm3, %v16409_v42 }
 0x135   : > { %12656 = vmatmul.mubr.msk.bf16.gmra.mrb[4].mxu1 %vm1269_vm3, %v15724_v14  ;;  %v16449_v14 = vsel %vm5785_vm5, %v5865_v44, %v5867_v19 }
 0x136   : > { %12659 = vmatprep.mubr.msk.bf16.mxu1 %vm1269_vm3, %v15750_v36  ;;  %v5869_v36 = vrot.slane %v15873_v0, 2 }
 0x137   : > { %13276 = vmatmul.mubr.msk.bf16.gmra.mrb[72].mxu0 %vm1269_vm3, %v16428_v25 }
 0x138   : > { %13279 = vmatprep.mubr.msk.bf16.mxu0 %vm1269_vm3, %v16433_v5  ;;  %v16460_v1 = vsel %vm5785_vm5, %v5867_v19, %v5869_v36  ;;  %v5879_v19 = vrot.slane %v15970_v48, 2 }
 0x13d   : > { %12660 = vmatmul.mubr.msk.bf16.gmra.mrb[8].mxu1 %vm1269_vm3, %v15754_v23  ;;  %v16465_v23 = vsel %vm5785_vm5, %v5869_v36, %v5871_v6 }
 0x13e   : > { %12663 = vmatprep.mubr.msk.bf16.mxu1 %vm1269_vm3, %v15795_v18  ;;  %v5873_v18 = vrot.slane %v15917_v30, 2 }
 0x13f   : > { %13280 = vmatmul.mubr.msk.bf16.gmra.mrb[76].mxu0 %vm1269_vm3, %v16444_v62 }
 0x140   : > { %13283 = vmatprep.mubr.msk.bf16.mxu0 %vm1269_vm3, %v16449_v14  ;;  %v16476_v44 = vsel %vm5785_vm5, %v5871_v6, %v5873_v18  ;;  %v5883_v6 = vrot.slane %v16011_v45, 2 }
 0x145   : > { %12664 = vmatmul.mubr.msk.bf16.gmra.mrb[12].mxu1 %vm1269_vm3, %v15802_v50  ;;  %v16481_v50 = vsel %vm5785_vm5, %v5873_v18, %v5875_v41 }
 0x146   : > { %12667 = vmatprep.mubr.msk.bf16.mxu1 %vm1269_vm3, %v15843_v55  ;;  %v5877_v55 = vrot.slane %v15961_v57, 2 }
 0x147   : > { %13284 = vmatmul.mubr.msk.bf16.gmra.mrb[80].mxu0 %vm1269_vm3, %v16460_v1 }
 0x148   : > { %13287 = vmatprep.mubr.msk.bf16.mxu0 %vm1269_vm3, %v16465_v23  ;;  %v16492_v36 = vsel %vm5785_vm5, %v5875_v41, %v5877_v55  ;;  %v19268_v41 = vld [vmem:[#allocation100_spill] sm:$0xff] }
 0x14d   : > { %12668 = vmatmul.mubr.msk.bf16.gmra.mrb[16].mxu1 %vm1269_vm3, %v15847_v2  ;;  %v16497_v2 = vsel %vm5785_vm5, %v5877_v55, %v5879_v19  ;;  %v5885_v55 = vrot.slane %v16040_v31, 2 }
 0x14e   : > { %12671 = vmatprep.mubr.msk.bf16.mxu1 %vm1269_vm3, %v15887_v8  ;;  %19265 = vst [vmem:[#allocation162_spill] sm:$0xff] %v16497_v2  ;;  %v5881_v8 = vrot.slane %v16002_v7, 2 }
 0x14f   : > { %13288 = vmatmul.mubr.msk.bf16.gmra.mrb[84].mxu0 %vm1269_vm3, %v16476_v44  ;;  %v16524_v27 = vsel %vm5785_vm5, %v5883_v6, %v5885_v55 }
 0x150   : > { %13291 = vmatprep.mubr.msk.bf16.mxu0 %vm1269_vm3, %v16481_v50  ;;  %v16513_v18 = vsel %vm5785_vm5, %v5881_v8, %v5883_v6  ;;  %19269 = vst [vmem:[#allocation165_spill] sm:$0xff] %v16524_v27  ;;  %v5889_v6 = vrot.slane %v16078_v46, 2 }
 0x151   : > { %19267 = vst [vmem:[#allocation164_spill] sm:$0xff] %v16513_v18 }
 0x155   : > { %12672 = vmatmul.mubr.msk.bf16.gmra.mrb[20].mxu1 %vm1269_vm3, %v15891_v22  ;;  %v16508_v22 = vsel %vm5785_vm5, %v5879_v19, %v5881_v8  ;;  %v5887_v19 = vrot.slane %v16049_v56, 2  ;;  %v16527_v8 = vld [vmem:[%s15185_s27 + $0x78] sm:$0xff]  }
 0x156   : > { %12675 = vmatprep.mubr.msk.bf16.mxu1 %vm1269_vm3, %v15931_v12  ;;  %19266 = vst [vmem:[#allocation163_spill] sm:$0xff] %v16508_v22  ;;  %19270 = vst [vmem:[#allocation166_spill] sm:$0xff] %v16527_v8 }
 0x157   : > { %13292 = vmatmul.mubr.msk.bf16.gmra.mrb[88].mxu0 %vm1269_vm3, %v16492_v36  ;;  %v16532_v38 = vsel %vm5785_vm5, %v5885_v55, %v5887_v19  ;;  %v16546_v55 = vsel %vm5785_vm5, %v5887_v19, %v5889_v6  ;;  %v5893_v19 = vrot.slane %v16116_v21, 2 }
 0x158   : > { %13295 = vmatprep.mubr.msk.bf16.mxu0 %vm1269_vm3, %v16497_v2  ;;  %19271 = vst [vmem:[#allocation167_spill] sm:$0xff] %v16532_v38  ;;  %19273 = vst [vmem:[#allocation169_spill] sm:$0xff] %v16546_v55  ;;  %v16694_v2 = vld [vmem:[%s15185_s27 + $0xf0] sm:$0xff]  }
 0x159   : > { %19300 = vst [vmem:[#allocation196_spill] sm:$0xff] %v16694_v2 }
 0x15d   : > { %12676 = vmatmul.mubr.msk.bf16.gmra.mrb[24].mxu1 %vm1269_vm3, %v15935_v24 }
 0x15e   : > { %12679 = vmatprep.mubr.msk.bf16.mxu1 %vm1269_vm3, %v19268_v41 }
 0x15f   : > { %13296 = vmatmul.mubr.msk.bf16.gmra.mrb[92].mxu0 %vm1269_vm3, %v16508_v22  ;;  %v16535_v22 = vld [vmem:[%s15185_s27 + $0x80] sm:$0xff]  }
 0x160   : > { %13299 = vmatprep.mubr.msk.bf16.mxu0 %vm1269_vm3, %v16513_v18  ;;  %19272 = vst [vmem:[#allocation168_spill] sm:$0xff] %v16535_v22  ;;  %v5891_v18 = vrot.slane %v16087_v33, 2 }
 0x165   : > { %12680 = vmatmul.mubr.msk.bf16.gmra.mrb[28].mxu1 %vm1269_vm3, %v16527_v8  ;;  %v16549_v8 = vld [vmem:[%s15185_s27 + $0x88] sm:$0xff]  }
 0x166   : > { %12683 = vmatprep.mubr.msk.bf16.mxu1 %vm1269_vm3, %v16535_v22  ;;  %19274 = vst [vmem:[#allocation170_spill] sm:$0xff] %v16549_v8  ;;  %v16554_v22 = vsel %vm5785_vm5, %v5889_v6, %v5891_v18  ;;  %v16568_v6 = vsel %vm5785_vm5, %v5891_v18, %v5893_v19  ;;  %v5897_v18 = vrot.slane %v16154_v26, 2 }
 0x167   : > { %13300 = vmatmul.mubr.msk.bf16.gmra.mrb[96].mxu0 %vm1269_vm3, %v16524_v27  ;;  %19275 = vst [vmem:[#allocation171_spill] sm:$0xff] %v16554_v22  ;;  %v16557_v27 = vld [vmem:[%s15185_s27 + $0x90] sm:$0xff]   ;;  %19277 = vst [vmem:[#allocation173_spill] sm:$0xff] %v16568_v6 }
 0x168   : > { %13303 = vmatprep.mubr.msk.bf16.mxu0 %vm1269_vm3, %v16532_v38  ;;  %19276 = vst [vmem:[#allocation172_spill] sm:$0xff] %v16557_v27  ;;  %v5895_v38 = vrot.slane %v16125_v9, 2 }
 0x16d   : > { %12684 = vmatmul.mubr.msk.bf16.gmra.mrb[32].mxu1 %vm1269_vm3, %v16549_v8  ;;  %v16571_v8 = vld [vmem:[%s15185_s27 + $0x98] sm:$0xff]  }
 0x16e   : > { %12687 = vmatprep.mubr.msk.bf16.mxu1 %vm1269_vm3, %v16557_v27  ;;  %19278 = vst [vmem:[#allocation174_spill] sm:$0xff] %v16571_v8  ;;  %v16576_v27 = vsel %vm5785_vm5, %v5893_v19, %v5895_v38  ;;  %v16590_v19 = vsel %vm5785_vm5, %v5895_v38, %v5897_v18  ;;  %v5901_v38 = vrot.slane %v16192_v61, 2 }
 0x16f   : > { %13304 = vmatmul.mubr.msk.bf16.gmra.mrb[100].mxu0 %vm1269_vm3, %v16546_v55  ;;  %19279 = vst [vmem:[#allocation175_spill] sm:$0xff] %v16576_v27  ;;  %v16579_v55 = vld [vmem:[%s15185_s27 + $0xa0] sm:$0xff]   ;;  %19281 = vst [vmem:[#allocation177_spill] sm:$0xff] %v16590_v19 }
 0x170   : > { %13307 = vmatprep.mubr.msk.bf16.mxu0 %vm1269_vm3, %v16554_v22  ;;  %19280 = vst [vmem:[#allocation176_spill] sm:$0xff] %v16579_v55  ;;  %v5899_v22 = vrot.slane %v16163_v49, 2 }
 0x175   : > { %12688 = vmatmul.mubr.msk.bf16.gmra.mrb[36].mxu1 %vm1269_vm3, %v16571_v8  ;;  %v16593_v8 = vld [vmem:[%s15185_s27 + $0xa8] sm:$0xff]  }
 0x176   : > { %12691 = vmatprep.mubr.msk.bf16.mxu1 %vm1269_vm3, %v16579_v55  ;;  %19282 = vst [vmem:[#allocation178_spill] sm:$0xff] %v16593_v8  ;;  %v16598_v55 = vsel %vm5785_vm5, %v5897_v18, %v5899_v22  ;;  %v16612_v18 = vsel %vm5785_vm5, %v5899_v22, %v5901_v38  ;;  %v5905_v22 = vrot.slane %v16230_v37, 2 }
 0x177   : > { %13308 = vmatmul.mubr.msk.bf16.gmra.mrb[104].mxu0 %vm1269_vm3, %v16568_v6  ;;  %19283 = vst [vmem:[#allocation179_spill] sm:$0xff] %v16598_v55  ;;  %v16601_v6 = vld [vmem:[%s15185_s27 + $0xb0] sm:$0xff]   ;;  %19285 = vst [vmem:[#allocation181_spill] sm:$0xff] %v16612_v18 }
 0x178   : > { %13311 = vmatprep.mubr.msk.bf16.mxu0 %vm1269_vm3, %v16576_v27  ;;  %19284 = vst [vmem:[#allocation180_spill] sm:$0xff] %v16601_v6  ;;  %v5903_v27 = vrot.slane %v16201_v43, 2 }
 0x17d   : > { %12692 = vmatmul.mubr.msk.bf16.gmra.mrb[40].mxu1 %vm1269_vm3, %v16593_v8  ;;  %v16615_v8 = vld [vmem:[%s15185_s27 + $0xb8] sm:$0xff]  }
 0x17e   : > { %12695 = vmatprep.mubr.msk.bf16.mxu1 %vm1269_vm3, %v16601_v6  ;;  %19286 = vst [vmem:[#allocation182_spill] sm:$0xff] %v16615_v8  ;;  %v16620_v6 = vsel %vm5785_vm5, %v5901_v38, %v5903_v27  ;;  %v16634_v38 = vsel %vm5785_vm5, %v5903_v27, %v5905_v22  ;;  %v5909_v27 = vrot.slane %v16268_v13, 2 }
 0x17f   : > { %13312 = vmatmul.mubr.msk.bf16.gmra.mrb[108].mxu0 %vm1269_vm3, %v16590_v19  ;;  %19287 = vst [vmem:[#allocation183_spill] sm:$0xff] %v16620_v6  ;;  %v16623_v19 = vld [vmem:[%s15185_s27 + $0xc0] sm:$0xff]   ;;  %19289 = vst [vmem:[#allocation185_spill] sm:$0xff] %v16634_v38 }
 0x180   : > { %13315 = vmatprep.mubr.msk.bf16.mxu0 %vm1269_vm3, %v16598_v55  ;;  %19288 = vst [vmem:[#allocation184_spill] sm:$0xff] %v16623_v19  ;;  %v5907_v55 = vrot.slane %v16239_v52, 2 }
 0x185   : > { %12696 = vmatmul.mubr.msk.bf16.gmra.mrb[44].mxu1 %vm1269_vm3, %v16615_v8  ;;  %v16637_v8 = vld [vmem:[%s15185_s27 + $0xc8] sm:$0xff]  }
 0x186   : > { %12699 = vmatprep.mubr.msk.bf16.mxu1 %vm1269_vm3, %v16623_v19  ;;  %19290 = vst [vmem:[#allocation186_spill] sm:$0xff] %v16637_v8  ;;  %v16642_v19 = vsel %vm5785_vm5, %v5905_v22, %v5907_v55  ;;  %v16656_v22 = vsel %vm5785_vm5, %v5907_v55, %v5909_v27  ;;  %v5913_v55 = vrot.slane %v16306_v39, 2 }
 0x187   : > { %13316 = vmatmul.mubr.msk.bf16.gmra.mrb[112].mxu0 %vm1269_vm3, %v16612_v18  ;;  %19291 = vst [vmem:[#allocation187_spill] sm:$0xff] %v16642_v19  ;;  %v16645_v18 = vld [vmem:[%s15185_s27 + $0xd0] sm:$0xff]   ;;  %19293 = vst [vmem:[#allocation189_spill] sm:$0xff] %v16656_v22 }
 0x188   : > { %13319 = vmatprep.mubr.msk.bf16.mxu0 %vm1269_vm3, %v16620_v6  ;;  %19292 = vst [vmem:[#allocation188_spill] sm:$0xff] %v16645_v18  ;;  %v5911_v6 = vrot.slane %v16277_v11, 2 }
 0x18a   : > { %v16682_v41 = vsel %vm5785_vm5, %v5911_v6, %v5913_v55 }
 0x18b   : > { %19298 = vst [vmem:[#allocation194_spill] sm:$0xff] %v16682_v41 }
 0x18d   : > { %12700 = vmatmul.mubr.msk.bf16.gmra.mrb[48].mxu1 %vm1269_vm3, %v16637_v8  ;;  %v16659_v8 = vld [vmem:[%s15185_s27 + $0xd8] sm:$0xff]  }
 0x18e   : > { %12703 = vmatprep.mubr.msk.bf16.mxu1 %vm1269_vm3, %v16645_v18  ;;  %19294 = vst [vmem:[#allocation190_spill] sm:$0xff] %v16659_v8  ;;  %v16667_v18 = vld [vmem:[%s15185_s27 + $0xe0] sm:$0xff]  }
 0x18f   : > { %13320 = vmatmul.mubr.msk.bf16.gmra.mrb[116].mxu0 %vm1269_vm3, %v16634_v38  ;;  %v16664_v38 = vsel %vm5785_vm5, %v5909_v27, %v5911_v6  ;;  %19296 = vst [vmem:[#allocation192_spill] sm:$0xff] %v16667_v18 }
 0x190   : > { %13323 = vmatprep.mubr.msk.bf16.mxu0 %vm1269_vm3, %v16642_v19  ;;  %19295 = vst [vmem:[#allocation191_spill] sm:$0xff] %v16664_v38  ;;  %v360_v19 = vld [vmem:[%s15185_s27 + $0x224] sm:$0xf] }
 0x191   : > { %v16679_v27 = vcombine.low %v16336_v51, %v360_v19  ;;  %v16706_v19 = vld [vmem:[%s15185_s27 + $0x230] sm:$0xf] }
 0x192   : > { %19301 = vst [vmem:[#allocation197_spill] sm:$0xff] %v16706_v19 }
 0x193   : > { %19297 = vst [vmem:[#allocation193_spill] sm:$0xff] %v16679_v27  ;;  %v5917_v51 = vrot.slane %v16679_v27, 2  ;;  %v16725_v27 = vld [vmem:[%s15185_s27 + $0x100] sm:$0xff]  }
 0x195   : > { %12704 = vmatmul.mubr.msk.bf16.gmra.mrb[52].mxu1 %vm1269_vm3, %v16659_v8  ;;  %v5915_v8 = vrot.slane %v16315_v40, 2 }
 0x196   : > { %12707 = vmatprep.mubr.msk.bf16.mxu1 %vm1269_vm3, %v16667_v18  ;;  %v16685_v18 = vld [vmem:[%s15185_s27 + $0xe8] sm:$0xff]  }
 0x197   : > { %13324 = vmatmul.mubr.msk.bf16.gmra.mrb[120].mxu0 %vm1269_vm3, %v16656_v22  ;;  %v14940_v22 = vld [vmem:[%s15185_s27 + $0x228] sm:$0xff]  }
 0x198   : > { %13327 = vmatprep.mubr.msk.bf16.mxu0 %vm1269_vm3, %v16664_v38  ;;  %v16690_v38 = vsel %vm5785_vm5, %v5913_v55, %v5915_v8  ;;  %v16703_v6 = vrot.slane %v14940_v22, 2  ;;  %v16709_v55 = vsel %vm5785_vm5, %v5915_v8, %v5917_v51 }
 0x199   : > { %19299 = vst [vmem:[#allocation195_spill] sm:$0xff] %v16690_v38  ;;  %19302 = vst [vmem:[#allocation198_spill] sm:$0xff] %v16709_v55 }
 0x19a   : > { %v16722_v22 = vsel %vm5785_vm5, %v5917_v51, %v16703_v6  ;;  %v16742_v51 = vld [vmem:[%s15185_s27 + $0x110] sm:$0xff]  }
 0x19b   : > { %19304 = vst [vmem:[#allocation200_spill] sm:$0xff] %v16722_v22  ;;  %19305 = vst [vmem:[#allocation201_spill] sm:$0xff] %v16742_v51 }
 0x19d   : > { %12708 = vmatmul.mubr.msk.bf16.gmra.mrb[56].mxu1 %vm1269_vm3, %v16685_v18 }
 0x19e   : > { %12711 = vmatprep.mubr.msk.bf16.mxu1 %vm1269_vm3, %v16694_v2  ;;  %v16713_v2 = vcombine.low %v16706_v19, %v16706_v19 }
 0x19f   : > { %13328 = vmatmul.mubr.msk.bf16.gmra.mrb[124].mxu0 %vm1269_vm3, %v16682_v41  ;;  %v16716_v41 = vld [vmem:[%s15185_s27 + $0xf8] sm:$0xff]  }
 0x1a0   : > { %13331 = vmatprep.mubr.msk.bf16.mxu0 %vm1269_vm3, %v16690_v38  ;;  %19303 = vst [vmem:[#allocation199_spill] sm:$0xff] %v16713_v2  ;;  %v5921_v8 = vrot.slane %v16713_v2, 2  ;;  %v16737_v38 = vld [vmem:[%s15185_s27 + $0x108] sm:$0xff]   ;;  %v19308_v2 = vld [vmem:[#allocation80_spill] sm:$0xff] }
 0x1a2   : > { %v5922_v19 = vsel %vm5785_vm5, %v16703_v6, %v5921_v8  ;;  %v16755_v8 = vld [vmem:[%s15185_s27 + $0x120] sm:$0xff]  }
 0x1a5   : > { %12712 = vmatmul.mubr.msk.bf16.gmra.mrb[60].mxu1 %vm1269_vm3, %v16716_v41 }
 0x1a6   : > { %12715 = vmatprep.mubr.msk.bf16.mxu1 %vm1269_vm3, %v16725_v27 }
 0x1a7   : > { %13332 = vmatmul.mubr.msk.bf16.gmra.mrb[128].mxu0 %vm1269_vm3, %v16709_v55  ;;  %v19306_v55 = vld [vmem:[#allocation75_spill] sm:$0xff] }
 0x1a8   : > { %13335 = vmatprep.mubr.msk.bf16.mxu0 %vm1269_vm3, %v16722_v22  ;;  %v16750_v22 = vld [vmem:[%s15185_s27 + $0x118] sm:$0xff]   ;;  %19307 = vst [vmem:[#allocation75_spill] sm:$0xff] %v16755_v8 }
 0x1ad   : > { %12716 = vmatmul.mubr.msk.bf16.gmra.mrb[64].mxu1 %vm1269_vm3, %v16737_v38 }
 0x1ae   : > { %12719 = vmatprep.mubr.msk.bf16.mxu1 %vm1269_vm3, %v16742_v51 }
 0x1af   : > { %13336 = vmatmul.mubr.msk.bf16.gmra.mrb[132].mxu0 %vm1269_vm3, %v5922_v19  ;;  %v371_v19 = vld [vmem:[%s18801_s1 + $0x6] sm:$0x3] }
 0x1b0   : > { %13341 = vmatprep.mubr.msk.bf16.mxu0 %vm1269_vm3, %v19306_v55  ;;  %v19309_v55 = vld [vmem:[#allocation81_spill] sm:$0xff]  ;;  %v16768_v51 = vand.u32 %v15161_v4, %v371_v19 }
 0x1b1   : > { %v19313_v19 = vld [vmem:[#allocation93_spill] sm:$0xff] }
 0x1b2   : > { %12925 = vmatprep.subr.bf16.mxu1 %v16768_v51 }
 0x1b5   : > { %12720 = vmatmul.mubr.msk.bf16.gmra.mrb[68].mxu1 %vm1269_vm3, %v16750_v22 }
 0x1b6   : > { %12723 = vmatprep.mubr.msk.bf16.mxu1 %vm1269_vm3, %v16755_v8  ;;  %v19311_v8 = vld [vmem:[#allocation87_spill] sm:$0xff] }
 0x1b7   : > { %13342 = vmatmul.mubr.msk.bf16.vlgmr.msra.gmra.mrb[0].mxu0 %vm1269_vm3, %v19308_v2  ;;  %v19310_v2 = vld [vmem:[#allocation86_spill] sm:$0xff] }
 0x1b8   : > { %13478 = vmatpush3.bf16.msra.mxu0 %v16424_v15  ;;  %13345 = vmatprep.mubr.msk.bf16.mxu0 %vm1269_vm3, %v19309_v55  ;;  %v19312_v15 = vld [vmem:[#allocation92_spill] sm:$0xff] }
 0x1bd   : > { %12724 = vmatmul.mubr.msk.bf16.gmra.mrb[72].mxu1 %vm1269_vm3, %v15714_v16  ;;  %v19315_v16 = vld [vmem:[#allocation99_spill] sm:$0xff] }
 0x1be   : > { %12727 = vmatprep.mubr.msk.bf16.mxu1 %vm1269_vm3, %v15738_v47  ;;  %v19314_v47 = vld [vmem:[#allocation98_spill] sm:$0xff] }
 0x1bf   : > { %13346 = vmatmul.mubr.msk.bf16.gmra.mrb[4].mxu0 %vm1269_vm3, %v19310_v2  ;;  %v14989_v2 = vld [vmem:[%s15185_s27 + $0x48] sm:$0xff]  }
 0x1c0   : > { %13349 = vmatprep.mubr.msk.bf16.mxu0 %vm1269_vm3, %v19311_v8 }
 0x1c5   : > { %12728 = vmatmul.mubr.msk.bf16.gmra.mrb[76].mxu1 %vm1269_vm3, %v15746_v54  ;;  %v19316_v54 = vld [vmem:[#allocation105_spill] sm:$0xff] }
 0x1c6   : > { %12731 = vmatprep.mubr.msk.bf16.mxu1 %vm1269_vm3, %v15778_v53  ;;  %v19317_v53 = vld [vmem:[#allocation106_spill] sm:$0xff] }
 0x1c7   : > { %13350 = vmatmul.mubr.msk.bf16.gmra.mrb[8].mxu0 %vm1269_vm3, %v19312_v15 }
 0x1c8   : > { %13353 = vmatprep.mubr.msk.bf16.mxu0 %vm1269_vm3, %v19313_v19 }
 0x1cd   : > { %12732 = vmatmul.mubr.msk.bf16.gmra.mrb[80].mxu1 %vm1269_vm3, %v15786_v59  ;;  %v19319_v59 = vld [vmem:[#allocation112_spill] sm:$0xff] }
 0x1ce   : > { %12735 = vmatprep.mubr.msk.bf16.mxu1 %vm1269_vm3, %v15829_v32  ;;  %v19318_v32 = vld [vmem:[#allocation111_spill] sm:$0xff] }
 0x1cf   : > { %13354 = vmatmul.mubr.msk.bf16.gmra.mrb[12].mxu0 %vm1269_vm3, %v19314_v47  ;;  %v14990_v47 = vld [vmem:[%s15185_s27 + $0x50] sm:$0xff]  }
 0x1d0   : > { %13357 = vmatprep.mubr.msk.bf16.mxu0 %vm1269_vm3, %v19315_v16  ;;  %v2794_v16 = vrot.slane %v14990_v47, 1 }
 0x1d5   : > { %12736 = vmatmul.mubr.msk.bf16.gmra.mrb[84].mxu1 %vm1269_vm3, %v15838_v20  ;;  %v19321_v20 = vld [vmem:[#allocation118_spill] sm:$0xff] }
 0x1d6   : > { %12739 = vmatprep.mubr.msk.bf16.mxu1 %vm1269_vm3, %v15873_v0  ;;  %v19320_v0 = vld [vmem:[#allocation117_spill] sm:$0xff] }
 0x1d7   : > { %13358 = vmatmul.mubr.msk.bf16.gmra.mrb[16].mxu0 %vm1269_vm3, %v19316_v54 }
 0x1d8   : > { %13361 = vmatprep.mubr.msk.bf16.mxu0 %vm1269_vm3, %v19317_v53 }
 0x1dd   : > { %12740 = vmatmul.mubr.msk.bf16.gmra.mrb[88].mxu1 %vm1269_vm3, %v15882_v58  ;;  %v19323_v58 = vld [vmem:[#allocation124_spill] sm:$0xff] }
 0x1de   : > { %12743 = vmatprep.mubr.msk.bf16.mxu1 %vm1269_vm3, %v15917_v30  ;;  %v19322_v30 = vld [vmem:[#allocation123_spill] sm:$0xff] }
 0x1df   : > { %13362 = vmatmul.mubr.msk.bf16.gmra.mrb[20].mxu0 %vm1269_vm3, %v19318_v32  ;;  %v2798_v32 = vrot.slane %v15931_v12, 1  ;;  %v19337_v12 = vld [vmem:[#allocation100_spill] sm:$0xff] }
 0x1e0   : > { %13365 = vmatprep.mubr.msk.bf16.mxu0 %vm1269_vm3, %v19319_v59 }
 0x1e5   : > { %12744 = vmatmul.mubr.msk.bf16.gmra.mrb[92].mxu1 %vm1269_vm3, %v15926_v3  ;;  %v19324_v3 = vld [vmem:[#allocation129_spill] sm:$0xff] }
 0x1e6   : > { %12747 = vmatprep.mubr.msk.bf16.mxu1 %vm1269_vm3, %v15961_v57  ;;  %v19325_v57 = vld [vmem:[#allocation130_spill] sm:$0xff] }
 0x1e7   : > { %13366 = vmatmul.mubr.msk.bf16.gmra.mrb[24].mxu0 %vm1269_vm3, %v19320_v0 }
 0x1e8   : > { %13369 = vmatprep.mubr.msk.bf16.mxu0 %vm1269_vm3, %v19321_v20  ;;  %v2802_v20 = vrot.slane %v19337_v12, 1  ;;  %v19360_v12 = vld [vmem:[#allocation183_spill] sm:$0xff] }
 0x1ed   : > { %12748 = vmatmul.mubr.msk.bf16.gmra.mrb[96].mxu1 %vm1269_vm3, %v15970_v48  ;;  %v19326_v48 = vld [vmem:[#allocation135_spill] sm:$0xff] }
 0x1ee   : > { %12751 = vmatprep.mubr.msk.bf16.mxu1 %vm1269_vm3, %v16002_v7  ;;  %v19327_v7 = vld [vmem:[#allocation136_spill] sm:$0xff] }
 0x1ef   : > { %13370 = vmatmul.mubr.msk.bf16.gmra.mrb[28].mxu0 %vm1269_vm3, %v19322_v30 }
 0x1f0   : > { %13373 = vmatprep.mubr.msk.bf16.mxu0 %vm1269_vm3, %v19323_v58  ;;  %v19340_v58 = vld [vmem:[#allocation164_spill] sm:$0xff] }
 0x1f5   : > { %12752 = vmatmul.mubr.msk.bf16.gmra.mrb[100].mxu1 %vm1269_vm3, %v16011_v45  ;;  %v19328_v45 = vld [vmem:[#allocation141_spill] sm:$0xff] }
 0x1f6   : > { %12755 = vmatprep.mubr.msk.bf16.mxu1 %vm1269_vm3, %v16040_v31  ;;  %v19329_v31 = vld [vmem:[#allocation142_spill] sm:$0xff] }
 0x1f7   : > { %13374 = vmatmul.mubr.msk.bf16.gmra.mrb[32].mxu0 %vm1269_vm3, %v19324_v3 }
 0x1f8   : > { %13377 = vmatprep.mubr.msk.bf16.mxu0 %vm1269_vm3, %v19325_v57 }
 0x1fd   : > { %12756 = vmatmul.mubr.msk.bf16.gmra.mrb[104].mxu1 %vm1269_vm3, %v16049_v56  ;;  %v19330_v56 = vld [vmem:[#allocation147_spill] sm:$0xff] }
 0x1fe   : > { %12759 = vmatprep.mubr.msk.bf16.mxu1 %vm1269_vm3, %v16078_v46  ;;  %v19331_v46 = vld [vmem:[#allocation148_spill] sm:$0xff] }
 0x1ff   : > { %13378 = vmatmul.mubr.msk.bf16.gmra.mrb[36].mxu0 %vm1269_vm3, %v19326_v48  ;;  %v19341_v48 = vld [vmem:[#allocation168_spill] sm:$0xff] }
 0x200   : > { %13381 = vmatprep.mubr.msk.bf16.mxu0 %vm1269_vm3, %v19327_v7  ;;  %v2806_v7 = vrot.slane %v19341_v48, 1  ;;  %v19363_v48 = vld [vmem:[#allocation190_spill] sm:$0xff] }
 0x205   : > { %12760 = vmatmul.mubr.msk.bf16.gmra.mrb[108].mxu1 %vm1269_vm3, %v16087_v33  ;;  %v19332_v33 = vld [vmem:[#allocation153_spill] sm:$0xff] }
 0x206   : > { %12763 = vmatprep.mubr.msk.bf16.mxu1 %vm1269_vm3, %v16116_v21  ;;  %v19333_v21 = vld [vmem:[#allocation154_spill] sm:$0xff] }
 0x207   : > { %13382 = vmatmul.mubr.msk.bf16.gmra.mrb[40].mxu0 %vm1269_vm3, %v19328_v45  ;;  %v19342_v45 = vld [vmem:[#allocation165_spill] sm:$0xff] }
 0x208   : > { %13385 = vmatprep.mubr.msk.bf16.mxu0 %vm1269_vm3, %v19329_v31  ;;  %v19343_v31 = vld [vmem:[#allocation170_spill] sm:$0xff] }
 0x20d   : > { %12764 = vmatmul.mubr.msk.bf16.gmra.mrb[112].mxu1 %vm1269_vm3, %v16125_v9  ;;  %v19334_v9 = vld [vmem:[#allocation159_spill] sm:$0xff] }
 0x20e   : > { %12767 = vmatprep.mubr.msk.bf16.mxu1 %vm1269_vm3, %v16154_v26  ;;  %v2775_v26 = vrot.slane %v16390_v17, 1 }
 0x20f   : > { %13386 = vmatmul.mubr.msk.bf16.gmra.mrb[44].mxu0 %vm1269_vm3, %v19330_v56  ;;  %v2808_v56 = vrot.slane %v19343_v31, 1 }
 0x210   : > { %13389 = vmatprep.mubr.msk.bf16.mxu0 %vm1269_vm3, %v19331_v46  ;;  %v19344_v46 = vld [vmem:[#allocation167_spill] sm:$0xff] }
 0x215   : > { %12768 = vmatmul.mubr.msk.bf16.gmra.mrb[116].mxu1 %vm1269_vm3, %v16163_v49  ;;  %v2776_v49 = vrot.slane %v16404_v63, 1 }
 0x216   : > { %12771 = vmatprep.mubr.msk.bf16.mxu1 %vm1269_vm3, %v16192_v61 }
 0x217   : > { %13390 = vmatmul.mubr.msk.bf16.gmra.mrb[48].mxu0 %vm1269_vm3, %v19332_v33  ;;  %v2777_v61 = vsel %vm2774_vm6, %v2775_v26, %v2776_v49 }
 0x218   : > { %13393 = vmatprep.mubr.msk.bf16.mxu0 %vm1269_vm3, %v19333_v21  ;;  %v17025_v21 = vsel %vm2774_vm6, %v2806_v7, %v2808_v56 }
 0x21d   : > { %12772 = vmatmul.mubr.msk.bf16.gmra.mrb[120].mxu1 %vm1269_vm3, %v16201_v43  ;;  %v14982_v43 = vld [vmem:[%s15185_s27 + $0x10] sm:$0xff]  }
 0x21e   : > { %12775 = vmatprep.mubr.msk.bf16.mxu1 %vm1269_vm3, %v16230_v37  ;;  %v2778_v37 = vrot.slane %v14982_v43, 1 }
 0x21f   : > { %13394 = vmatmul.mubr.msk.bf16.gmra.mrb[52].mxu0 %vm1269_vm3, %v19334_v9  ;;  %v19345_v9 = vld [vmem:[#allocation172_spill] sm:$0xff] }
 0x220   : > { %13397 = vmatprep.mubr.msk.bf16.mxu0 %vm1269_vm3, %v16343_v35  ;;  %v2810_v26 = vrot.slane %v19345_v9, 1 }
 0x225   : > { %12776 = vmatmul.mubr.msk.bf16.gmra.mrb[124].mxu1 %vm1269_vm3, %v16239_v52  ;;  %v14983_v52 = vld [vmem:[%s15185_s27 + $0x18] sm:$0xff]  }
 0x226   : > { %12779 = vmatprep.mubr.msk.bf16.mxu1 %vm1269_vm3, %v16268_v13  ;;  %v2779_v13 = vsel %vm2774_vm6, %v2776_v49, %v2778_v37  ;;  %v19346_v49 = vld [vmem:[#allocation169_spill] sm:$0xff] }
 0x227   : > { %13398 = vmatmul.mubr.msk.bf16.gmra.mrb[56].mxu0 %vm1269_vm3, %v16367_v10  ;;  %v2780_v10 = vrot.slane %v14983_v52, 1  ;;  %v17038_v52 = vsel %vm2774_vm6, %v2808_v56, %v2810_v26 }
 0x228   : > { %13401 = vmatprep.mubr.msk.bf16.mxu0 %vm1269_vm3, %v16371_v60  ;;  %v14984_v60 = vld [vmem:[%s15185_s27 + $0x20] sm:$0xff]  }
 0x22d   : > { %12780 = vmatmul.mubr.msk.bf16.gmra.mrb[128].mxu1 %vm1269_vm3, %v16277_v11  ;;  %v16905_v11 = vsel %vm2774_vm6, %v2778_v37, %v2780_v10  ;;  %v19348_v37 = vld [vmem:[#allocation171_spill] sm:$0xff] }
 0x22e   : > { %12783 = vmatprep.mubr.msk.bf16.mxu1 %vm1269_vm3, %v16306_v39  ;;  %v2782_v39 = vrot.slane %v14984_v60, 1 }
 0x22f   : > { %13402 = vmatmul.mubr.msk.bf16.gmra.mrb[60].mxu0 %vm1269_vm3, %v16383_v28  ;;  %v19335_v28 = vld [vmem:[#allocation2_spill] sm:$0xff] }
 0x230   : > { %13405 = vmatprep.mubr.msk.bf16.mxu0 %vm1269_vm3, %v16387_v29  ;;  %v376_v29 = vld [vmem:[%s18801_s1 + $0x10] sm:$0x3] }
 0x231   : > { %v16922_v17 = vand.u32 %v15161_v4, %v376_v29  ;;  %v14987_v4 = vld [vmem:[%s15185_s27 + $0x38] sm:$0xff]   ;;  %v19352_v29 = vld [vmem:[#allocation175_spill] sm:$0xff] }
 0x233   : > { %13615 = vmatprep.subr.bf16.mxu0 %v16922_v17 }
 0x235   : > { %12784 = vmatmul.mubr.msk.bf16.gmra.mrb[132].mxu1 %vm1269_vm3, %v16315_v40  ;;  %v14985_v40 = vld [vmem:[%s15185_s27 + $0x28] sm:$0xff]  }
 0x236   : > { %12789 = vmatprep.mubr.msk.bf16.mxu1 %vm1269_vm3, %v2777_v61  ;;  %v2784_v35 = vrot.slane %v14985_v40, 1  ;;  %v19347_v61 = vld [vmem:[#allocation174_spill] sm:$0xff] }
 0x237   : > { %13406 = vmatmul.mubr.msk.bf16.gmra.mrb[64].mxu0 %vm1269_vm3, %v16401_v34  ;;  %v16925_v34 = vsel %vm2774_vm6, %v2780_v10, %v2782_v39  ;;  %v2812_v43 = vrot.slane %v19347_v61, 1  ;;  %v19351_v40 = vld [vmem:[#allocation178_spill] sm:$0xff]  ;;  %v19367_v61 = vld [vmem:[#allocation191_spill] sm:$0xff] }
 0x238   : > { %13409 = vmatprep.mubr.msk.bf16.mxu0 %vm1269_vm3, %v16409_v42  ;;  %v16928_v63 = vsel %vm2774_vm6, %v2782_v39, %v2784_v35  ;;  %v14986_v42 = vld [vmem:[%s15185_s27 + $0x30] sm:$0xff]   ;;  %v19350_v39 = vld [vmem:[#allocation173_spill] sm:$0xff] }
 0x239   : > { %v17041_v10 = vsel %vm2774_vm6, %v2810_v26, %v2812_v43  ;;  %v19366_v26 = vld [vmem:[#allocation189_spill] sm:$0xff] }
 0x23d   : > { %12790 = vmatmul.mubr.msk.bf16.vlgmr.msra.gmra.mrb[0].mxu1 %vm1269_vm3, %v2779_v13  ;;  %v19349_v13 = vld [vmem:[#allocation176_spill] sm:$0xff] }
 0x23e   : > { %12926 = vmatpush3.bf16.msra.mxu1 %v16768_v51  ;;  %12793 = vmatprep.mubr.msk.bf16.mxu1 %vm1269_vm3, %v16905_v11  ;;  %v2814_v60 = vrot.slane %v19349_v13, 1  ;;  %v19368_v13 = vld [vmem:[#allocation196_spill] sm:$0xff] }
 0x23f   : > { %13410 = vmatmul.mubr.msk.bf16.gmra.mrb[68].mxu0 %vm1269_vm3, %v16428_v25  ;;  %13753 = vmatprep.subr.bf16.mxu1 %v19335_v28  ;;  %v2786_v25 = vrot.slane %v14986_v42, 1 }
 0x240   : > { %13413 = vmatprep.mubr.msk.bf16.mxu0 %vm1269_vm3, %v16433_v5  ;;  %v2788_v5 = vrot.slane %v14987_v4, 1  ;;  %v17054_v42 = vsel %vm2774_vm6, %v2812_v43, %v2814_v60  ;;  %v19353_v4 = vld [vmem:[#allocation180_spill] sm:$0xff] }
 0x241   : > { %v16942_v51 = vsel %vm2774_vm6, %v2784_v35, %v2786_v25  ;;  %v2816_v35 = vrot.slane %v19351_v40, 1  ;;  %v19370_v40 = vld [vmem:[#allocation195_spill] sm:$0xff] }
 0x242   : > { %v16945_v8 = vsel %vm2774_vm6, %v2786_v25, %v2788_v5 }
 0x243   : > { %v17057_v25 = vsel %vm2774_vm6, %v2814_v60, %v2816_v35  ;;  %v2834_v60 = vrot.slane %v19368_v13, 1 }
 0x245   : > { %12794 = vmatmul.mubr.msk.bf16.gmra.mrb[4].mxu1 %vm1269_vm3, %v16925_v34 }
 0x246   : > { %12797 = vmatprep.mubr.msk.bf16.mxu1 %vm1269_vm3, %v16928_v63 }
 0x247   : > { %13414 = vmatmul.mubr.msk.bf16.gmra.mrb[72].mxu0 %vm1269_vm3, %v16444_v62  ;;  %v14988_v62 = vld [vmem:[%s15185_s27 + $0x40] sm:$0xff]  }
 0x248   : > { %13417 = vmatprep.mubr.msk.bf16.mxu0 %vm1269_vm3, %v16449_v14  ;;  %v2790_v55 = vrot.slane %v14988_v62, 1  ;;  %v2792_v14 = vrot.slane %v14989_v2, 1  ;;  %v19354_v62 = vld [vmem:[#allocation177_spill] sm:$0xff] }
 0x24a   : > { %v16958_v15 = vsel %vm2774_vm6, %v2788_v5, %v2790_v55  ;;  %v16961_v19 = vsel %vm2774_vm6, %v2790_v55, %v2792_v14  ;;  %v2818_v5 = vrot.slane %v19353_v4, 1  ;;  %v19355_v55 = vld [vmem:[#allocation182_spill] sm:$0xff] }
 0x24b   : > { %v2820_v2 = vrot.slane %v19355_v55, 1  ;;  %v17144_v55 = vld [vmem:[%s15185_s27 + $0x238] sm:$0xff]  }
 0x24c   : > { %v17070_v47 = vsel %vm2774_vm6, %v2816_v35, %v2818_v5  ;;  %v364_v35 = vld [vmem:[%s15185_s27 + $0x234] sm:$0xf] }
 0x24d   : > { %12798 = vmatmul.mubr.msk.bf16.gmra.mrb[8].mxu1 %vm1269_vm3, %v16942_v51 }
 0x24e   : > { %12801 = vmatprep.mubr.msk.bf16.mxu1 %vm1269_vm3, %v16945_v8 }
 0x24f   : > { %13418 = vmatmul.mubr.msk.bf16.gmra.mrb[76].mxu0 %vm1269_vm3, %v16460_v1  ;;  %v14991_v1 = vld [vmem:[%s15185_s27 + $0x58] sm:$0xff]  }
 0x250   : > { %13421 = vmatprep.mubr.msk.bf16.mxu0 %vm1269_vm3, %v16465_v23  ;;  %v2796_v54 = vrot.slane %v14991_v1, 1  ;;  %v16974_v23 = vsel %vm2774_vm6, %v2792_v14, %v2794_v16  ;;  %v19356_v14 = vld [vmem:[#allocation179_spill] sm:$0xff]  ;;  %v19357_v1 = vld [vmem:[#allocation184_spill] sm:$0xff] }
 0x252   : > { %v16977_v53 = vsel %vm2774_vm6, %v2794_v16, %v2796_v54  ;;  %v16990_v59 = vsel %vm2774_vm6, %v2796_v54, %v2798_v32  ;;  %v17073_v16 = vsel %vm2774_vm6, %v2818_v5, %v2820_v2  ;;  %v2822_v54 = vrot.slane %v19357_v1, 1  ;;  %v19371_v5 = vld [vmem:[#allocation197_spill] sm:$0xff]  ;;  %v19374_v1 = vld [vmem:[#allocation200_spill] sm:$0xff] }
 0x255   : > { %12802 = vmatmul.mubr.msk.bf16.gmra.mrb[12].mxu1 %vm1269_vm3, %v16958_v15 }
 0x256   : > { %12805 = vmatprep.mubr.msk.bf16.mxu1 %vm1269_vm3, %v16961_v19 }
 0x257   : > { %13422 = vmatmul.mubr.msk.bf16.gmra.mrb[80].mxu0 %vm1269_vm3, %v16476_v44  ;;  %v2800_v44 = vrot.slane %v15935_v24, 1  ;;  %v19339_v24 = vld [vmem:[#allocation166_spill] sm:$0xff] }
 0x258   : > { %13425 = vmatprep.mubr.msk.bf16.mxu0 %vm1269_vm3, %v16481_v50  ;;  %v19336_v50 = vld [vmem:[#allocation162_spill] sm:$0xff]  ;;  %v2804_v30 = vrot.slane %v19339_v24, 1  ;;  %v19361_v24 = vld [vmem:[#allocation188_spill] sm:$0xff] }
 0x259   : > { %v16993_v0 = vsel %vm2774_vm6, %v2798_v32, %v2800_v44  ;;  %v17006_v3 = vsel %vm2774_vm6, %v2800_v44, %v2802_v20  ;;  %v19358_v32 = vld [vmem:[#allocation181_spill] sm:$0xff]  ;;  %v19359_v44 = vld [vmem:[#allocation186_spill] sm:$0xff] }
 0x25a   : > { %v17009_v57 = vsel %vm2774_vm6, %v2802_v20, %v2804_v30  ;;  %v17022_v33 = vsel %vm2774_vm6, %v2804_v30, %v2806_v7  ;;  %v17086_v20 = vsel %vm2774_vm6, %v2820_v2, %v2822_v54  ;;  %v2826_v30 = vrot.slane %v19361_v24, 1  ;;  %v19373_v2 = vld [vmem:[#allocation198_spill] sm:$0xff] }
 0x25b   : > { %v2828_v7 = vrot.slane %v19363_v48, 1  ;;  %v17168_v24 = vld [vmem:[%s15185_s27 + $0x240] ss:$0 sps:$4 sm:$0xff]  }
 0x25d   : > { %12806 = vmatmul.mubr.msk.bf16.gmra.mrb[16].mxu1 %vm1269_vm3, %v16974_v23  ;;  %v17105_v56 = vsel %vm2774_vm6, %v2826_v30, %v2828_v7 }
 0x25e   : > { %12809 = vmatprep.mubr.msk.bf16.mxu1 %vm1269_vm3, %v16977_v53 }
 0x25f   : > { %13426 = vmatmul.mubr.msk.bf16.gmra.mrb[84].mxu0 %vm1269_vm3, %v16492_v36  ;;  %v19338_v36 = vld [vmem:[#allocation163_spill] sm:$0xff] }
 0x260   : > { %13429 = vmatprep.mubr.msk.bf16.mxu0 %vm1269_vm3, %v19336_v50  ;;  %v2824_v50 = vrot.slane %v19359_v44, 1 }
 0x262   : > { %v17102_v31 = vsel %vm2774_vm6, %v2824_v50, %v2826_v30 }
 0x265   : > { %12810 = vmatmul.mubr.msk.bf16.gmra.mrb[20].mxu1 %vm1269_vm3, %v16990_v59 }
 0x266   : > { %12813 = vmatprep.mubr.msk.bf16.mxu1 %vm1269_vm3, %v16993_v0 }
 0x267   : > { %13430 = vmatmul.mubr.msk.bf16.gmra.mrb[88].mxu0 %vm1269_vm3, %v19338_v36  ;;  %v17089_v36 = vsel %vm2774_vm6, %v2822_v54, %v2824_v50 }
 0x268   : > { %13433 = vmatprep.mubr.msk.bf16.mxu0 %vm1269_vm3, %v19340_v58  ;;  %v19362_v58 = vld [vmem:[#allocation185_spill] sm:$0xff] }
 0x26d   : > { %12814 = vmatmul.mubr.msk.bf16.gmra.mrb[24].mxu1 %vm1269_vm3, %v17006_v3 }
 0x26e   : > { %12817 = vmatprep.mubr.msk.bf16.mxu1 %vm1269_vm3, %v17009_v57 }
 0x26f   : > { %13434 = vmatmul.mubr.msk.bf16.gmra.mrb[92].mxu0 %vm1269_vm3, %v19342_v45  ;;  %v19364_v45 = vld [vmem:[#allocation187_spill] sm:$0xff] }
 0x270   : > { %13437 = vmatprep.mubr.msk.bf16.mxu0 %vm1269_vm3, %v19344_v46  ;;  %v19365_v46 = vld [vmem:[#allocation192_spill] sm:$0xff] }
 0x271   : > { %v2830_v9 = vrot.slane %v19365_v46, 1  ;;  %v19378_v46 = vld [vmem:[#allocation5_spill] sm:$0xff] }
 0x273   : > { %v17118_v43 = vsel %vm2774_vm6, %v2828_v7, %v2830_v9  ;;  %v19377_v7 = vld [vmem:[#allocation6_spill] sm:$0xff] }
 0x275   : > { %12818 = vmatmul.mubr.msk.bf16.gmra.mrb[28].mxu1 %vm1269_vm3, %v17022_v33 }
 0x276   : > { %12821 = vmatprep.mubr.msk.bf16.mxu1 %vm1269_vm3, %v17025_v21 }
 0x277   : > { %13438 = vmatmul.mubr.msk.bf16.gmra.mrb[96].mxu0 %vm1269_vm3, %v19346_v49  ;;  %v2832_v49 = vrot.slane %v16685_v18, 1  ;;  %v2836_v18 = vrot.slane %v16716_v41, 1  ;;  %v2838_v41 = vrot.slane %v16725_v27, 1 }
 0x278   : > { %13441 = vmatprep.mubr.msk.bf16.mxu0 %vm1269_vm3, %v19348_v37 }
 0x279   : > { %v17121_v37 = vsel %vm2774_vm6, %v2830_v9, %v2832_v49  ;;  %v17138_v4 = vsel %vm2774_vm6, %v2834_v60, %v2836_v18  ;;  %v17159_v44 = vsel %vm2774_vm6, %v2836_v18, %v2838_v41  ;;  %v7590_v9 = vrot.slane %v19378_v46, 3 }
 0x27d   : > { %12822 = vmatmul.mubr.msk.bf16.gmra.mrb[32].mxu1 %vm1269_vm3, %v17038_v52 }
 0x27e   : > { %12825 = vmatprep.mubr.msk.bf16.mxu1 %vm1269_vm3, %v17041_v10 }
 0x27f   : > { %13442 = vmatmul.mubr.msk.bf16.gmra.mrb[100].mxu0 %vm1269_vm3, %v19350_v39  ;;  %v19369_v39 = vld [vmem:[#allocation194_spill] sm:$0xff] }
 0x280   : > { %13445 = vmatprep.mubr.msk.bf16.mxu0 %vm1269_vm3, %v19352_v29  ;;  %v17135_v29 = vsel %vm2774_vm6, %v2832_v49, %v2834_v60  ;;  %v2844_v49 = vrot.slane %v16750_v22, 1 }
 0x285   : > { %12826 = vmatmul.mubr.msk.bf16.gmra.mrb[36].mxu1 %vm1269_vm3, %v17054_v42 }
 0x286   : > { %12829 = vmatprep.mubr.msk.bf16.mxu1 %vm1269_vm3, %v17057_v25 }
 0x287   : > { %13446 = vmatmul.mubr.msk.bf16.gmra.mrb[104].mxu0 %vm1269_vm3, %v19354_v62  ;;  %v17141_v62 = vcombine.low %v19371_v5, %v364_v35  ;;  %v19380_v35 = vld [vmem:[#allocation8_spill] sm:$0xff] }
 0x288   : > { %13449 = vmatprep.mubr.msk.bf16.mxu0 %vm1269_vm3, %v19356_v14  ;;  %v2840_v14 = vrot.slane %v16737_v38, 1  ;;  %v19375_v38 = vld [vmem:[#allocation4_spill] sm:$0xff]  ;;  %v7593_v5 = vrot.slane %v19380_v35, 2 }
 0x289   : > { %19372 = vst [vmem:[#allocation80_spill] sm:$0xff] %v17141_v62  ;;  %v6854_v54 = vrot.slane %v17141_v62, 2  ;;  %v7586_v30 = vrot.slane %v19375_v38, 2 }
 0x28a   : > { %v17162_v50 = vsel %vm2774_vm6, %v2838_v41, %v2840_v14  ;;  %v19381_v41 = vld [vmem:[#allocation7_spill] sm:$0xff] }
 0x28b   : > { %v6855_v27 = vsel %vm5785_vm5, %v16703_v6, %v6854_v54  ;;  %v7594_v22 = vrot.slane %v19381_v41, 3 }
 0x28d   : > { %12830 = vmatmul.mubr.msk.bf16.gmra.mrb[40].mxu1 %vm1269_vm3, %v17070_v47 }
 0x28e   : > { %12833 = vmatprep.mubr.msk.bf16.mxu1 %vm1269_vm3, %v17073_v16 }
 0x28f   : > { %13450 = vmatmul.mubr.msk.bf16.gmra.mrb[108].mxu0 %vm1269_vm3, %v19358_v32  ;;  %v6856_v32 = vrot.slane %v17144_v55, 2 }
 0x290   : > { %13453 = vmatprep.mubr.msk.bf16.mxu0 %vm1269_vm3, %v19360_v12 }
 0x291   : > { %v6857_v12 = vsel %vm5785_vm5, %v6854_v54, %v6856_v32 }
 0x295   : > { %12834 = vmatmul.mubr.msk.bf16.gmra.mrb[44].mxu1 %vm1269_vm3, %v17086_v20 }
 0x296   : > { %12837 = vmatprep.mubr.msk.bf16.mxu1 %vm1269_vm3, %v17089_v36 }
 0x297   : > { %13454 = vmatmul.mubr.msk.bf16.gmra.mrb[112].mxu0 %vm1269_vm3, %v19362_v58  ;;  %v19376_v58 = vld [vmem:[#allocation3_spill] sm:$0xff] }
 0x298   : > { %13457 = vmatprep.mubr.msk.bf16.mxu0 %vm1269_vm3, %v19364_v45  ;;  %v7587_v48 = vrot.slane %v19376_v58, 3  ;;  %v7589_v45 = vrot.slane %v19377_v7, 2  ;;  %v7595_v58 = vor.u32 %v7594_v22, %v7593_v5  ;;  %v19388_v5 = vld [vmem:[#allocation13_spill] sm:$0xff] }
 0x299   : > { %v7606_v41 = vrot.slane %v19388_v5, 3 }
 0x29a   : > { %v7588_v13 = vor.u32 %v7587_v48, %v7586_v30  ;;  %v7591_v60 = vor.u32 %v7590_v9, %v7589_v45  ;;  %v19385_v9 = vld [vmem:[#allocation12_spill] sm:$0xff] }
 0x29c   : > { %v7596_v46 = vsel %vm7585_vm7, %v7591_v60, %v7595_v58 }
 0x29d   : > { %12838 = vmatmul.mubr.msk.bf16.gmra.mrb[48].mxu1 %vm1269_vm3, %v17102_v31 }
 0x29e   : > { %12841 = vmatprep.mubr.msk.bf16.mxu1 %vm1269_vm3, %v17105_v56 }
 0x29f   : > { %13458 = vmatmul.mubr.msk.bf16.gmra.mrb[116].mxu0 %vm1269_vm3, %v19366_v26  ;;  %v19379_v26 = vld [vmem:[#allocation201_spill] sm:$0xff] }
 0x2a0   : > { %13461 = vmatprep.mubr.msk.bf16.mxu0 %vm1269_vm3, %v19367_v61  ;;  %v2842_v6 = vrot.slane %v19379_v26, 1  ;;  %v6858_v61 = vrot.slane %v17168_v24, 2  ;;  %v7601_v26 = vrot.slane %v19385_v9, 2  ;;  %v19391_v9 = vld [vmem:[#allocation18_spill] sm:$0xff] }
 0x2a2   : > { %v17187_v18 = vsel %vm2774_vm6, %v2842_v6, %v2844_v49 }
 0x2a5   : > { %12842 = vmatmul.mubr.msk.bf16.gmra.mrb[52].mxu1 %vm1269_vm3, %v17118_v43 }
 0x2a6   : > { %12845 = vmatprep.mubr.msk.bf16.mxu1 %vm1269_vm3, %v17121_v37 }
 0x2a7   : > { %13462 = vmatmul.mubr.msk.bf16.gmra.mrb[120].mxu0 %vm1269_vm3, %v19369_v39  ;;  %v17184_v39 = vsel %vm2774_vm6, %v2840_v14, %v2842_v6  ;;  %v19386_v6 = vld [vmem:[#allocation11_spill] sm:$0xff] }
 0x2a8   : > { %13465 = vmatprep.mubr.msk.bf16.mxu0 %vm1269_vm3, %v19370_v40  ;;  %v6859_v40 = vsel %vm5785_vm5, %v6856_v32, %v6858_v61  ;;  %v14992_v32 = vld [vmem:[%s15185_s27 + $0x128] sm:$0xff]   ;;  %v7602_v61 = vrot.slane %v19386_v6, 3  ;;  %v19392_v6 = vld [vmem:[#allocation17_spill] sm:$0xff] }
 0x2a9   : > { %v2848_v30 = vrot.slane %v14992_v32, 1 }
 0x2ad   : > { %12846 = vmatmul.mubr.msk.bf16.gmra.mrb[56].mxu1 %vm1269_vm3, %v17135_v29 }
 0x2ae   : > { %12849 = vmatprep.mubr.msk.bf16.mxu1 %vm1269_vm3, %v17138_v4 }
 0x2af   : > { %13466 = vmatmul.mubr.msk.bf16.gmra.mrb[124].mxu0 %vm1269_vm3, %v19373_v2  ;;  %v7592_v2 = vsel %vm7585_vm7, %v7588_v13, %v7591_v60  ;;  %v14994_v60 = vld [vmem:[%s15185_s27 + $0x138] sm:$0xff]  }
 0x2b0   : > { %13469 = vmatprep.mubr.msk.bf16.mxu0 %vm1269_vm3, %v19374_v1  ;;  %v19382_v1 = vld [vmem:[#allocation10_spill] sm:$0xff] }
 0x2b1   : > { %v7597_v54 = vrot.slane %v19382_v1, 2  ;;  %v7603_v1 = vor.u32 %v7602_v61, %v7601_v26  ;;  %v7613_v26 = vrot.slane %v19391_v9, 2  ;;  %v7614_v61 = vrot.slane %v19392_v6, 3 }
 0x2b3   : > { %v7615_v5 = vor.u32 %v7614_v61, %v7613_v26 }
 0x2b5   : > { %12850 = vmatmul.mubr.msk.bf16.gmra.mrb[60].mxu1 %vm1269_vm3, %v17159_v44 }
 0x2b6   : > { %12853 = vmatprep.mubr.msk.bf16.mxu1 %vm1269_vm3, %v17162_v50 }
 0x2b7   : > { %13470 = vmatmul.mubr.msk.bf16.gmra.mrb[128].mxu0 %vm1269_vm3, %v6855_v27  ;;  %v19383_v27 = vld [vmem:[#allocation9_spill] sm:$0xff] }
 0x2b8   : > { %13473 = vmatprep.mubr.msk.bf16.mxu0 %vm1269_vm3, %v6857_v12  ;;  %v7598_v14 = vrot.slane %v19383_v27, 3  ;;  %v19384_v12 = vld [vmem:[#allocation75_spill] sm:$0xff] }
 0x2b9   : > { %v2846_v38 = vrot.slane %v19384_v12, 1 }
 0x2ba   : > { %v7599_v48 = vor.u32 %v7598_v14, %v7597_v54 }
 0x2bb   : > { %v17204_v7 = vsel %vm2774_vm6, %v2844_v49, %v2846_v38  ;;  %v17207_v45 = vsel %vm2774_vm6, %v2846_v38, %v2848_v30  ;;  %v14993_v49 = vld [vmem:[%s15185_s27 + $0x130] sm:$0xff]  }
 0x2bc   : > { %v7600_v13 = vsel %vm7585_vm7, %v7595_v58, %v7599_v48  ;;  %v2850_v22 = vrot.slane %v14993_v49, 1  ;;  %v7604_v12 = vsel %vm7585_vm7, %v7599_v48, %v7603_v1  ;;  %v19389_v38 = vld [vmem:[#allocation16_spill] sm:$0xff]  ;;  %v19390_v58 = vld [vmem:[#allocation15_spill] sm:$0xff] }
 0x2bd   : > { %12854 = vmatmul.mubr.msk.bf16.gmra.mrb[64].mxu1 %vm1269_vm3, %v17184_v39  ;;  %v7609_v32 = vrot.slane %v19389_v38, 2  ;;  %v14996_v48 = vld [vmem:[%s15185_s27 + $0x148] sm:$0xff]  }
 0x2be   : > { %12857 = vmatprep.mubr.msk.bf16.mxu1 %vm1269_vm3, %v17187_v18  ;;  %v17225_v27 = vsel %vm2774_vm6, %v2848_v30, %v2850_v22  ;;  %v14995_v30 = vld [vmem:[%s15185_s27 + $0x140] sm:$0xff]   ;;  %v19394_v38 = vld [vmem:[#allocation19_spill] sm:$0xff] }
 0x2bf   : > { %13474 = vmatmul.mubr.msk.bf16.gmra.mrb[132].mxu0 %vm1269_vm3, %v6859_v40  ;;  %v19387_v40 = vld [vmem:[#allocation14_spill] sm:$0xff] }
 0x2c0   : > { %13479 = vmatprep.mubr.msk.bf16.mxu0 %vm1269_vm3, %v7592_v2  ;;  %v7605_v35 = vrot.slane %v19387_v40, 2  ;;  %v2852_v2 = vrot.slane %v14994_v60, 1  ;;  %v2856_v40 = vrot.slane %v14996_v48, 1  ;;  %v19393_v60 = vld [vmem:[#allocation20_spill] sm:$0xff] }
 0x2c2   : > { %v7607_v54 = vor.u32 %v7606_v41, %v7605_v35  ;;  %v17228_v14 = vsel %vm2774_vm6, %v2850_v22, %v2852_v2 }
 0x2c5   : > { %12858 = vmatmul.mubr.msk.bf16.gmra.mrb[68].mxu1 %vm1269_vm3, %v17204_v7 }
 0x2c6   : > { %12861 = vmatprep.mubr.msk.bf16.mxu1 %vm1269_vm3, %v17207_v45 }
 0x2c7   : > { %13480 = vmatmul.mubr.msk.bf16.vlgmr.msra.gmra.mrb[0].mxu0 %vm1269_vm3, %v7596_v46  ;;  %v7610_v46 = vrot.slane %v19390_v58, 3 }
 0x2c8   : > { %13616 = vmatpush3.bf16.msra.mxu0 %v16922_v17  ;;  %13483 = vmatprep.mubr.msk.bf16.mxu0 %vm1269_vm3, %v7600_v13  ;;  %v7608_v17 = vsel %vm7585_vm7, %v7603_v1, %v7607_v54  ;;  %v2854_v13 = vrot.slane %v14995_v30, 1  ;;  %v7617_v1 = vrot.slane %v19393_v60, 2  ;;  %v19399_v60 = vld [vmem:[#allocation24_spill] sm:$0xff] }
 0x2c9   : > { %v7611_v35 = vor.u32 %v7610_v46, %v7609_v32  ;;  %v19396_v46 = vld [vmem:[#allocation21_spill] sm:$0xff] }
 0x2ca   : > { %v17245_v41 = vsel %vm2774_vm6, %v2852_v2, %v2854_v13  ;;  %v17248_v49 = vsel %vm2774_vm6, %v2854_v13, %v2856_v40  ;;  %v7622_v9 = vrot.slane %v19396_v46, 3  ;;  %v14997_v2 = vld [vmem:[%s15185_s27 + $0x150] sm:$0xff]   ;;  %v19401_v46 = vld [vmem:[#allocation26_spill] sm:$0xff] }
 0x2cb   : > { %v7612_v22 = vsel %vm7585_vm7, %v7607_v54, %v7611_v35  ;;  %v7616_v58 = vsel %vm7585_vm7, %v7611_v35, %v7615_v5  ;;  %v2858_v26 = vrot.slane %v14997_v2, 1  ;;  %v14998_v54 = vld [vmem:[%s15185_s27 + $0x158] sm:$0xff]  }
 0x2cc   : > { %v2860_v6 = vrot.slane %v14998_v54, 1 }
 0x2cd   : > { %12862 = vmatmul.mubr.msk.bf16.gmra.mrb[72].mxu1 %vm1269_vm3, %v17225_v27  ;;  %v17265_v13 = vsel %vm2774_vm6, %v2856_v40, %v2858_v26  ;;  %v14999_v40 = vld [vmem:[%s15185_s27 + $0x160] sm:$0xff]  }
 0x2ce   : > { %12865 = vmatprep.mubr.msk.bf16.mxu1 %vm1269_vm3, %v17228_v14  ;;  %19397 = vst [vmem:[#allocation81_spill] sm:$0xff] %v17265_v13  ;;  %v17268_v48 = vsel %vm2774_vm6, %v2858_v26, %v2860_v6 }
 0x2cf   : > { %13484 = vmatmul.mubr.msk.bf16.gmra.mrb[4].mxu0 %vm1269_vm3, %v7604_v12  ;;  %v7618_v12 = vrot.slane %v19394_v38, 3  ;;  %19398 = vst [vmem:[#allocation86_spill] sm:$0xff] %v17268_v48  ;;  %v7625_v38 = vrot.slane %v19399_v60, 2 }
 0x2d0   : > { %13487 = vmatprep.mubr.msk.bf16.mxu0 %vm1269_vm3, %v7608_v17  ;;  %v19395_v17 = vld [vmem:[#allocation22_spill] sm:$0xff] }
 0x2d1   : > { %v7621_v32 = vrot.slane %v19395_v17, 2  ;;  %v7619_v61 = vor.u32 %v7618_v12, %v7617_v1  ;;  %v19400_v17 = vld [vmem:[#allocation23_spill] sm:$0xff]  ;;  %v7629_v1 = vrot.slane %v19401_v46, 2  ;;  %v19402_v12 = vld [vmem:[#allocation25_spill] sm:$0xff]  ;;  %v19405_v46 = vld [vmem:[#allocation28_spill] sm:$0xff] }
 0x2d3   : > { %v7623_v30 = vor.u32 %v7622_v9, %v7621_v32  ;;  %v7620_v35 = vsel %vm7585_vm7, %v7615_v5, %v7619_v61  ;;  %v7630_v32 = vrot.slane %v19402_v12, 3  ;;  %v2862_v9 = vrot.slane %v14999_v40, 1  ;;  %v15000_v5 = vld [vmem:[%s15185_s27 + $0x168] sm:$0xff]  }
 0x2d4   : > { %v2864_v2 = vrot.slane %v15000_v5, 1  ;;  %v7633_v12 = vrot.slane %v19405_v46, 2  ;;  %v19406_v40 = vld [vmem:[#allocation27_spill] sm:$0xff]  ;;  %v19407_v5 = vld [vmem:[#allocation30_spill] sm:$0xff] }
 0x2d5   : > { %12866 = vmatmul.mubr.msk.bf16.gmra.mrb[76].mxu1 %vm1269_vm3, %v17245_v41  ;;  %v7631_v54 = vor.u32 %v7630_v32, %v7629_v1 }
 0x2d6   : > { %12869 = vmatprep.mubr.msk.bf16.mxu1 %vm1269_vm3, %v17248_v49  ;;  %v17288_v60 = vsel %vm2774_vm6, %v2862_v9, %v2864_v2 }
 0x2d7   : > { %13488 = vmatmul.mubr.msk.bf16.gmra.mrb[8].mxu0 %vm1269_vm3, %v7612_v22  ;;  %v7626_v22 = vrot.slane %v19400_v17, 3  ;;  %19404 = vst [vmem:[#allocation92_spill] sm:$0xff] %v17288_v60 }
 0x2d8   : > { %13491 = vmatprep.mubr.msk.bf16.mxu0 %vm1269_vm3, %v7616_v58  ;;  %v7624_v58 = vsel %vm7585_vm7, %v7619_v61, %v7623_v30  ;;  %v17285_v61 = vsel %vm2774_vm6, %v2860_v6, %v2862_v9  ;;  %v15001_v6 = vld [vmem:[%s15185_s27 + $0x170] sm:$0xff]  }
 0x2d9   : > { %v7627_v26 = vor.u32 %v7626_v22, %v7625_v38  ;;  %19403 = vst [vmem:[#allocation87_spill] sm:$0xff] %v17285_v61  ;;  %v7637_v38 = vrot.slane %v19407_v5, 2  ;;  %v19408_v22 = vld [vmem:[#allocation29_spill] sm:$0xff]  ;;  %v2866_v32 = vrot.slane %v15001_v6, 1 }
 0x2da   : > { %v7638_v1 = vrot.slane %v19408_v22, 3 }
 0x2db   : > { %v7628_v17 = vsel %vm7585_vm7, %v7623_v30, %v7627_v26  ;;  %v15002_v30 = vld [vmem:[%s15185_s27 + $0x178] sm:$0xff]  }
 0x2dc   : > { %v2868_v9 = vrot.slane %v15002_v30, 1  ;;  %v19413_v30 = vld [vmem:[#allocation34_spill] sm:$0xff] }
 0x2dd   : > { %12870 = vmatmul.mubr.msk.bf16.gmra.mrb[80].mxu1 %vm1269_vm3, %v17265_v13 }
 0x2de   : > { %12873 = vmatprep.mubr.msk.bf16.mxu1 %vm1269_vm3, %v17268_v48  ;;  %v17308_v5 = vsel %vm2774_vm6, %v2866_v32, %v2868_v9 }
 0x2df   : > { %13492 = vmatmul.mubr.msk.bf16.gmra.mrb[12].mxu0 %vm1269_vm3, %v7620_v35  ;;  %v7634_v35 = vrot.slane %v19406_v40, 3  ;;  %v7639_v40 = vor.u32 %v7638_v1, %v7637_v38  ;;  %19410 = vst [vmem:[#allocation98_spill] sm:$0xff] %v17308_v5 }
 0x2e0   : > { %13495 = vmatprep.mubr.msk.bf16.mxu0 %vm1269_vm3, %v7624_v58  ;;  %v7632_v58 = vsel %vm7585_vm7, %v7627_v26, %v7631_v54  ;;  %v17305_v26 = vsel %vm2774_vm6, %v2864_v2, %v2866_v32  ;;  %v15003_v2 = vld [vmem:[%s15185_s27 + $0x180] sm:$0xff]  }
 0x2e1   : > { %v7635_v46 = vor.u32 %v7634_v35, %v7633_v12  ;;  %19409 = vst [vmem:[#allocation93_spill] sm:$0xff] %v17305_v26  ;;  %v7645_v12 = vrot.slane %v19413_v30, 2  ;;  %v19414_v35 = vld [vmem:[#allocation33_spill] sm:$0xff]  ;;  %v2870_v1 = vrot.slane %v15003_v2, 1 }
 0x2e2   : > { %v7646_v38 = vrot.slane %v19414_v35, 3 }
 0x2e3   : > { %v7636_v22 = vsel %vm7585_vm7, %v7631_v54, %v7635_v46  ;;  %v15004_v54 = vld [vmem:[%s15185_s27 + $0x188] sm:$0xff]  }
 0x2e4   : > { %v7647_v32 = vor.u32 %v7646_v38, %v7645_v12 }
 0x2e5   : > { %12874 = vmatmul.mubr.msk.bf16.gmra.mrb[84].mxu1 %vm1269_vm3, %v17285_v61  ;;  %v19412_v61 = vld [vmem:[#allocation31_spill] sm:$0xff] }
 0x2e6   : > { %12877 = vmatprep.mubr.msk.bf16.mxu1 %vm1269_vm3, %v17288_v60  ;;  %v19411_v60 = vld [vmem:[#allocation32_spill] sm:$0xff] }
 0x2e7   : > { %13496 = vmatmul.mubr.msk.bf16.gmra.mrb[16].mxu0 %vm1269_vm3, %v7628_v17  ;;  %v7641_v6 = vrot.slane %v19411_v60, 2  ;;  %v7642_v17 = vrot.slane %v19412_v61, 3  ;;  %v2872_v60 = vrot.slane %v15004_v54, 1  ;;  %v19419_v54 = vld [vmem:[#allocation38_spill] sm:$0xff] }
 0x2e8   : > { %13499 = vmatprep.mubr.msk.bf16.mxu0 %vm1269_vm3, %v7632_v58  ;;  %v7640_v58 = vsel %vm7585_vm7, %v7635_v46, %v7639_v40  ;;  %v17325_v46 = vsel %vm2774_vm6, %v2868_v9, %v2870_v1  ;;  %v15005_v9 = vld [vmem:[%s15185_s27 + $0x190] sm:$0xff]  }
 0x2e9   : > { %v7643_v61 = vor.u32 %v7642_v17, %v7641_v6  ;;  %19415 = vst [vmem:[#allocation99_spill] sm:$0xff] %v17325_v46  ;;  %v17328_v30 = vsel %vm2774_vm6, %v2870_v1, %v2872_v60  ;;  %v7653_v6 = vrot.slane %v19419_v54, 2  ;;  %v19420_v17 = vld [vmem:[#allocation37_spill] sm:$0xff]  ;;  %v2874_v38 = vrot.slane %v15005_v9, 1 }
 0x2ea   : > { %19416 = vst [vmem:[#allocation105_spill] sm:$0xff] %v17328_v30  ;;  %v7654_v12 = vrot.slane %v19420_v17, 3 }
 0x2eb   : > { %v7644_v35 = vsel %vm7585_vm7, %v7639_v40, %v7643_v61  ;;  %v15006_v40 = vld [vmem:[%s15185_s27 + $0x198] sm:$0xff]  }
 0x2ec   : > { %v7655_v1 = vor.u32 %v7654_v12, %v7653_v6 }
 0x2ed   : > { %12878 = vmatmul.mubr.msk.bf16.gmra.mrb[88].mxu1 %vm1269_vm3, %v17305_v26  ;;  %v19418_v26 = vld [vmem:[#allocation35_spill] sm:$0xff] }
 0x2ee   : > { %12881 = vmatprep.mubr.msk.bf16.mxu1 %vm1269_vm3, %v17308_v5  ;;  %v19417_v5 = vld [vmem:[#allocation36_spill] sm:$0xff] }
 0x2ef   : > { %13500 = vmatmul.mubr.msk.bf16.gmra.mrb[20].mxu0 %vm1269_vm3, %v7636_v22  ;;  %v7649_v2 = vrot.slane %v19417_v5, 2  ;;  %v7650_v22 = vrot.slane %v19418_v26, 3  ;;  %v2876_v5 = vrot.slane %v15006_v40, 1  ;;  %v19425_v40 = vld [vmem:[#allocation42_spill] sm:$0xff] }
 0x2f0   : > { %13503 = vmatprep.mubr.msk.bf16.mxu0 %vm1269_vm3, %v7640_v58  ;;  %v7648_v58 = vsel %vm7585_vm7, %v7643_v61, %v7647_v32  ;;  %v17345_v61 = vsel %vm2774_vm6, %v2872_v60, %v2874_v38  ;;  %v15007_v60 = vld [vmem:[%s15185_s27 + $0x1a0] sm:$0xff]  }
 0x2f1   : > { %v7651_v26 = vor.u32 %v7650_v22, %v7649_v2  ;;  %19421 = vst [vmem:[#allocation106_spill] sm:$0xff] %v17345_v61  ;;  %v17348_v54 = vsel %vm2774_vm6, %v2874_v38, %v2876_v5  ;;  %v7661_v2 = vrot.slane %v19425_v40, 2  ;;  %v19426_v22 = vld [vmem:[#allocation41_spill] sm:$0xff]  ;;  %v2878_v12 = vrot.slane %v15007_v60, 1 }
 0x2f2   : > { %19422 = vst [vmem:[#allocation111_spill] sm:$0xff] %v17348_v54  ;;  %v7662_v6 = vrot.slane %v19426_v22, 3 }
 0x2f3   : > { %v7652_v17 = vsel %vm7585_vm7, %v7647_v32, %v7651_v26  ;;  %v15008_v32 = vld [vmem:[%s15185_s27 + $0x1a8] sm:$0xff]  }
 0x2f4   : > { %v7663_v38 = vor.u32 %v7662_v6, %v7661_v2 }
 0x2f5   : > { %12882 = vmatmul.mubr.msk.bf16.gmra.mrb[92].mxu1 %vm1269_vm3, %v17325_v46  ;;  %v19424_v46 = vld [vmem:[#allocation39_spill] sm:$0xff] }
 0x2f6   : > { %12885 = vmatprep.mubr.msk.bf16.mxu1 %vm1269_vm3, %v17328_v30  ;;  %v19423_v30 = vld [vmem:[#allocation40_spill] sm:$0xff] }
 0x2f7   : > { %13504 = vmatmul.mubr.msk.bf16.gmra.mrb[24].mxu0 %vm1269_vm3, %v7644_v35  ;;  %v7657_v9 = vrot.slane %v19423_v30, 2  ;;  %v7658_v35 = vrot.slane %v19424_v46, 3  ;;  %v2880_v30 = vrot.slane %v15008_v32, 1  ;;  %v19431_v32 = vld [vmem:[#allocation46_spill] sm:$0xff] }
 0x2f8   : > { %13507 = vmatprep.mubr.msk.bf16.mxu0 %vm1269_vm3, %v7648_v58  ;;  %v7656_v58 = vsel %vm7585_vm7, %v7651_v26, %v7655_v1  ;;  %v17365_v26 = vsel %vm2774_vm6, %v2876_v5, %v2878_v12  ;;  %v15009_v5 = vld [vmem:[%s15185_s27 + $0x1b0] sm:$0xff]  }
 0x2f9   : > { %v7659_v46 = vor.u32 %v7658_v35, %v7657_v9  ;;  %19427 = vst [vmem:[#allocation112_spill] sm:$0xff] %v17365_v26  ;;  %v17368_v40 = vsel %vm2774_vm6, %v2878_v12, %v2880_v30  ;;  %v7669_v9 = vrot.slane %v19431_v32, 2  ;;  %v19432_v35 = vld [vmem:[#allocation45_spill] sm:$0xff]  ;;  %v2882_v6 = vrot.slane %v15009_v5, 1 }
 0x2fa   : > { %19428 = vst [vmem:[#allocation117_spill] sm:$0xff] %v17368_v40  ;;  %v7670_v2 = vrot.slane %v19432_v35, 3 }
 0x2fb   : > { %v7660_v22 = vsel %vm7585_vm7, %v7655_v1, %v7659_v46  ;;  %v15010_v1 = vld [vmem:[%s15185_s27 + $0x1b8] sm:$0xff]  }
 0x2fc   : > { %v7671_v12 = vor.u32 %v7670_v2, %v7669_v9 }
 0x2fd   : > { %12886 = vmatmul.mubr.msk.bf16.gmra.mrb[96].mxu1 %vm1269_vm3, %v17345_v61  ;;  %v19430_v61 = vld [vmem:[#allocation43_spill] sm:$0xff] }
 0x2fe   : > { %12889 = vmatprep.mubr.msk.bf16.mxu1 %vm1269_vm3, %v17348_v54  ;;  %v19429_v54 = vld [vmem:[#allocation44_spill] sm:$0xff] }
 0x2ff   : > { %13508 = vmatmul.mubr.msk.bf16.gmra.mrb[28].mxu0 %vm1269_vm3, %v7652_v17  ;;  %v7665_v60 = vrot.slane %v19429_v54, 2  ;;  %v7666_v17 = vrot.slane %v19430_v61, 3  ;;  %v2884_v54 = vrot.slane %v15010_v1, 1  ;;  %v19437_v1 = vld [vmem:[#allocation50_spill] sm:$0xff] }
 0x300   : > { %13511 = vmatprep.mubr.msk.bf16.mxu0 %vm1269_vm3, %v7656_v58  ;;  %v7664_v58 = vsel %vm7585_vm7, %v7659_v46, %v7663_v38  ;;  %v17385_v46 = vsel %vm2774_vm6, %v2880_v30, %v2882_v6  ;;  %v15011_v30 = vld [vmem:[%s15185_s27 + $0x1c0] sm:$0xff]  }
 0x301   : > { %v7667_v61 = vor.u32 %v7666_v17, %v7665_v60  ;;  %19433 = vst [vmem:[#allocation118_spill] sm:$0xff] %v17385_v46  ;;  %v17388_v32 = vsel %vm2774_vm6, %v2882_v6, %v2884_v54  ;;  %v7677_v60 = vrot.slane %v19437_v1, 2  ;;  %v19438_v17 = vld [vmem:[#allocation49_spill] sm:$0xff]  ;;  %v2886_v2 = vrot.slane %v15011_v30, 1 }
 0x302   : > { %19434 = vst [vmem:[#allocation123_spill] sm:$0xff] %v17388_v32  ;;  %v7678_v9 = vrot.slane %v19438_v17, 3 }
 0x303   : > { %v7668_v35 = vsel %vm7585_vm7, %v7663_v38, %v7667_v61  ;;  %v15012_v38 = vld [vmem:[%s15185_s27 + $0x1c8] sm:$0xff]  }
 0x304   : > { %v7679_v6 = vor.u32 %v7678_v9, %v7677_v60 }
 0x305   : > { %12890 = vmatmul.mubr.msk.bf16.gmra.mrb[100].mxu1 %vm1269_vm3, %v17365_v26  ;;  %v19436_v26 = vld [vmem:[#allocation47_spill] sm:$0xff] }
 0x306   : > { %12893 = vmatprep.mubr.msk.bf16.mxu1 %vm1269_vm3, %v17368_v40  ;;  %v19435_v40 = vld [vmem:[#allocation48_spill] sm:$0xff] }
 0x307   : > { %13512 = vmatmul.mubr.msk.bf16.gmra.mrb[32].mxu0 %vm1269_vm3, %v7660_v22  ;;  %v7673_v5 = vrot.slane %v19435_v40, 2  ;;  %v7674_v22 = vrot.slane %v19436_v26, 3  ;;  %v2888_v40 = vrot.slane %v15012_v38, 1  ;;  %v19443_v38 = vld [vmem:[#allocation54_spill] sm:$0xff] }
 0x308   : > { %13515 = vmatprep.mubr.msk.bf16.mxu0 %vm1269_vm3, %v7664_v58  ;;  %v7672_v58 = vsel %vm7585_vm7, %v7667_v61, %v7671_v12  ;;  %v17405_v61 = vsel %vm2774_vm6, %v2884_v54, %v2886_v2  ;;  %v15013_v54 = vld [vmem:[%s15185_s27 + $0x1d0] sm:$0xff]  }
 0x309   : > { %v7675_v26 = vor.u32 %v7674_v22, %v7673_v5  ;;  %19439 = vst [vmem:[#allocation124_spill] sm:$0xff] %v17405_v61  ;;  %v17408_v1 = vsel %vm2774_vm6, %v2886_v2, %v2888_v40  ;;  %v7685_v5 = vrot.slane %v19443_v38, 2  ;;  %v19444_v22 = vld [vmem:[#allocation53_spill] sm:$0xff]  ;;  %v2890_v9 = vrot.slane %v15013_v54, 1 }
 0x30a   : > { %19440 = vst [vmem:[#allocation129_spill] sm:$0xff] %v17408_v1  ;;  %v7686_v60 = vrot.slane %v19444_v22, 3 }
 0x30b   : > { %v7676_v17 = vsel %vm7585_vm7, %v7671_v12, %v7675_v26  ;;  %v15014_v12 = vld [vmem:[%s15185_s27 + $0x1d8] sm:$0xff]  }
 0x30c   : > { %v7687_v2 = vor.u32 %v7686_v60, %v7685_v5 }
 0x30d   : > { %12894 = vmatmul.mubr.msk.bf16.gmra.mrb[104].mxu1 %vm1269_vm3, %v17385_v46  ;;  %v19442_v46 = vld [vmem:[#allocation51_spill] sm:$0xff] }
 0x30e   : > { %12897 = vmatprep.mubr.msk.bf16.mxu1 %vm1269_vm3, %v17388_v32  ;;  %v19441_v32 = vld [vmem:[#allocation52_spill] sm:$0xff] }
 0x30f   : > { %13516 = vmatmul.mubr.msk.bf16.gmra.mrb[36].mxu0 %vm1269_vm3, %v7668_v35  ;;  %v7681_v30 = vrot.slane %v19441_v32, 2  ;;  %v7682_v35 = vrot.slane %v19442_v46, 3  ;;  %v2892_v32 = vrot.slane %v15014_v12, 1  ;;  %v19449_v12 = vld [vmem:[#allocation58_spill] sm:$0xff] }
 0x310   : > { %13519 = vmatprep.mubr.msk.bf16.mxu0 %vm1269_vm3, %v7672_v58  ;;  %v7680_v58 = vsel %vm7585_vm7, %v7675_v26, %v7679_v6  ;;  %v17425_v26 = vsel %vm2774_vm6, %v2888_v40, %v2890_v9  ;;  %v15015_v40 = vld [vmem:[%s15185_s27 + $0x1e0] sm:$0xff]  }
 0x311   : > { %v7683_v46 = vor.u32 %v7682_v35, %v7681_v30  ;;  %19445 = vst [vmem:[#allocation130_spill] sm:$0xff] %v17425_v26  ;;  %v17428_v38 = vsel %vm2774_vm6, %v2890_v9, %v2892_v32  ;;  %v7693_v30 = vrot.slane %v19449_v12, 2  ;;  %v19450_v35 = vld [vmem:[#allocation57_spill] sm:$0xff]  ;;  %v2894_v60 = vrot.slane %v15015_v40, 1 }
 0x312   : > { %19446 = vst [vmem:[#allocation135_spill] sm:$0xff] %v17428_v38  ;;  %v7694_v5 = vrot.slane %v19450_v35, 3 }
 0x313   : > { %v7684_v22 = vsel %vm7585_vm7, %v7679_v6, %v7683_v46  ;;  %v15016_v6 = vld [vmem:[%s15185_s27 + $0x1e8] sm:$0xff]  }
 0x314   : > { %v7695_v9 = vor.u32 %v7694_v5, %v7693_v30 }
 0x315   : > { %12898 = vmatmul.mubr.msk.bf16.gmra.mrb[108].mxu1 %vm1269_vm3, %v17405_v61  ;;  %v19448_v61 = vld [vmem:[#allocation55_spill] sm:$0xff] }
 0x316   : > { %12901 = vmatprep.mubr.msk.bf16.mxu1 %vm1269_vm3, %v17408_v1  ;;  %v19447_v1 = vld [vmem:[#allocation56_spill] sm:$0xff] }
 0x317   : > { %13520 = vmatmul.mubr.msk.bf16.gmra.mrb[40].mxu0 %vm1269_vm3, %v7676_v17  ;;  %v7689_v54 = vrot.slane %v19447_v1, 2  ;;  %v7690_v17 = vrot.slane %v19448_v61, 3  ;;  %v2896_v1 = vrot.slane %v15016_v6, 1  ;;  %v19455_v6 = vld [vmem:[#allocation62_spill] sm:$0xff] }
 0x318   : > { %13523 = vmatprep.mubr.msk.bf16.mxu0 %vm1269_vm3, %v7680_v58  ;;  %v7688_v58 = vsel %vm7585_vm7, %v7683_v46, %v7687_v2  ;;  %v17445_v46 = vsel %vm2774_vm6, %v2892_v32, %v2894_v60  ;;  %v15017_v32 = vld [vmem:[%s15185_s27 + $0x1f0] sm:$0xff]  }
 0x319   : > { %v7691_v61 = vor.u32 %v7690_v17, %v7689_v54  ;;  %19451 = vst [vmem:[#allocation136_spill] sm:$0xff] %v17445_v46  ;;  %v17448_v12 = vsel %vm2774_vm6, %v2894_v60, %v2896_v1  ;;  %v7701_v54 = vrot.slane %v19455_v6, 2  ;;  %v19456_v17 = vld [vmem:[#allocation61_spill] sm:$0xff]  ;;  %v2898_v5 = vrot.slane %v15017_v32, 1 }
 0x31a   : > { %19452 = vst [vmem:[#allocation141_spill] sm:$0xff] %v17448_v12  ;;  %v7702_v30 = vrot.slane %v19456_v17, 3 }
 0x31b   : > { %v7692_v35 = vsel %vm7585_vm7, %v7687_v2, %v7691_v61  ;;  %v15018_v2 = vld [vmem:[%s15185_s27 + $0x1f8] sm:$0xff]  }
 0x31c   : > { %v7703_v60 = vor.u32 %v7702_v30, %v7701_v54 }
 0x31d   : > { %12902 = vmatmul.mubr.msk.bf16.gmra.mrb[112].mxu1 %vm1269_vm3, %v17425_v26  ;;  %v19454_v26 = vld [vmem:[#allocation59_spill] sm:$0xff] }
 0x31e   : > { %12905 = vmatprep.mubr.msk.bf16.mxu1 %vm1269_vm3, %v17428_v38  ;;  %v19453_v38 = vld [vmem:[#allocation60_spill] sm:$0xff] }
 0x31f   : > { %13524 = vmatmul.mubr.msk.bf16.gmra.mrb[44].mxu0 %vm1269_vm3, %v7684_v22  ;;  %v7697_v40 = vrot.slane %v19453_v38, 2  ;;  %v7698_v22 = vrot.slane %v19454_v26, 3  ;;  %v2900_v38 = vrot.slane %v15018_v2, 1  ;;  %v19461_v2 = vld [vmem:[#allocation66_spill] sm:$0xff] }
 0x320   : > { %13527 = vmatprep.mubr.msk.bf16.mxu0 %vm1269_vm3, %v7688_v58  ;;  %v7696_v58 = vsel %vm7585_vm7, %v7691_v61, %v7695_v9  ;;  %v17465_v61 = vsel %vm2774_vm6, %v2896_v1, %v2898_v5  ;;  %v15019_v1 = vld [vmem:[%s15185_s27 + $0x200] sm:$0xff]  }
 0x321   : > { %v7699_v26 = vor.u32 %v7698_v22, %v7697_v40  ;;  %19457 = vst [vmem:[#allocation142_spill] sm:$0xff] %v17465_v61  ;;  %v17468_v6 = vsel %vm2774_vm6, %v2898_v5, %v2900_v38  ;;  %v7709_v40 = vrot.slane %v19461_v2, 2  ;;  %v19462_v22 = vld [vmem:[#allocation65_spill] sm:$0xff]  ;;  %v2902_v30 = vrot.slane %v15019_v1, 1 }
 0x322   : > { %19458 = vst [vmem:[#allocation147_spill] sm:$0xff] %v17468_v6  ;;  %v7710_v54 = vrot.slane %v19462_v22, 3 }
 0x323   : > { %v7700_v17 = vsel %vm7585_vm7, %v7695_v9, %v7699_v26  ;;  %v15020_v9 = vld [vmem:[%s15185_s27 + $0x208] sm:$0xff]  }
 0x324   : > { %v7711_v5 = vor.u32 %v7710_v54, %v7709_v40 }
 0x325   : > { %12906 = vmatmul.mubr.msk.bf16.gmra.mrb[116].mxu1 %vm1269_vm3, %v17445_v46  ;;  %v19460_v46 = vld [vmem:[#allocation63_spill] sm:$0xff] }
 0x326   : > { %12909 = vmatprep.mubr.msk.bf16.mxu1 %vm1269_vm3, %v17448_v12  ;;  %v19459_v12 = vld [vmem:[#allocation64_spill] sm:$0xff] }
 0x327   : > { %13528 = vmatmul.mubr.msk.bf16.gmra.mrb[48].mxu0 %vm1269_vm3, %v7692_v35  ;;  %v7705_v32 = vrot.slane %v19459_v12, 2  ;;  %v7706_v35 = vrot.slane %v19460_v46, 3  ;;  %v2904_v12 = vrot.slane %v15020_v9, 1  ;;  %v19467_v9 = vld [vmem:[#allocation72_spill] sm:$0xff] }
 0x328   : > { %13531 = vmatprep.mubr.msk.bf16.mxu0 %vm1269_vm3, %v7696_v58  ;;  %v7704_v58 = vsel %vm7585_vm7, %v7699_v26, %v7703_v60  ;;  %v17485_v26 = vsel %vm2774_vm6, %v2900_v38, %v2902_v30  ;;  %v15021_v38 = vld [vmem:[%s15185_s27 + $0x210] sm:$0xff]  }
 0x329   : > { %v7707_v46 = vor.u32 %v7706_v35, %v7705_v32  ;;  %19463 = vst [vmem:[#allocation148_spill] sm:$0xff] %v17485_v26  ;;  %v17488_v2 = vsel %vm2774_vm6, %v2902_v30, %v2904_v12  ;;  %v7717_v32 = vrot.slane %v19467_v9, 2  ;;  %v19468_v35 = vld [vmem:[#allocation70_spill] sm:$0xff]  ;;  %v2906_v54 = vrot.slane %v15021_v38, 1 }
 0x32a   : > { %19464 = vst [vmem:[#allocation153_spill] sm:$0xff] %v17488_v2  ;;  %v7718_v40 = vrot.slane %v19468_v35, 3 }
 0x32b   : > { %v7708_v22 = vsel %vm7585_vm7, %v7703_v60, %v7707_v46  ;;  %v15022_v60 = vld [vmem:[%s15185_s27 + $0x218] sm:$0xff]  }
 0x32c   : > { %v7719_v30 = vor.u32 %v7718_v40, %v7717_v32  ;;  %v19474_v32 = vld [vmem:[#allocation74_spill] sm:$0xff]  ;;  %v19475_v40 = vld [vmem:[#allocation160_spill] sm:$0xff] }
 0x32d   : > { %12910 = vmatmul.mubr.msk.bf16.gmra.mrb[120].mxu1 %vm1269_vm3, %v17465_v61  ;;  %v19466_v61 = vld [vmem:[#allocation67_spill] sm:$0xff] }
 0x32e   : > { %12913 = vmatprep.mubr.msk.bf16.mxu1 %vm1269_vm3, %v17468_v6  ;;  %v19465_v6 = vld [vmem:[#allocation68_spill] sm:$0xff] }
 0x32f   : > { %13532 = vmatmul.mubr.msk.bf16.gmra.mrb[52].mxu0 %vm1269_vm3, %v7700_v17  ;;  %v7713_v1 = vrot.slane %v19465_v6, 2  ;;  %v7714_v17 = vrot.slane %v19466_v61, 3  ;;  %v17503_v6 = vrot.slane %v15022_v60, 1 }
 0x330   : > { %13535 = vmatprep.mubr.msk.bf16.mxu0 %vm1269_vm3, %v7704_v58  ;;  %v7712_v58 = vsel %vm7585_vm7, %v7707_v46, %v7711_v5  ;;  %v17507_v46 = vsel %vm2774_vm6, %v2904_v12, %v2906_v54  ;;  %v7726_v12 = vrot.slane %v19474_v32, 3 }
 0x331   : > { %v7715_v61 = vor.u32 %v7714_v17, %v7713_v1  ;;  %19469 = vst [vmem:[#allocation154_spill] sm:$0xff] %v17507_v46  ;;  %v17511_v35 = vsel %vm2774_vm6, %v2906_v54, %v17503_v6  ;;  %v19473_v1 = vld [vmem:[#allocation77_spill] sm:$0xff]  ;;  %v2910_v54 = vrot.slane %v19475_v40, 1  ;;  %v19478_v40 = vld [vmem:[#allocation83_spill] sm:$0xff] }
 0x332   : > { %19470 = vst [vmem:[#allocation159_spill] sm:$0xff] %v17511_v35  ;;  %v7725_v17 = vrot.slane %v19473_v1, 2  ;;  %v7733_v48 = vrot.slane %v19478_v40, 2 }
 0x333   : > { %v7716_v9 = vsel %vm7585_vm7, %v7711_v5, %v7715_v61 }
 0x334   : > { %v7727_v60 = vor.u32 %v7726_v12, %v7725_v17 }
 0x335   : > { %12914 = vmatmul.mubr.msk.bf16.gmra.mrb[124].mxu1 %vm1269_vm3, %v17485_v26  ;;  %v19472_v26 = vld [vmem:[#allocation71_spill] sm:$0xff] }
 0x336   : > { %12917 = vmatprep.mubr.msk.bf16.mxu1 %vm1269_vm3, %v17488_v2  ;;  %v19471_v2 = vld [vmem:[#allocation73_spill] sm:$0xff] }
 0x337   : > { %13536 = vmatmul.mubr.msk.bf16.gmra.mrb[56].mxu0 %vm1269_vm3, %v7708_v22  ;;  %v7721_v38 = vrot.slane %v19471_v2, 2  ;;  %v7722_v22 = vrot.slane %v19472_v26, 3  ;;  %v2911_v26 = vsel %vm2774_vm6, %v17503_v6, %v2910_v54  ;;  %v19476_v2 = vld [vmem:[#allocation78_spill] sm:$0xff] }
 0x338   : > { %13539 = vmatprep.mubr.msk.bf16.mxu0 %vm1269_vm3, %v7712_v58  ;;  %v7720_v58 = vsel %vm7585_vm7, %v7715_v61, %v7719_v30  ;;  %v7729_v1 = vrot.slane %v19476_v2, 2 }
 0x339   : > { %v7723_v5 = vor.u32 %v7722_v22, %v7721_v38 }
 0x33b   : > { %v7724_v61 = vsel %vm7585_vm7, %v7719_v30, %v7723_v5 }
 0x33d   : > { %12918 = vmatmul.mubr.msk.bf16.gmra.mrb[128].mxu1 %vm1269_vm3, %v17507_v46  ;;  %v19477_v46 = vld [vmem:[#allocation76_spill] sm:$0xff] }
 0x33e   : > { %12921 = vmatprep.mubr.msk.bf16.mxu1 %vm1269_vm3, %v17511_v35  ;;  %v7730_v32 = vrot.slane %v19477_v46, 3  ;;  %v7728_v35 = vsel %vm7585_vm7, %v7723_v5, %v7727_v60  ;;  %v19482_v5 = vld [vmem:[#allocation89_spill] sm:$0xff] }
 0x33f   : > { %13540 = vmatmul.mubr.msk.bf16.gmra.mrb[60].mxu0 %vm1269_vm3, %v7716_v9  ;;  %v19479_v9 = vld [vmem:[#allocation79_spill] sm:$0xff] }
 0x340   : > { %13543 = vmatprep.mubr.msk.bf16.mxu0 %vm1269_vm3, %v7720_v58  ;;  %v7734_v13 = vrot.slane %v19479_v9, 3  ;;  %v7731_v30 = vor.u32 %v7730_v32, %v7729_v1  ;;  %v19480_v58 = vld [vmem:[#allocation84_spill] sm:$0xff]  ;;  %v7741_v9 = vrot.slane %v19482_v5, 2 }
 0x341   : > { %v7737_v17 = vrot.slane %v19480_v58, 2  ;;  %v19485_v32 = vld [vmem:[#allocation88_spill] sm:$0xff] }
 0x342   : > { %v7735_v38 = vor.u32 %v7734_v13, %v7733_v48  ;;  %v7732_v22 = vsel %vm7585_vm7, %v7727_v60, %v7731_v30  ;;  %v7746_v60 = vrot.slane %v19485_v32, 3 }
 0x344   : > { %v7736_v54 = vsel %vm7585_vm7, %v7731_v30, %v7735_v38 }
 0x345   : > { %12922 = vmatmul.mubr.msk.bf16.gmra.mrb[132].mxu1 %vm1269_vm3, %v2911_v26  ;;  %v19481_v26 = vld [vmem:[#allocation82_spill] sm:$0xff] }
 0x346   : > { %12927 = vmatprep.mubr.msk.bf16.mxu1 %vm1269_vm3, %v16905_v11  ;;  %v7738_v12 = vrot.slane %v19481_v26, 3  ;;  %v19483_v11 = vld [vmem:[#allocation85_spill] sm:$0xff] }
 0x347   : > { %13544 = vmatmul.mubr.msk.bf16.gmra.mrb[64].mxu0 %vm1269_vm3, %v7724_v61  ;;  %v7742_v40 = vrot.slane %v19483_v11, 3  ;;  %v19486_v61 = vld [vmem:[#allocation95_spill] sm:$0xff] }
 0x348   : > { %13547 = vmatprep.mubr.msk.bf16.mxu0 %vm1269_vm3, %v7728_v35  ;;  %v7739_v13 = vor.u32 %v7738_v12, %v7737_v17  ;;  %v7749_v30 = vrot.slane %v19486_v61, 2 }
 0x349   : > { %v7743_v48 = vor.u32 %v7742_v40, %v7741_v9 }
 0x34a   : > { %v7740_v35 = vsel %vm7585_vm7, %v7735_v38, %v7739_v13 }
 0x34d   : > { %12928 = vmatmul.mubr.msk.bf16.vlgmr.msra.gmra.mrb[0].mxu1 %vm1269_vm3, %v16925_v34  ;;  %v19484_v34 = vld [vmem:[#allocation90_spill] sm:$0xff] }
 0x34e   : > { %13754 = vmatpush3.bf16.msra.mxu1 %v19335_v28  ;;  %12931 = vmatprep.mubr.msk.bf16.mxu1 %vm1269_vm3, %v16928_v63  ;;  %v7745_v1 = vrot.slane %v19484_v34, 2  ;;  %v7744_v28 = vsel %vm7585_vm7, %v7739_v13, %v7743_v48  ;;  %v19487_v63 = vld [vmem:[#allocation91_spill] sm:$0xff]  ;;  %v19490_v13 = vld [vmem:[#allocation102_spill] sm:$0xff] }
 0x34f   : > { %13548 = vmatmul.mubr.msk.bf16.gmra.mrb[68].mxu0 %vm1269_vm3, %v7732_v22  ;;  %v7750_v11 = vrot.slane %v19487_v63, 3  ;;  %v19488_v22 = vld [vmem:[#allocation96_spill] sm:$0xff]  ;;  %v7757_v63 = vrot.slane %v19490_v13, 2 }
 0x350   : > { %13551 = vmatprep.mubr.msk.bf16.mxu0 %vm1269_vm3, %v7736_v54  ;;  %v7747_v40 = vor.u32 %v7746_v60, %v7745_v1  ;;  %v7753_v17 = vrot.slane %v19488_v22, 2  ;;  %v19492_v1 = vld [vmem:[#allocation103_spill] sm:$0xff] }
 0x351   : > { %v7751_v9 = vor.u32 %v7750_v11, %v7749_v30  ;;  %v7761_v60 = vrot.slane %v19492_v1, 2 }
 0x352   : > { %v7748_v38 = vsel %vm7585_vm7, %v7743_v48, %v7747_v40 }
 0x353   : > { %v7752_v54 = vsel %vm7585_vm7, %v7747_v40, %v7751_v9  ;;  %v19494_v40 = vld [vmem:[#allocation108_spill] sm:$0xff] }
 0x355   : > { %12932 = vmatmul.mubr.msk.bf16.gmra.mrb[4].mxu1 %vm1269_vm3, %v16942_v51  ;;  %v19489_v51 = vld [vmem:[#allocation94_spill] sm:$0xff] }
 0x356   : > { %12935 = vmatprep.mubr.msk.bf16.mxu1 %vm1269_vm3, %v16945_v8  ;;  %v7754_v12 = vrot.slane %v19489_v51, 3  ;;  %v19491_v8 = vld [vmem:[#allocation97_spill] sm:$0xff] }
 0x357   : > { %13552 = vmatmul.mubr.msk.bf16.gmra.mrb[72].mxu0 %vm1269_vm3, %v7740_v35  ;;  %v7758_v61 = vrot.slane %v19491_v8, 3  ;;  %v7765_v8 = vrot.slane %v19494_v40, 2 }
 0x358   : > { %13555 = vmatprep.mubr.msk.bf16.mxu0 %vm1269_vm3, %v7744_v28  ;;  %v7755_v11 = vor.u32 %v7754_v12, %v7753_v17 }
 0x359   : > { %v7759_v48 = vor.u32 %v7758_v61, %v7757_v63 }
 0x35a   : > { %v7756_v35 = vsel %vm7585_vm7, %v7751_v9, %v7755_v11 }
 0x35b   : > { %v7760_v30 = vsel %vm7585_vm7, %v7755_v11, %v7759_v48  ;;  %v19498_v11 = vld [vmem:[#allocation114_spill] sm:$0xff] }
 0x35d   : > { %12936 = vmatmul.mubr.msk.bf16.gmra.mrb[8].mxu1 %vm1269_vm3, %v16958_v15  ;;  %v19493_v15 = vld [vmem:[#allocation101_spill] sm:$0xff] }
 0x35e   : > { %12939 = vmatprep.mubr.msk.bf16.mxu1 %vm1269_vm3, %v16961_v19  ;;  %v7762_v28 = vrot.slane %v19493_v15, 3  ;;  %v19495_v19 = vld [vmem:[#allocation104_spill] sm:$0xff] }
 0x35f   : > { %13556 = vmatmul.mubr.msk.bf16.gmra.mrb[76].mxu0 %vm1269_vm3, %v7748_v38  ;;  %v7766_v13 = vrot.slane %v19495_v19, 3  ;;  %v19496_v38 = vld [vmem:[#allocation109_spill] sm:$0xff]  ;;  %v7773_v19 = vrot.slane %v19498_v11, 2 }
 0x360   : > { %13559 = vmatprep.mubr.msk.bf16.mxu0 %vm1269_vm3, %v7752_v54  ;;  %v7763_v61 = vor.u32 %v7762_v28, %v7761_v60  ;;  %v7769_v17 = vrot.slane %v19496_v38, 2 }
 0x361   : > { %v7767_v63 = vor.u32 %v7766_v13, %v7765_v8 }
 0x362   : > { %v7764_v9 = vsel %vm7585_vm7, %v7759_v48, %v7763_v61 }
 0x363   : > { %v7768_v54 = vsel %vm7585_vm7, %v7763_v61, %v7767_v63  ;;  %v19502_v61 = vld [vmem:[#allocation120_spill] sm:$0xff] }
 0x365   : > { %12940 = vmatmul.mubr.msk.bf16.gmra.mrb[12].mxu1 %vm1269_vm3, %v16974_v23  ;;  %v19497_v23 = vld [vmem:[#allocation107_spill] sm:$0xff] }
 0x366   : > { %12943 = vmatprep.mubr.msk.bf16.mxu1 %vm1269_vm3, %v16977_v53  ;;  %v7770_v12 = vrot.slane %v19497_v23, 3  ;;  %v19499_v53 = vld [vmem:[#allocation110_spill] sm:$0xff] }
 0x367   : > { %13560 = vmatmul.mubr.msk.bf16.gmra.mrb[80].mxu0 %vm1269_vm3, %v7756_v35  ;;  %v7774_v40 = vrot.slane %v19499_v53, 3  ;;  %v19500_v35 = vld [vmem:[#allocation115_spill] sm:$0xff]  ;;  %v7781_v53 = vrot.slane %v19502_v61, 2 }
 0x368   : > { %13563 = vmatprep.mubr.msk.bf16.mxu0 %vm1269_vm3, %v7760_v30  ;;  %v7771_v13 = vor.u32 %v7770_v12, %v7769_v17  ;;  %v7777_v60 = vrot.slane %v19500_v35, 2 }
 0x369   : > { %v7775_v8 = vor.u32 %v7774_v40, %v7773_v19 }
 0x36a   : > { %v7772_v48 = vsel %vm7585_vm7, %v7767_v63, %v7771_v13 }
 0x36b   : > { %v7776_v30 = vsel %vm7585_vm7, %v7771_v13, %v7775_v8  ;;  %v19506_v13 = vld [vmem:[#allocation126_spill] sm:$0xff] }
 0x36d   : > { %12944 = vmatmul.mubr.msk.bf16.gmra.mrb[16].mxu1 %vm1269_vm3, %v16990_v59  ;;  %v19501_v59 = vld [vmem:[#allocation113_spill] sm:$0xff] }
 0x36e   : > { %12947 = vmatprep.mubr.msk.bf16.mxu1 %vm1269_vm3, %v16993_v0  ;;  %v7778_v28 = vrot.slane %v19501_v59, 3  ;;  %v19503_v0 = vld [vmem:[#allocation116_spill] sm:$0xff] }
 0x36f   : > { %13564 = vmatmul.mubr.msk.bf16.gmra.mrb[84].mxu0 %vm1269_vm3, %v7764_v9  ;;  %v7782_v11 = vrot.slane %v19503_v0, 3  ;;  %v19504_v9 = vld [vmem:[#allocation121_spill] sm:$0xff]  ;;  %v7789_v0 = vrot.slane %v19506_v13, 2 }
 0x370   : > { %13567 = vmatprep.mubr.msk.bf16.mxu0 %vm1269_vm3, %v7768_v54  ;;  %v7779_v40 = vor.u32 %v7778_v28, %v7777_v60  ;;  %v7785_v17 = vrot.slane %v19504_v9, 2 }
 0x371   : > { %v7783_v19 = vor.u32 %v7782_v11, %v7781_v53 }
 0x372   : > { %v7780_v63 = vsel %vm7585_vm7, %v7775_v8, %v7779_v40 }
 0x373   : > { %v7784_v54 = vsel %vm7585_vm7, %v7779_v40, %v7783_v19  ;;  %v19510_v40 = vld [vmem:[#allocation132_spill] sm:$0xff] }
 0x375   : > { %12948 = vmatmul.mubr.msk.bf16.gmra.mrb[20].mxu1 %vm1269_vm3, %v17006_v3  ;;  %v19505_v3 = vld [vmem:[#allocation119_spill] sm:$0xff] }
 0x376   : > { %12951 = vmatprep.mubr.msk.bf16.mxu1 %vm1269_vm3, %v17009_v57  ;;  %v7786_v12 = vrot.slane %v19505_v3, 3  ;;  %v19507_v57 = vld [vmem:[#allocation122_spill] sm:$0xff] }
 0x377   : > { %13568 = vmatmul.mubr.msk.bf16.gmra.mrb[88].mxu0 %vm1269_vm3, %v7772_v48  ;;  %v7790_v61 = vrot.slane %v19507_v57, 3  ;;  %v19508_v48 = vld [vmem:[#allocation127_spill] sm:$0xff]  ;;  %v7797_v57 = vrot.slane %v19510_v40, 2 }
 0x378   : > { %13571 = vmatprep.mubr.msk.bf16.mxu0 %vm1269_vm3, %v7776_v30  ;;  %v7787_v11 = vor.u32 %v7786_v12, %v7785_v17  ;;  %v7793_v60 = vrot.slane %v19508_v48, 2 }
 0x379   : > { %v7791_v53 = vor.u32 %v7790_v61, %v7789_v0 }
 0x37a   : > { %v7788_v8 = vsel %vm7585_vm7, %v7783_v19, %v7787_v11 }
 0x37b   : > { %v7792_v30 = vsel %vm7585_vm7, %v7787_v11, %v7791_v53  ;;  %v19514_v11 = vld [vmem:[#allocation138_spill] sm:$0xff] }
 0x37d   : > { %12952 = vmatmul.mubr.msk.bf16.gmra.mrb[24].mxu1 %vm1269_vm3, %v17022_v33  ;;  %v19509_v33 = vld [vmem:[#allocation125_spill] sm:$0xff] }
 0x37e   : > { %12955 = vmatprep.mubr.msk.bf16.mxu1 %vm1269_vm3, %v17025_v21  ;;  %v7794_v28 = vrot.slane %v19509_v33, 3  ;;  %v19511_v21 = vld [vmem:[#allocation128_spill] sm:$0xff] }
 0x37f   : > { %13572 = vmatmul.mubr.msk.bf16.gmra.mrb[92].mxu0 %vm1269_vm3, %v7780_v63  ;;  %v7798_v13 = vrot.slane %v19511_v21, 3  ;;  %v19512_v63 = vld [vmem:[#allocation133_spill] sm:$0xff]  ;;  %v7805_v21 = vrot.slane %v19514_v11, 2 }
 0x380   : > { %13575 = vmatprep.mubr.msk.bf16.mxu0 %vm1269_vm3, %v7784_v54  ;;  %v7795_v61 = vor.u32 %v7794_v28, %v7793_v60  ;;  %v7801_v17 = vrot.slane %v19512_v63, 2 }
 0x381   : > { %v7799_v0 = vor.u32 %v7798_v13, %v7797_v57 }
 0x382   : > { %v7796_v19 = vsel %vm7585_vm7, %v7791_v53, %v7795_v61 }
 0x383   : > { %v7800_v54 = vsel %vm7585_vm7, %v7795_v61, %v7799_v0  ;;  %v19518_v61 = vld [vmem:[#allocation144_spill] sm:$0xff] }
 0x385   : > { %12956 = vmatmul.mubr.msk.bf16.gmra.mrb[28].mxu1 %vm1269_vm3, %v17038_v52  ;;  %v19513_v52 = vld [vmem:[#allocation131_spill] sm:$0xff] }
 0x386   : > { %12959 = vmatprep.mubr.msk.bf16.mxu1 %vm1269_vm3, %v17041_v10  ;;  %v7802_v12 = vrot.slane %v19513_v52, 3  ;;  %v19515_v10 = vld [vmem:[#allocation134_spill] sm:$0xff] }
 0x387   : > { %13576 = vmatmul.mubr.msk.bf16.gmra.mrb[96].mxu0 %vm1269_vm3, %v7788_v8  ;;  %v7806_v40 = vrot.slane %v19515_v10, 3  ;;  %v19516_v8 = vld [vmem:[#allocation139_spill] sm:$0xff]  ;;  %v7813_v10 = vrot.slane %v19518_v61, 2 }
 0x388   : > { %13579 = vmatprep.mubr.msk.bf16.mxu0 %vm1269_vm3, %v7792_v30  ;;  %v7803_v13 = vor.u32 %v7802_v12, %v7801_v17  ;;  %v7809_v60 = vrot.slane %v19516_v8, 2 }
 0x389   : > { %v7807_v57 = vor.u32 %v7806_v40, %v7805_v21 }
 0x38a   : > { %v7804_v53 = vsel %vm7585_vm7, %v7799_v0, %v7803_v13 }
 0x38b   : > { %v7808_v30 = vsel %vm7585_vm7, %v7803_v13, %v7807_v57  ;;  %v19522_v13 = vld [vmem:[#allocation150_spill] sm:$0xff] }
 0x38d   : > { %12960 = vmatmul.mubr.msk.bf16.gmra.mrb[32].mxu1 %vm1269_vm3, %v17054_v42  ;;  %v19517_v42 = vld [vmem:[#allocation137_spill] sm:$0xff] }
 0x38e   : > { %12963 = vmatprep.mubr.msk.bf16.mxu1 %vm1269_vm3, %v17057_v25  ;;  %v7810_v28 = vrot.slane %v19517_v42, 3  ;;  %v19519_v25 = vld [vmem:[#allocation140_spill] sm:$0xff] }
 0x38f   : > { %13580 = vmatmul.mubr.msk.bf16.gmra.mrb[100].mxu0 %vm1269_vm3, %v7796_v19  ;;  %v7814_v11 = vrot.slane %v19519_v25, 3  ;;  %v19520_v19 = vld [vmem:[#allocation145_spill] sm:$0xff]  ;;  %v7821_v25 = vrot.slane %v19522_v13, 2 }
 0x390   : > { %13583 = vmatprep.mubr.msk.bf16.mxu0 %vm1269_vm3, %v7800_v54  ;;  %v7811_v40 = vor.u32 %v7810_v28, %v7809_v60  ;;  %v7817_v17 = vrot.slane %v19520_v19, 2 }
 0x391   : > { %v7815_v21 = vor.u32 %v7814_v11, %v7813_v10 }
 0x392   : > { %v7812_v0 = vsel %vm7585_vm7, %v7807_v57, %v7811_v40 }
 0x393   : > { %v7816_v54 = vsel %vm7585_vm7, %v7811_v40, %v7815_v21  ;;  %v19526_v40 = vld [vmem:[#allocation156_spill] sm:$0xff] }
 0x395   : > { %12964 = vmatmul.mubr.msk.bf16.gmra.mrb[36].mxu1 %vm1269_vm3, %v17070_v47  ;;  %v19521_v47 = vld [vmem:[#allocation143_spill] sm:$0xff] }
 0x396   : > { %12967 = vmatprep.mubr.msk.bf16.mxu1 %vm1269_vm3, %v17073_v16  ;;  %v7818_v12 = vrot.slane %v19521_v47, 3  ;;  %v19523_v16 = vld [vmem:[#allocation146_spill] sm:$0xff] }
 0x397   : > { %13584 = vmatmul.mubr.msk.bf16.gmra.mrb[104].mxu0 %vm1269_vm3, %v7804_v53  ;;  %v7822_v61 = vrot.slane %v19523_v16, 3  ;;  %v19524_v53 = vld [vmem:[#allocation151_spill] sm:$0xff]  ;;  %v7829_v16 = vrot.slane %v19526_v40, 2 }
 0x398   : > { %13587 = vmatprep.mubr.msk.bf16.mxu0 %vm1269_vm3, %v7808_v30  ;;  %v7819_v11 = vor.u32 %v7818_v12, %v7817_v17  ;;  %v7825_v60 = vrot.slane %v19524_v53, 2  ;;  %v19529_v17 = vld [vmem:[#allocation155_spill] sm:$0xff] }
 0x399   : > { %v7823_v10 = vor.u32 %v7822_v61, %v7821_v25  ;;  %v7834_v12 = vrot.slane %v19529_v17, 3 }
 0x39a   : > { %v7820_v57 = vsel %vm7585_vm7, %v7815_v21, %v7819_v11 }
 0x39b   : > { %v7824_v30 = vsel %vm7585_vm7, %v7819_v11, %v7823_v10  ;;  %v19530_v11 = vld [vmem:[#allocation161_spill] sm:$0xff] }
 0x39d   : > { %12968 = vmatmul.mubr.msk.bf16.gmra.mrb[40].mxu1 %vm1269_vm3, %v17086_v20  ;;  %v19525_v20 = vld [vmem:[#allocation149_spill] sm:$0xff] }
 0x39e   : > { %12971 = vmatprep.mubr.msk.bf16.mxu1 %vm1269_vm3, %v17089_v36  ;;  %v7826_v28 = vrot.slane %v19525_v20, 3  ;;  %v19527_v36 = vld [vmem:[#allocation152_spill] sm:$0xff] }
 0x39f   : > { %13588 = vmatmul.mubr.msk.bf16.gmra.mrb[108].mxu0 %vm1269_vm3, %v7812_v0  ;;  %v7830_v13 = vrot.slane %v19527_v36, 3  ;;  %v19528_v0 = vld [vmem:[#allocation157_spill] sm:$0xff]  ;;  %v19531_v36 = vld [vmem:[#allocation158_spill] sm:$0xff] }
 0x3a0   : > { %13591 = vmatprep.mubr.msk.bf16.mxu0 %vm1269_vm3, %v7816_v54  ;;  %v7827_v61 = vor.u32 %v7826_v28, %v7825_v60 }
 0x3a1   : > { %v7831_v25 = vor.u32 %v7830_v13, %v7829_v16  ;;  %v19532_v16 = vld [vmem:[#allocation193_spill] sm:$0xff] }
 0x3a2   : > { %v7828_v21 = vsel %vm7585_vm7, %v7823_v10, %v7827_v61  ;;  %v19100_v10 = vshrl.u32 %v19532_v16, 16  ;;  %v19098_v60 = vshll.u32 %v19532_v16, 16 }
 0x3a3   : > { %v7832_v54 = vsel %vm7585_vm7, %v7827_v61, %v7831_v25 }
 0x3a5   : > { %12972 = vmatmul.mubr.msk.bf16.gmra.mrb[44].mxu1 %vm1269_vm3, %v17102_v31  ;;  %v7833_v31 = vrot.slane %v19528_v0, 2 }
 0x3a6   : > { %12975 = vmatprep.mubr.msk.bf16.mxu1 %vm1269_vm3, %v17105_v56  ;;  %v7837_v56 = vrot.slane %v19530_v11, 2 }
 0x3a7   : > { %13592 = vmatmul.mubr.msk.bf16.gmra.mrb[112].mxu0 %vm1269_vm3, %v7820_v57  ;;  %v7838_v57 = vrot.slane %v19531_v36, 3  ;;  %v7835_v13 = vor.u32 %v7834_v12, %v7833_v31 }
 0x3a8   : > { %13595 = vmatprep.mubr.msk.bf16.mxu0 %vm1269_vm3, %v7824_v30 }
 0x3a9   : > { %v7839_v28 = vor.u32 %v7838_v57, %v7837_v56  ;;  %v7836_v36 = vsel %vm7585_vm7, %v7831_v25, %v7835_v13  ;;  %v7850_v56 = vshrl.u32 %v17141_v62, 16 }
 0x3ab   : > { %v7840_v31 = vsel %vm7585_vm7, %v7835_v13, %v7839_v28  ;;  %v7859_v13 = vshrl.u32 %v17144_v55, 16 }
 0x3ad   : > { %12976 = vmatmul.mubr.msk.bf16.gmra.mrb[48].mxu1 %vm1269_vm3, %v17118_v43  ;;  %v17699_v43 = vld [vmem:[%s15185_s27 + $0x228] sm:$0xff]  }
 0x3ae   : > { %12979 = vmatprep.mubr.msk.bf16.mxu1 %vm1269_vm3, %v17121_v37  ;;  %19533 = vst [vmem:[#allocation2_spill] sm:$0xff] %v17699_v43  ;;  %v19097_v30 = vshrl.u32 %v17699_v43, 16  ;;  %v19099_v61 = vshll.u32 %v17699_v43, 16  ;;  %v7841_v37 = vrot.slane %v19100_v10, 2 }
 0x3af   : > { %13596 = vmatmul.mubr.msk.bf16.gmra.mrb[116].mxu0 %vm1269_vm3, %v7828_v21  ;;  %v7842_v21 = vrot.slane %v19098_v60, 3 }
 0x3b0   : > { %13599 = vmatprep.mubr.msk.bf16.mxu0 %vm1269_vm3, %v7832_v54  ;;  %v7845_v12 = vrot.slane %v19097_v30, 2  ;;  %v7846_v54 = vrot.slane %v19099_v61, 3  ;;  %v7862_v30 = vshll.u32 %v17144_v55, 16  ;;  %v7852_v61 = vrot.slane %v7850_v56, 2 }
 0x3b1   : > { %v7843_v25 = vor.u32 %v7842_v21, %v7841_v37  ;;  %v7871_v21 = vshll.u32 %v17168_v24, 16 }
 0x3b2   : > { %v7847_v57 = vor.u32 %v7846_v54, %v7845_v12  ;;  %v7864_v37 = vrot.slane %v7862_v30, 3  ;;  %v15025_v30 = vld [vmem:[%s15185_s27 + $0x28] sm:$0xff]  }
 0x3b3   : > { %v7844_v60 = vsel %vm7585_vm7, %v7839_v28, %v7843_v25  ;;  %v7868_v28 = vshrl.u32 %v17168_v24, 16  ;;  %v7873_v54 = vrot.slane %v7871_v21, 3  ;;  %v15031_v21 = vld [vmem:[%s15185_s27 + $0x58] sm:$0xff]  }
 0x3b5   : > { %12980 = vmatmul.mubr.msk.bf16.gmra.mrb[52].mxu1 %vm1269_vm3, %v17135_v29  ;;  %v7853_v29 = vshll.u32 %v17141_v62, 16  ;;  %v7870_v12 = vrot.slane %v7868_v28, 2 }
 0x3b6   : > { %12983 = vmatprep.mubr.msk.bf16.mxu1 %vm1269_vm3, %v17138_v4  ;;  %v7848_v4 = vsel %vm7585_vm7, %v7843_v25, %v7847_v57 }
 0x3b7   : > { %13600 = vmatmul.mubr.msk.bf16.gmra.mrb[120].mxu0 %vm1269_vm3, %v7836_v36  ;;  %v7855_v10 = vrot.slane %v7853_v29, 3  ;;  %v7861_v36 = vrot.slane %v7859_v13, 2  ;;  %v7874_v24 = vor.u32 %v7873_v54, %v7870_v12  ;;  %v15027_v29 = vld [vmem:[%s15185_s27 + $0x38] sm:$0xff]   ;;  %v19535_v54 = vld [vmem:[#allocation86_spill] sm:$0xff] }
 0x3b8   : > { %13603 = vmatprep.mubr.msk.bf16.mxu0 %vm1269_vm3, %v7840_v31  ;;  %v19534_v12 = vld [vmem:[#allocation81_spill] sm:$0xff] }
 0x3b9   : > { %v7856_v55 = vor.u32 %v7855_v10, %v7852_v61  ;;  %v7865_v31 = vor.u32 %v7864_v37, %v7861_v36  ;;  %v15024_v10 = vld [vmem:[%s15185_s27 + $0x20] sm:$0xff]   ;;  %v8798_v61 = vrot.slane %v15025_v30, 3  ;;  %v15029_v36 = vld [vmem:[%s15185_s27 + $0x48] sm:$0xff]  }
 0x3ba   : > { %v8806_v37 = vrot.slane %v15029_v36, 3  ;;  %v19536_v30 = vld [vmem:[#allocation87_spill] sm:$0xff] }
 0x3bb   : > { %v7875_v25 = vsel %vm7585_vm7, %v7865_v31, %v7874_v24  ;;  %v15033_v24 = vld [vmem:[%s15185_s27 + $0x68] sm:$0xff]  }
 0x3bd   : > { %12984 = vmatmul.mubr.msk.bf16.gmra.mrb[56].mxu1 %vm1269_vm3, %v17159_v44  ;;  %v7857_v44 = vsel %vm7585_vm7, %v7847_v57, %v7856_v55  ;;  %v8802_v57 = vrot.slane %v15027_v29, 3 }
 0x3be   : > { %12987 = vmatprep.mubr.msk.bf16.mxu1 %vm1269_vm3, %v17162_v50  ;;  %v7866_v50 = vsel %vm7585_vm7, %v7856_v55, %v7865_v31  ;;  %v8810_v31 = vrot.slane %v15031_v21, 3  ;;  %v19541_v21 = vld [vmem:[#allocation105_spill] sm:$0xff] }
 0x3bf   : > { %13604 = vmatmul.mubr.msk.bf16.gmra.mrb[124].mxu0 %vm1269_vm3, %v7844_v60  ;;  %v8797_v60 = vrot.slane %v15024_v10, 3  ;;  %v8814_v10 = vrot.slane %v15033_v24, 3  ;;  %v19543_v24 = vld [vmem:[#allocation111_spill] sm:$0xff] }
 0x3c0   : > { %13607 = vmatprep.mubr.msk.bf16.mxu0 %vm1269_vm3, %v7848_v4 }
 0x3c5   : > { %12988 = vmatmul.mubr.msk.bf16.gmra.mrb[60].mxu1 %vm1269_vm3, %v17184_v39  ;;  %v8799_v39 = vsel %vm8796_vm8, %v8797_v60, %v8798_v61 }
 0x3c6   : > { %12991 = vmatprep.mubr.msk.bf16.mxu1 %vm1269_vm3, %v17187_v18  ;;  %v15026_v18 = vld [vmem:[%s15185_s27 + $0x30] sm:$0xff]  }
 0x3c7   : > { %13608 = vmatmul.mubr.msk.bf16.gmra.mrb[128].mxu0 %vm1269_vm3, %v7857_v44  ;;  %v8800_v56 = vrot.slane %v15026_v18, 3 }
 0x3c8   : > { %13611 = vmatprep.mubr.msk.bf16.mxu0 %vm1269_vm3, %v7866_v50 }
 0x3c9   : > { %v8801_v13 = vsel %vm8796_vm8, %v8798_v61, %v8800_v56 }
 0x3cd   : > { %12992 = vmatmul.mubr.msk.bf16.gmra.mrb[64].mxu1 %vm1269_vm3, %v17204_v7  ;;  %v8803_v7 = vsel %vm8796_vm8, %v8800_v56, %v8802_v57  ;;  %v15035_v56 = vld [vmem:[%s15185_s27 + $0x78] sm:$0xff]  }
 0x3ce   : > { %12995 = vmatprep.mubr.msk.bf16.mxu1 %vm1269_vm3, %v17207_v45  ;;  %v15028_v45 = vld [vmem:[%s15185_s27 + $0x40] sm:$0xff]   ;;  %v8818_v29 = vrot.slane %v15035_v56, 3  ;;  %v19545_v56 = vld [vmem:[#allocation117_spill] sm:$0xff] }
 0x3cf   : > { %13612 = vmatmul.mubr.msk.bf16.gmra.mrb[132].mxu0 %vm1269_vm3, %v7875_v25  ;;  %v8804_v4 = vrot.slane %v15028_v45, 3  ;;  %v19537_v25 = vld [vmem:[#allocation92_spill] sm:$0xff]  ;;  %v19539_v45 = vld [vmem:[#allocation98_spill] sm:$0xff] }
 0x3d0   : > { %13617 = vmatprep.mubr.msk.bf16.mxu0 %vm1269_vm3, %v8799_v39  ;;  %v15034_v39 = vld [vmem:[%s15185_s27 + $0x70] sm:$0xff]  }
 0x3d1   : > { %v8805_v55 = vsel %vm8796_vm8, %v8802_v57, %v8804_v4  ;;  %v8816_v18 = vrot.slane %v15034_v39, 3  ;;  %v19544_v39 = vld [vmem:[#allocation112_spill] sm:$0xff] }
 0x3d3   : > { %v8817_v57 = vsel %vm8796_vm8, %v8814_v10, %v8816_v18 }
 0x3d5   : > { %12996 = vmatmul.mubr.msk.bf16.gmra.mrb[68].mxu1 %vm1269_vm3, %v17225_v27  ;;  %v8807_v27 = vsel %vm8796_vm8, %v8804_v4, %v8806_v37  ;;  %v15036_v4 = vld [vmem:[%s15185_s27 + $0x80] sm:$0xff]  }
 0x3d6   : > { %12999 = vmatprep.mubr.msk.bf16.mxu1 %vm1269_vm3, %v17228_v14  ;;  %v15030_v14 = vld [vmem:[%s15185_s27 + $0x50] sm:$0xff]   ;;  %v8820_v36 = vrot.slane %v15036_v4, 3  ;;  %v19546_v4 = vld [vmem:[#allocation118_spill] sm:$0xff] }
 0x3d7   : > { %13618 = vmatmul.mubr.msk.bf16.vlgmr.msra.gmra.mrb[0].mxu0 %vm1269_vm3, %v8801_v13  ;;  %v8808_v28 = vrot.slane %v15030_v14, 3  ;;  %v19538_v13 = vld [vmem:[#allocation93_spill] sm:$0xff]  ;;  %v19540_v14 = vld [vmem:[#allocation99_spill] sm:$0xff] }
 0x3d8   : > { %13621 = vmatprep.mubr.msk.bf16.mxu0 %vm1269_vm3, %v8803_v7  ;;  %v8819_v7 = vsel %vm8796_vm8, %v8816_v18, %v8818_v29 }
 0x3d9   : > { %v8809_v44 = vsel %vm8796_vm8, %v8806_v37, %v8808_v28  ;;  %v15037_v37 = vld [vmem:[%s15185_s27 + $0x88] sm:$0xff]  }
 0x3dd   : > { %13000 = vmatmul.mubr.msk.bf16.gmra.mrb[72].mxu1 %vm1269_vm3, %v17245_v41  ;;  %v8811_v41 = vsel %vm8796_vm8, %v8808_v28, %v8810_v31 }
 0x3de   : > { %13003 = vmatprep.mubr.msk.bf16.mxu1 %vm1269_vm3, %v17248_v49  ;;  %v15032_v49 = vld [vmem:[%s15185_s27 + $0x60] sm:$0xff]  }
 0x3df   : > { %13622 = vmatmul.mubr.msk.bf16.gmra.mrb[4].mxu0 %vm1269_vm3, %v8805_v55  ;;  %v8812_v50 = vrot.slane %v15032_v49, 3  ;;  %v8822_v55 = vrot.slane %v15037_v37, 3  ;;  %v19542_v49 = vld [vmem:[#allocation106_spill] sm:$0xff]  ;;  %v19547_v37 = vld [vmem:[#allocation123_spill] sm:$0xff] }
 0x3e0   : > { %13625 = vmatprep.mubr.msk.bf16.mxu0 %vm1269_vm3, %v8807_v27  ;;  %v8821_v27 = vsel %vm8796_vm8, %v8818_v29, %v8820_v36  ;;  %v15042_v29 = vld [vmem:[%s15185_s27 + $0xb0] sm:$0xff]  }
 0x3e1   : > { %v8813_v60 = vsel %vm8796_vm8, %v8810_v31, %v8812_v50  ;;  %v8815_v61 = vsel %vm8796_vm8, %v8812_v50, %v8814_v10  ;;  %v8823_v28 = vsel %vm8796_vm8, %v8820_v36, %v8822_v55  ;;  %v15038_v31 = vld [vmem:[%s15185_s27 + $0x90] sm:$0xff]   ;;  %v15040_v10 = vld [vmem:[%s15185_s27 + $0xa0] sm:$0xff]  }
 0x3e5   : > { %13004 = vmatmul.mubr.msk.bf16.gmra.mrb[76].mxu1 %vm1269_vm3, %v19534_v12  ;;  %v15039_v12 = vld [vmem:[%s15185_s27 + $0x98] sm:$0xff]  }
 0x3e6   : > { %13007 = vmatprep.mubr.msk.bf16.mxu1 %vm1269_vm3, %v19535_v54 }
 0x3e7   : > { %13626 = vmatmul.mubr.msk.bf16.gmra.mrb[8].mxu0 %vm1269_vm3, %v8809_v44  ;;  %v8824_v44 = vrot.slane %v15038_v31, 3  ;;  %v19548_v31 = vld [vmem:[#allocation124_spill] sm:$0xff] }
 0x3e8   : > { %13629 = vmatprep.mubr.msk.bf16.mxu0 %vm1269_vm3, %v8811_v41  ;;  %v8826_v41 = vrot.slane %v15039_v12, 3  ;;  %v19549_v12 = vld [vmem:[#allocation129_spill] sm:$0xff] }
 0x3e9   : > { %v8825_v54 = vsel %vm8796_vm8, %v8822_v55, %v8824_v44  ;;  %v15044_v55 = vld [vmem:[%s15185_s27 + $0xc0] sm:$0xff]  }
 0x3ea   : > { %v8827_v50 = vsel %vm8796_vm8, %v8824_v44, %v8826_v41 }
 0x3ed   : > { %13008 = vmatmul.mubr.msk.bf16.gmra.mrb[80].mxu1 %vm1269_vm3, %v19536_v30  ;;  %v15041_v30 = vld [vmem:[%s15185_s27 + $0xa8] sm:$0xff]  }
 0x3ee   : > { %13011 = vmatprep.mubr.msk.bf16.mxu1 %vm1269_vm3, %v19537_v25 }
 0x3ef   : > { %13630 = vmatmul.mubr.msk.bf16.gmra.mrb[12].mxu0 %vm1269_vm3, %v8813_v60  ;;  %v8828_v60 = vrot.slane %v15040_v10, 3 }
 0x3f0   : > { %13633 = vmatprep.mubr.msk.bf16.mxu0 %vm1269_vm3, %v8815_v61  ;;  %v8830_v61 = vrot.slane %v15041_v30, 3 }
 0x3f1   : > { %v8829_v25 = vsel %vm8796_vm8, %v8826_v41, %v8828_v60 }
 0x3f2   : > { %v8831_v18 = vsel %vm8796_vm8, %v8828_v60, %v8830_v61 }
 0x3f5   : > { %13012 = vmatmul.mubr.msk.bf16.gmra.mrb[84].mxu1 %vm1269_vm3, %v19538_v13  ;;  %v15043_v13 = vld [vmem:[%s15185_s27 + $0xb8] sm:$0xff]  }
 0x3f6   : > { %13015 = vmatprep.mubr.msk.bf16.mxu1 %vm1269_vm3, %v19539_v45 }
 0x3f7   : > { %13634 = vmatmul.mubr.msk.bf16.gmra.mrb[16].mxu0 %vm1269_vm3, %v8817_v57  ;;  %v8832_v57 = vrot.slane %v15042_v29, 3  ;;  %v15048_v29 = vld [vmem:[%s15185_s27 + $0xe0] sm:$0xff]  }
 0x3f8   : > { %13637 = vmatprep.mubr.msk.bf16.mxu0 %vm1269_vm3, %v8819_v7  ;;  %v8834_v7 = vrot.slane %v15043_v13, 3 }
 0x3f9   : > { %v8833_v45 = vsel %vm8796_vm8, %v8830_v61, %v8832_v57 }
 0x3fa   : > { %v8835_v36 = vsel %vm8796_vm8, %v8832_v57, %v8834_v7  ;;  %v8844_v57 = vrot.slane %v15048_v29, 3  ;;  %v15052_v29 = vld [vmem:[%s15185_s27 + $0x100] sm:$0xff]  }
 0x3fd   : > { %13016 = vmatmul.mubr.msk.bf16.gmra.mrb[88].mxu1 %vm1269_vm3, %v19540_v14  ;;  %v15045_v14 = vld [vmem:[%s15185_s27 + $0xc8] sm:$0xff]  }
 0x3fe   : > { %13019 = vmatprep.mubr.msk.bf16.mxu1 %vm1269_vm3, %v19541_v21 }
 0x3ff   : > { %13638 = vmatmul.mubr.msk.bf16.gmra.mrb[20].mxu0 %vm1269_vm3, %v8821_v27  ;;  %v8836_v27 = vrot.slane %v15044_v55, 3  ;;  %v19552_v55 = vld [vmem:[#allocation136_spill] sm:$0xff] }
 0x400   : > { %13641 = vmatprep.mubr.msk.bf16.mxu0 %vm1269_vm3, %v8823_v28  ;;  %v8838_v28 = vrot.slane %v15045_v14, 3  ;;  %v19553_v14 = vld [vmem:[#allocation141_spill] sm:$0xff] }
 0x401   : > { %v8837_v21 = vsel %vm8796_vm8, %v8834_v7, %v8836_v27  ;;  %v15049_v7 = vld [vmem:[%s15185_s27 + $0xe8] sm:$0xff]  }
 0x402   : > { %v8839_v44 = vsel %vm8796_vm8, %v8836_v27, %v8838_v28 }
 0x405   : > { %13020 = vmatmul.mubr.msk.bf16.gmra.mrb[92].mxu1 %vm1269_vm3, %v19542_v49 }
 0x406   : > { %13023 = vmatprep.mubr.msk.bf16.mxu1 %vm1269_vm3, %v19543_v24  ;;  %v15047_v24 = vld [vmem:[%s15185_s27 + $0xd8] sm:$0xff]  }
 0x407   : > { %13642 = vmatmul.mubr.msk.bf16.gmra.mrb[24].mxu0 %vm1269_vm3, %v8825_v54  ;;  %v15046_v54 = vld [vmem:[%s15185_s27 + $0xd0] sm:$0xff]   ;;  %v8842_v10 = vrot.slane %v15047_v24, 3 }
 0x408   : > { %13645 = vmatprep.mubr.msk.bf16.mxu0 %vm1269_vm3, %v8827_v50  ;;  %v8840_v49 = vrot.slane %v15046_v54, 3 }
 0x40a   : > { %v8841_v61 = vsel %vm8796_vm8, %v8838_v28, %v8840_v49 }
 0x40d   : > { %13024 = vmatmul.mubr.msk.bf16.gmra.mrb[96].mxu1 %vm1269_vm3, %v19544_v39  ;;  %v8843_v39 = vsel %vm8796_vm8, %v8840_v49, %v8842_v10 }
 0x40e   : > { %13027 = vmatprep.mubr.msk.bf16.mxu1 %vm1269_vm3, %v19545_v56 }
 0x40f   : > { %13646 = vmatmul.mubr.msk.bf16.gmra.mrb[28].mxu0 %vm1269_vm3, %v8829_v25  ;;  %v19550_v25 = vld [vmem:[#allocation130_spill] sm:$0xff] }
 0x410   : > { %13649 = vmatprep.mubr.msk.bf16.mxu0 %vm1269_vm3, %v8831_v18  ;;  %v19551_v18 = vld [vmem:[#allocation135_spill] sm:$0xff] }
 0x415   : > { %13028 = vmatmul.mubr.msk.bf16.gmra.mrb[100].mxu1 %vm1269_vm3, %v19546_v4 }
 0x416   : > { %13031 = vmatprep.mubr.msk.bf16.mxu1 %vm1269_vm3, %v19547_v37  ;;  %v8845_v37 = vsel %vm8796_vm8, %v8842_v10, %v8844_v57 }
 0x417   : > { %13650 = vmatmul.mubr.msk.bf16.gmra.mrb[32].mxu0 %vm1269_vm3, %v8833_v45  ;;  %v8846_v45 = vrot.slane %v15049_v7, 3 }
 0x418   : > { %13653 = vmatprep.mubr.msk.bf16.mxu0 %vm1269_vm3, %v8835_v36 }
 0x419   : > { %v8847_v27 = vsel %vm8796_vm8, %v8844_v57, %v8846_v45  ;;  %v8852_v57 = vrot.slane %v15052_v29, 3 }
 0x41d   : > { %13032 = vmatmul.mubr.msk.bf16.gmra.mrb[104].mxu1 %vm1269_vm3, %v19548_v31 }
 0x41e   : > { %13035 = vmatprep.mubr.msk.bf16.mxu1 %vm1269_vm3, %v19549_v12  ;;  %v15051_v12 = vld [vmem:[%s15185_s27 + $0xf8] sm:$0xff]  }
 0x41f   : > { %13654 = vmatmul.mubr.msk.bf16.gmra.mrb[36].mxu0 %vm1269_vm3, %v8837_v21  ;;  %v15050_v21 = vld [vmem:[%s15185_s27 + $0xf0] sm:$0xff]   ;;  %v8850_v54 = vrot.slane %v15051_v12, 3  ;;  %v19560_v12 = vld [vmem:[#allocation153_spill] sm:$0xff] }
 0x420   : > { %v17850_v41 = vpop.f32.mrb[0].mxu1  ;;  %13657 = vmatprep.mubr.msk.bf16.mxu0 %vm1269_vm3, %v8839_v44  ;;  %v8848_v31 = vrot.slane %v15050_v21, 3  ;;  %v19559_v21 = vld [vmem:[#allocation148_spill] sm:$0xff] }
 0x421   : > { %v17854_v50 = vpop.f32.mrb[1].mxu1 }
 0x422   : > { %v17857_v60 = vpop.f32.mrb[2].mxu1  ;;  %v8849_v10 = vsel %vm8796_vm8, %v8846_v45, %v8848_v31  ;;  %v15053_v45 = vld [vmem:[%s15185_s27 + $0x108] sm:$0xff]  }
 0x423   : > { %v17859_v30 = vpop.f32.mrb[3].mxu1 }
 0x425   : > { %13036 = vmatmul.mubr.msk.bf16.gmra.mrb[108].mxu1 %vm1269_vm3, %v19550_v25  ;;  %v8851_v25 = vsel %vm8796_vm8, %v8848_v31, %v8850_v54 }
 0x426   : > { %13039 = vmatprep.mubr.msk.bf16.mxu1 %vm1269_vm3, %v19551_v18 }
 0x427   : > { %13658 = vmatmul.mubr.msk.bf16.gmra.mrb[40].mxu0 %vm1269_vm3, %v8841_v61  ;;  %v19554_v61 = vld [vmem:[#allocation142_spill] sm:$0xff] }
 0x428   : > { %v17868_v56 = vpop.f32.mrb[4].mxu1  ;;  %13661 = vmatprep.mubr.msk.bf16.mxu0 %vm1269_vm3, %v8843_v39  ;;  %v19555_v39 = vld [vmem:[#allocation147_spill] sm:$0xff] }
 0x429   : > { %v17872_v13 = vpop.f32.mrb[5].mxu1 }
 0x42a   : > { %v17875_v4 = vpop.f32.mrb[6].mxu1 }
 0x42b   : > { %v17877_v36 = vpop.f32.mrb[7].mxu1 }
 0x42d   : > { %13040 = vmatmul.mubr.msk.bf16.gmra.mrb[112].mxu1 %vm1269_vm3, %v19552_v55 }
 0x42e   : > { %13043 = vmatprep.mubr.msk.bf16.mxu1 %vm1269_vm3, %v19553_v14  ;;  %v8853_v14 = vsel %vm8796_vm8, %v8850_v54, %v8852_v57  ;;  %v15055_v54 = vld [vmem:[%s15185_s27 + $0x118] sm:$0xff]  }
 0x42f   : > { %13662 = vmatmul.mubr.msk.bf16.gmra.mrb[44].mxu0 %vm1269_vm3, %v8845_v37  ;;  %v8854_v37 = vrot.slane %v15053_v45, 3  ;;  %v8858_v29 = vrot.slane %v15055_v54, 3  ;;  %v3845_v54 = vrot.slane %v17699_v43, 1 }
 0x430   : > { %v17886_v28 = vpop.f32.mrb[8].mxu1  ;;  %13665 = vmatprep.mubr.msk.bf16.mxu0 %vm1269_vm3, %v8847_v27 }
 0x431   : > { %v17890_v44 = vpop.f32.mrb[9].mxu1  ;;  %v8855_v31 = vsel %vm8796_vm8, %v8852_v57, %v8854_v37 }
 0x432   : > { %v17893_v49 = vpop.f32.mrb[10].mxu1 }
 0x433   : > { %v17895_v24 = vpop.f32.mrb[11].mxu1 }
 0x435   : > { %13044 = vmatmul.mubr.msk.bf16.gmra.mrb[116].mxu1 %vm1269_vm3, %v19554_v61  ;;  %v15054_v61 = vld [vmem:[%s15185_s27 + $0x110] sm:$0xff]  }
 0x436   : > { %13047 = vmatprep.mubr.msk.bf16.mxu1 %vm1269_vm3, %v19555_v39 }
 0x437   : > { %13666 = vmatmul.mubr.msk.bf16.gmra.mrb[48].mxu0 %vm1269_vm3, %v8849_v10 }
 0x438   : > { %v17904_v18 = vpop.f32.mrb[12].mxu1  ;;  %13669 = vmatprep.mubr.msk.bf16.mxu0 %vm1269_vm3, %v8851_v25  ;;  %v8856_v25 = vrot.slane %v15054_v61, 3  ;;  %v3843_v61 = vrot.slane %v19532_v16, 1 }
 0x439   : > { %v17908_v7 = vpop.f32.mrb[13].mxu1 }
 0x43a   : > { %19556 = vst [vmem:[#allocation162_spill] sm:$0xff] %v17908_v7  ;;  %v17911_v55 = vpop.f32.mrb[14].mxu1 }
 0x43b   : > { %19557 = vst [vmem:[#allocation100_spill] sm:$0xff] %v17911_v55  ;;  %v17913_v27 = vpop.f32.mrb[15].mxu1  ;;  %v19578_v55 = vld [vmem:[#allocation71_spill] sm:$0xff] }
 0x43c   : > { %19558 = vst [vmem:[#allocation163_spill] sm:$0xff] %v17913_v27 }
 0x43d   : > { %13048 = vmatmul.mubr.msk.bf16.gmra.mrb[120].mxu1 %vm1269_vm3, %v19559_v21  ;;  %v8857_v21 = vsel %vm8796_vm8, %v8854_v37, %v8856_v25 }
 0x43e   : > { %13051 = vmatprep.mubr.msk.bf16.mxu1 %vm1269_vm3, %v19560_v12  ;;  %v19565_v12 = vld [vmem:[#allocation154_spill] sm:$0xff] }
 0x43f   : > { %13670 = vmatmul.mubr.msk.bf16.gmra.mrb[52].mxu0 %vm1269_vm3, %v8853_v14  ;;  %v8859_v14 = vsel %vm8796_vm8, %v8856_v25, %v8858_v29 }
 0x440   : > { %v17922_v10 = vpop.f32.mrb[16].mxu1  ;;  %13673 = vmatprep.mubr.msk.bf16.mxu0 %vm1269_vm3, %v8855_v31  ;;  %v19566_v31 = vld [vmem:[#allocation159_spill] sm:$0xff] }
 0x441   : > { %19561 = vst [vmem:[#allocation166_spill] sm:$0xff] %v17922_v10  ;;  %v17926_v39 = vpop.f32.mrb[17].mxu1 }
 0x442   : > { %19562 = vst [vmem:[#allocation164_spill] sm:$0xff] %v17926_v39  ;;  %v17929_v45 = vpop.f32.mrb[18].mxu1 }
 0x443   : > { %19563 = vst [vmem:[#allocation168_spill] sm:$0xff] %v17929_v45  ;;  %v17931_v57 = vpop.f32.mrb[19].mxu1 }
 0x444   : > { %19564 = vst [vmem:[#allocation165_spill] sm:$0xff] %v17931_v57  ;;  %v15056_v57 = vld [vmem:[%s15185_s27 + $0x120] sm:$0xff]  }
 0x445   : > { %13052 = vmatmul.mubr.msk.bf16.gmra.mrb[124].mxu1 %vm1269_vm3, %v19565_v12  ;;  %v8860_v37 = vrot.slane %v15056_v57, 3  ;;  %v15057_v12 = vld [vmem:[%s15185_s27 + $0x128] sm:$0xff]  }
 0x446   : > { %13055 = vmatprep.mubr.msk.bf16.mxu1 %vm1269_vm3, %v19566_v31  ;;  %v8862_v39 = vrot.slane %v15057_v12, 3  ;;  %v3844_v31 = vsel %vm2774_vm6, %v17503_v6, %v3843_v61 }
 0x447   : > { %13674 = vmatmul.mubr.msk.bf16.gmra.mrb[56].mxu0 %vm1269_vm3, %v8857_v21  ;;  %v3846_v21 = vsel %vm2774_vm6, %v3843_v61, %v3845_v54  ;;  %v8861_v57 = vsel %vm8796_vm8, %v8858_v29, %v8860_v37  ;;  %v15059_v29 = vld [vmem:[%s15185_s27 + $0x138] sm:$0xff]  }
 0x448   : > { %v17942_v62 = vpop.f32.mrb[20].mxu1  ;;  %13677 = vmatprep.mubr.msk.bf16.mxu0 %vm1269_vm3, %v8859_v14  ;;  %v19572_v14 = vld [vmem:[#allocation70_spill] sm:$0xff]  ;;  %v8863_v12 = vsel %vm8796_vm8, %v8860_v37, %v8862_v39  ;;  %v8866_v27 = vrot.slane %v15059_v29, 3 }
 0x449   : > { %19567 = vst [vmem:[#allocation170_spill] sm:$0xff] %v17942_v62  ;;  %v17946_v45 = vpop.f32.mrb[21].mxu1  ;;  %v19571_v62 = vld [vmem:[#allocation72_spill] sm:$0xff]  ;;  %v4715_v16 = vrot.slane %v19572_v14, 2 }
 0x44a   : > { %19568 = vst [vmem:[#allocation167_spill] sm:$0xff] %v17946_v45  ;;  %v17949_v25 = vpop.f32.mrb[22].mxu1  ;;  %v4714_v43 = vrot.slane %v19571_v62, 1  ;;  %v15058_v62 = vld [vmem:[%s15185_s27 + $0x130] sm:$0xff]  }
 0x44b   : > { %19569 = vst [vmem:[#allocation172_spill] sm:$0xff] %v17949_v25  ;;  %v17953_v10 = vpop.f32.mrb[23].mxu1  ;;  %v19573_v25 = vld [vmem:[#allocation199_spill] sm:$0xff]  ;;  %v8864_v61 = vrot.slane %v15058_v62, 3  ;;  %v19581_v62 = vld [vmem:[#allocation77_spill] sm:$0xff] }
 0x44c   : > { %19570 = vst [vmem:[#allocation169_spill] sm:$0xff] %v17953_v10  ;;  %v3847_v45 = vrot.slane %v19573_v25, 1  ;;  %v4716_v6 = vor.u32 %v4715_v16, %v4714_v43  ;;  %v19580_v43 = vld [vmem:[#allocation69_spill] sm:$0xff] }
 0x44d   : > { %13056 = vmatmul.mubr.msk.bf16.gmra.mrb[128].mxu1 %vm1269_vm3, %v3844_v31  ;;  %v8865_v29 = vsel %vm8796_vm8, %v8862_v39, %v8864_v61 }
 0x44e   : > { %13059 = vmatprep.mubr.msk.bf16.mxu1 %vm1269_vm3, %v3846_v21  ;;  %v3848_v37 = vsel %vm2774_vm6, %v3845_v54, %v3847_v45  ;;  %v19577_v21 = vld [vmem:[#allocation73_spill] sm:$0xff]  ;;  %v8867_v45 = vsel %vm8796_vm8, %v8864_v61, %v8866_v27 }
 0x44f   : > { %13678 = vmatmul.mubr.msk.bf16.gmra.mrb[60].mxu0 %vm1269_vm3, %v8861_v57  ;;  %v4718_v25 = vrot.slane %v19577_v21, 1  ;;  %v4719_v57 = vrot.slane %v19578_v55, 2 }
 0x450   : > { %v17964_v10 = vpop.f32.mrb[24].mxu1  ;;  %13681 = vmatprep.mubr.msk.bf16.mxu0 %vm1269_vm3, %v8863_v12  ;;  %v4717_v12 = vsel %vm4574_vm4, %v19580_v43, %v4716_v6  ;;  %v15060_v43 = vld [vmem:[%s15185_s27 + $0x140] sm:$0xff]  }
 0x451   : > { %19574 = vst [vmem:[#allocation174_spill] sm:$0xff] %v17964_v10  ;;  %v17968_v14 = vpop.f32.mrb[25].mxu1  ;;  %v4722_v10 = vrot.slane %v19581_v62, 1  ;;  %v4720_v54 = vor.u32 %v4719_v57, %v4718_v25  ;;  %v8868_v62 = vrot.slane %v15060_v43, 3  ;;  %v4726_v25 = vrot.slane %v19476_v2, 1  ;;  %v19585_v57 = vld [vmem:[#allocation83_spill] sm:$0xff] }
 0x452   : > { %19575 = vst [vmem:[#allocation171_spill] sm:$0xff] %v17968_v14  ;;  %v17971_v31 = vpop.f32.mrb[26].mxu1  ;;  %v19582_v14 = vld [vmem:[#allocation74_spill] sm:$0xff] }
 0x453   : > { %19576 = vst [vmem:[#allocation176_spill] sm:$0xff] %v17971_v31  ;;  %v17976_v16 = vpop.f32.mrb[27].mxu1  ;;  %v4723_v7 = vrot.slane %v19582_v14, 2  ;;  %v15061_v14 = vld [vmem:[%s15185_s27 + $0x148] sm:$0xff]   ;;  %v4721_v61 = vsel %vm4574_vm4, %v4716_v6, %v4720_v54  ;;  %v8869_v43 = vsel %vm8796_vm8, %v8866_v27, %v8868_v62 }
 0x454   : > { %19579 = vst [vmem:[#allocation173_spill] sm:$0xff] %v17976_v16  ;;  %v8870_v39 = vrot.slane %v15061_v14, 3 }
 0x455   : > { %13060 = vmatmul.mubr.msk.bf16.gmra.mrb[132].mxu1 %vm1269_vm3, %v3848_v37  ;;  %v4724_v55 = vor.u32 %v4723_v7, %v4722_v10  ;;  %v4727_v37 = vrot.slane %v19477_v46, 2 }
 0x456   : > { %13133 = vmatprep.mubr.msk.bf16.mxu1 %vm1269_vm3, %v4717_v12  ;;  %v4730_v12 = vrot.slane %v19585_v57, 1  ;;  %v8871_v6 = vsel %vm8796_vm8, %v8868_v62, %v8870_v39 }
 0x457   : > { %13682 = vmatmul.mubr.msk.bf16.gmra.mrb[64].mxu0 %vm1269_vm3, %v8865_v29  ;;  %v4725_v10 = vsel %vm4574_vm4, %v4720_v54, %v4724_v55  ;;  %v19586_v29 = vld [vmem:[#allocation79_spill] sm:$0xff]  ;;  %v4728_v2 = vor.u32 %v4727_v37, %v4726_v25  ;;  %v15062_v54 = vld [vmem:[%s15185_s27 + $0x150] sm:$0xff]   ;;  %v4735_v25 = vrot.slane %v19481_v26, 2 }
 0x458   : > { %v17987_v21 = vpop.f32.mrb[28].mxu1  ;;  %13685 = vmatprep.mubr.msk.bf16.mxu0 %vm1269_vm3, %v8867_v45  ;;  %v4731_v45 = vrot.slane %v19586_v29, 2  ;;  %v8872_v57 = vrot.slane %v15062_v54, 3  ;;  %v15063_v29 = vld [vmem:[%s15185_s27 + $0x158] sm:$0xff]  }
 0x459   : > { %v17991_v16 = vpop.f32.mrb[29].mxu1  ;;  %v8874_v27 = vrot.slane %v15063_v29, 3  ;;  %v4729_v62 = vsel %vm4574_vm4, %v4724_v55, %v4728_v2 }
 0x45a   : > { %v17994_v31 = vpop.f32.mrb[30].mxu1  ;;  %v4732_v46 = vor.u32 %v4731_v45, %v4730_v12  ;;  %v4738_v12 = vrot.slane %v19482_v5, 1  ;;  %v19588_v45 = vld [vmem:[#allocation85_spill] sm:$0xff] }
 0x45b   : > { %19583 = vst [vmem:[#allocation178_spill] sm:$0xff] %v17994_v31  ;;  %v17999_v7 = vpop.f32.mrb[31].mxu1  ;;  %v8875_v55 = vsel %vm8796_vm8, %v8872_v57, %v8874_v27 }
 0x45c   : > { %19584 = vst [vmem:[#allocation175_spill] sm:$0xff] %v17999_v7 }
 0x45d   : > { %13134 = vmatmul.mubr.msk.bf16.vlgmr.msra.gmra.mrb[68].mxu1 %vm1269_vm3, %v4721_v61  ;;  %v4734_v61 = vrot.slane %v19480_v58, 1 }
 0x45e   : > { %13137 = vmatprep.mubr.msk.bf16.mxu1 %vm1269_vm3, %v4725_v10  ;;  %v4733_v10 = vsel %vm4574_vm4, %v4728_v2, %v4732_v46  ;;  %v15064_v2 = vld [vmem:[%s15185_s27 + $0x160] sm:$0xff]  }
 0x45f   : > { %13686 = vmatmul.mubr.msk.bf16.gmra.mrb[68].mxu0 %vm1269_vm3, %v8869_v43  ;;  %v4739_v43 = vrot.slane %v19588_v45, 2  ;;  %v4736_v58 = vor.u32 %v4735_v25, %v4734_v61  ;;  %v8876_v5 = vrot.slane %v15064_v2, 3  ;;  %v15065_v45 = vld [vmem:[%s15185_s27 + $0x168] sm:$0xff]   ;;  %v4743_v61 = vrot.slane %v19485_v32, 2 }
 0x460   : > { %v18009_v14 = vpop.f32.mrb[32].mxu1  ;;  %13689 = vmatprep.mubr.msk.bf16.mxu0 %vm1269_vm3, %v8871_v6  ;;  %v8873_v6 = vsel %vm8796_vm8, %v8870_v39, %v8872_v57  ;;  %v8878_v39 = vrot.slane %v15065_v45, 3 }
 0x461   : > { %v18013_v7 = vpop.f32.mrb[33].mxu1  ;;  %v4740_v26 = vor.u32 %v4739_v43, %v4738_v12  ;;  %v4737_v57 = vsel %vm4574_vm4, %v4732_v46, %v4736_v58  ;;  %v19591_v12 = vld [vmem:[#allocation95_spill] sm:$0xff]  ;;  %v8877_v2 = vsel %vm8796_vm8, %v8874_v27, %v8876_v5 }
 0x462   : > { %v18016_v31 = vpop.f32.mrb[34].mxu1  ;;  %v4746_v43 = vrot.slane %v19591_v12, 1  ;;  %v8879_v46 = vsel %vm8796_vm8, %v8876_v5, %v8878_v39 }
 0x463   : > { %v18021_v37 = vpop.f32.mrb[35].mxu1 }
 0x464   : > { %19587 = vst [vmem:[#allocation180_spill] sm:$0xff] %v18021_v37 }
 0x465   : > { %13138 = vmatmul.mubr.msk.bf16.gmra.mrb[72].mxu1 %vm1269_vm3, %v4729_v62  ;;  %v4742_v62 = vrot.slane %v19484_v34, 1 }
 0x466   : > { %13141 = vmatprep.mubr.msk.bf16.mxu1 %vm1269_vm3, %v4733_v10  ;;  %v4741_v10 = vsel %vm4574_vm4, %v4736_v58, %v4740_v26  ;;  %v15066_v58 = vld [vmem:[%s15185_s27 + $0x170] sm:$0xff]  }
 0x467   : > { %13690 = vmatmul.mubr.msk.bf16.gmra.mrb[72].mxu0 %vm1269_vm3, %v8873_v6  ;;  %v19592_v6 = vld [vmem:[#allocation91_spill] sm:$0xff]  ;;  %v4744_v34 = vor.u32 %v4743_v61, %v4742_v62  ;;  %v8880_v12 = vrot.slane %v15066_v58, 3  ;;  %v4751_v62 = vrot.slane %v19489_v51, 2 }
 0x468   : > { %v18031_v54 = vpop.f32.mrb[36].mxu1  ;;  %13693 = vmatprep.mubr.msk.bf16.mxu0 %vm1269_vm3, %v8875_v55  ;;  %v4747_v55 = vrot.slane %v19592_v6, 2  ;;  %v15067_v6 = vld [vmem:[%s15185_s27 + $0x178] sm:$0xff]  }
 0x469   : > { %v18035_v29 = vpop.f32.mrb[37].mxu1  ;;  %v8882_v27 = vrot.slane %v15067_v6, 3  ;;  %v4745_v5 = vsel %vm4574_vm4, %v4740_v26, %v4744_v34  ;;  %v8881_v58 = vsel %vm8796_vm8, %v8878_v39, %v8880_v12 }
 0x46a   : > { %v18038_v37 = vpop.f32.mrb[38].mxu1  ;;  %v4748_v32 = vor.u32 %v4747_v55, %v4746_v43  ;;  %v19595_v43 = vld [vmem:[#allocation102_spill] sm:$0xff] }
 0x46b   : > { %19589 = vst [vmem:[#allocation177_spill] sm:$0xff] %v18038_v37  ;;  %v18043_v25 = vpop.f32.mrb[39].mxu1  ;;  %v4754_v55 = vrot.slane %v19595_v43, 1  ;;  %v8883_v26 = vsel %vm8796_vm8, %v8880_v12, %v8882_v27 }
 0x46c   : > { %19590 = vst [vmem:[#allocation182_spill] sm:$0xff] %v18043_v25 }
 0x46d   : > { %13142 = vmatmul.mubr.msk.bf16.gmra.mrb[76].mxu1 %vm1269_vm3, %v4737_v57  ;;  %v4750_v57 = vrot.slane %v19488_v22, 1 }
 0x46e   : > { %13145 = vmatprep.mubr.msk.bf16.mxu1 %vm1269_vm3, %v4741_v10  ;;  %v4749_v10 = vsel %vm4574_vm4, %v4744_v34, %v4748_v32  ;;  %v15068_v34 = vld [vmem:[%s15185_s27 + $0x180] sm:$0xff]  }
 0x46f   : > { %13694 = vmatmul.mubr.msk.bf16.gmra.mrb[76].mxu0 %vm1269_vm3, %v8877_v2  ;;  %v19596_v2 = vld [vmem:[#allocation97_spill] sm:$0xff]  ;;  %v4752_v22 = vor.u32 %v4751_v62, %v4750_v57  ;;  %v8884_v43 = vrot.slane %v15068_v34, 3  ;;  %v4759_v57 = vrot.slane %v19493_v15, 2 }
 0x470   : > { %v18053_v45 = vpop.f32.mrb[40].mxu1  ;;  %13697 = vmatprep.mubr.msk.bf16.mxu0 %vm1269_vm3, %v8879_v46  ;;  %v4755_v46 = vrot.slane %v19596_v2, 2  ;;  %v15069_v2 = vld [vmem:[%s15185_s27 + $0x188] sm:$0xff]  }
 0x471   : > { %v18057_v25 = vpop.f32.mrb[41].mxu1  ;;  %v8886_v39 = vrot.slane %v15069_v2, 3  ;;  %v4753_v12 = vsel %vm4574_vm4, %v4748_v32, %v4752_v22  ;;  %v8885_v34 = vsel %vm8796_vm8, %v8882_v27, %v8884_v43 }
 0x472   : > { %v18060_v37 = vpop.f32.mrb[42].mxu1  ;;  %v4756_v51 = vor.u32 %v4755_v46, %v4754_v55  ;;  %v19599_v55 = vld [vmem:[#allocation108_spill] sm:$0xff] }
 0x473   : > { %19593 = vst [vmem:[#allocation179_spill] sm:$0xff] %v18060_v37  ;;  %v18065_v61 = vpop.f32.mrb[43].mxu1  ;;  %v4762_v46 = vrot.slane %v19599_v55, 1  ;;  %v8887_v32 = vsel %vm8796_vm8, %v8884_v43, %v8886_v39 }
 0x474   : > { %19594 = vst [vmem:[#allocation184_spill] sm:$0xff] %v18065_v61 }
 0x475   : > { %13146 = vmatmul.mubr.msk.bf16.gmra.mrb[80].mxu1 %vm1269_vm3, %v4745_v5  ;;  %v4758_v5 = vrot.slane %v19492_v1, 1 }
 0x476   : > { %13149 = vmatprep.mubr.msk.bf16.mxu1 %vm1269_vm3, %v4749_v10  ;;  %v4757_v10 = vsel %vm4574_vm4, %v4752_v22, %v4756_v51  ;;  %v15070_v22 = vld [vmem:[%s15185_s27 + $0x190] sm:$0xff]  }
 0x477   : > { %13698 = vmatmul.mubr.msk.bf16.gmra.mrb[80].mxu0 %vm1269_vm3, %v8881_v58  ;;  %v19600_v58 = vld [vmem:[#allocation104_spill] sm:$0xff]  ;;  %v4760_v1 = vor.u32 %v4759_v57, %v4758_v5  ;;  %v8888_v55 = vrot.slane %v15070_v22, 3  ;;  %v4767_v5 = vrot.slane %v19497_v23, 2 }
 0x478   : > { %v18075_v6 = vpop.f32.mrb[44].mxu1  ;;  %13701 = vmatprep.mubr.msk.bf16.mxu0 %vm1269_vm3, %v8883_v26  ;;  %v4763_v26 = vrot.slane %v19600_v58, 2  ;;  %v15071_v58 = vld [vmem:[%s15185_s27 + $0x198] sm:$0xff]  }
 0x479   : > { %v18079_v61 = vpop.f32.mrb[45].mxu1  ;;  %v8890_v27 = vrot.slane %v15071_v58, 3  ;;  %v4761_v43 = vsel %vm4574_vm4, %v4756_v51, %v4760_v1  ;;  %v8889_v22 = vsel %vm8796_vm8, %v8886_v39, %v8888_v55 }
 0x47a   : > { %v18082_v37 = vpop.f32.mrb[46].mxu1  ;;  %v4764_v15 = vor.u32 %v4763_v26, %v4762_v46  ;;  %v19603_v46 = vld [vmem:[#allocation114_spill] sm:$0xff] }
 0x47b   : > { %19597 = vst [vmem:[#allocation181_spill] sm:$0xff] %v18082_v37  ;;  %v18087_v62 = vpop.f32.mrb[47].mxu1  ;;  %v4770_v26 = vrot.slane %v19603_v46, 1  ;;  %v8891_v51 = vsel %vm8796_vm8, %v8888_v55, %v8890_v27 }
 0x47c   : > { %19598 = vst [vmem:[#allocation186_spill] sm:$0xff] %v18087_v62 }
 0x47d   : > { %13150 = vmatmul.mubr.msk.bf16.gmra.mrb[84].mxu1 %vm1269_vm3, %v4753_v12  ;;  %v4766_v12 = vrot.slane %v19496_v38, 1 }
 0x47e   : > { %13153 = vmatprep.mubr.msk.bf16.mxu1 %vm1269_vm3, %v4757_v10  ;;  %v4765_v10 = vsel %vm4574_vm4, %v4760_v1, %v4764_v15  ;;  %v15072_v1 = vld [vmem:[%s15185_s27 + $0x1a0] sm:$0xff]  }
 0x47f   : > { %13702 = vmatmul.mubr.msk.bf16.gmra.mrb[84].mxu0 %vm1269_vm3, %v8885_v34  ;;  %v19604_v34 = vld [vmem:[#allocation110_spill] sm:$0xff]  ;;  %v4768_v38 = vor.u32 %v4767_v5, %v4766_v12  ;;  %v8892_v46 = vrot.slane %v15072_v1, 3  ;;  %v4775_v12 = vrot.slane %v19501_v59, 2 }
 0x480   : > { %v18097_v2 = vpop.f32.mrb[48].mxu1  ;;  %13705 = vmatprep.mubr.msk.bf16.mxu0 %vm1269_vm3, %v8887_v32  ;;  %v4771_v32 = vrot.slane %v19604_v34, 2  ;;  %v15073_v34 = vld [vmem:[%s15185_s27 + $0x1a8] sm:$0xff]  }
 0x481   : > { %v18101_v62 = vpop.f32.mrb[49].mxu1  ;;  %v8894_v39 = vrot.slane %v15073_v34, 3  ;;  %v4769_v55 = vsel %vm4574_vm4, %v4764_v15, %v4768_v38  ;;  %v8893_v1 = vsel %vm8796_vm8, %v8890_v27, %v8892_v46 }
 0x482   : > { %v18104_v37 = vpop.f32.mrb[50].mxu1  ;;  %v4772_v23 = vor.u32 %v4771_v32, %v4770_v26  ;;  %v19607_v26 = vld [vmem:[#allocation120_spill] sm:$0xff] }
 0x483   : > { %19601 = vst [vmem:[#allocation183_spill] sm:$0xff] %v18104_v37  ;;  %v18109_v57 = vpop.f32.mrb[51].mxu1  ;;  %v4778_v32 = vrot.slane %v19607_v26, 1  ;;  %v8895_v15 = vsel %vm8796_vm8, %v8892_v46, %v8894_v39 }
 0x484   : > { %19602 = vst [vmem:[#allocation188_spill] sm:$0xff] %v18109_v57 }
 0x485   : > { %13154 = vmatmul.mubr.msk.bf16.gmra.mrb[88].mxu1 %vm1269_vm3, %v4761_v43  ;;  %v4774_v43 = vrot.slane %v19500_v35, 1 }
 0x486   : > { %13157 = vmatprep.mubr.msk.bf16.mxu1 %vm1269_vm3, %v4765_v10  ;;  %v4773_v10 = vsel %vm4574_vm4, %v4768_v38, %v4772_v23  ;;  %v15074_v38 = vld [vmem:[%s15185_s27 + $0x1b0] sm:$0xff]  }
 0x487   : > { %13706 = vmatmul.mubr.msk.bf16.gmra.mrb[88].mxu0 %vm1269_vm3, %v8889_v22  ;;  %v19608_v22 = vld [vmem:[#allocation116_spill] sm:$0xff]  ;;  %v4776_v35 = vor.u32 %v4775_v12, %v4774_v43  ;;  %v8896_v26 = vrot.slane %v15074_v38, 3  ;;  %v4783_v43 = vrot.slane %v19505_v3, 2 }
 0x488   : > { %v18119_v58 = vpop.f32.mrb[52].mxu1  ;;  %13709 = vmatprep.mubr.msk.bf16.mxu0 %vm1269_vm3, %v8891_v51  ;;  %v4779_v51 = vrot.slane %v19608_v22, 2  ;;  %v15075_v22 = vld [vmem:[%s15185_s27 + $0x1b8] sm:$0xff]  }
 0x489   : > { %v18123_v57 = vpop.f32.mrb[53].mxu1  ;;  %v8898_v27 = vrot.slane %v15075_v22, 3  ;;  %v4777_v46 = vsel %vm4574_vm4, %v4772_v23, %v4776_v35  ;;  %v8897_v38 = vsel %vm8796_vm8, %v8894_v39, %v8896_v26 }
 0x48a   : > { %v18126_v37 = vpop.f32.mrb[54].mxu1  ;;  %v4780_v59 = vor.u32 %v4779_v51, %v4778_v32  ;;  %v19611_v32 = vld [vmem:[#allocation126_spill] sm:$0xff] }
 0x48b   : > { %19605 = vst [vmem:[#allocation185_spill] sm:$0xff] %v18126_v37  ;;  %v18131_v5 = vpop.f32.mrb[55].mxu1  ;;  %v4786_v51 = vrot.slane %v19611_v32, 1  ;;  %v8899_v23 = vsel %vm8796_vm8, %v8896_v26, %v8898_v27 }
 0x48c   : > { %19606 = vst [vmem:[#allocation190_spill] sm:$0xff] %v18131_v5 }
 0x48d   : > { %13158 = vmatmul.mubr.msk.bf16.gmra.mrb[92].mxu1 %vm1269_vm3, %v4769_v55  ;;  %v4782_v55 = vrot.slane %v19504_v9, 1 }
 0x48e   : > { %13161 = vmatprep.mubr.msk.bf16.mxu1 %vm1269_vm3, %v4773_v10  ;;  %v4781_v10 = vsel %vm4574_vm4, %v4776_v35, %v4780_v59  ;;  %v15076_v35 = vld [vmem:[%s15185_s27 + $0x1c0] sm:$0xff]  }
 0x48f   : > { %13710 = vmatmul.mubr.msk.bf16.gmra.mrb[92].mxu0 %vm1269_vm3, %v8893_v1  ;;  %v19612_v1 = vld [vmem:[#allocation122_spill] sm:$0xff]  ;;  %v4784_v9 = vor.u32 %v4783_v43, %v4782_v55  ;;  %v8900_v32 = vrot.slane %v15076_v35, 3  ;;  %v4791_v55 = vrot.slane %v19509_v33, 2 }
 0x490   : > { %v18141_v34 = vpop.f32.mrb[56].mxu1  ;;  %13713 = vmatprep.mubr.msk.bf16.mxu0 %vm1269_vm3, %v8895_v15  ;;  %v4787_v15 = vrot.slane %v19612_v1, 2  ;;  %v15077_v1 = vld [vmem:[%s15185_s27 + $0x1c8] sm:$0xff]  }
 0x491   : > { %v18145_v5 = vpop.f32.mrb[57].mxu1  ;;  %v8902_v39 = vrot.slane %v15077_v1, 3  ;;  %v4785_v26 = vsel %vm4574_vm4, %v4780_v59, %v4784_v9  ;;  %v8901_v35 = vsel %vm8796_vm8, %v8898_v27, %v8900_v32 }
 0x492   : > { %v18148_v37 = vpop.f32.mrb[58].mxu1  ;;  %v4788_v3 = vor.u32 %v4787_v15, %v4786_v51  ;;  %v19615_v51 = vld [vmem:[#allocation132_spill] sm:$0xff] }
 0x493   : > { %19609 = vst [vmem:[#allocation187_spill] sm:$0xff] %v18148_v37  ;;  %v18153_v12 = vpop.f32.mrb[59].mxu1  ;;  %v4794_v15 = vrot.slane %v19615_v51, 1  ;;  %v8903_v59 = vsel %vm8796_vm8, %v8900_v32, %v8902_v39 }
 0x494   : > { %19610 = vst [vmem:[#allocation192_spill] sm:$0xff] %v18153_v12 }
 0x495   : > { %13162 = vmatmul.mubr.msk.bf16.gmra.mrb[96].mxu1 %vm1269_vm3, %v4777_v46  ;;  %v4790_v46 = vrot.slane %v19508_v48, 1 }
 0x496   : > { %13165 = vmatprep.mubr.msk.bf16.mxu1 %vm1269_vm3, %v4781_v10  ;;  %v4789_v10 = vsel %vm4574_vm4, %v4784_v9, %v4788_v3  ;;  %v15078_v9 = vld [vmem:[%s15185_s27 + $0x1d0] sm:$0xff]  }
 0x497   : > { %13714 = vmatmul.mubr.msk.bf16.gmra.mrb[96].mxu0 %vm1269_vm3, %v8897_v38  ;;  %v19616_v38 = vld [vmem:[#allocation128_spill] sm:$0xff]  ;;  %v4792_v48 = vor.u32 %v4791_v55, %v4790_v46  ;;  %v8904_v51 = vrot.slane %v15078_v9, 3  ;;  %v4799_v46 = vrot.slane %v19513_v52, 2 }
 0x498   : > { %v18163_v22 = vpop.f32.mrb[60].mxu1  ;;  %13717 = vmatprep.mubr.msk.bf16.mxu0 %vm1269_vm3, %v8899_v23  ;;  %v4795_v23 = vrot.slane %v19616_v38, 2  ;;  %v15079_v38 = vld [vmem:[%s15185_s27 + $0x1d8] sm:$0xff]  }
 0x499   : > { %v18167_v12 = vpop.f32.mrb[61].mxu1  ;;  %v8906_v27 = vrot.slane %v15079_v38, 3  ;;  %v4793_v32 = vsel %vm4574_vm4, %v4788_v3, %v4792_v48  ;;  %v8905_v9 = vsel %vm8796_vm8, %v8902_v39, %v8904_v51  ;;  %v15080_v3 = vld [vmem:[%s15185_s27 + $0x1e0] sm:$0xff]   ;;  %v15081_v39 = vld [vmem:[%s15185_s27 + $0x1e8] sm:$0xff]  }
 0x49a   : > { %v18170_v37 = vpop.f32.mrb[62].mxu1  ;;  %v4796_v33 = vor.u32 %v4795_v23, %v4794_v15  ;;  %v19620_v15 = vld [vmem:[#allocation138_spill] sm:$0xff] }
 0x49b   : > { %19613 = vst [vmem:[#allocation189_spill] sm:$0xff] %v18170_v37  ;;  %v18175_v43 = vpop.f32.mrb[63].mxu1  ;;  %v4802_v23 = vrot.slane %v19620_v15, 1  ;;  %v8907_v38 = vsel %vm8796_vm8, %v8904_v51, %v8906_v27  ;;  %v4806_v15 = vrot.slane %v19516_v8, 1  ;;  %v18215_v51 = vld [vmem:[%s18802_s2] ss:$0 sm:$0xff] }
 0x49c   : > { %19614 = vst [vmem:[#allocation191_spill] sm:$0xff] %v18175_v43  ;;  %v19623_v8 = vld [vmem:[#allocation140_spill] sm:$0xff] }
 0x49d   : > { %13166 = vmatmul.mubr.msk.bf16.gmra.mrb[100].mxu1 %vm1269_vm3, %v4785_v26  ;;  %v4798_v26 = vrot.slane %v19512_v63, 1 }
 0x49e   : > { %13169 = vmatprep.mubr.msk.bf16.mxu1 %vm1269_vm3, %v4789_v10  ;;  %v4797_v10 = vsel %vm4574_vm4, %v4792_v48, %v4796_v33  ;;  %v8908_v48 = vrot.slane %v15080_v3, 3 }
 0x49f   : > { %13718 = vmatmul.mubr.msk.bf16.gmra.mrb[100].mxu0 %vm1269_vm3, %v8901_v35  ;;  %v19621_v35 = vld [vmem:[#allocation134_spill] sm:$0xff]  ;;  %v4800_v63 = vor.u32 %v4799_v46, %v4798_v26 }
 0x4a0   : > { %v18185_v1 = vpop.f32.mrb[64].mxu1  ;;  %13721 = vmatprep.mubr.msk.bf16.mxu0 %vm1269_vm3, %v8903_v59  ;;  %v4803_v59 = vrot.slane %v19621_v35, 2  ;;  %v4807_v35 = vrot.slane %v19517_v42, 2 }
 0x4a1   : > { %v18189_v43 = vpop.f32.mrb[65].mxu1  ;;  %v4801_v26 = vsel %vm4574_vm4, %v4796_v33, %v4800_v63 }
 0x4a2   : > { %19617 = vst [vmem:[#allocation196_spill] sm:$0xff] %v18189_v43  ;;  %v18192_v37 = vpop.f32.mrb[66].mxu1  ;;  %v4804_v52 = vor.u32 %v4803_v59, %v4802_v23  ;;  %v19622_v59 = vld [vmem:[#allocation144_spill] sm:$0xff] }
 0x4a3   : > { %19618 = vst [vmem:[#allocation194_spill] sm:$0xff] %v18192_v37  ;;  %v18197_v55 = vpop.f32.mrb[67].mxu1  ;;  %v4808_v37 = vor.u32 %v4807_v35, %v4806_v15  ;;  %v15082_v15 = vld [vmem:[%s15185_s27 + $0x1f0] sm:$0xff]  }
 0x4a4   : > { %19619 = vst [vmem:[#allocation195_spill] sm:$0xff] %v18197_v55  ;;  %v8910_v55 = vrot.slane %v15081_v39, 3  ;;  %v4805_v23 = vsel %vm4574_vm4, %v4800_v63, %v4804_v52  ;;  %v8909_v39 = vsel %vm8796_vm8, %v8906_v27, %v8908_v48 }
 0x4a5   : > { %13170 = vmatmul.mubr.msk.bf16.gmra.mrb[104].mxu1 %vm1269_vm3, %v4793_v32 }
 0x4a6   : > { %13173 = vmatprep.mubr.msk.bf16.mxu1 %vm1269_vm3, %v4797_v10  ;;  %v8911_v63 = vsel %vm8796_vm8, %v8908_v48, %v8910_v55 }
 0x4a7   : > { %13722 = vmatmul.mubr.msk.bf16.gmra.mrb[104].mxu0 %vm1269_vm3, %v8905_v9  ;;  %v4810_v9 = vrot.slane %v19622_v59, 1 }
 0x4a8   : > { %13725 = vmatprep.mubr.msk.bf16.mxu0 %vm1269_vm3, %v8907_v38  ;;  %v4811_v38 = vrot.slane %v19623_v8, 2  ;;  %v4815_v8 = vrot.slane %v19521_v47, 2 }
 0x4aa   : > { %v13619_v32 = vpop.f32.mrb[0].mxu0  ;;  %v4812_v35 = vor.u32 %v4811_v38, %v4810_v9 }
 0x4ab   : > { %v13755_v46 = vadd.f32 %v13619_v32, %v17850_v41  ;;  %v9175_v10 = vpop.f32.mrb[1].mxu0 }
 0x4ac   : > { %v13756_v42 = vadd.f32 %v9175_v10, %v17854_v50  ;;  %v13620_v3 = vpop.f32.mrb[2].mxu0 }
 0x4ad   : > { %v9863_v43 = vadd.f32 %v13755_v46, %v18215_v51  ;;  %v13757_v33 = vadd.f32 %v13620_v3, %v17857_v60  ;;  %v9178_v41 = vpop.f32.mrb[3].mxu0  ;;  %13174 = vmatmul.mubr.msk.bf16.gmra.mrb[108].mxu1 %vm1269_vm3, %v4801_v26  ;;  %v8912_v60 = vrot.slane %v15082_v15, 3  ;;  %v4814_v26 = vrot.slane %v19520_v19, 1 }
 0x4ae   : > { %v9861_v32 = vadd.f32 %v13756_v42, %v18215_v51  ;;  %v13758_v59 = vadd.f32 %v9178_v41, %v17859_v30  ;;  %13177 = vmatprep.mubr.msk.bf16.mxu1 %vm1269_vm3, %v4805_v23  ;;  %v15083_v23 = vld [vmem:[%s15185_s27 + $0x1f8] sm:$0xff]   ;;  %v19625_v41 = vld [vmem:[#allocation146_spill] sm:$0xff] }
 0x4af   : > { %v9999_v50 = vmax.f32 %v9863_v43, 0.0  ;;  %v9864_v27 = vadd.f32 %v13757_v33, %v18215_v51  ;;  %13726 = vmatmul.mubr.msk.bf16.gmra.mrb[108].mxu0 %vm1269_vm3, %v8909_v39  ;;  %v4809_v43 = vsel %vm4574_vm4, %v4804_v52, %v4808_v37  ;;  %v8914_v9 = vrot.slane %v15083_v23, 3  ;;  %v19624_v39 = vld [vmem:[#allocation150_spill] sm:$0xff] }
 0x4b0   : > { %v9997_v48 = vmax.f32 %v9861_v32, 0.0  ;;  %v9862_v30 = vadd.f32 %v13758_v59, %v18215_v51  ;;  %13729 = vmatprep.mubr.msk.bf16.mxu0 %vm1269_vm3, %v8911_v63  ;;  %v4818_v33 = vrot.slane %v19624_v39, 1  ;;  %v4819_v32 = vrot.slane %v19625_v41, 2  ;;  %v15085_v39 = vld [vmem:[%s15185_s27 + $0x208] sm:$0xff]  }
 0x4b1   : > { %v11756_v46 = vpack.c.bf16 %v9999_v50, %v9999_v50  ;;  %v10000_v10 = vmax.f32 %v9864_v27, 0.0  ;;  %v4813_v59 = vsel %vm4574_vm4, %v4808_v37, %v4812_v35  ;;  %v8913_v15 = vsel %vm8796_vm8, %v8910_v55, %v8912_v60 }
 0x4b2   : > { %v11754_v38 = vpack.c.bf16 %v9997_v48, %v9997_v48  ;;  %v9998_v42 = vmax.f32 %v9862_v30, 0.0  ;;  %v13623_v3 = vpop.f32.mrb[4].mxu0  ;;  %v4816_v55 = vor.u32 %v4815_v8, %v4814_v26 }
 0x4b3   : > { %10680 = vst.msk [vmem:[%s18238_s19 + $0x8] sm:$0xf] %vm10677_vm9, %v11756_v46  ;;  %v11757_v52 = vpack.c.bf16 %v10000_v10, %v10000_v10  ;;  %v13759_v19 = vadd.f32 %v13623_v3, %v17868_v56  ;;  %v9191_v63 = vpop.f32.mrb[5].mxu0  ;;  %v8915_v56 = vsel %vm8796_vm8, %v8912_v60, %v8914_v9  ;;  %v4820_v10 = vor.u32 %v4819_v32, %v4818_v33 }
 0x4b4   : > { %10678 = vst.msk [vmem:[%s18238_s19] sm:$0xf] %vm10677_vm9, %v11754_v38  ;;  %v11755_v47 = vpack.c.bf16 %v9998_v42, %v9998_v42  ;;  %v13760_v50 = vadd.f32 %v9191_v63, %v17872_v13  ;;  %v13624_v27 = vpop.f32.mrb[6].mxu0  ;;  %v4823_v3 = vrot.slane %v19525_v20, 2  ;;  %v8918_v33 = vrot.slane %v15085_v39, 3 }
 0x4b5   : > { %10681 = vst.msk [vmem:[%s18238_s19 + $0xc] sm:$0xf] %vm10677_vm9, %v11757_v52  ;;  %v9867_v48 = vadd.f32 %v13759_v19, %v18215_v51  ;;  %v13761_v30 = vadd.f32 %v13624_v27, %v17875_v4  ;;  %v9194_v46 = vpop.f32.mrb[7].mxu0  ;;  %13178 = vmatmul.mubr.msk.bf16.gmra.mrb[112].mxu1 %vm1269_vm3, %v4809_v43  ;;  %v15084_v4 = vld [vmem:[%s15185_s27 + $0x200] sm:$0xff]   ;;  %v4817_v19 = vsel %vm4574_vm4, %v4812_v35, %v4816_v55 }
 0x4b6   : > { %10679 = vst.msk [vmem:[%s18238_s19 + $0x4] sm:$0xf] %vm10677_vm9, %v11755_v47  ;;  %v9865_v37 = vadd.f32 %v13760_v50, %v18215_v51  ;;  %v13762_v13 = vadd.f32 %v9194_v46, %v17877_v36  ;;  %13181 = vmatprep.mubr.msk.bf16.mxu1 %vm1269_vm3, %v4813_v59  ;;  %v8916_v43 = vrot.slane %v15084_v4, 3  ;;  %v4822_v36 = vrot.slane %v19524_v53, 1  ;;  %v19626_v50 = vld [vmem:[#allocation152_spill] sm:$0xff] }
 0x4b7   : > { %v10003_v23 = vmax.f32 %v9867_v48, 0.0  ;;  %v9868_v38 = vadd.f32 %v13761_v30, %v18215_v51  ;;  %13730 = vmatmul.mubr.msk.bf16.gmra.mrb[112].mxu0 %vm1269_vm3, %v8913_v15  ;;  %v4821_v63 = vsel %vm4574_vm4, %v4816_v55, %v4820_v10  ;;  %v4826_v47 = vrot.slane %v19526_v40, 1 }
 0x4b8   : > { %v10001_v60 = vmax.f32 %v9865_v37, 0.0  ;;  %v9866_v42 = vadd.f32 %v13762_v13, %v18215_v51  ;;  %13733 = vmatprep.mubr.msk.bf16.mxu0 %vm1269_vm3, %v8915_v56  ;;  %v4827_v27 = vrot.slane %v19626_v50, 2  ;;  %v8917_v35 = vsel %vm8796_vm8, %v8914_v9, %v8916_v43 }
 0x4b9   : > { %v11760_v26 = vpack.c.bf16 %v10003_v23, %v10003_v23  ;;  %v10004_v8 = vmax.f32 %v9868_v38, 0.0  ;;  %v4824_v46 = vor.u32 %v4823_v3, %v4822_v36  ;;  %v8919_v40 = vsel %vm8796_vm8, %v8916_v43, %v8918_v33  ;;  %v15087_v3 = vld [vmem:[%s15185_s27 + $0x218] sm:$0xff]  }
 0x4ba   : > { %v11758_v41 = vpack.c.bf16 %v10001_v60, %v10001_v60  ;;  %v10002_v32 = vmax.f32 %v9866_v42, 0.0  ;;  %v13627_v52 = vpop.f32.mrb[8].mxu0  ;;  %v4828_v38 = vor.u32 %v4827_v27, %v4826_v47 }
 0x4bb   : > { %10684 = vst.msk [vmem:[%s18238_s19 + $0x18] sm:$0xf] %vm10677_vm9, %v11760_v26  ;;  %v11761_v59 = vpack.c.bf16 %v10004_v8, %v10004_v8  ;;  %v13763_v53 = vadd.f32 %v13627_v52, %v17886_v28  ;;  %v9207_v20 = vpop.f32.mrb[9].mxu0  ;;  %v4825_v60 = vsel %vm4574_vm4, %v4820_v10, %v4824_v46  ;;  %v8922_v26 = vrot.slane %v15087_v3, 3 }
 0x4bc   : > { %10682 = vst.msk [vmem:[%s18238_s19 + $0x10] sm:$0xf] %vm10677_vm9, %v11758_v41  ;;  %v11759_v15 = vpack.c.bf16 %v10002_v32, %v10002_v32  ;;  %v13764_v48 = vadd.f32 %v9207_v20, %v17890_v44  ;;  %v13628_v30 = vpop.f32.mrb[10].mxu0  ;;  %v4831_v8 = vrot.slane %v19529_v17, 2  ;;  %v4834_v52 = vrot.slane %v19530_v11, 1  ;;  %v19628_v20 = vld [vmem:[#allocation162_spill] sm:$0xff] }
 0x4bd   : > { %10685 = vst.msk [vmem:[%s18238_s19 + $0x1c] sm:$0xf] %vm10677_vm9, %v11761_v59  ;;  %v9871_v28 = vadd.f32 %v13763_v53, %v18215_v51  ;;  %v13765_v56 = vadd.f32 %v13628_v30, %v17893_v49  ;;  %v9210_v37 = vpop.f32.mrb[11].mxu0  ;;  %13182 = vmatmul.mubr.msk.bf16.gmra.mrb[116].mxu1 %vm1269_vm3, %v4817_v19  ;;  %v15086_v49 = vld [vmem:[%s15185_s27 + $0x210] sm:$0xff]   ;;  %v19627_v19 = vld [vmem:[#allocation158_spill] sm:$0xff]  ;;  %v4829_v53 = vsel %vm4574_vm4, %v4824_v46, %v4828_v38  ;;  %v19630_v46 = vld [vmem:[#allocation163_spill] sm:$0xff] }
 0x4be   : > { %10683 = vst.msk [vmem:[%s18238_s19 + $0x14] sm:$0xf] %vm10677_vm9, %v11759_v15  ;;  %v9869_v44 = vadd.f32 %v13764_v48, %v18215_v51  ;;  %v13766_v13 = vadd.f32 %v9210_v37, %v17895_v24  ;;  %13185 = vmatprep.mubr.msk.bf16.mxu1 %vm1269_vm3, %v4821_v63  ;;  %v8920_v23 = vrot.slane %v15086_v49, 3  ;;  %v4830_v24 = vrot.slane %v19528_v0, 1  ;;  %v19629_v15 = vld [vmem:[#allocation100_spill] sm:$0xff] }
 0x4bf   : > { %v10007_v9 = vmax.f32 %v9871_v28, 0.0  ;;  %v9872_v55 = vadd.f32 %v13765_v56, %v18215_v51  ;;  %13734 = vmatmul.mubr.msk.bf16.gmra.mrb[116].mxu0 %vm1269_vm3, %v8917_v35  ;;  %v4835_v63 = vrot.slane %v19627_v19, 2  ;;  %v19634_v19 = vld [vmem:[#allocation166_spill] sm:$0xff] }
 0x4c0   : > { %v10005_v4 = vmax.f32 %v9869_v44, 0.0  ;;  %v9870_v43 = vadd.f32 %v13766_v13, %v18215_v51  ;;  %13737 = vmatprep.mubr.msk.bf16.mxu0 %vm1269_vm3, %v8919_v40  ;;  %v8921_v27 = vsel %vm8796_vm8, %v8918_v33, %v8920_v23  ;;  %v4832_v33 = vor.u32 %v4831_v8, %v4830_v24 }
 0x4c1   : > { %v11764_v42 = vpack.c.bf16 %v10007_v9, %v10007_v9  ;;  %v10008_v36 = vmax.f32 %v9872_v55, 0.0  ;;  %v4836_v56 = vor.u32 %v4835_v63, %v4834_v52  ;;  %v19631_v9 = vld [vmem:[#allocation193_spill] sm:$0xff] }
 0x4c2   : > { %v11762_v39 = vpack.c.bf16 %v10005_v4, %v10005_v4  ;;  %v10006_v41 = vmax.f32 %v9870_v43, 0.0  ;;  %v13631_v32 = vpop.f32.mrb[12].mxu0  ;;  %v8924_v55 = vrot.slane %v19631_v9, 3  ;;  %v19632_v49 = vshrl.u32 %v19631_v9, 16 }
 0x4c3   : > { %10688 = vst.msk [vmem:[%s18238_s19 + $0x28] sm:$0xf] %vm10677_vm9, %v11764_v42  ;;  %v11765_v10 = vpack.c.bf16 %v10008_v36, %v10008_v36  ;;  %v13767_v0 = vadd.f32 %v13631_v32, %v17904_v18  ;;  %v9223_v59 = vpop.f32.mrb[13].mxu0  ;;  %v8923_v18 = vsel %vm8796_vm8, %v8920_v23, %v8922_v26  ;;  %v19633_v42 = vshll.u32 %v19631_v9, 16 }
 0x4c4   : > { %10686 = vst.msk [vmem:[%s18238_s19 + $0x20] sm:$0xf] %vm10677_vm9, %v11762_v39  ;;  %v11763_v17 = vpack.c.bf16 %v10006_v41, %v10006_v41  ;;  %v13768_v47 = vadd.f32 %v9223_v59, %v19628_v20  ;;  %v13632_v50 = vpop.f32.mrb[14].mxu0  ;;  %v4841_v23 = vrot.slane %v19632_v49, 1  ;;  %v4833_v41 = vsel %vm4574_vm4, %v4828_v38, %v4832_v33 }
 0x4c5   : > { %10689 = vst.msk [vmem:[%s18238_s19 + $0x2c] sm:$0xf] %vm10677_vm9, %v11765_v10  ;;  %v9875_v11 = vadd.f32 %v13767_v0, %v18215_v51  ;;  %v13769_v48 = vadd.f32 %v13632_v50, %v19629_v15  ;;  %v9226_v30 = vpop.f32.mrb[15].mxu0  ;;  %13186 = vmatmul.mubr.msk.bf16.gmra.mrb[120].mxu1 %vm1269_vm3, %v4825_v60  ;;  %v15088_v60 = vld [vmem:[%s15185_s27 + $0x228] sm:$0xff]   ;;  %v4844_v36 = vrot.slane %v19633_v42, 2  ;;  %v4837_v32 = vsel %vm4574_vm4, %v4832_v33, %v4836_v56  ;;  %v19635_v0 = vld [vmem:[#allocation2_spill] sm:$0xff] }
 0x4c6   : > { %10687 = vst.msk [vmem:[%s18238_s19 + $0x24] sm:$0xf] %vm10677_vm9, %v11763_v17  ;;  %v9873_v35 = vadd.f32 %v13768_v47, %v18215_v51  ;;  %v13770_v28 = vadd.f32 %v9226_v30, %v19630_v46  ;;  %13189 = vmatprep.mubr.msk.bf16.mxu1 %vm1269_vm3, %v4829_v53  ;;  %v8926_v24 = vrot.slane %v15088_v60, 3  ;;  %v19636_v59 = vshrl.u32 %v19635_v0, 16  ;;  %v19638_v50 = vld [vmem:[#allocation164_spill] sm:$0xff]  ;;  %v19640_v33 = vld [vmem:[#allocation165_spill] sm:$0xff] }
 0x4c7   : > { %v10011_v37 = vmax.f32 %v9875_v11, 0.0  ;;  %v9876_v40 = vadd.f32 %v13769_v48, %v18215_v51  ;;  %13738 = vmatmul.mubr.msk.bf16.gmra.mrb[120].mxu0 %vm1269_vm3, %v8921_v27  ;;  %v19637_v17 = vshll.u32 %v19635_v0, 16  ;;  %v8925_v11 = vsel %vm8796_vm8, %v8922_v26, %v8924_v55  ;;  %v19639_v48 = vld [vmem:[#allocation168_spill] sm:$0xff]  ;;  %v19641_v26 = vld [vmem:[#allocation199_spill] sm:$0xff] }
 0x4c8   : > { %v10009_v44 = vmax.f32 %v9873_v35, 0.0  ;;  %v9874_v13 = vadd.f32 %v13770_v28, %v18215_v51  ;;  %13741 = vmatprep.mubr.msk.bf16.mxu0 %vm1269_vm3, %v8923_v18  ;;  %v4850_v53 = vrot.slane %v19636_v59, 1  ;;  %v8927_v35 = vsel %vm8796_vm8, %v8924_v55, %v8926_v24 }
 0x4c9   : > { %v11768_v4 = vpack.c.bf16 %v10011_v37, %v10011_v37  ;;  %v10012_v43 = vmax.f32 %v9876_v40, 0.0  ;;  %v4853_v20 = vrot.slane %v19637_v17, 2  ;;  %v4845_v46 = vor.u32 %v4844_v36, %v4841_v23  ;;  %v19644_v17 = vld [vmem:[#allocation167_spill] sm:$0xff] }
 0x4ca   : > { %v11766_v3 = vpack.c.bf16 %v10009_v44, %v10009_v44  ;;  %v10010_v8 = vmax.f32 %v9874_v13, 0.0  ;;  %v13635_v39 = vpop.f32.mrb[16].mxu0  ;;  %v4857_v40 = vshrl.u32 %v19641_v26, 16  ;;  %v4860_v44 = vshll.u32 %v19641_v26, 16  ;;  %v15090_v26 = vld [vmem:[%s15185_s27 + $0x240] ss:$0 sps:$4 sm:$0xff]  }
 0x4cb   : > { %10692 = vst.msk [vmem:[%s18238_s19 + $0x38] sm:$0xf] %vm10677_vm9, %v11768_v4  ;;  %v11769_v52 = vpack.c.bf16 %v10012_v43, %v10012_v43  ;;  %v13771_v63 = vadd.f32 %v13635_v39, %v19634_v19  ;;  %v9239_v10 = vpop.f32.mrb[17].mxu0  ;;  %v4854_v55 = vor.u32 %v4853_v20, %v4850_v53  ;;  %v19642_v4 = vld [vmem:[#allocation80_spill] sm:$0xff]  ;;  %v4846_v36 = vsel %vm4574_vm4, %v4836_v56, %v4845_v46 }
 0x4cc   : > { %10690 = vst.msk [vmem:[%s18238_s19 + $0x30] sm:$0xf] %vm10677_vm9, %v11766_v3  ;;  %v11767_v47 = vpack.c.bf16 %v10010_v8, %v10010_v8  ;;  %v13772_v38 = vadd.f32 %v9239_v10, %v19638_v50  ;;  %v13636_v27 = vpop.f32.mrb[18].mxu0  ;;  %v8928_v43 = vrot.slane %v19642_v4, 3  ;;  %v15089_v3 = vld [vmem:[%s15185_s27 + $0x238] sm:$0xff]   ;;  %v4862_v19 = vrot.slane %v4860_v44, 2 }
 0x4cd   : > { %10693 = vst.msk [vmem:[%s18238_s19 + $0x3c] sm:$0xf] %vm10677_vm9, %v11769_v52  ;;  %v9879_v15 = vadd.f32 %v13771_v63, %v18215_v51  ;;  %v13773_v30 = vadd.f32 %v13636_v27, %v19639_v48  ;;  %v9242_v18 = vpop.f32.mrb[19].mxu0  ;;  %13190 = vmatmul.mubr.msk.bf16.gmra.mrb[124].mxu1 %vm1269_vm3, %v4833_v41  ;;  %v8930_v8 = vrot.slane %v15089_v3, 3  ;;  %v4859_v52 = vrot.slane %v4857_v40, 1  ;;  %v19643_v10 = vld [vmem:[#allocation170_spill] sm:$0xff] }
 0x4ce   : > { %10691 = vst.msk [vmem:[%s18238_s19 + $0x34] sm:$0xf] %vm10677_vm9, %v11767_v47  ;;  %v9877_v28 = vadd.f32 %v13772_v38, %v18215_v51  ;;  %v13774_v37 = vadd.f32 %v9242_v18, %v19640_v33  ;;  %13193 = vmatprep.mubr.msk.bf16.mxu1 %vm1269_vm3, %v4837_v32  ;;  %v4855_v53 = vsel %vm4574_vm4, %v4845_v46, %v4854_v55  ;;  %v19645_v27 = vld [vmem:[#allocation172_spill] sm:$0xff]  ;;  %v19646_v18 = vld [vmem:[#allocation169_spill] sm:$0xff]  ;;  %v8932_v40 = vrot.slane %v15090_v26, 3  ;;  %v19652_v26 = vld [vmem:[#allocation175_spill] sm:$0xff] }
 0x4cf   : > { %v10015_v13 = vmax.f32 %v9879_v15, 0.0  ;;  %v9880_v9 = vadd.f32 %v13773_v30, %v18215_v51  ;;  %13742 = vmatmul.mubr.msk.bf16.gmra.mrb[124].mxu0 %vm1269_vm3, %v8925_v11  ;;  %v8929_v50 = vsel %vm8796_vm8, %v8926_v24, %v8928_v43  ;;  %v8931_v48 = vsel %vm8796_vm8, %v8928_v43, %v8930_v8 }
 0x4d0   : > { %v10013_v49 = vmax.f32 %v9877_v28, 0.0  ;;  %v9878_v23 = vadd.f32 %v13774_v37, %v18215_v51  ;;  %13745 = vmatprep.mubr.msk.bf16.mxu0 %vm1269_vm3, %v8927_v35  ;;  %v4863_v24 = vor.u32 %v4862_v19, %v4859_v52  ;;  %v8933_v52 = vsel %vm8796_vm8, %v8930_v8, %v8932_v40 }
 0x4d1   : > { %v11772_v60 = vpack.c.bf16 %v10015_v13, %v10015_v13  ;;  %v10016_v42 = vmax.f32 %v9880_v9, 0.0 }
 0x4d2   : > { %v11770_v39 = vpack.c.bf16 %v10013_v49, %v10013_v49  ;;  %v10014_v41 = vmax.f32 %v9878_v23, 0.0  ;;  %v13639_v32 = vpop.f32.mrb[20].mxu0  ;;  %v4864_v4 = vsel %vm4574_vm4, %v4854_v55, %v4863_v24 }
 0x4d3   : > { %10696 = vst.msk [vmem:[%s18238_s19 + $0x48] sm:$0xf] %vm10677_vm9, %v11772_v60  ;;  %v11773_v63 = vpack.c.bf16 %v10016_v42, %v10016_v42  ;;  %v13775_v0 = vadd.f32 %v13639_v32, %v19643_v10  ;;  %v9255_v59 = vpop.f32.mrb[21].mxu0  ;;  %v19647_v60 = vld [vmem:[#allocation174_spill] sm:$0xff] }
 0x4d4   : > { %10694 = vst.msk [vmem:[%s18238_s19 + $0x40] sm:$0xf] %vm10677_vm9, %v11770_v39  ;;  %v11771_v56 = vpack.c.bf16 %v10014_v41, %v10014_v41  ;;  %v13776_v20 = vadd.f32 %v9255_v59, %v19644_v17  ;;  %v13640_v47 = vpop.f32.mrb[22].mxu0  ;;  %v19648_v39 = vld [vmem:[#allocation171_spill] sm:$0xff]  ;;  %v19650_v59 = vld [vmem:[#allocation173_spill] sm:$0xff] }
 0x4d5   : > { %10697 = vst.msk [vmem:[%s18238_s19 + $0x4c] sm:$0xf] %vm10677_vm9, %v11773_v63  ;;  %v9883_v38 = vadd.f32 %v13775_v0, %v18215_v51  ;;  %v13777_v11 = vadd.f32 %v13640_v47, %v19645_v27  ;;  %v9258_v15 = vpop.f32.mrb[23].mxu0  ;;  %13194 = vmatmul.mubr.msk.bf16.gmra.mrb[128].mxu1 %vm1269_vm3, %v4846_v36  ;;  %v19649_v63 = vld [vmem:[#allocation176_spill] sm:$0xff] }
 0x4d6   : > { %10695 = vst.msk [vmem:[%s18238_s19 + $0x44] sm:$0xf] %vm10677_vm9, %v11771_v56  ;;  %v9881_v30 = vadd.f32 %v13776_v20, %v18215_v51  ;;  %v13778_v35 = vadd.f32 %v9258_v15, %v19646_v18  ;;  %13197 = vmatprep.mubr.msk.bf16.mxu1 %vm1269_vm3, %v4855_v53 }
 0x4d7   : > { %v10019_v46 = vmax.f32 %v9883_v38, 0.0  ;;  %v9884_v28 = vadd.f32 %v13777_v11, %v18215_v51  ;;  %13746 = vmatmul.mubr.msk.bf16.gmra.mrb[128].mxu0 %vm1269_vm3, %v8929_v50 }
 0x4d8   : > { %v10017_v33 = vmax.f32 %v9881_v30, 0.0  ;;  %v9882_v37 = vadd.f32 %v13778_v35, %v18215_v51  ;;  %13749 = vmatprep.mubr.msk.bf16.mxu0 %vm1269_vm3, %v8931_v48 }
 0x4d9   : > { %v11776_v44 = vpack.c.bf16 %v10019_v46, %v10019_v46  ;;  %v10020_v13 = vmax.f32 %v9884_v28, 0.0  ;;  %v19651_v28 = vld [vmem:[#allocation178_spill] sm:$0xff] }
 0x4da   : > { %v11774_v9 = vpack.c.bf16 %v10017_v33, %v10017_v33  ;;  %v10018_v49 = vmax.f32 %v9882_v37, 0.0  ;;  %v13643_v23 = vpop.f32.mrb[24].mxu0 }
 0x4db   : > { %10700 = vst.msk [vmem:[%s18238_s19 + $0x58] sm:$0xf] %vm10677_vm9, %v11776_v44  ;;  %v11777_v43 = vpack.c.bf16 %v10020_v13, %v10020_v13  ;;  %v13779_v42 = vadd.f32 %v13643_v23, %v19647_v60  ;;  %v9271_v36 = vpop.f32.mrb[25].mxu0 }
 0x4dc   : > { %10698 = vst.msk [vmem:[%s18238_s19 + $0x50] sm:$0xf] %vm10677_vm9, %v11774_v9  ;;  %v11775_v3 = vpack.c.bf16 %v10018_v49, %v10018_v49  ;;  %v13780_v41 = vadd.f32 %v9271_v36, %v19648_v39  ;;  %v13644_v32 = vpop.f32.mrb[26].mxu0 }
 0x4dd   : > { %10701 = vst.msk [vmem:[%s18238_s19 + $0x5c] sm:$0xf] %vm10677_vm9, %v11777_v43  ;;  %v9887_v19 = vadd.f32 %v13779_v42, %v18215_v51  ;;  %v13781_v55 = vadd.f32 %v13644_v32, %v19649_v63  ;;  %v9274_v10 = vpop.f32.mrb[27].mxu0  ;;  %13198 = vmatmul.mubr.msk.bf16.gmra.mrb[132].mxu1 %vm1269_vm3, %v4864_v4 }
 0x4de   : > { %10699 = vst.msk [vmem:[%s18238_s19 + $0x54] sm:$0xf] %vm10677_vm9, %v11775_v3  ;;  %v9885_v0 = vadd.f32 %v13780_v41, %v18215_v51  ;;  %v13782_v53 = vadd.f32 %v9274_v10, %v19650_v59 }
 0x4df   : > { %v10023_v56 = vmax.f32 %v9887_v19, 0.0  ;;  %v9888_v8 = vadd.f32 %v13781_v55, %v18215_v51  ;;  %13750 = vmatmul.mubr.msk.bf16.gmra.mrb[132].mxu0 %vm1269_vm3, %v8933_v52  ;;  %v19653_v55 = vld [vmem:[#allocation180_spill] sm:$0xff] }
 0x4e0   : > { %v10021_v17 = vmax.f32 %v9885_v0, 0.0  ;;  %v9886_v20 = vadd.f32 %v13782_v53, %v18215_v51 }
 0x4e1   : > { %v11780_v47 = vpack.c.bf16 %v10023_v56, %v10023_v56  ;;  %v10024_v50 = vmax.f32 %v9888_v8, 0.0 }
 0x4e2   : > { %v11778_v38 = vpack.c.bf16 %v10021_v17, %v10021_v17  ;;  %v10022_v27 = vmax.f32 %v9886_v20, 0.0  ;;  %v13647_v11 = vpop.f32.mrb[28].mxu0 }
 0x4e3   : > { %10704 = vst.msk [vmem:[%s18238_s19 + $0x68] sm:$0xf] %vm10677_vm9, %v11780_v47  ;;  %v11781_v15 = vpack.c.bf16 %v10024_v50, %v10024_v50  ;;  %v13783_v48 = vadd.f32 %v13647_v11, %v17987_v21  ;;  %v9287_v30 = vpop.f32.mrb[29].mxu0 }
 0x4e4   : > { %10702 = vst.msk [vmem:[%s18238_s19 + $0x60] sm:$0xf] %vm10677_vm9, %v11778_v38  ;;  %v11779_v18 = vpack.c.bf16 %v10022_v27, %v10022_v27  ;;  %v13784_v35 = vadd.f32 %v9287_v30, %v17991_v16  ;;  %v13648_v24 = vpop.f32.mrb[30].mxu0  ;;  %v19654_v30 = vld [vmem:[#allocation177_spill] sm:$0xff] }
 0x4e5   : > { %10705 = vst.msk [vmem:[%s18238_s19 + $0x6c] sm:$0xf] %vm10677_vm9, %v11781_v15  ;;  %v9891_v46 = vadd.f32 %v13783_v48, %v18215_v51  ;;  %v13785_v33 = vadd.f32 %v13648_v24, %v19651_v28  ;;  %v9290_v37 = vpop.f32.mrb[31].mxu0  ;;  %v19655_v24 = vld [vmem:[#allocation182_spill] sm:$0xff] }
 0x4e6   : > { %10703 = vst.msk [vmem:[%s18238_s19 + $0x64] sm:$0xf] %vm10677_vm9, %v11779_v18  ;;  %v9889_v21 = vadd.f32 %v13784_v35, %v18215_v51  ;;  %v13786_v40 = vadd.f32 %v9290_v37, %v19652_v26 }
 0x4e7   : > { %v10027_v44 = vmax.f32 %v9891_v46, 0.0  ;;  %v9892_v13 = vadd.f32 %v13785_v33, %v18215_v51 }
 0x4e8   : > { %v10025_v16 = vmax.f32 %v9889_v21, 0.0  ;;  %v9890_v9 = vadd.f32 %v13786_v40, %v18215_v51 }
 0x4e9   : > { %v11784_v49 = vpack.c.bf16 %v10027_v44, %v10027_v44  ;;  %v10028_v23 = vmax.f32 %v9892_v13, 0.0 }
 0x4ea   : > { %v11782_v4 = vpack.c.bf16 %v10025_v16, %v10025_v16  ;;  %v10026_v43 = vmax.f32 %v9890_v9, 0.0  ;;  %v13651_v60 = vpop.f32.mrb[32].mxu0 }
 0x4eb   : > { %10708 = vst.msk [vmem:[%s18238_s19 + $0x78] sm:$0xf] %vm10677_vm9, %v11784_v49  ;;  %v11785_v42 = vpack.c.bf16 %v10028_v23, %v10028_v23  ;;  %v13787_v36 = vadd.f32 %v13651_v60, %v18009_v14  ;;  %v9303_v3 = vpop.f32.mrb[33].mxu0 }
 0x4ec   : > { %10706 = vst.msk [vmem:[%s18238_s19 + $0x70] sm:$0xf] %vm10677_vm9, %v11782_v4  ;;  %v11783_v39 = vpack.c.bf16 %v10026_v43, %v10026_v43  ;;  %v13788_v41 = vadd.f32 %v9303_v3, %v18013_v7  ;;  %v13652_v32 = vpop.f32.mrb[34].mxu0 }
 0x4ed   : > { %10709 = vst.msk [vmem:[%s18238_s19 + $0x7c] sm:$0xf] %vm10677_vm9, %v11785_v42  ;;  %v9895_v52 = vadd.f32 %v13787_v36, %v18215_v51  ;;  %v13789_v19 = vadd.f32 %v13652_v32, %v18016_v31  ;;  %v9306_v63 = vpop.f32.mrb[35].mxu0  ;;  %v19656_v42 = vld [vmem:[#allocation179_spill] sm:$0xff] }
 0x4ee   : > { %10707 = vst.msk [vmem:[%s18238_s19 + $0x74] sm:$0xf] %vm10677_vm9, %v11783_v39  ;;  %v9893_v14 = vadd.f32 %v13788_v41, %v18215_v51  ;;  %v13790_v10 = vadd.f32 %v9306_v63, %v19653_v55  ;;  %v19657_v39 = vld [vmem:[#allocation184_spill] sm:$0xff] }
 0x4ef   : > { %v10031_v0 = vmax.f32 %v9895_v52, 0.0  ;;  %v9896_v59 = vadd.f32 %v13789_v19, %v18215_v51 }
 0x4f0   : > { %v10029_v7 = vmax.f32 %v9893_v14, 0.0  ;;  %v9894_v53 = vadd.f32 %v13790_v10, %v18215_v51 }
 0x4f1   : > { %v11788_v56 = vpack.c.bf16 %v10031_v0, %v10031_v0  ;;  %v10032_v8 = vmax.f32 %v9896_v59, 0.0 }
 0x4f2   : > { %v11786_v17 = vpack.c.bf16 %v10029_v7, %v10029_v7  ;;  %v10030_v31 = vmax.f32 %v9894_v53, 0.0  ;;  %v13655_v20 = vpop.f32.mrb[36].mxu0 }
 0x4f3   : > { %10712 = vst.msk [vmem:[%s18238_s19 + $0x88] sm:$0xf] %vm10677_vm9, %v11788_v56  ;;  %v11789_v47 = vpack.c.bf16 %v10032_v8, %v10032_v8  ;;  %v13791_v50 = vadd.f32 %v13655_v20, %v18031_v54  ;;  %v9319_v38 = vpop.f32.mrb[37].mxu0  ;;  %v19658_v20 = vld [vmem:[#allocation181_spill] sm:$0xff] }
 0x4f4   : > { %10710 = vst.msk [vmem:[%s18238_s19 + $0x80] sm:$0xf] %vm10677_vm9, %v11786_v17  ;;  %v11787_v27 = vpack.c.bf16 %v10030_v31, %v10030_v31  ;;  %v13792_v11 = vadd.f32 %v9319_v38, %v18035_v29  ;;  %v13656_v15 = vpop.f32.mrb[38].mxu0  ;;  %v19659_v38 = vld [vmem:[#allocation186_spill] sm:$0xff] }
 0x4f5   : > { %10713 = vst.msk [vmem:[%s18238_s19 + $0x8c] sm:$0xf] %vm10677_vm9, %v11789_v47  ;;  %v9899_v48 = vadd.f32 %v13791_v50, %v18215_v51  ;;  %v13793_v18 = vadd.f32 %v13656_v15, %v19654_v30  ;;  %v9322_v35 = vpop.f32.mrb[39].mxu0 }
 0x4f6   : > { %10711 = vst.msk [vmem:[%s18238_s19 + $0x84] sm:$0xf] %vm10677_vm9, %v11787_v27  ;;  %v9897_v54 = vadd.f32 %v13792_v11, %v18215_v51  ;;  %v13794_v46 = vadd.f32 %v9322_v35, %v19655_v24 }
 0x4f7   : > { %v10035_v28 = vmax.f32 %v9899_v48, 0.0  ;;  %v9900_v33 = vadd.f32 %v13793_v18, %v18215_v51 }
 0x4f8   : > { %v10033_v29 = vmax.f32 %v9897_v54, 0.0  ;;  %v9898_v37 = vadd.f32 %v13794_v46, %v18215_v51 }
 0x4f9   : > { %v11792_v21 = vpack.c.bf16 %v10035_v28, %v10035_v28  ;;  %v10036_v26 = vmax.f32 %v9900_v33, 0.0 }
 0x4fa   : > { %v11790_v40 = vpack.c.bf16 %v10033_v29, %v10033_v29  ;;  %v10034_v44 = vmax.f32 %v9898_v37, 0.0  ;;  %v13659_v13 = vpop.f32.mrb[40].mxu0 }
 0x4fb   : > { %10716 = vst.msk [vmem:[%s18238_s19 + $0x98] sm:$0xf] %vm10677_vm9, %v11792_v21  ;;  %v11793_v16 = vpack.c.bf16 %v10036_v26, %v10036_v26  ;;  %v13795_v9 = vadd.f32 %v13659_v13, %v18053_v45  ;;  %v9335_v49 = vpop.f32.mrb[41].mxu0 }
 0x4fc   : > { %10714 = vst.msk [vmem:[%s18238_s19 + $0x90] sm:$0xf] %vm10677_vm9, %v11790_v40  ;;  %v11791_v23 = vpack.c.bf16 %v10034_v44, %v10034_v44  ;;  %v13796_v4 = vadd.f32 %v9335_v49, %v18057_v25  ;;  %v13660_v43 = vpop.f32.mrb[42].mxu0  ;;  %v19660_v40 = vld [vmem:[#allocation183_spill] sm:$0xff] }
 0x4fd   : > { %10717 = vst.msk [vmem:[%s18238_s19 + $0x9c] sm:$0xf] %vm10677_vm9, %v11793_v16  ;;  %v9903_v60 = vadd.f32 %v13795_v9, %v18215_v51  ;;  %v13797_v36 = vadd.f32 %v13660_v43, %v19656_v42  ;;  %v9338_v3 = vpop.f32.mrb[43].mxu0  ;;  %v19661_v16 = vld [vmem:[#allocation188_spill] sm:$0xff] }
 0x4fe   : > { %10715 = vst.msk [vmem:[%s18238_s19 + $0x94] sm:$0xf] %vm10677_vm9, %v11791_v23  ;;  %v9901_v45 = vadd.f32 %v13796_v4, %v18215_v51  ;;  %v13798_v41 = vadd.f32 %v9338_v3, %v19657_v39 }
 0x4ff   : > { %v10039_v32 = vmax.f32 %v9903_v60, 0.0  ;;  %v9904_v52 = vadd.f32 %v13797_v36, %v18215_v51 }
 0x500   : > { %v10037_v25 = vmax.f32 %v9901_v45, 0.0  ;;  %v9902_v19 = vadd.f32 %v13798_v41, %v18215_v51 }
 0x501   : > { %v11796_v63 = vpack.c.bf16 %v10039_v32, %v10039_v32  ;;  %v10040_v14 = vmax.f32 %v9904_v52, 0.0 }
 0x502   : > { %v11794_v55 = vpack.c.bf16 %v10037_v25, %v10037_v25  ;;  %v10038_v10 = vmax.f32 %v9902_v19, 0.0  ;;  %v13663_v0 = vpop.f32.mrb[44].mxu0 }
 0x503   : > { %10720 = vst.msk [vmem:[%s18238_s19 + $0xa8] sm:$0xf] %vm10677_vm9, %v11796_v63  ;;  %v11797_v59 = vpack.c.bf16 %v10040_v14, %v10040_v14  ;;  %v13799_v7 = vadd.f32 %v13663_v0, %v18075_v6  ;;  %v9351_v53 = vpop.f32.mrb[45].mxu0  ;;  %v19662_v63 = vld [vmem:[#allocation185_spill] sm:$0xff] }
 0x504   : > { %10718 = vst.msk [vmem:[%s18238_s19 + $0xa0] sm:$0xf] %vm10677_vm9, %v11794_v55  ;;  %v11795_v56 = vpack.c.bf16 %v10038_v10, %v10038_v10  ;;  %v13800_v8 = vadd.f32 %v9351_v53, %v18079_v61  ;;  %v13664_v17 = vpop.f32.mrb[46].mxu0  ;;  %v19663_v10 = vld [vmem:[#allocation190_spill] sm:$0xff] }
 0x505   : > { %10721 = vst.msk [vmem:[%s18238_s19 + $0xac] sm:$0xf] %vm10677_vm9, %v11797_v59  ;;  %v9907_v31 = vadd.f32 %v13799_v7, %v18215_v51  ;;  %v13801_v47 = vadd.f32 %v13664_v17, %v19658_v20  ;;  %v9354_v50 = vpop.f32.mrb[47].mxu0 }
 0x506   : > { %10719 = vst.msk [vmem:[%s18238_s19 + $0xa4] sm:$0xf] %vm10677_vm9, %v11795_v56  ;;  %v9905_v6 = vadd.f32 %v13800_v8, %v18215_v51  ;;  %v13802_v27 = vadd.f32 %v9354_v50, %v19659_v38 }
 0x507   : > { %v10043_v11 = vmax.f32 %v9907_v31, 0.0  ;;  %v9908_v15 = vadd.f32 %v13801_v47, %v18215_v51 }
 0x508   : > { %v10041_v61 = vmax.f32 %v9905_v6, 0.0  ;;  %v9906_v48 = vadd.f32 %v13802_v27, %v18215_v51 }
 0x509   : > { %v11800_v30 = vpack.c.bf16 %v10043_v11, %v10043_v11  ;;  %v10044_v18 = vmax.f32 %v9908_v15, 0.0 }
 0x50a   : > { %v11798_v35 = vpack.c.bf16 %v10041_v61, %v10041_v61  ;;  %v10042_v54 = vmax.f32 %v9906_v48, 0.0  ;;  %v13667_v24 = vpop.f32.mrb[48].mxu0  ;;  %v19664_v61 = vld [vmem:[#allocation187_spill] sm:$0xff] }
 0x50b   : > { %10724 = vst.msk [vmem:[%s18238_s19 + $0xb8] sm:$0xf] %vm10677_vm9, %v11800_v30  ;;  %v11801_v46 = vpack.c.bf16 %v10044_v18, %v10044_v18  ;;  %v13803_v28 = vadd.f32 %v13667_v24, %v18097_v2  ;;  %v9367_v33 = vpop.f32.mrb[49].mxu0  ;;  %v19665_v18 = vld [vmem:[#allocation192_spill] sm:$0xff] }
 0x50c   : > { %10722 = vst.msk [vmem:[%s18238_s19 + $0xb0] sm:$0xf] %vm10677_vm9, %v11798_v35  ;;  %v11799_v29 = vpack.c.bf16 %v10042_v54, %v10042_v54  ;;  %v13804_v37 = vadd.f32 %v9367_v33, %v18101_v62  ;;  %v13668_v21 = vpop.f32.mrb[50].mxu0 }
 0x50d   : > { %10725 = vst.msk [vmem:[%s18238_s19 + $0xbc] sm:$0xf] %vm10677_vm9, %v11801_v46  ;;  %v9911_v26 = vadd.f32 %v13803_v28, %v18215_v51  ;;  %v13805_v44 = vadd.f32 %v13668_v21, %v19660_v40  ;;  %v9370_v13 = vpop.f32.mrb[51].mxu0 }
 0x50e   : > { %10723 = vst.msk [vmem:[%s18238_s19 + $0xb4] sm:$0xf] %vm10677_vm9, %v11799_v29  ;;  %v9909_v2 = vadd.f32 %v13804_v37, %v18215_v51  ;;  %v13806_v9 = vadd.f32 %v9370_v13, %v19661_v16 }
 0x50f   : > { %v10047_v49 = vmax.f32 %v9911_v26, 0.0  ;;  %v9912_v23 = vadd.f32 %v13805_v44, %v18215_v51 }
 0x510   : > { %v10045_v62 = vmax.f32 %v9909_v2, 0.0  ;;  %v9910_v4 = vadd.f32 %v13806_v9, %v18215_v51 }
 0x511   : > { %v11804_v43 = vpack.c.bf16 %v10047_v49, %v10047_v49  ;;  %v10048_v60 = vmax.f32 %v9912_v23, 0.0  ;;  %v19666_v49 = vld [vmem:[#allocation189_spill] sm:$0xff] }
 0x512   : > { %v11802_v42 = vpack.c.bf16 %v10045_v62, %v10045_v62  ;;  %v10046_v36 = vmax.f32 %v9910_v4, 0.0  ;;  %v13671_v3 = vpop.f32.mrb[52].mxu0  ;;  %v19667_v4 = vld [vmem:[#allocation191_spill] sm:$0xff] }
 0x513   : > { %10728 = vst.msk [vmem:[%s18238_s19 + $0xc8] sm:$0xf] %vm10677_vm9, %v11804_v43  ;;  %v11805_v45 = vpack.c.bf16 %v10048_v60, %v10048_v60  ;;  %v13807_v39 = vadd.f32 %v13671_v3, %v18119_v58  ;;  %v9383_v41 = vpop.f32.mrb[53].mxu0 }
 0x514   : > { %10726 = vst.msk [vmem:[%s18238_s19 + $0xc0] sm:$0xf] %vm10677_vm9, %v11802_v42  ;;  %v11803_v32 = vpack.c.bf16 %v10046_v36, %v10046_v36  ;;  %v13808_v52 = vadd.f32 %v9383_v41, %v18123_v57  ;;  %v13672_v25 = vpop.f32.mrb[54].mxu0 }
 0x515   : > { %10729 = vst.msk [vmem:[%s18238_s19 + $0xcc] sm:$0xf] %vm10677_vm9, %v11805_v45  ;;  %v9915_v19 = vadd.f32 %v13807_v39, %v18215_v51  ;;  %v13809_v14 = vadd.f32 %v13672_v25, %v19662_v63  ;;  %v9386_v55 = vpop.f32.mrb[55].mxu0 }
 0x516   : > { %10727 = vst.msk [vmem:[%s18238_s19 + $0xc4] sm:$0xf] %vm10677_vm9, %v11803_v32  ;;  %v9913_v58 = vadd.f32 %v13808_v52, %v18215_v51  ;;  %v13810_v0 = vadd.f32 %v9386_v55, %v19663_v10 }
 0x517   : > { %v10051_v59 = vmax.f32 %v9915_v19, 0.0  ;;  %v9916_v7 = vadd.f32 %v13809_v14, %v18215_v51  ;;  %v19668_v14 = vld [vmem:[#allocation196_spill] sm:$0xff] }
 0x518   : > { %v10049_v57 = vmax.f32 %v9913_v58, 0.0  ;;  %v9914_v53 = vadd.f32 %v13810_v0, %v18215_v51  ;;  %v19669_v0 = vld [vmem:[#allocation194_spill] sm:$0xff] }
 0x519   : > { %v11808_v56 = vpack.c.bf16 %v10051_v59, %v10051_v59  ;;  %v10052_v8 = vmax.f32 %v9916_v7, 0.0 }
 0x51a   : > { %v11806_v17 = vpack.c.bf16 %v10049_v57, %v10049_v57  ;;  %v10050_v31 = vmax.f32 %v9914_v53, 0.0  ;;  %v13675_v20 = vpop.f32.mrb[56].mxu0 }
 0x51b   : > { %10732 = vst.msk [vmem:[%s18238_s19 + $0xd8] sm:$0xf] %vm10677_vm9, %v11808_v56  ;;  %v11809_v47 = vpack.c.bf16 %v10052_v8, %v10052_v8  ;;  %v13811_v50 = vadd.f32 %v13675_v20, %v18141_v34  ;;  %v9399_v6 = vpop.f32.mrb[57].mxu0 }
 0x51c   : > { %10730 = vst.msk [vmem:[%s18238_s19 + $0xd0] sm:$0xf] %vm10677_vm9, %v11806_v17  ;;  %v11807_v38 = vpack.c.bf16 %v10050_v31, %v10050_v31  ;;  %v13812_v27 = vadd.f32 %v9399_v6, %v18145_v5  ;;  %v13676_v11 = vpop.f32.mrb[58].mxu0 }
 0x51d   : > { %10733 = vst.msk [vmem:[%s18238_s19 + $0xdc] sm:$0xf] %vm10677_vm9, %v11809_v47  ;;  %v9919_v15 = vadd.f32 %v13811_v50, %v18215_v51  ;;  %v13813_v48 = vadd.f32 %v13676_v11, %v19664_v61  ;;  %v9402_v30 = vpop.f32.mrb[59].mxu0 }
 0x51e   : > { %10731 = vst.msk [vmem:[%s18238_s19 + $0xd4] sm:$0xf] %vm10677_vm9, %v11807_v38  ;;  %v9917_v34 = vadd.f32 %v13812_v27, %v18215_v51  ;;  %v13814_v35 = vadd.f32 %v9402_v30, %v19665_v18 }
 0x51f   : > { %v10055_v54 = vmax.f32 %v9919_v15, 0.0  ;;  %v9920_v24 = vadd.f32 %v13813_v48, %v18215_v51 }
 0x520   : > { %v10053_v5 = vmax.f32 %v9917_v34, 0.0  ;;  %v9918_v46 = vadd.f32 %v13814_v35, %v18215_v51 }
 0x521   : > { %v11812_v28 = vpack.c.bf16 %v10055_v54, %v10055_v54  ;;  %v10056_v33 = vmax.f32 %v9920_v24, 0.0  ;;  %v18583_v54 = vld [vmem:[%s18802_s2] ss:$0 sm:$0xff] }
 0x522   : > { %v11810_v29 = vpack.c.bf16 %v10053_v5, %v10053_v5  ;;  %v10054_v37 = vmax.f32 %v9918_v46, 0.0  ;;  %v13679_v21 = vpop.f32.mrb[60].mxu0 }
 0x523   : > { %10736 = vst.msk [vmem:[%s18238_s19 + $0xe8] sm:$0xf] %vm10677_vm9, %v11812_v28  ;;  %v11813_v26 = vpack.c.bf16 %v10056_v33, %v10056_v33  ;;  %v13815_v40 = vadd.f32 %v13679_v21, %v18163_v22  ;;  %v9415_v44 = vpop.f32.mrb[61].mxu0 }
 0x524   : > { %10734 = vst.msk [vmem:[%s18238_s19 + $0xe0] sm:$0xf] %vm10677_vm9, %v11810_v29  ;;  %v11811_v13 = vpack.c.bf16 %v10054_v37, %v10054_v37  ;;  %v13816_v2 = vadd.f32 %v9415_v44, %v18167_v12  ;;  %v13680_v16 = vpop.f32.mrb[62].mxu0 }
 0x525   : > { %10737 = vst.msk [vmem:[%s18238_s19 + $0xec] sm:$0xf] %vm10677_vm9, %v11813_v26  ;;  %v9923_v9 = vadd.f32 %v13815_v40, %v18215_v51  ;;  %v13817_v23 = vadd.f32 %v13680_v16, %v19666_v49  ;;  %v9418_v62 = vpop.f32.mrb[63].mxu0 }
 0x526   : > { %10735 = vst.msk [vmem:[%s18238_s19 + $0xe4] sm:$0xf] %vm10677_vm9, %v11811_v13  ;;  %v9921_v22 = vadd.f32 %v13816_v2, %v18215_v51  ;;  %v13818_v43 = vadd.f32 %v9418_v62, %v19667_v4 }
 0x527   : > { %v10059_v60 = vmax.f32 %v9923_v9, 0.0  ;;  %v9924_v42 = vadd.f32 %v13817_v23, %v18215_v51 }
 0x528   : > { %v10057_v12 = vmax.f32 %v9921_v22, 0.0  ;;  %v9922_v36 = vadd.f32 %v13818_v43, %v18215_v51 }
 0x529   : > { %v11816_v3 = vpack.c.bf16 %v10059_v60, %v10059_v60  ;;  %v10060_v45 = vmax.f32 %v9924_v42, 0.0 }
 0x52a   : > { %v11814_v39 = vpack.c.bf16 %v10057_v12, %v10057_v12  ;;  %v10058_v41 = vmax.f32 %v9922_v36, 0.0  ;;  %v13683_v32 = vpop.f32.mrb[64].mxu0 }
 0x52b   : > { %10740 = vst.msk [vmem:[%s18238_s19 + $0xf8] sm:$0xf] %vm10677_vm9, %v11816_v3  ;;  %v11817_v52 = vpack.c.bf16 %v10060_v45, %v10060_v45  ;;  %v13819_v25 = vadd.f32 %v13683_v32, %v18185_v1  ;;  %v9431_v19 = vpop.f32.mrb[65].mxu0  ;;  %v19670_v1 = vld [vmem:[#allocation195_spill] sm:$0xff] }
 0x52c   : > { %10738 = vst.msk [vmem:[%s18238_s19 + $0xf0] sm:$0xf] %vm10677_vm9, %v11814_v39  ;;  %v11815_v63 = vpack.c.bf16 %v10058_v41, %v10058_v41  ;;  %v13820_v55 = vadd.f32 %v9431_v19, %v19668_v14  ;;  %v13684_v58 = vpop.f32.mrb[66].mxu0 }
 0x52d   : > { %10741 = vst.msk [vmem:[%s18238_s19 + $0xfc] sm:$0xf] %vm10677_vm9, %v11817_v52  ;;  %v9927_v10 = vadd.f32 %v13819_v25, %v18215_v51  ;;  %v13821_v59 = vadd.f32 %v13684_v58, %v19669_v0  ;;  %v9434_v7 = vpop.f32.mrb[67].mxu0 }
 0x52e   : > { %10739 = vst.msk [vmem:[%s18238_s19 + $0xf4] sm:$0xf] %vm10677_vm9, %v11815_v63  ;;  %v9925_v57 = vadd.f32 %v13820_v55, %v18215_v51  ;;  %v13822_v53 = vadd.f32 %v9434_v7, %v19670_v1 }
 0x52f   : > { %v10063_v56 = vmax.f32 %v9927_v10, 0.0  ;;  %v9928_v8 = vadd.f32 %v13821_v59, %v18215_v51 }
 0x530   : > { %v10061_v17 = vmax.f32 %v9925_v57, 0.0  ;;  %v9926_v31 = vadd.f32 %v13822_v53, %v18215_v51  ;;  %v13135_v20 = vpop.f32.mrb[68].mxu1 }
 0x531   : > { %v11820_v47 = vpack.c.bf16 %v10063_v56, %v10063_v56  ;;  %v10064_v50 = vmax.f32 %v9928_v8, 0.0  ;;  %v5378_v6 = vpop.f32.mrb[69].mxu1 }
 0x532   : > { %v11818_v38 = vpack.c.bf16 %v10061_v17, %v10061_v17  ;;  %v10062_v27 = vmax.f32 %v9926_v31, 0.0  ;;  %v13687_v11 = vpop.f32.mrb[68].mxu0  ;;  %v13136_v15 = vpop.f32.mrb[70].mxu1 }
 0x533   : > { %10744 = vst.msk [vmem:[%s18238_s19 + $0x108] sm:$0xf] %vm10677_vm9, %v11820_v47  ;;  %v11821_v61 = vpack.c.bf16 %v10064_v50, %v10064_v50  ;;  %v13823_v48 = vadd.f32 %v13687_v11, %v13135_v20  ;;  %v9447_v30 = vpop.f32.mrb[69].mxu0  ;;  %v5381_v34 = vpop.f32.mrb[71].mxu1 }
 0x534   : > { %10742 = vst.msk [vmem:[%s18238_s19 + $0x100] sm:$0xf] %vm10677_vm9, %v11818_v38  ;;  %v11819_v18 = vpack.c.bf16 %v10062_v27, %v10062_v27  ;;  %v13824_v51 = vadd.f32 %v9447_v30, %v5378_v6  ;;  %v13688_v35 = vpop.f32.mrb[70].mxu0 }
 0x535   : > { %10745 = vst.msk [vmem:[%s18238_s19 + $0x10c] sm:$0xf] %vm10677_vm9, %v11821_v61  ;;  %v9931_v24 = vadd.f32 %v18583_v54, %v13823_v48  ;;  %v13825_v5 = vadd.f32 %v13688_v35, %v13136_v15  ;;  %v9450_v46 = vpop.f32.mrb[71].mxu0 }
 0x536   : > { %10743 = vst.msk [vmem:[%s18238_s19 + $0x104] sm:$0xf] %vm10677_vm9, %v11819_v18  ;;  %v9929_v28 = vadd.f32 %v18583_v54, %v13824_v51  ;;  %v13826_v33 = vadd.f32 %v9450_v46, %v5381_v34 }
 0x537   : > { %v10067_v29 = vmax.f32 %v9931_v24, 0.0  ;;  %v9932_v37 = vadd.f32 %v18583_v54, %v13825_v5 }
 0x538   : > { %v10065_v21 = vmax.f32 %v9929_v28, 0.0  ;;  %v9930_v26 = vadd.f32 %v18583_v54, %v13826_v33  ;;  %v13139_v40 = vpop.f32.mrb[72].mxu1 }
 0x539   : > { %v11824_v44 = vpack.c.bf16 %v10067_v29, %v10067_v29  ;;  %v10068_v13 = vmax.f32 %v9932_v37, 0.0  ;;  %v5394_v2 = vpop.f32.mrb[73].mxu1 }
 0x53a   : > { %v11822_v16 = vpack.c.bf16 %v10065_v21, %v10065_v21  ;;  %v10066_v9 = vmax.f32 %v9930_v26, 0.0  ;;  %v13691_v49 = vpop.f32.mrb[72].mxu0  ;;  %v13140_v23 = vpop.f32.mrb[74].mxu1 }
 0x53b   : > { %10748 = vst.msk [vmem:[%s18238_s19 + $0x118] sm:$0xf] %vm10677_vm9, %v11824_v44  ;;  %v11825_v62 = vpack.c.bf16 %v10068_v13, %v10068_v13  ;;  %v13827_v22 = vadd.f32 %v13691_v49, %v13139_v40  ;;  %v9463_v4 = vpop.f32.mrb[73].mxu0  ;;  %v5397_v43 = vpop.f32.mrb[75].mxu1 }
 0x53c   : > { %10746 = vst.msk [vmem:[%s18238_s19 + $0x110] sm:$0xf] %vm10677_vm9, %v11822_v16  ;;  %v11823_v60 = vpack.c.bf16 %v10066_v9, %v10066_v9  ;;  %v13828_v42 = vadd.f32 %v9463_v4, %v5394_v2  ;;  %v13692_v12 = vpop.f32.mrb[74].mxu0 }
 0x53d   : > { %10749 = vst.msk [vmem:[%s18238_s19 + $0x11c] sm:$0xf] %vm10677_vm9, %v11825_v62  ;;  %v9935_v36 = vadd.f32 %v18583_v54, %v13827_v22  ;;  %v13829_v3 = vadd.f32 %v13692_v12, %v13140_v23  ;;  %v9466_v45 = vpop.f32.mrb[75].mxu0 }
 0x53e   : > { %10747 = vst.msk [vmem:[%s18238_s19 + $0x114] sm:$0xf] %vm10677_vm9, %v11823_v60  ;;  %v9933_v39 = vadd.f32 %v18583_v54, %v13828_v42  ;;  %v13830_v41 = vadd.f32 %v9466_v45, %v5397_v43 }
 0x53f   : > { %v10071_v32 = vmax.f32 %v9935_v36, 0.0  ;;  %v9936_v52 = vadd.f32 %v18583_v54, %v13829_v3 }
 0x540   : > { %v10069_v25 = vmax.f32 %v9933_v39, 0.0  ;;  %v9934_v19 = vadd.f32 %v18583_v54, %v13830_v41  ;;  %v13143_v63 = vpop.f32.mrb[76].mxu1 }
 0x541   : > { %v11828_v14 = vpack.c.bf16 %v10071_v32, %v10071_v32  ;;  %v10072_v55 = vmax.f32 %v9936_v52, 0.0  ;;  %v5410_v58 = vpop.f32.mrb[77].mxu1 }
 0x542   : > { %v11826_v10 = vpack.c.bf16 %v10069_v25, %v10069_v25  ;;  %v10070_v0 = vmax.f32 %v9934_v19, 0.0  ;;  %v13695_v59 = vpop.f32.mrb[76].mxu0  ;;  %v13144_v7 = vpop.f32.mrb[78].mxu1 }
 0x543   : > { %10752 = vst.msk [vmem:[%s18238_s19 + $0x128] sm:$0xf] %vm10677_vm9, %v11828_v14  ;;  %v11829_v57 = vpack.c.bf16 %v10072_v55, %v10072_v55  ;;  %v13831_v1 = vadd.f32 %v13695_v59, %v13143_v63  ;;  %v9479_v53 = vpop.f32.mrb[77].mxu0  ;;  %v5413_v56 = vpop.f32.mrb[79].mxu1 }
 0x544   : > { %10750 = vst.msk [vmem:[%s18238_s19 + $0x120] sm:$0xf] %vm10677_vm9, %v11826_v10  ;;  %v11827_v8 = vpack.c.bf16 %v10070_v0, %v10070_v0  ;;  %v13832_v17 = vadd.f32 %v9479_v53, %v5410_v58  ;;  %v13696_v31 = vpop.f32.mrb[78].mxu0 }
 0x545   : > { %10753 = vst.msk [vmem:[%s18238_s19 + $0x12c] sm:$0xf] %vm10677_vm9, %v11829_v57  ;;  %v9939_v20 = vadd.f32 %v18583_v54, %v13831_v1  ;;  %v13833_v47 = vadd.f32 %v13696_v31, %v13144_v7  ;;  %v9482_v50 = vpop.f32.mrb[79].mxu0 }
 0x546   : > { %10751 = vst.msk [vmem:[%s18238_s19 + $0x124] sm:$0xf] %vm10677_vm9, %v11827_v8  ;;  %v9937_v6 = vadd.f32 %v18583_v54, %v13832_v17  ;;  %v13834_v38 = vadd.f32 %v9482_v50, %v5413_v56 }
 0x547   : > { %v10075_v27 = vmax.f32 %v9939_v20, 0.0  ;;  %v9940_v11 = vadd.f32 %v18583_v54, %v13833_v47 }
 0x548   : > { %v10073_v15 = vmax.f32 %v9937_v6, 0.0  ;;  %v9938_v61 = vadd.f32 %v18583_v54, %v13834_v38  ;;  %v13147_v48 = vpop.f32.mrb[80].mxu1 }
 0x549   : > { %v11832_v30 = vpack.c.bf16 %v10075_v27, %v10075_v27  ;;  %v10076_v34 = vmax.f32 %v9940_v11, 0.0  ;;  %v5426_v18 = vpop.f32.mrb[81].mxu1 }
 0x54a   : > { %v11830_v51 = vpack.c.bf16 %v10073_v15, %v10073_v15  ;;  %v10074_v35 = vmax.f32 %v9938_v61, 0.0  ;;  %v13699_v24 = vpop.f32.mrb[80].mxu0  ;;  %v13148_v5 = vpop.f32.mrb[82].mxu1 }
 0x54b   : > { %10756 = vst.msk [vmem:[%s18238_s19 + $0x138] sm:$0xf] %vm10677_vm9, %v11832_v30  ;;  %v11833_v46 = vpack.c.bf16 %v10076_v34, %v10076_v34  ;;  %v13835_v28 = vadd.f32 %v13699_v24, %v13147_v48  ;;  %v9495_v33 = vpop.f32.mrb[81].mxu0  ;;  %v5429_v29 = vpop.f32.mrb[83].mxu1 }
 0x54c   : > { %10754 = vst.msk [vmem:[%s18238_s19 + $0x130] sm:$0xf] %vm10677_vm9, %v11830_v51  ;;  %v11831_v37 = vpack.c.bf16 %v10074_v35, %v10074_v35  ;;  %v13836_v21 = vadd.f32 %v9495_v33, %v5426_v18  ;;  %v13700_v26 = vpop.f32.mrb[82].mxu0 }
 0x54d   : > { %10757 = vst.msk [vmem:[%s18238_s19 + $0x13c] sm:$0xf] %vm10677_vm9, %v11833_v46  ;;  %v9943_v40 = vadd.f32 %v18583_v54, %v13835_v28  ;;  %v13837_v44 = vadd.f32 %v13700_v26, %v13148_v5  ;;  %v9498_v13 = vpop.f32.mrb[83].mxu0 }
 0x54e   : > { %10755 = vst.msk [vmem:[%s18238_s19 + $0x134] sm:$0xf] %vm10677_vm9, %v11831_v37  ;;  %v9941_v2 = vadd.f32 %v18583_v54, %v13836_v21  ;;  %v13838_v16 = vadd.f32 %v9498_v13, %v5429_v29 }
 0x54f   : > { %v10079_v9 = vmax.f32 %v9943_v40, 0.0  ;;  %v9944_v49 = vadd.f32 %v18583_v54, %v13837_v44 }
 0x550   : > { %v10077_v23 = vmax.f32 %v9941_v2, 0.0  ;;  %v9942_v62 = vadd.f32 %v18583_v54, %v13838_v16  ;;  %v13151_v22 = vpop.f32.mrb[84].mxu1 }
 0x551   : > { %v11836_v4 = vpack.c.bf16 %v10079_v9, %v10079_v9  ;;  %v10080_v43 = vmax.f32 %v9944_v49, 0.0  ;;  %v5442_v60 = vpop.f32.mrb[85].mxu1 }
 0x552   : > { %v11834_v42 = vpack.c.bf16 %v10077_v23, %v10077_v23  ;;  %v10078_v12 = vmax.f32 %v9942_v62, 0.0  ;;  %v13703_v36 = vpop.f32.mrb[84].mxu0  ;;  %v13152_v3 = vpop.f32.mrb[86].mxu1 }
 0x553   : > { %10760 = vst.msk [vmem:[%s18238_s19 + $0x148] sm:$0xf] %vm10677_vm9, %v11836_v4  ;;  %v11837_v45 = vpack.c.bf16 %v10080_v43, %v10080_v43  ;;  %v13839_v39 = vadd.f32 %v13703_v36, %v13151_v22  ;;  %v9511_v41 = vpop.f32.mrb[85].mxu0  ;;  %v5445_v32 = vpop.f32.mrb[87].mxu1 }
 0x554   : > { %10758 = vst.msk [vmem:[%s18238_s19 + $0x140] sm:$0xf] %vm10677_vm9, %v11834_v42  ;;  %v11835_v52 = vpack.c.bf16 %v10078_v12, %v10078_v12  ;;  %v13840_v25 = vadd.f32 %v9511_v41, %v5442_v60  ;;  %v13704_v19 = vpop.f32.mrb[86].mxu0 }
 0x555   : > { %10761 = vst.msk [vmem:[%s18238_s19 + $0x14c] sm:$0xf] %vm10677_vm9, %v11837_v45  ;;  %v9947_v63 = vadd.f32 %v18583_v54, %v13839_v39  ;;  %v13841_v14 = vadd.f32 %v13704_v19, %v13152_v3  ;;  %v9514_v55 = vpop.f32.mrb[87].mxu0 }
 0x556   : > { %10759 = vst.msk [vmem:[%s18238_s19 + $0x144] sm:$0xf] %vm10677_vm9, %v11835_v52  ;;  %v9945_v58 = vadd.f32 %v18583_v54, %v13840_v25  ;;  %v13842_v10 = vadd.f32 %v9514_v55, %v5445_v32 }
 0x557   : > { %v10083_v0 = vmax.f32 %v9947_v63, 0.0  ;;  %v9948_v59 = vadd.f32 %v18583_v54, %v13841_v14 }
 0x558   : > { %v10081_v7 = vmax.f32 %v9945_v58, 0.0  ;;  %v9946_v57 = vadd.f32 %v18583_v54, %v13842_v10  ;;  %v13155_v1 = vpop.f32.mrb[88].mxu1 }
 0x559   : > { %v11840_v53 = vpack.c.bf16 %v10083_v0, %v10083_v0  ;;  %v10084_v56 = vmax.f32 %v9948_v59, 0.0  ;;  %v5458_v8 = vpop.f32.mrb[89].mxu1 }
 0x55a   : > { %v11838_v17 = vpack.c.bf16 %v10081_v7, %v10081_v7  ;;  %v10082_v31 = vmax.f32 %v9946_v57, 0.0  ;;  %v13707_v20 = vpop.f32.mrb[88].mxu0  ;;  %v13156_v47 = vpop.f32.mrb[90].mxu1 }
 0x55b   : > { %10764 = vst.msk [vmem:[%s18238_s19 + $0x158] sm:$0xf] %vm10677_vm9, %v11840_v53  ;;  %v11841_v50 = vpack.c.bf16 %v10084_v56, %v10084_v56  ;;  %v13843_v6 = vadd.f32 %v13707_v20, %v13155_v1  ;;  %v9527_v38 = vpop.f32.mrb[89].mxu0  ;;  %v5461_v27 = vpop.f32.mrb[91].mxu1 }
 0x55c   : > { %10762 = vst.msk [vmem:[%s18238_s19 + $0x150] sm:$0xf] %vm10677_vm9, %v11838_v17  ;;  %v11839_v11 = vpack.c.bf16 %v10082_v31, %v10082_v31  ;;  %v13844_v15 = vadd.f32 %v9527_v38, %v5458_v8  ;;  %v13708_v61 = vpop.f32.mrb[90].mxu0 }
 0x55d   : > { %10765 = vst.msk [vmem:[%s18238_s19 + $0x15c] sm:$0xf] %vm10677_vm9, %v11841_v50  ;;  %v9951_v48 = vadd.f32 %v18583_v54, %v13843_v6  ;;  %v13845_v30 = vadd.f32 %v13708_v61, %v13156_v47  ;;  %v9530_v34 = vpop.f32.mrb[91].mxu0 }
 0x55e   : > { %10763 = vst.msk [vmem:[%s18238_s19 + $0x154] sm:$0xf] %vm10677_vm9, %v11839_v11  ;;  %v9949_v18 = vadd.f32 %v18583_v54, %v13844_v15  ;;  %v13846_v51 = vadd.f32 %v9530_v34, %v5461_v27 }
 0x55f   : > { %v10087_v35 = vmax.f32 %v9951_v48, 0.0  ;;  %v9952_v24 = vadd.f32 %v18583_v54, %v13845_v30 }
 0x560   : > { %v10085_v5 = vmax.f32 %v9949_v18, 0.0  ;;  %v9950_v46 = vadd.f32 %v18583_v54, %v13846_v51  ;;  %v13159_v28 = vpop.f32.mrb[92].mxu1 }
 0x561   : > { %v11844_v33 = vpack.c.bf16 %v10087_v35, %v10087_v35  ;;  %v10088_v29 = vmax.f32 %v9952_v24, 0.0  ;;  %v5474_v37 = vpop.f32.mrb[93].mxu1 }
 0x562   : > { %v11842_v21 = vpack.c.bf16 %v10085_v5, %v10085_v5  ;;  %v10086_v26 = vmax.f32 %v9950_v46, 0.0  ;;  %v13711_v40 = vpop.f32.mrb[92].mxu0  ;;  %v13160_v44 = vpop.f32.mrb[94].mxu1 }
 0x563   : > { %10768 = vst.msk [vmem:[%s18238_s19 + $0x168] sm:$0xf] %vm10677_vm9, %v11844_v33  ;;  %v11845_v13 = vpack.c.bf16 %v10088_v29, %v10088_v29  ;;  %v13847_v2 = vadd.f32 %v13711_v40, %v13159_v28  ;;  %v9543_v16 = vpop.f32.mrb[93].mxu0  ;;  %v5477_v9 = vpop.f32.mrb[95].mxu1 }
 0x564   : > { %10766 = vst.msk [vmem:[%s18238_s19 + $0x160] sm:$0xf] %vm10677_vm9, %v11842_v21  ;;  %v11843_v49 = vpack.c.bf16 %v10086_v26, %v10086_v26  ;;  %v13848_v23 = vadd.f32 %v9543_v16, %v5474_v37  ;;  %v13712_v62 = vpop.f32.mrb[94].mxu0 }
 0x565   : > { %10769 = vst.msk [vmem:[%s18238_s19 + $0x16c] sm:$0xf] %vm10677_vm9, %v11845_v13  ;;  %v9955_v22 = vadd.f32 %v18583_v54, %v13847_v2  ;;  %v13849_v4 = vadd.f32 %v13712_v62, %v13160_v44  ;;  %v9546_v43 = vpop.f32.mrb[95].mxu0 }
 0x566   : > { %10767 = vst.msk [vmem:[%s18238_s19 + $0x164] sm:$0xf] %vm10677_vm9, %v11843_v49  ;;  %v9953_v60 = vadd.f32 %v18583_v54, %v13848_v23  ;;  %v13850_v42 = vadd.f32 %v9546_v43, %v5477_v9 }
 0x567   : > { %v10091_v12 = vmax.f32 %v9955_v22, 0.0  ;;  %v9956_v36 = vadd.f32 %v18583_v54, %v13849_v4 }
 0x568   : > { %v10089_v3 = vmax.f32 %v9953_v60, 0.0  ;;  %v9954_v45 = vadd.f32 %v18583_v54, %v13850_v42  ;;  %v13163_v39 = vpop.f32.mrb[96].mxu1 }
 0x569   : > { %v11848_v41 = vpack.c.bf16 %v10091_v12, %v10091_v12  ;;  %v10092_v32 = vmax.f32 %v9956_v36, 0.0  ;;  %v5490_v52 = vpop.f32.mrb[97].mxu1 }
 0x56a   : > { %v11846_v25 = vpack.c.bf16 %v10089_v3, %v10089_v3  ;;  %v10090_v19 = vmax.f32 %v9954_v45, 0.0  ;;  %v13715_v63 = vpop.f32.mrb[96].mxu0  ;;  %v13164_v14 = vpop.f32.mrb[98].mxu1 }
 0x56b   : > { %10772 = vst.msk [vmem:[%s18238_s19 + $0x178] sm:$0xf] %vm10677_vm9, %v11848_v41  ;;  %v11849_v55 = vpack.c.bf16 %v10092_v32, %v10092_v32  ;;  %v13851_v58 = vadd.f32 %v13715_v63, %v13163_v39  ;;  %v9559_v10 = vpop.f32.mrb[97].mxu0  ;;  %v5493_v0 = vpop.f32.mrb[99].mxu1 }
 0x56c   : > { %10770 = vst.msk [vmem:[%s18238_s19 + $0x170] sm:$0xf] %vm10677_vm9, %v11846_v25  ;;  %v11847_v59 = vpack.c.bf16 %v10090_v19, %v10090_v19  ;;  %v13852_v7 = vadd.f32 %v9559_v10, %v5490_v52  ;;  %v13716_v57 = vpop.f32.mrb[98].mxu0 }
 0x56d   : > { %10773 = vst.msk [vmem:[%s18238_s19 + $0x17c] sm:$0xf] %vm10677_vm9, %v11849_v55  ;;  %v9959_v1 = vadd.f32 %v18583_v54, %v13851_v58  ;;  %v13853_v53 = vadd.f32 %v13716_v57, %v13164_v14  ;;  %v9562_v56 = vpop.f32.mrb[99].mxu0 }
 0x56e   : > { %10771 = vst.msk [vmem:[%s18238_s19 + $0x174] sm:$0xf] %vm10677_vm9, %v11847_v59  ;;  %v9957_v8 = vadd.f32 %v18583_v54, %v13852_v7  ;;  %v13854_v17 = vadd.f32 %v9562_v56, %v5493_v0 }
 0x56f   : > { %v10095_v31 = vmax.f32 %v9959_v1, 0.0  ;;  %v9960_v20 = vadd.f32 %v18583_v54, %v13853_v53 }
 0x570   : > { %v10093_v47 = vmax.f32 %v9957_v8, 0.0  ;;  %v9958_v50 = vadd.f32 %v18583_v54, %v13854_v17  ;;  %v13167_v6 = vpop.f32.mrb[100].mxu1 }
 0x571   : > { %v11852_v38 = vpack.c.bf16 %v10095_v31, %v10095_v31  ;;  %v10096_v27 = vmax.f32 %v9960_v20, 0.0  ;;  %v5506_v11 = vpop.f32.mrb[101].mxu1 }
 0x572   : > { %v11850_v15 = vpack.c.bf16 %v10093_v47, %v10093_v47  ;;  %v10094_v61 = vmax.f32 %v9958_v50, 0.0  ;;  %v13719_v48 = vpop.f32.mrb[100].mxu0  ;;  %v13168_v30 = vpop.f32.mrb[102].mxu1 }
 0x573   : > { %10776 = vst.msk [vmem:[%s18238_s19 + $0x188] sm:$0xf] %vm10677_vm9, %v11852_v38  ;;  %v11853_v34 = vpack.c.bf16 %v10096_v27, %v10096_v27  ;;  %v13855_v18 = vadd.f32 %v13719_v48, %v13167_v6  ;;  %v9575_v51 = vpop.f32.mrb[101].mxu0  ;;  %v5509_v35 = vpop.f32.mrb[103].mxu1 }
 0x574   : > { %10774 = vst.msk [vmem:[%s18238_s19 + $0x180] sm:$0xf] %vm10677_vm9, %v11850_v15  ;;  %v11851_v24 = vpack.c.bf16 %v10094_v61, %v10094_v61  ;;  %v13856_v5 = vadd.f32 %v9575_v51, %v5506_v11  ;;  %v13720_v46 = vpop.f32.mrb[102].mxu0 }
 0x575   : > { %10777 = vst.msk [vmem:[%s18238_s19 + $0x18c] sm:$0xf] %vm10677_vm9, %v11853_v34  ;;  %v9963_v28 = vadd.f32 %v18583_v54, %v13855_v18  ;;  %v13857_v33 = vadd.f32 %v13720_v46, %v13168_v30  ;;  %v9578_v29 = vpop.f32.mrb[103].mxu0 }
 0x576   : > { %10775 = vst.msk [vmem:[%s18238_s19 + $0x184] sm:$0xf] %vm10677_vm9, %v11851_v24  ;;  %v9961_v37 = vadd.f32 %v18583_v54, %v13856_v5  ;;  %v13858_v21 = vadd.f32 %v9578_v29, %v5509_v35 }
 0x577   : > { %v10099_v26 = vmax.f32 %v9963_v28, 0.0  ;;  %v9964_v40 = vadd.f32 %v18583_v54, %v13857_v33 }
 0x578   : > { %v10097_v44 = vmax.f32 %v9961_v37, 0.0  ;;  %v9962_v13 = vadd.f32 %v18583_v54, %v13858_v21  ;;  %v13171_v2 = vpop.f32.mrb[104].mxu1 }
 0x579   : > { %v11856_v16 = vpack.c.bf16 %v10099_v26, %v10099_v26  ;;  %v10100_v9 = vmax.f32 %v9964_v40, 0.0  ;;  %v5522_v49 = vpop.f32.mrb[105].mxu1 }
 0x57a   : > { %v11854_v23 = vpack.c.bf16 %v10097_v44, %v10097_v44  ;;  %v10098_v62 = vmax.f32 %v9962_v13, 0.0  ;;  %v13723_v22 = vpop.f32.mrb[104].mxu0  ;;  %v13172_v4 = vpop.f32.mrb[106].mxu1 }
 0x57b   : > { %10780 = vst.msk [vmem:[%s18238_s19 + $0x198] sm:$0xf] %vm10677_vm9, %v11856_v16  ;;  %v11857_v43 = vpack.c.bf16 %v10100_v9, %v10100_v9  ;;  %v13859_v60 = vadd.f32 %v13723_v22, %v13171_v2  ;;  %v9591_v42 = vpop.f32.mrb[105].mxu0  ;;  %v5525_v12 = vpop.f32.mrb[107].mxu1 }
 0x57c   : > { %10778 = vst.msk [vmem:[%s18238_s19 + $0x190] sm:$0xf] %vm10677_vm9, %v11854_v23  ;;  %v11855_v36 = vpack.c.bf16 %v10098_v62, %v10098_v62  ;;  %v13860_v3 = vadd.f32 %v9591_v42, %v5522_v49  ;;  %v13724_v45 = vpop.f32.mrb[106].mxu0 }
 0x57d   : > { %10781 = vst.msk [vmem:[%s18238_s19 + $0x19c] sm:$0xf] %vm10677_vm9, %v11857_v43  ;;  %v9967_v39 = vadd.f32 %v18583_v54, %v13859_v60  ;;  %v13861_v41 = vadd.f32 %v13724_v45, %v13172_v4  ;;  %v9594_v32 = vpop.f32.mrb[107].mxu0 }
 0x57e   : > { %10779 = vst.msk [vmem:[%s18238_s19 + $0x194] sm:$0xf] %vm10677_vm9, %v11855_v36  ;;  %v9965_v52 = vadd.f32 %v18583_v54, %v13860_v3  ;;  %v13862_v25 = vadd.f32 %v9594_v32, %v5525_v12 }
 0x57f   : > { %v10103_v19 = vmax.f32 %v9967_v39, 0.0  ;;  %v9968_v63 = vadd.f32 %v18583_v54, %v13861_v41 }
 0x580   : > { %v10101_v14 = vmax.f32 %v9965_v52, 0.0  ;;  %v9966_v55 = vadd.f32 %v18583_v54, %v13862_v25  ;;  %v13175_v58 = vpop.f32.mrb[108].mxu1 }
 0x581   : > { %v11860_v10 = vpack.c.bf16 %v10103_v19, %v10103_v19  ;;  %v10104_v0 = vmax.f32 %v9968_v63, 0.0  ;;  %v5538_v59 = vpop.f32.mrb[109].mxu1 }
 0x582   : > { %v11858_v7 = vpack.c.bf16 %v10101_v14, %v10101_v14  ;;  %v10102_v57 = vmax.f32 %v9966_v55, 0.0  ;;  %v13727_v1 = vpop.f32.mrb[108].mxu0  ;;  %v13176_v53 = vpop.f32.mrb[110].mxu1 }
 0x583   : > { %10784 = vst.msk [vmem:[%s18238_s19 + $0x1a8] sm:$0xf] %vm10677_vm9, %v11860_v10  ;;  %v11861_v56 = vpack.c.bf16 %v10104_v0, %v10104_v0  ;;  %v13863_v8 = vadd.f32 %v13727_v1, %v13175_v58  ;;  %v9607_v17 = vpop.f32.mrb[109].mxu0  ;;  %v5541_v31 = vpop.f32.mrb[111].mxu1 }
 0x584   : > { %10782 = vst.msk [vmem:[%s18238_s19 + $0x1a0] sm:$0xf] %vm10677_vm9, %v11858_v7  ;;  %v11859_v20 = vpack.c.bf16 %v10102_v57, %v10102_v57  ;;  %v13864_v47 = vadd.f32 %v9607_v17, %v5538_v59  ;;  %v13728_v50 = vpop.f32.mrb[110].mxu0 }
 0x585   : > { %10785 = vst.msk [vmem:[%s18238_s19 + $0x1ac] sm:$0xf] %vm10677_vm9, %v11861_v56  ;;  %v9971_v6 = vadd.f32 %v18583_v54, %v13863_v8  ;;  %v13865_v38 = vadd.f32 %v13728_v50, %v13176_v53  ;;  %v9610_v27 = vpop.f32.mrb[111].mxu0 }
 0x586   : > { %10783 = vst.msk [vmem:[%s18238_s19 + $0x1a4] sm:$0xf] %vm10677_vm9, %v11859_v20  ;;  %v9969_v11 = vadd.f32 %v18583_v54, %v13864_v47  ;;  %v13866_v15 = vadd.f32 %v9610_v27, %v5541_v31 }
 0x587   : > { %v10107_v61 = vmax.f32 %v9971_v6, 0.0  ;;  %v9972_v48 = vadd.f32 %v18583_v54, %v13865_v38 }
 0x588   : > { %v10105_v30 = vmax.f32 %v9969_v11, 0.0  ;;  %v9970_v34 = vadd.f32 %v18583_v54, %v13866_v15  ;;  %v13179_v18 = vpop.f32.mrb[112].mxu1 }
 0x589   : > { %v11864_v51 = vpack.c.bf16 %v10107_v61, %v10107_v61  ;;  %v10108_v35 = vmax.f32 %v9972_v48, 0.0  ;;  %v5554_v24 = vpop.f32.mrb[113].mxu1 }
 0x58a   : > { %v11862_v5 = vpack.c.bf16 %v10105_v30, %v10105_v30  ;;  %v10106_v46 = vmax.f32 %v9970_v34, 0.0  ;;  %v13731_v28 = vpop.f32.mrb[112].mxu0  ;;  %v13180_v33 = vpop.f32.mrb[114].mxu1 }
 0x58b   : > { %10788 = vst.msk [vmem:[%s18238_s19 + $0x1b8] sm:$0xf] %vm10677_vm9, %v11864_v51  ;;  %v11865_v29 = vpack.c.bf16 %v10108_v35, %v10108_v35  ;;  %v13867_v37 = vadd.f32 %v13731_v28, %v13179_v18  ;;  %v9623_v21 = vpop.f32.mrb[113].mxu0  ;;  %v5557_v26 = vpop.f32.mrb[115].mxu1 }
 0x58c   : > { %10786 = vst.msk [vmem:[%s18238_s19 + $0x1b0] sm:$0xf] %vm10677_vm9, %v11862_v5  ;;  %v11863_v40 = vpack.c.bf16 %v10106_v46, %v10106_v46  ;;  %v13868_v44 = vadd.f32 %v9623_v21, %v5554_v24  ;;  %v13732_v13 = vpop.f32.mrb[114].mxu0 }
 0x58d   : > { %10789 = vst.msk [vmem:[%s18238_s19 + $0x1bc] sm:$0xf] %vm10677_vm9, %v11865_v29  ;;  %v9975_v2 = vadd.f32 %v18583_v54, %v13867_v37  ;;  %v13869_v16 = vadd.f32 %v13732_v13, %v13180_v33  ;;  %v9626_v9 = vpop.f32.mrb[115].mxu0 }
 0x58e   : > { %10787 = vst.msk [vmem:[%s18238_s19 + $0x1b4] sm:$0xf] %vm10677_vm9, %v11863_v40  ;;  %v9973_v49 = vadd.f32 %v18583_v54, %v13868_v44  ;;  %v13870_v23 = vadd.f32 %v9626_v9, %v5557_v26 }
 0x58f   : > { %v10111_v62 = vmax.f32 %v9975_v2, 0.0  ;;  %v9976_v22 = vadd.f32 %v18583_v54, %v13869_v16 }
 0x590   : > { %v10109_v4 = vmax.f32 %v9973_v49, 0.0  ;;  %v9974_v43 = vadd.f32 %v18583_v54, %v13870_v23  ;;  %v13183_v60 = vpop.f32.mrb[116].mxu1 }
 0x591   : > { %v11868_v42 = vpack.c.bf16 %v10111_v62, %v10111_v62  ;;  %v10112_v12 = vmax.f32 %v9976_v22, 0.0  ;;  %v5570_v36 = vpop.f32.mrb[117].mxu1 }
 0x592   : > { %v11866_v3 = vpack.c.bf16 %v10109_v4, %v10109_v4  ;;  %v10110_v45 = vmax.f32 %v9974_v43, 0.0  ;;  %v13735_v39 = vpop.f32.mrb[116].mxu0  ;;  %v13184_v41 = vpop.f32.mrb[118].mxu1 }
 0x593   : > { %10792 = vst.msk [vmem:[%s18238_s19 + $0x1c8] sm:$0xf] %vm10677_vm9, %v11868_v42  ;;  %v11869_v32 = vpack.c.bf16 %v10112_v12, %v10112_v12  ;;  %v13871_v52 = vadd.f32 %v13735_v39, %v13183_v60  ;;  %v9639_v25 = vpop.f32.mrb[117].mxu0  ;;  %v5573_v19 = vpop.f32.mrb[119].mxu1 }
 0x594   : > { %10790 = vst.msk [vmem:[%s18238_s19 + $0x1c0] sm:$0xf] %vm10677_vm9, %v11866_v3  ;;  %v11867_v63 = vpack.c.bf16 %v10110_v45, %v10110_v45  ;;  %v13872_v14 = vadd.f32 %v9639_v25, %v5570_v36  ;;  %v13736_v55 = vpop.f32.mrb[118].mxu0 }
 0x595   : > { %10793 = vst.msk [vmem:[%s18238_s19 + $0x1cc] sm:$0xf] %vm10677_vm9, %v11869_v32  ;;  %v9979_v58 = vadd.f32 %v18583_v54, %v13871_v52  ;;  %v13873_v10 = vadd.f32 %v13736_v55, %v13184_v41  ;;  %v9642_v0 = vpop.f32.mrb[119].mxu0 }
 0x596   : > { %10791 = vst.msk [vmem:[%s18238_s19 + $0x1c4] sm:$0xf] %vm10677_vm9, %v11867_v63  ;;  %v9977_v59 = vadd.f32 %v18583_v54, %v13872_v14  ;;  %v13874_v7 = vadd.f32 %v9642_v0, %v5573_v19 }
 0x597   : > { %v10115_v57 = vmax.f32 %v9979_v58, 0.0  ;;  %v9980_v1 = vadd.f32 %v18583_v54, %v13873_v10 }
 0x598   : > { %v10113_v53 = vmax.f32 %v9977_v59, 0.0  ;;  %v9978_v56 = vadd.f32 %v18583_v54, %v13874_v7  ;;  %v13187_v8 = vpop.f32.mrb[120].mxu1 }
 0x599   : > { %v11872_v17 = vpack.c.bf16 %v10115_v57, %v10115_v57  ;;  %v10116_v31 = vmax.f32 %v9980_v1, 0.0  ;;  %v5586_v20 = vpop.f32.mrb[121].mxu1 }
 0x59a   : > { %v11870_v47 = vpack.c.bf16 %v10113_v53, %v10113_v53  ;;  %v10114_v50 = vmax.f32 %v9978_v56, 0.0  ;;  %v13739_v6 = vpop.f32.mrb[120].mxu0  ;;  %v13188_v38 = vpop.f32.mrb[122].mxu1 }
 0x59b   : > { %10796 = vst.msk [vmem:[%s18238_s19 + $0x1d8] sm:$0xf] %vm10677_vm9, %v11872_v17  ;;  %v11873_v27 = vpack.c.bf16 %v10116_v31, %v10116_v31  ;;  %v13875_v11 = vadd.f32 %v13739_v6, %v13187_v8  ;;  %v9655_v15 = vpop.f32.mrb[121].mxu0  ;;  %v5589_v61 = vpop.f32.mrb[123].mxu1 }
 0x59c   : > { %10794 = vst.msk [vmem:[%s18238_s19 + $0x1d0] sm:$0xf] %vm10677_vm9, %v11870_v47  ;;  %v11871_v48 = vpack.c.bf16 %v10114_v50, %v10114_v50  ;;  %v13876_v30 = vadd.f32 %v9655_v15, %v5586_v20  ;;  %v13740_v34 = vpop.f32.mrb[122].mxu0 }
 0x59d   : > { %10797 = vst.msk [vmem:[%s18238_s19 + $0x1dc] sm:$0xf] %vm10677_vm9, %v11873_v27  ;;  %v9983_v18 = vadd.f32 %v18583_v54, %v13875_v11  ;;  %v13877_v51 = vadd.f32 %v13740_v34, %v13188_v38  ;;  %v9658_v35 = vpop.f32.mrb[123].mxu0 }
 0x59e   : > { %10795 = vst.msk [vmem:[%s18238_s19 + $0x1d4] sm:$0xf] %vm10677_vm9, %v11871_v48  ;;  %v9981_v24 = vadd.f32 %v18583_v54, %v13876_v30  ;;  %v13878_v5 = vadd.f32 %v9658_v35, %v5589_v61 }
 0x59f   : > { %v10119_v46 = vmax.f32 %v9983_v18, 0.0  ;;  %v9984_v28 = vadd.f32 %v18583_v54, %v13877_v51 }
 0x5a0   : > { %v10117_v33 = vmax.f32 %v9981_v24, 0.0  ;;  %v9982_v29 = vadd.f32 %v18583_v54, %v13878_v5  ;;  %v13191_v37 = vpop.f32.mrb[124].mxu1 }
 0x5a1   : > { %v11876_v21 = vpack.c.bf16 %v10119_v46, %v10119_v46  ;;  %v10120_v26 = vmax.f32 %v9984_v28, 0.0  ;;  %v5602_v40 = vpop.f32.mrb[125].mxu1 }
 0x5a2   : > { %v11874_v44 = vpack.c.bf16 %v10117_v33, %v10117_v33  ;;  %v10118_v13 = vmax.f32 %v9982_v29, 0.0  ;;  %v13743_v2 = vpop.f32.mrb[124].mxu0  ;;  %v13192_v16 = vpop.f32.mrb[126].mxu1 }
 0x5a3   : > { %10800 = vst.msk [vmem:[%s18238_s19 + $0x1e8] sm:$0xf] %vm10677_vm9, %v11876_v21  ;;  %v11877_v9 = vpack.c.bf16 %v10120_v26, %v10120_v26  ;;  %v13879_v49 = vadd.f32 %v13743_v2, %v13191_v37  ;;  %v9671_v23 = vpop.f32.mrb[125].mxu0  ;;  %v5605_v62 = vpop.f32.mrb[127].mxu1 }
 0x5a4   : > { %10798 = vst.msk [vmem:[%s18238_s19 + $0x1e0] sm:$0xf] %vm10677_vm9, %v11874_v44  ;;  %v11875_v22 = vpack.c.bf16 %v10118_v13, %v10118_v13  ;;  %v13880_v4 = vadd.f32 %v9671_v23, %v5602_v40  ;;  %v13744_v43 = vpop.f32.mrb[126].mxu0 }
 0x5a5   : > { %10801 = vst.msk [vmem:[%s18238_s19 + $0x1ec] sm:$0xf] %vm10677_vm9, %v11877_v9  ;;  %v9987_v60 = vadd.f32 %v18583_v54, %v13879_v49  ;;  %v13881_v42 = vadd.f32 %v13744_v43, %v13192_v16  ;;  %v9674_v12 = vpop.f32.mrb[127].mxu0 }
 0x5a6   : > { %10799 = vst.msk [vmem:[%s18238_s19 + $0x1e4] sm:$0xf] %vm10677_vm9, %v11875_v22  ;;  %v9985_v36 = vadd.f32 %v18583_v54, %v13880_v4  ;;  %v13882_v3 = vadd.f32 %v9674_v12, %v5605_v62 }
 0x5a7   : > { %v10123_v45 = vmax.f32 %v9987_v60, 0.0  ;;  %v9988_v39 = vadd.f32 %v18583_v54, %v13881_v42 }
 0x5a8   : > { %v10121_v41 = vmax.f32 %v9985_v36, 0.0  ;;  %v9986_v32 = vadd.f32 %v18583_v54, %v13882_v3  ;;  %v13195_v52 = vpop.f32.mrb[128].mxu1 }
 0x5a9   : > { %v11880_v25 = vpack.c.bf16 %v10123_v45, %v10123_v45  ;;  %v10124_v19 = vmax.f32 %v9988_v39, 0.0  ;;  %v5618_v63 = vpop.f32.mrb[129].mxu1 }
 0x5aa   : > { %v11878_v14 = vpack.c.bf16 %v10121_v41, %v10121_v41  ;;  %v10122_v55 = vmax.f32 %v9986_v32, 0.0  ;;  %v13747_v58 = vpop.f32.mrb[128].mxu0  ;;  %v13196_v10 = vpop.f32.mrb[130].mxu1 }
 0x5ab   : > { %10804 = vst.msk [vmem:[%s18238_s19 + $0x1f8] sm:$0xf] %vm10677_vm9, %v11880_v25  ;;  %v11881_v0 = vpack.c.bf16 %v10124_v19, %v10124_v19  ;;  %v13883_v59 = vadd.f32 %v13747_v58, %v13195_v52  ;;  %v9687_v7 = vpop.f32.mrb[129].mxu0  ;;  %v5621_v57 = vpop.f32.mrb[131].mxu1 }
 0x5ac   : > { %10802 = vst.msk [vmem:[%s18238_s19 + $0x1f0] sm:$0xf] %vm10677_vm9, %v11878_v14  ;;  %v11879_v1 = vpack.c.bf16 %v10122_v55, %v10122_v55  ;;  %v13884_v53 = vadd.f32 %v9687_v7, %v5618_v63  ;;  %v13748_v56 = vpop.f32.mrb[130].mxu0 }
 0x5ad   : > { %10805 = vst.msk [vmem:[%s18238_s19 + $0x1fc] sm:$0xf] %vm10677_vm9, %v11881_v0  ;;  %v9991_v8 = vadd.f32 %v18583_v54, %v13883_v59  ;;  %v13885_v17 = vadd.f32 %v13748_v56, %v13196_v10  ;;  %v9690_v31 = vpop.f32.mrb[131].mxu0 }
 0x5ae   : > { %10803 = vst.msk [vmem:[%s18238_s19 + $0x1f4] sm:$0xf] %vm10677_vm9, %v11879_v1  ;;  %v9989_v20 = vadd.f32 %v18583_v54, %v13884_v53  ;;  %v13886_v47 = vadd.f32 %v9690_v31, %v5621_v57 }
 0x5af   : > { %v10127_v50 = vmax.f32 %v9991_v8, 0.0  ;;  %v9992_v6 = vadd.f32 %v18583_v54, %v13885_v17 }
 0x5b0   : > { %v10125_v38 = vmax.f32 %v9989_v20, 0.0  ;;  %v9990_v27 = vadd.f32 %v18583_v54, %v13886_v47  ;;  %v13199_v11 = vpop.f32.mrb[132].mxu1 }
 0x5b1   : > { %v11884_v15 = vpack.c.bf16 %v10127_v50, %v10127_v50  ;;  %v10128_v61 = vmax.f32 %v9992_v6, 0.0  ;;  %v5634_v48 = vpop.f32.mrb[133].mxu1 }
 0x5b2   : > { %v11882_v30 = vpack.c.bf16 %v10125_v38, %v10125_v38  ;;  %v10126_v34 = vmax.f32 %v9990_v27, 0.0  ;;  %v13751_v18 = vpop.f32.mrb[132].mxu0  ;;  %v13200_v51 = vpop.f32.mrb[134].mxu1 }
 0x5b3   : > { %10808 = vst.msk [vmem:[%s18238_s19 + $0x208] sm:$0xf] %vm10677_vm9, %v11884_v15  ;;  %v11885_v35 = vpack.c.bf16 %v10128_v61, %v10128_v61  ;;  %v13887_v24 = vadd.f32 %v13751_v18, %v13199_v11  ;;  %v9703_v5 = vpop.f32.mrb[133].mxu0  ;;  %v5637_v46 = vpop.f32.mrb[135].mxu1 }
 0x5b4   : > { %10806 = vst.msk [vmem:[%s18238_s19 + $0x200] sm:$0xf] %vm10677_vm9, %v11882_v30  ;;  %v11883_v28 = vpack.c.bf16 %v10126_v34, %v10126_v34  ;;  %v13888_v33 = vadd.f32 %v9703_v5, %v5634_v48  ;;  %v13752_v29 = vpop.f32.mrb[134].mxu0 }
 0x5b5   : > { %10809 = vst.msk [vmem:[%s18238_s19 + $0x20c] sm:$0xf] %vm10677_vm9, %v11885_v35  ;;  %v9995_v37 = vadd.f32 %v18583_v54, %v13887_v24  ;;  %v13889_v21 = vadd.f32 %v13752_v29, %v13200_v51  ;;  %v9706_v26 = vpop.f32.mrb[135].mxu0 }
 0x5b6   : > { %10807 = vst.msk [vmem:[%s18238_s19 + $0x204] sm:$0xf] %vm10677_vm9, %v11883_v28  ;;  %v9993_v40 = vadd.f32 %v18583_v54, %v13888_v33  ;;  %v13890_v44 = vadd.f32 %v9706_v26, %v5637_v46 }
 0x5b7   : > { %v10131_v13 = vmax.f32 %v9995_v37, 0.0  ;;  %v9996_v2 = vadd.f32 %v18583_v54, %v13889_v21 }
 0x5b8   : > { %v10129_v16 = vmax.f32 %v9993_v40, 0.0  ;;  %v9994_v9 = vadd.f32 %v18583_v54, %v13890_v44 }
 0x5b9   : > { %v11888_v49 = vpack.c.bf16 %v10131_v13, %v10131_v13  ;;  %v10132_v23 = vmax.f32 %v9996_v2, 0.0 }
 0x5ba   : > { %v11886_v62 = vpack.c.bf16 %v10129_v16, %v10129_v16  ;;  %v10130_v22 = vmax.f32 %v9994_v9, 0.0 }
 0x5bb   : > { %10812 = vst.msk [vmem:[%s18238_s19 + $0x218] sm:$0xf] %vm10677_vm9, %v11888_v49  ;;  %v11889_v4 = vpack.c.bf16 %v10132_v23, %v10132_v23 }
 0x5bc   : > { %10810 = vst.msk [vmem:[%s18238_s19 + $0x210] sm:$0xf] %vm10677_vm9, %v11886_v62  ;;  %v11887_v43 = vpack.c.bf16 %v10130_v22, %v10130_v22 }
 0x5bd   : > { %10813 = vst.msk [vmem:[%s18238_s19 + $0x21c] sm:$0xf] %vm10677_vm9, %v11889_v4 }
 0x5be   : > { %10811 = vst.msk [vmem:[%s18238_s19 + $0x214] sm:$0xf] %vm10677_vm9, %v11887_v43 }
 0x5bf PF: > { %s13_s14 = sadd.s32 1, %s15114_s14   ;;  %s19671_s12 = smov %s15110_s13 }
 0x5c0   : > { %p10_p5 = scmp.ge.s32.totalorder %s13_s14, 4   ;;  %s19672_s13 = smov %s19674_s15 }
 0x5c2   :  { %12 = sbr.rel (!%p10_p5) target bundleno = 2 (0x2), region = 68 }

</bundles_post_ra>
